<compile_context>
chip_gen: v5e
topology: v5e:2x2
jax: 0.10.0
libtpu: 0.0.40
codegen_flags: <defaults>
</compile_context>

<pallas_src>
import functools

import numpy as np

import jax
import jax.numpy as jnp
from jax.experimental import pallas as pl
from jax.experimental.pallas import tpu as pltpu


_VMEM_BUDGET = 8 * 1024 * 1024   # conservative per-block budget; fits v5e/v6e/v7x


def _largest_divisor_chunk(n, per_item_bytes, budget=_VMEM_BUDGET, cap=8):
    """Largest divisor of n not exceeding the VMEM budget (and a small unroll cap)."""
    max_items = max(1, min(cap, budget // max(per_item_bytes, 1)))
    for c in range(min(n, max_items), 0, -1):
        if n % c == 0:
            return c
    return 1


def _tap_shifts_masks(H, W, K):
    """Static roll shifts and validity masks for a KxK 'same' conv on flattened H*W."""
    P = (K - 1) // 2
    HW = H * W
    yy = np.arange(H)[:, None]
    xx = np.arange(W)[None, :]
    shifts, masks, needs_mask = [], [], []
    for ky in range(K):
        for kx in range(K):
            dy, dx = ky - P, kx - P
            off = dy * W + dx
            shifts.append(int((-off) % HW))
            m = ((yy + dy >= 0) & (yy + dy < H) & (xx + dx >= 0) & (xx + dx < W))
            masks.append(m.reshape(-1))
            needs_mask.append(not bool(m.all()))
    return shifts, np.stack(masks).astype(np.float32), needs_mask


def _im2col(x, mask_val, shifts, needs_mask):
    """x: (..., C, HW) value -> patch matrix (..., K*K*C, HW) via roll + mask."""
    taps = []
    for k, s in enumerate(shifts):
        t = x if s == 0 else pltpu.roll(x, s, x.ndim - 1)
        if needs_mask[k]:
            t = t * mask_val[k]
        taps.append(t)
    if len(taps) == 1:
        return taps[0]
    return jnp.concatenate(taps, axis=x.ndim - 2)


# ----------------------------------------------------------------------------
# Pallas kernels
# ----------------------------------------------------------------------------
@functools.lru_cache(maxsize=None)
def _conv2d_call(N, H, W, Cin, Cout, K, nb):
    """KxK 'same' conv as im2col + MXU matmul; nb images per grid step, lane dim = H*W."""
    HW = H * W
    KK = K * K
    shifts, _, needs_mask = _tap_shifts_masks(H, W, K)

    def kernel(mask_ref, x_ref, w_ref, b_ref, o_ref):
        x = x_ref[...]                                     # (nb, Cin, HW)
        mask = mask_ref[...]                               # (KK, HW)
        patches = _im2col(x, mask, shifts, needs_mask)     # (nb, KK*Cin, HW)
        w = w_ref[...]                                     # (Cout, KK*Cin)
        b = b_ref[...]                                     # (Cout, 1)
        for i in range(nb):
            acc = jnp.dot(w, patches[i], preferred_element_type=jnp.float32)
            o_ref[i] = acc + b

    return pl.pallas_call(
        kernel,
        out_shape=jax.ShapeDtypeStruct((N, Cout, HW), jnp.float32),
        grid=(N // nb,),
        in_specs=[
            pl.BlockSpec((KK, HW), lambda n: (0, 0)),
            pl.BlockSpec((nb, Cin, HW), lambda n: (n, 0, 0)),
            pl.BlockSpec((Cout, KK * Cin), lambda n: (0, 0)),
            pl.BlockSpec((Cout, 1), lambda n: (0, 0)),
        ],
        out_specs=pl.BlockSpec((nb, Cout, HW), lambda n: (n, 0, 0)),
        compiler_params=pltpu.CompilerParams(dimension_semantics=("parallel",)),
    )


def conv2d(x, w, b):
    """x: (N, Cin, H, W); w: (K, K, Cin, Cout); b: (Cout,) -> (N, Cout, H, W)."""
    N, Cin, H, W = x.shape
    K = w.shape[0]
    Cout = w.shape[-1]
    HW = H * W
    per_item = 4 * HW * (Cin + K * K * Cin + Cout) * 2
    nb = _largest_divisor_chunk(N, per_item)
    w2 = jnp.transpose(w.reshape(K * K * Cin, Cout))       # (Cout, K*K*Cin)
    mask = jnp.asarray(_tap_shifts_masks(H, W, K)[1])
    out = _conv2d_call(N, H, W, Cin, Cout, K, nb)(
        mask, x.reshape(N, Cin, HW), w2, b[:, None])
    return out.reshape(N, Cout, H, W)


@functools.lru_cache(maxsize=None)
def _bn_act_call(N, C, HW, nb, with_residual):
    """Fused y = lrelu_0.2(x * scale + shift [+ identity]); lane dim = H*W."""

    def kernel(x_ref, s_ref, t_ref, *rest):
        if with_residual:
            id_ref, o_ref = rest
            y = x_ref[...] * s_ref[...] + t_ref[...] + id_ref[...]
        else:
            (o_ref,) = rest
            y = x_ref[...] * s_ref[...] + t_ref[...]
        o_ref[...] = jnp.where(y >= 0.0, y, 0.2 * y)

    in_specs = [
        pl.BlockSpec((nb, C, HW), lambda n: (n, 0, 0)),
        pl.BlockSpec((C, 1), lambda n: (0, 0)),
        pl.BlockSpec((C, 1), lambda n: (0, 0)),
    ]
    if with_residual:
        in_specs.append(pl.BlockSpec((nb, C, HW), lambda n: (n, 0, 0)))
    return pl.pallas_call(
        kernel,
        out_shape=jax.ShapeDtypeStruct((N, C, HW), jnp.float32),
        grid=(N // nb,),
        in_specs=in_specs,
        out_specs=pl.BlockSpec((nb, C, HW), lambda n: (n, 0, 0)),
        compiler_params=pltpu.CompilerParams(dimension_semantics=("parallel",)),
    )


@functools.lru_cache(maxsize=None)
def _bi_clstm_call(T, B, F, H, W):
    """Fused bidirectional ConvLSTM recurrence.

    grid = (direction=2 [parallel], time=T [arbitrary]); h, c live in VMEM scratch
    across time steps; the x-gates (Wx*x + b) are precomputed and streamed in.
    """
    HW = H * W
    shifts, _, needs_mask = _tap_shifts_masks(H, W, 3)

    def kernel(mask_ref, xg_ref, wh_ref, hs_ref, c_out_ref, h_scr, c_scr):
        t = pl.program_id(1)

        @pl.when(t == 0)
        def _init():
            h_scr[...] = jnp.zeros_like(h_scr)
            c_scr[...] = jnp.zeros_like(c_scr)

        mask = mask_ref[...]                                   # (9, HW)
        wh = wh_ref[0]                                         # (4F, 9F)
        h_prev = h_scr[...]                                    # (B, F, HW)
        patches = _im2col(h_prev, mask, shifts, needs_mask)    # (B, 9F, HW)
        xg = xg_ref[0, 0]                                      # (B, 4F, HW)
        for b in range(B):
            g = xg[b] + jnp.dot(wh, patches[b], preferred_element_type=jnp.float32)
            i_g = jax.nn.sigmoid(g[0 * F:1 * F])
            f_g = jax.nn.sigmoid(g[1 * F:2 * F])
            g_g = jnp.tanh(g[2 * F:3 * F])
            o_g = jax.nn.sigmoid(g[3 * F:4 * F])
            c_new = f_g * c_scr[b] + i_g * g_g
            h_new = o_g * jnp.tanh(c_new)
            c_scr[b] = c_new
            h_scr[b] = h_new
            hs_ref[0, 0, b] = h_new
            c_out_ref[0, b] = c_new

    def time_idx(d, t):
        # forward direction scans t = 0..T-1; backward scans t = T-1..0
        return d * (T - 1 - t) + (1 - d) * t

    return pl.pallas_call(
        kernel,
        out_shape=(
            jax.ShapeDtypeStruct((2, T, B, F, HW), jnp.float32),   # hidden states
            jax.ShapeDtypeStruct((2, B, F, HW), jnp.float32),      # final cell states
        ),
        grid=(2, T),
        in_specs=[
            pl.BlockSpec((9, HW), lambda d, t: (0, 0)),
            pl.BlockSpec((1, 1, B, 4 * F, HW),
                         lambda d, t: (d, time_idx(d, t), 0, 0, 0)),
            pl.BlockSpec((1, 4 * F, 9 * F), lambda d, t: (d, 0, 0)),
        ],
        out_specs=(
            pl.BlockSpec((1, 1, B, F, HW),
                         lambda d, t: (d, time_idx(d, t), 0, 0, 0)),
            pl.BlockSpec((1, B, F, HW), lambda d, t: (d, 0, 0, 0)),
        ),
        scratch_shapes=[
            pltpu.VMEM((B, F, HW), jnp.float32),   # h
            pltpu.VMEM((B, F, HW), jnp.float32),   # c
        ],
        compiler_params=pltpu.CompilerParams(
            dimension_semantics=("parallel", "arbitrary")),
    )


# ----------------------------------------------------------------------------
# Module forward (JAX glue around the Pallas kernels)
# ----------------------------------------------------------------------------
def res_conv(x, p):
    """resConv forward (training-mode BatchNorm). x: (N, Cin, H, W)."""
    convs = p["convs"]
    num_layer = len(convs)
    N, _, H, W = x.shape
    HW = H * W
    out = x
    scale = shift = None
    for i, cp in enumerate(convs):
        out = conv2d(out, cp["w"], cp["b"])
        mean = jnp.mean(out, axis=(0, 2, 3))
        var = jnp.var(out, axis=(0, 2, 3))          # biased, like PyTorch training BN
        scale = cp["gamma"] / jnp.sqrt(var + 1e-5)
        shift = cp["beta"] - mean * scale
        C = out.shape[1]
        if i < num_layer - 1:
            nb = _largest_divisor_chunk(N, 4 * C * HW * 3)
            out = _bn_act_call(N, C, HW, nb, False)(
                out.reshape(N, C, HW), scale[:, None], shift[:, None]
            ).reshape(N, C, H, W)
    identity = x
    if "w11" in p:                                  # channel-change 1x1 conv on residual
        identity = conv2d(x, p["w11"], p["b11"])
    C = out.shape[1]
    nb = _largest_divisor_chunk(N, 4 * C * HW * 4)
    out = _bn_act_call(N, C, HW, nb, True)(
        out.reshape(N, C, HW), scale[:, None], shift[:, None],
        identity.reshape(N, C, HW)).reshape(N, C, H, W)
    return out


def bi_convlstm(x_seq, p, out_steps=None):
    """Bidirectional ConvLSTM. x_seq: (B, T, C, H, W) -> ((B, T', outC, H, W), state)."""
    B, T, C, H, W = x_seq.shape
    F = p["b_f"].shape[0] // 4
    HW = H * W
    flat = x_seq.reshape(B * T, C, H, W)

    # Input-to-gate conv (Wx * x + b) for all frames / both directions in one pass.
    xg_f = conv2d(flat, p["wx_f"], p["b_f"])        # (B*T, 4F, H, W)
    xg_b = conv2d(flat, p["wx_b"], p["b_b"])

    def to_tb(a):
        return jnp.moveaxis(a.reshape(B, T, 4 * F, HW), 0, 1)   # (T, B, 4F, HW)

    xg = jnp.stack([to_tb(xg_f), to_tb(xg_b)], axis=0)          # (2, T, B, 4F, HW)

    def wh_mat(w):                                   # (3,3,F,4F) -> (4F, 9F)
        return jnp.transpose(w.reshape(9 * F, 4 * F))

    wh = jnp.stack([wh_mat(p["wh_f"]), wh_mat(p["wh_b"])], axis=0)  # (2, 4F, 9F)
    mask = jnp.asarray(_tap_shifts_masks(H, W, 3)[1])

    hs, c_last = _bi_clstm_call(T, B, F, H, W)(mask, xg, wh)
    # hs[d, s] = hidden state of direction d at actual time step s.

    if out_steps is None:
        out_steps = T
    hs_img = hs.reshape(2, T, B, F, H, W)
    cat = jnp.concatenate([hs_img[0], hs_img[1]], axis=2)       # (T, B, 2F, H, W)
    cat = cat[T - out_steps:]
    out = conv2d(cat.reshape(out_steps * B, 2 * F, H, W), p["w_out"], p["b_out"])
    outC = out.shape[1]
    out = jnp.moveaxis(out.reshape(out_steps, B, outC, H, W), 0, 1)  # (B, T', outC, H, W)

    state_f = (hs_img[0, T - 1], c_last[0].reshape(B, F, H, W))
    state_b = (hs_img[1, 0], c_last[1].reshape(B, F, H, W))
    return out, (state_f, state_b)


def multi_block_lstm_forward(params, x, m_length):
    """multi_block_LSTM.forward. x: (B, T, C, H, W) NCHW, exactly like PyTorch.
    (The PyTorch `device` argument has no JAX equivalent and is ignored.)"""
    num_block = len(params)
    cur = x.astype(jnp.float32)
    state = None
    for li, blk in enumerate(params):
        B, T, C, H, W = cur.shape
        flat = cur.reshape(B * T, C, H, W)            # voltoslices
        conv_out = res_conv(flat, blk["resconv"])
        seq = conv_out.reshape(B, T, conv_out.shape[1], H, W)   # slicetovol
        out_steps = None if li < num_block - 1 else m_length    # last block is many-to-one
        cur, state = bi_convlstm(seq, blk["clstm"], out_steps=out_steps)
    return cur, state


# ----------------------------------------------------------------------------
# Deterministic parameter construction (synthetic weights, same shapes as __init__)
# ----------------------------------------------------------------------------
def init_params(key, in_channels, out_channels, num_filter, num_block, num_conv_layer):
    if not isinstance(num_filter, (list, tuple)):
        num_filter = [num_filter] * num_block
    params = []
    cur_in = in_channels
    for bi in range(num_block):
        F = num_filter[bi]
        out_c = num_filter[bi] if bi < num_block - 1 else out_channels
        keys = jax.random.split(jax.random.fold_in(key, bi), 12)
        convs = []
        cin = cur_in
        for li in range(num_conv_layer):
            k1, k2 = jax.random.split(jax.random.fold_in(keys[0], li))
            convs.append(dict(
                w=0.1 * jax.random.normal(k1, (3, 3, cin, F), jnp.float32),
                b=0.01 * jax.random.normal(k2, (F,), jnp.float32),
                gamma=jnp.ones((F,), jnp.float32),
                beta=jnp.zeros((F,), jnp.float32)))
            cin = F
        resconv = dict(convs=convs)
        if cur_in != F:
            resconv["w11"] = 0.1 * jax.random.normal(keys[1], (1, 1, cur_in, F), jnp.float32)
            resconv["b11"] = 0.01 * jax.random.normal(keys[2], (F,), jnp.float32)
        clstm = dict(
            wx_f=0.1 * jax.random.normal(keys[3], (3, 3, F, 4 * F), jnp.float32),
            wh_f=0.1 * jax.random.normal(keys[4], (3, 3, F, 4 * F), jnp.float32),
            b_f=jnp.zeros((4 * F,), jnp.float32),
            wx_b=0.1 * jax.random.normal(keys[5], (3, 3, F, 4 * F), jnp.float32),
            wh_b=0.1 * jax.random.normal(keys[6], (3, 3, F, 4 * F), jnp.float32),
            b_b=jnp.zeros((4 * F,), jnp.float32),
            w_out=0.1 * jax.random.normal(keys[7], (3, 3, 2 * F, out_c), jnp.float32),
            b_out=jnp.zeros((out_c,), jnp.float32))
        params.append(dict(resconv=resconv, clstm=clstm))
        cur_in = F
    return params


if __name__ == "__main__":
    B, T, C_IN, H, W = 1, 3, 2, 16, 16
    NUM_FILTER, NUM_BLOCK = 4, 2
    OUT_CHANNELS, M_LENGTH, NUM_CONV_LAYER = 1, 2, 1

    key = jax.random.PRNGKey(0)
    key, xk = jax.random.split(key)
    x = jax.random.normal(xk, (B, T, C_IN, H, W), jnp.float32)
    params = init_params(key, C_IN, OUT_CHANNELS, NUM_FILTER, NUM_BLOCK, NUM_CONV_LAYER)

    fwd = jax.jit(functools.partial(multi_block_lstm_forward, m_length=M_LENGTH))
    out, state = fwd(params, x)
    jax.block_until_ready((out, state))

    assert out.shape == (B, M_LENGTH, OUT_CHANNELS, H, W)
    print("KERNEL_OK")
</pallas_src>

<mosaic_0001>
module attributes {stable_mosaic.version = 11 : i64} {
  func.func @kernel(%arg0: i32, %arg1: memref<1x256xf32, #tpu.memory_space<vmem>>, %arg2: memref<3x2x256xf32, #tpu.memory_space<vmem>>, %arg3: memref<4x2xf32, #tpu.memory_space<vmem>>, %arg4: memref<4x1xf32, #tpu.memory_space<vmem>>, %arg5: memref<3x4x256xf32, #tpu.memory_space<vmem>>) attributes {dimension_semantics = [#tpu.dimension_semantics<parallel>], iteration_bounds = array<i64: 1>, scalar_prefetch = 0 : i64, scratch_operands = 0 : i64, tpu.core_type = #tpu.core_type<tc>, window_params = [{pipeline_mode = #tpu.pipeline_mode<synchronous>, transform_indices = @transform_0, window_bounds = array<i64: 1, 256>}, {transform_indices = @transform_1, window_bounds = array<i64: 3, 2, 256>}, {pipeline_mode = #tpu.pipeline_mode<synchronous>, transform_indices = @transform_2, window_bounds = array<i64: 4, 2>}, {pipeline_mode = #tpu.pipeline_mode<synchronous>, transform_indices = @transform_3, window_bounds = array<i64: 4, 1>}, {transform_indices = @transform_4, window_bounds = array<i64: 3, 4, 256>}]} {
    %c0 = arith.constant 0 : index
    %c0_0 = arith.constant 0 : index
    %c0_1 = arith.constant 0 : index
    %0 = vector.load %arg2[%c0, %c0_0, %c0_1] : memref<3x2x256xf32, #tpu.memory_space<vmem>>, vector<3x2x256xf32>
    %c0_2 = arith.constant 0 : index
    %c0_3 = arith.constant 0 : index
    %1 = vector.load %arg3[%c0_2, %c0_3] : memref<4x2xf32, #tpu.memory_space<vmem>>, vector<4x2xf32>
    %c0_4 = arith.constant 0 : index
    %c0_5 = arith.constant 0 : index
    %2 = vector.load %arg4[%c0_4, %c0_5] : memref<4x1xf32, #tpu.memory_space<vmem>>, vector<4x1xf32>
    %3 = vector.extract_strided_slice %0 {offsets = [0, 0, 0], sizes = [1, 2, 256], strides = [1, 1, 1]} : vector<3x2x256xf32> to vector<1x2x256xf32>
    %4 = vector.shape_cast %3 : vector<1x2x256xf32> to vector<2x256xf32>
    %cst = arith.constant dense<0.000000e+00> : vector<4x256xf32>
    %5 = tpu.matmul %1, %4, %cst {dimension_numbers = #tpu.dot_dimension_numbers<[1], [0], [0], [1], [0, 0, 1, 1], [], []>} : vector<4x2xf32>, vector<2x256xf32>, vector<4x256xf32> -> vector<4x256xf32>
    %6 = vector.broadcast %2 : vector<4x1xf32> to vector<4x256xf32>
    %7 = arith.addf %5, %6 : vector<4x256xf32>
    %c0_6 = arith.constant 0 : index
    %c0_7 = arith.constant 0 : index
    %c0_8 = arith.constant 0 : index
    %8 = vector.load %arg5[%c0_6, %c0_7, %c0_8] : memref<3x4x256xf32, #tpu.memory_space<vmem>>, vector<1x4x256xf32>
    %9 = vector.shape_cast %8 : vector<1x4x256xf32> to vector<4x256xf32>
    %10 = vector.shape_cast %7 : vector<4x256xf32> to vector<1x4x256xf32>
    tpu.vector_store %arg5[%c0_6, %c0_7, %c0_8], %10 {strides = array<i32>} : memref<3x4x256xf32, #tpu.memory_space<vmem>>, vector<1x4x256xf32>,
    %11 = vector.extract_strided_slice %0 {offsets = [1, 0, 0], sizes = [1, 2, 256], strides = [1, 1, 1]} : vector<3x2x256xf32> to vector<1x2x256xf32>
    %12 = vector.shape_cast %11 : vector<1x2x256xf32> to vector<2x256xf32>
    %cst_9 = arith.constant dense<0.000000e+00> : vector<4x256xf32>
    %13 = tpu.matmul %1, %12, %cst_9 {dimension_numbers = #tpu.dot_dimension_numbers<[1], [0], [0], [1], [0, 0, 1, 1], [], []>} : vector<4x2xf32>, vector<2x256xf32>, vector<4x256xf32> -> vector<4x256xf32>
    %14 = vector.broadcast %2 : vector<4x1xf32> to vector<4x256xf32>
    %15 = arith.addf %13, %14 : vector<4x256xf32>
    %c1 = arith.constant 1 : index
    %c0_10 = arith.constant 0 : index
    %c0_11 = arith.constant 0 : index
    %16 = vector.load %arg5[%c1, %c0_10, %c0_11] : memref<3x4x256xf32, #tpu.memory_space<vmem>>, vector<1x4x256xf32>
    %17 = vector.shape_cast %16 : vector<1x4x256xf32> to vector<4x256xf32>
    %18 = vector.shape_cast %15 : vector<4x256xf32> to vector<1x4x256xf32>
    tpu.vector_store %arg5[%c1, %c0_10, %c0_11], %18 {strides = array<i32>} : memref<3x4x256xf32, #tpu.memory_space<vmem>>, vector<1x4x256xf32>,
    %19 = vector.extract_strided_slice %0 {offsets = [2, 0, 0], sizes = [1, 2, 256], strides = [1, 1, 1]} : vector<3x2x256xf32> to vector<1x2x256xf32>
    %20 = vector.shape_cast %19 : vector<1x2x256xf32> to vector<2x256xf32>
    %cst_12 = arith.constant dense<0.000000e+00> : vector<4x256xf32>
    %21 = tpu.matmul %1, %20, %cst_12 {dimension_numbers = #tpu.dot_dimension_numbers<[1], [0], [0], [1], [0, 0, 1, 1], [], []>} : vector<4x2xf32>, vector<2x256xf32>, vector<4x256xf32> -> vector<4x256xf32>
    %22 = vector.broadcast %2 : vector<4x1xf32> to vector<4x256xf32>
    %23 = arith.addf %21, %22 : vector<4x256xf32>
    %c2 = arith.constant 2 : index
    %c0_13 = arith.constant 0 : index
    %c0_14 = arith.constant 0 : index
    %24 = vector.load %arg5[%c2, %c0_13, %c0_14] : memref<3x4x256xf32, #tpu.memory_space<vmem>>, vector<1x4x256xf32>
    %25 = vector.shape_cast %24 : vector<1x4x256xf32> to vector<4x256xf32>
    %26 = vector.shape_cast %23 : vector<4x256xf32> to vector<1x4x256xf32>
    tpu.vector_store %arg5[%c2, %c0_13, %c0_14], %26 {strides = array<i32>} : memref<3x4x256xf32, #tpu.memory_space<vmem>>, vector<1x4x256xf32>,
    return
  }
  func.func @transform_0(%arg0: i32) -> (i32, i32) {
    %c0_i32 = arith.constant 0 : i32
    %c0_i32_0 = arith.constant 0 : i32
    %c0_i32_1 = arith.constant 0 : i32
    return %c0_i32, %c0_i32_0 : i32, i32
  }
  func.func @transform_1(%arg0: i32) -> (i32, i32, i32) {
    %c0_i32 = arith.constant 0 : i32
    %c0_i32_0 = arith.constant 0 : i32
    %c0_i32_1 = arith.constant 0 : i32
    return %arg0, %c0_i32, %c0_i32_0 : i32, i32, i32
  }
  func.func @transform_2(%arg0: i32) -> (i32, i32) {
    %c0_i32 = arith.constant 0 : i32
    %c0_i32_0 = arith.constant 0 : i32
    %c0_i32_1 = arith.constant 0 : i32
    return %c0_i32, %c0_i32_0 : i32, i32
  }
  func.func @transform_3(%arg0: i32) -> (i32, i32) {
    %c0_i32 = arith.constant 0 : i32
    %c0_i32_0 = arith.constant 0 : i32
    %c0_i32_1 = arith.constant 0 : i32
    return %c0_i32, %c0_i32_0 : i32, i32
  }
  func.func @transform_4(%arg0: i32) -> (i32, i32, i32) {
    %c0_i32 = arith.constant 0 : i32
    %c0_i32_0 = arith.constant 0 : i32
    %c0_i32_1 = arith.constant 0 : i32
    return %arg0, %c0_i32, %c0_i32_0 : i32, i32, i32
  }
}

module attributes {stable_mosaic.version = 11 : i64} {
  func.func @kernel(%arg0: i32, %arg1: memref<9x256xf32, #tpu.memory_space<vmem>>, %arg2: memref<3x2x256xf32, #tpu.memory_space<vmem>>, %arg3: memref<4x18xf32, #tpu.memory_space<vmem>>, %arg4: memref<4x1xf32, #tpu.memory_space<vmem>>, %arg5: memref<3x4x256xf32, #tpu.memory_space<vmem>>) attributes {dimension_semantics = [#tpu.dimension_semantics<parallel>], iteration_bounds = array<i64: 1>, scalar_prefetch = 0 : i64, scratch_operands = 0 : i64, tpu.core_type = #tpu.core_type<tc>, window_params = [{pipeline_mode = #tpu.pipeline_mode<synchronous>, transform_indices = @transform_0, window_bounds = array<i64: 9, 256>}, {transform_indices = @transform_1, window_bounds = array<i64: 3, 2, 256>}, {pipeline_mode = #tpu.pipeline_mode<synchronous>, transform_indices = @transform_2, window_bounds = array<i64: 4, 18>}, {pipeline_mode = #tpu.pipeline_mode<synchronous>, transform_indices = @transform_3, window_bounds = array<i64: 4, 1>}, {transform_indices = @transform_4, window_bounds = array<i64: 3, 4, 256>}]} {
    %c0 = arith.constant 0 : index
    %c0_0 = arith.constant 0 : index
    %c0_1 = arith.constant 0 : index
    %0 = vector.load %arg2[%c0, %c0_0, %c0_1] : memref<3x2x256xf32, #tpu.memory_space<vmem>>, vector<3x2x256xf32>
    %c0_2 = arith.constant 0 : index
    %c0_3 = arith.constant 0 : index
    %1 = vector.load %arg1[%c0_2, %c0_3] : memref<9x256xf32, #tpu.memory_space<vmem>>, vector<9x256xf32>
    %c17_i32 = arith.constant 17 : i32
    %2 = tpu.dynamic_rotate %0 by %c17_i32 dim 2 : vector<3x2x256xf32>, i32 -> vector<3x2x256xf32>
    %3 = vector.extract_strided_slice %1 {offsets = [0, 0], sizes = [1, 256], strides = [1, 1]} : vector<9x256xf32> to vector<1x256xf32>
    %4 = vector.shape_cast %3 : vector<1x256xf32> to vector<256xf32>
    %5 = vector.shape_cast %4 : vector<256xf32> to vector<1x1x256xf32>
    %6 = vector.broadcast %5 : vector<1x1x256xf32> to vector<3x2x256xf32>
    %7 = arith.mulf %2, %6 : vector<3x2x256xf32>
    %c16_i32 = arith.constant 16 : i32
    %8 = tpu.dynamic_rotate %0 by %c16_i32 dim 2 : vector<3x2x256xf32>, i32 -> vector<3x2x256xf32>
    %9 = vector.extract_strided_slice %1 {offsets = [1, 0], sizes = [1, 256], strides = [1, 1]} : vector<9x256xf32> to vector<1x256xf32>
    %10 = vector.shape_cast %9 : vector<1x256xf32> to vector<256xf32>
    %11 = vector.shape_cast %10 : vector<256xf32> to vector<1x1x256xf32>
    %12 = vector.broadcast %11 : vector<1x1x256xf32> to vector<3x2x256xf32>
    %13 = arith.mulf %8, %12 : vector<3x2x256xf32>
    %c15_i32 = arith.constant 15 : i32
    %14 = tpu.dynamic_rotate %0 by %c15_i32 dim 2 : vector<3x2x256xf32>, i32 -> vector<3x2x256xf32>
    %15 = vector.extract_strided_slice %1 {offsets = [2, 0], sizes = [1, 256], strides = [1, 1]} : vector<9x256xf32> to vector<1x256xf32>
    %16 = vector.shape_cast %15 : vector<1x256xf32> to vector<256xf32>
    %17 = vector.shape_cast %16 : vector<256xf32> to vector<1x1x256xf32>
    %18 = vector.broadcast %17 : vector<1x1x256xf32> to vector<3x2x256xf32>
    %19 = arith.mulf %14, %18 : vector<3x2x256xf32>
    %c1_i32 = arith.constant 1 : i32
    %20 = tpu.dynamic_rotate %0 by %c1_i32 dim 2 : vector<3x2x256xf32>, i32 -> vector<3x2x256xf32>
    %21 = vector.extract_strided_slice %1 {offsets = [3, 0], sizes = [1, 256], strides = [1, 1]} : vector<9x256xf32> to vector<1x256xf32>
    %22 = vector.shape_cast %21 : vector<1x256xf32> to vector<256xf32>
    %23 = vector.shape_cast %22 : vector<256xf32> to vector<1x1x256xf32>
    %24 = vector.broadcast %23 : vector<1x1x256xf32> to vector<3x2x256xf32>
    %25 = arith.mulf %20, %24 : vector<3x2x256xf32>
    %c255_i32 = arith.constant 255 : i32
    %26 = tpu.dynamic_rotate %0 by %c255_i32 dim 2 : vector<3x2x256xf32>, i32 -> vector<3x2x256xf32>
    %27 = vector.extract_strided_slice %1 {offsets = [5, 0], sizes = [1, 256], strides = [1, 1]} : vector<9x256xf32> to vector<1x256xf32>
    %28 = vector.shape_cast %27 : vector<1x256xf32> to vector<256xf32>
    %29 = vector.shape_cast %28 : vector<256xf32> to vector<1x1x256xf32>
    %30 = vector.broadcast %29 : vector<1x1x256xf32> to vector<3x2x256xf32>
    %31 = arith.mulf %26, %30 : vector<3x2x256xf32>
    %c241_i32 = arith.constant 241 : i32
    %32 = tpu.dynamic_rotate %0 by %c241_i32 dim 2 : vector<3x2x256xf32>, i32 -> vector<3x2x256xf32>
    %33 = vector.extract_strided_slice %1 {offsets = [6, 0], sizes = [1, 256], strides = [1, 1]} : vector<9x256xf32> to vector<1x256xf32>
    %34 = vector.shape_cast %33 : vector<1x256xf32> to vector<256xf32>
    %35 = vector.shape_cast %34 : vector<256xf32> to vector<1x1x256xf32>
    %36 = vector.broadcast %35 : vector<1x1x256xf32> to vector<3x2x256xf32>
    %37 = arith.mulf %32, %36 : vector<3x2x256xf32>
    %c240_i32 = arith.constant 240 : i32
    %38 = tpu.dynamic_rotate %0 by %c240_i32 dim 2 : vector<3x2x256xf32>, i32 -> vector<3x2x256xf32>
    %39 = vector.extract_strided_slice %1 {offsets = [7, 0], sizes = [1, 256], strides = [1, 1]} : vector<9x256xf32> to vector<1x256xf32>
    %40 = vector.shape_cast %39 : vector<1x256xf32> to vector<256xf32>
    %41 = vector.shape_cast %40 : vector<256xf32> to vector<1x1x256xf32>
    %42 = vector.broadcast %41 : vector<1x1x256xf32> to vector<3x2x256xf32>
    %43 = arith.mulf %38, %42 : vector<3x2x256xf32>
    %c239_i32 = arith.constant 239 : i32
    %44 = tpu.dynamic_rotate %0 by %c239_i32 dim 2 : vector<3x2x256xf32>, i32 -> vector<3x2x256xf32>
    %45 = vector.extract_strided_slice %1 {offsets = [8, 0], sizes = [1, 256], strides = [1, 1]} : vector<9x256xf32> to vector<1x256xf32>
    %46 = vector.shape_cast %45 : vector<1x256xf32> to vector<256xf32>
    %47 = vector.shape_cast %46 : vector<256xf32> to vector<1x1x256xf32>
    %48 = vector.broadcast %47 : vector<1x1x256xf32> to vector<3x2x256xf32>
    %49 = arith.mulf %44, %48 : vector<3x2x256xf32>
    %50 = tpu.concatenate %7, %13, %19, %25, %0, %31, %37, %43, %49 in 1 : vector<3x2x256xf32>, vector<3x2x256xf32>, vector<3x2x256xf32>, vector<3x2x256xf32>, vector<3x2x256xf32>, vector<3x2x256xf32>, vector<3x2x256xf32>, vector<3x2x256xf32>, vector<3x2x256xf32> -> vector<3x18x256xf32>
    %c0_4 = arith.constant 0 : index
    %c0_5 = arith.constant 0 : index
    %51 = vector.load %arg3[%c0_4, %c0_5] : memref<4x18xf32, #tpu.memory_space<vmem>>, vector<4x18xf32>
    %c0_6 = arith.constant 0 : index
    %c0_7 = arith.constant 0 : index
    %52 = vector.load %arg4[%c0_6, %c0_7] : memref<4x1xf32, #tpu.memory_space<vmem>>, vector<4x1xf32>
    %53 = vector.extract_strided_slice %50 {offsets = [0, 0, 0], sizes = [1, 18, 256], strides = [1, 1, 1]} : vector<3x18x256xf32> to vector<1x18x256xf32>
    %54 = vector.shape_cast %53 : vector<1x18x256xf32> to vector<18x256xf32>
    %cst = arith.constant dense<0.000000e+00> : vector<4x256xf32>
    %55 = tpu.matmul %51, %54, %cst {dimension_numbers = #tpu.dot_dimension_numbers<[1], [0], [0], [1], [0, 0, 1, 1], [], []>} : vector<4x18xf32>, vector<18x256xf32>, vector<4x256xf32> -> vector<4x256xf32>
    %56 = vector.broadcast %52 : vector<4x1xf32> to vector<4x256xf32>
    %57 = arith.addf %55, %56 : vector<4x256xf32>
    %c0_8 = arith.constant 0 : index
    %c0_9 = arith.constant 0 : index
    %c0_10 = arith.constant 0 : index
    %58 = vector.load %arg5[%c0_8, %c0_9, %c0_10] : memref<3x4x256xf32, #tpu.memory_space<vmem>>, vector<1x4x256xf32>
    %59 = vector.shape_cast %58 : vector<1x4x256xf32> to vector<4x256xf32>
    %60 = vector.shape_cast %57 : vector<4x256xf32> to vector<1x4x256xf32>
    tpu.vector_store %arg5[%c0_8, %c0_9, %c0_10], %60 {strides = array<i32>} : memref<3x4x256xf32, #tpu.memory_space<vmem>>, vector<1x4x256xf32>,
    %61 = vector.extract_strided_slice %50 {offsets = [1, 0, 0], sizes = [1, 18, 256], strides = [1, 1, 1]} : vector<3x18x256xf32> to vector<1x18x256xf32>
    %62 = vector.shape_cast %61 : vector<1x18x256xf32> to vector<18x256xf32>
    %cst_11 = arith.constant dense<0.000000e+00> : vector<4x256xf32>
    %63 = tpu.matmul %51, %62, %cst_11 {dimension_numbers = #tpu.dot_dimension_numbers<[1], [0], [0], [1], [0, 0, 1, 1], [], []>} : vector<4x18xf32>, vector<18x256xf32>, vector<4x256xf32> -> vector<4x256xf32>
    %64 = vector.broadcast %52 : vector<4x1xf32> to vector<4x256xf32>
    %65 = arith.addf %63, %64 : vector<4x256xf32>
    %c1 = arith.constant 1 : index
    %c0_12 = arith.constant 0 : index
    %c0_13 = arith.constant 0 : index
    %66 = vector.load %arg5[%c1, %c0_12, %c0_13] : memref<3x4x256xf32, #tpu.memory_space<vmem>>, vector<1x4x256xf32>
    %67 = vector.shape_cast %66 : vector<1x4x256xf32> to vector<4x256xf32>
    %68 = vector.shape_cast %65 : vector<4x256xf32> to vector<1x4x256xf32>
    tpu.vector_store %arg5[%c1, %c0_12, %c0_13], %68 {strides = array<i32>} : memref<3x4x256xf32, #tpu.memory_space<vmem>>, vector<1x4x256xf32>,
    %69 = vector.extract_strided_slice %50 {offsets = [2, 0, 0], sizes = [1, 18, 256], strides = [1, 1, 1]} : vector<3x18x256xf32> to vector<1x18x256xf32>
    %70 = vector.shape_cast %69 : vector<1x18x256xf32> to vector<18x256xf32>
    %cst_14 = arith.constant dense<0.000000e+00> : vector<4x256xf32>
    %71 = tpu.matmul %51, %70, %cst_14 {dimension_numbers = #tpu.dot_dimension_numbers<[1], [0], [0], [1], [0, 0, 1, 1], [], []>} : vector<4x18xf32>, vector<18x256xf32>, vector<4x256xf32> -> vector<4x256xf32>
    %72 = vector.broadcast %52 : vector<4x1xf32> to vector<4x256xf32>
    %73 = arith.addf %71, %72 : vector<4x256xf32>
    %c2 = arith.constant 2 : index
    %c0_15 = arith.constant 0 : index
    %c0_16 = arith.constant 0 : index
    %74 = vector.load %arg5[%c2, %c0_15, %c0_16] : memref<3x4x256xf32, #tpu.memory_space<vmem>>, vector<1x4x256xf32>
    %75 = vector.shape_cast %74 : vector<1x4x256xf32> to vector<4x256xf32>
    %76 = vector.shape_cast %73 : vector<4x256xf32> to vector<1x4x256xf32>
    tpu.vector_store %arg5[%c2, %c0_15, %c0_16], %76 {strides = array<i32>} : memref<3x4x256xf32, #tpu.memory_space<vmem>>, vector<1x4x256xf32>,
    return
  }
  func.func @transform_0(%arg0: i32) -> (i32, i32) {
    %c0_i32 = arith.constant 0 : i32
    %c0_i32_0 = arith.constant 0 : i32
    %c0_i32_1 = arith.constant 0 : i32
    return %c0_i32, %c0_i32_0 : i32, i32
  }
  func.func @transform_1(%arg0: i32) -> (i32, i32, i32) {
    %c0_i32 = arith.constant 0 : i32
    %c0_i32_0 = arith.constant 0 : i32
    %c0_i32_1 = arith.constant 0 : i32
    return %arg0, %c0_i32, %c0_i32_0 : i32, i32, i32
  }
  func.func @transform_2(%arg0: i32) -> (i32, i32) {
    %c0_i32 = arith.constant 0 : i32
    %c0_i32_0 = arith.constant 0 : i32
    %c0_i32_1 = arith.constant 0 : i32
    return %c0_i32, %c0_i32_0 : i32, i32
  }
  func.func @transform_3(%arg0: i32) -> (i32, i32) {
    %c0_i32 = arith.constant 0 : i32
    %c0_i32_0 = arith.constant 0 : i32
    %c0_i32_1 = arith.constant 0 : i32
    return %c0_i32, %c0_i32_0 : i32, i32
  }
  func.func @transform_4(%arg0: i32) -> (i32, i32, i32) {
    %c0_i32 = arith.constant 0 : i32
    %c0_i32_0 = arith.constant 0 : i32
    %c0_i32_1 = arith.constant 0 : i32
    return %arg0, %c0_i32, %c0_i32_0 : i32, i32, i32
  }
}

module attributes {stable_mosaic.version = 11 : i64} {
  func.func @kernel(%arg0: i32, %arg1: memref<9x256xf32, #tpu.memory_space<vmem>>, %arg2: memref<3x4x256xf32, #tpu.memory_space<vmem>>, %arg3: memref<16x36xf32, #tpu.memory_space<vmem>>, %arg4: memref<16x1xf32, #tpu.memory_space<vmem>>, %arg5: memref<3x16x256xf32, #tpu.memory_space<vmem>>) attributes {dimension_semantics = [#tpu.dimension_semantics<parallel>], iteration_bounds = array<i64: 1>, scalar_prefetch = 0 : i64, scratch_operands = 0 : i64, tpu.core_type = #tpu.core_type<tc>, window_params = [{pipeline_mode = #tpu.pipeline_mode<synchronous>, transform_indices = @transform_0, window_bounds = array<i64: 9, 256>}, {transform_indices = @transform_1, window_bounds = array<i64: 3, 4, 256>}, {pipeline_mode = #tpu.pipeline_mode<synchronous>, transform_indices = @transform_2, window_bounds = array<i64: 16, 36>}, {pipeline_mode = #tpu.pipeline_mode<synchronous>, transform_indices = @transform_3, window_bounds = array<i64: 16, 1>}, {transform_indices = @transform_4, window_bounds = array<i64: 3, 16, 256>}]} {
    %c0 = arith.constant 0 : index
    %c0_0 = arith.constant 0 : index
    %c0_1 = arith.constant 0 : index
    %0 = vector.load %arg2[%c0, %c0_0, %c0_1] : memref<3x4x256xf32, #tpu.memory_space<vmem>>, vector<3x4x256xf32>
    %c0_2 = arith.constant 0 : index
    %c0_3 = arith.constant 0 : index
    %1 = vector.load %arg1[%c0_2, %c0_3] : memref<9x256xf32, #tpu.memory_space<vmem>>, vector<9x256xf32>
    %c17_i32 = arith.constant 17 : i32
    %2 = tpu.dynamic_rotate %0 by %c17_i32 dim 2 : vector<3x4x256xf32>, i32 -> vector<3x4x256xf32>
    %3 = vector.extract_strided_slice %1 {offsets = [0, 0], sizes = [1, 256], strides = [1, 1]} : vector<9x256xf32> to vector<1x256xf32>
    %4 = vector.shape_cast %3 : vector<1x256xf32> to vector<256xf32>
    %5 = vector.shape_cast %4 : vector<256xf32> to vector<1x1x256xf32>
    %6 = vector.broadcast %5 : vector<1x1x256xf32> to vector<3x4x256xf32>
    %7 = arith.mulf %2, %6 : vector<3x4x256xf32>
    %c16_i32 = arith.constant 16 : i32
    %8 = tpu.dynamic_rotate %0 by %c16_i32 dim 2 : vector<3x4x256xf32>, i32 -> vector<3x4x256xf32>
    %9 = vector.extract_strided_slice %1 {offsets = [1, 0], sizes = [1, 256], strides = [1, 1]} : vector<9x256xf32> to vector<1x256xf32>
    %10 = vector.shape_cast %9 : vector<1x256xf32> to vector<256xf32>
    %11 = vector.shape_cast %10 : vector<256xf32> to vector<1x1x256xf32>
    %12 = vector.broadcast %11 : vector<1x1x256xf32> to vector<3x4x256xf32>
    %13 = arith.mulf %8, %12 : vector<3x4x256xf32>
    %c15_i32 = arith.constant 15 : i32
    %14 = tpu.dynamic_rotate %0 by %c15_i32 dim 2 : vector<3x4x256xf32>, i32 -> vector<3x4x256xf32>
    %15 = vector.extract_strided_slice %1 {offsets = [2, 0], sizes = [1, 256], strides = [1, 1]} : vector<9x256xf32> to vector<1x256xf32>
    %16 = vector.shape_cast %15 : vector<1x256xf32> to vector<256xf32>
    %17 = vector.shape_cast %16 : vector<256xf32> to vector<1x1x256xf32>
    %18 = vector.broadcast %17 : vector<1x1x256xf32> to vector<3x4x256xf32>
    %19 = arith.mulf %14, %18 : vector<3x4x256xf32>
    %c1_i32 = arith.constant 1 : i32
    %20 = tpu.dynamic_rotate %0 by %c1_i32 dim 2 : vector<3x4x256xf32>, i32 -> vector<3x4x256xf32>
    %21 = vector.extract_strided_slice %1 {offsets = [3, 0], sizes = [1, 256], strides = [1, 1]} : vector<9x256xf32> to vector<1x256xf32>
    %22 = vector.shape_cast %21 : vector<1x256xf32> to vector<256xf32>
    %23 = vector.shape_cast %22 : vector<256xf32> to vector<1x1x256xf32>
    %24 = vector.broadcast %23 : vector<1x1x256xf32> to vector<3x4x256xf32>
    %25 = arith.mulf %20, %24 : vector<3x4x256xf32>
    %c255_i32 = arith.constant 255 : i32
    %26 = tpu.dynamic_rotate %0 by %c255_i32 dim 2 : vector<3x4x256xf32>, i32 -> vector<3x4x256xf32>
    %27 = vector.extract_strided_slice %1 {offsets = [5, 0], sizes = [1, 256], strides = [1, 1]} : vector<9x256xf32> to vector<1x256xf32>
    %28 = vector.shape_cast %27 : vector<1x256xf32> to vector<256xf32>
    %29 = vector.shape_cast %28 : vector<256xf32> to vector<1x1x256xf32>
    %30 = vector.broadcast %29 : vector<1x1x256xf32> to vector<3x4x256xf32>
    %31 = arith.mulf %26, %30 : vector<3x4x256xf32>
    %c241_i32 = arith.constant 241 : i32
    %32 = tpu.dynamic_rotate %0 by %c241_i32 dim 2 : vector<3x4x256xf32>, i32 -> vector<3x4x256xf32>
    %33 = vector.extract_strided_slice %1 {offsets = [6, 0], sizes = [1, 256], strides = [1, 1]} : vector<9x256xf32> to vector<1x256xf32>
    %34 = vector.shape_cast %33 : vector<1x256xf32> to vector<256xf32>
    %35 = vector.shape_cast %34 : vector<256xf32> to vector<1x1x256xf32>
    %36 = vector.broadcast %35 : vector<1x1x256xf32> to vector<3x4x256xf32>
    %37 = arith.mulf %32, %36 : vector<3x4x256xf32>
    %c240_i32 = arith.constant 240 : i32
    %38 = tpu.dynamic_rotate %0 by %c240_i32 dim 2 : vector<3x4x256xf32>, i32 -> vector<3x4x256xf32>
    %39 = vector.extract_strided_slice %1 {offsets = [7, 0], sizes = [1, 256], strides = [1, 1]} : vector<9x256xf32> to vector<1x256xf32>
    %40 = vector.shape_cast %39 : vector<1x256xf32> to vector<256xf32>
    %41 = vector.shape_cast %40 : vector<256xf32> to vector<1x1x256xf32>
    %42 = vector.broadcast %41 : vector<1x1x256xf32> to vector<3x4x256xf32>
    %43 = arith.mulf %38, %42 : vector<3x4x256xf32>
    %c239_i32 = arith.constant 239 : i32
    %44 = tpu.dynamic_rotate %0 by %c239_i32 dim 2 : vector<3x4x256xf32>, i32 -> vector<3x4x256xf32>
    %45 = vector.extract_strided_slice %1 {offsets = [8, 0], sizes = [1, 256], strides = [1, 1]} : vector<9x256xf32> to vector<1x256xf32>
    %46 = vector.shape_cast %45 : vector<1x256xf32> to vector<256xf32>
    %47 = vector.shape_cast %46 : vector<256xf32> to vector<1x1x256xf32>
    %48 = vector.broadcast %47 : vector<1x1x256xf32> to vector<3x4x256xf32>
    %49 = arith.mulf %44, %48 : vector<3x4x256xf32>
    %50 = tpu.concatenate %7, %13, %19, %25, %0, %31, %37, %43, %49 in 1 : vector<3x4x256xf32>, vector<3x4x256xf32>, vector<3x4x256xf32>, vector<3x4x256xf32>, vector<3x4x256xf32>, vector<3x4x256xf32>, vector<3x4x256xf32>, vector<3x4x256xf32>, vector<3x4x256xf32> -> vector<3x36x256xf32>
    %c0_4 = arith.constant 0 : index
    %c0_5 = arith.constant 0 : index
    %51 = vector.load %arg3[%c0_4, %c0_5] : memref<16x36xf32, #tpu.memory_space<vmem>>, vector<16x36xf32>
    %c0_6 = arith.constant 0 : index
    %c0_7 = arith.constant 0 : index
    %52 = vector.load %arg4[%c0_6, %c0_7] : memref<16x1xf32, #tpu.memory_space<vmem>>, vector<16x1xf32>
    %53 = vector.extract_strided_slice %50 {offsets = [0, 0, 0], sizes = [1, 36, 256], strides = [1, 1, 1]} : vector<3x36x256xf32> to vector<1x36x256xf32>
    %54 = vector.shape_cast %53 : vector<1x36x256xf32> to vector<36x256xf32>
    %cst = arith.constant dense<0.000000e+00> : vector<16x256xf32>
    %55 = tpu.matmul %51, %54, %cst {dimension_numbers = #tpu.dot_dimension_numbers<[1], [0], [0], [1], [0, 0, 1, 1], [], []>} : vector<16x36xf32>, vector<36x256xf32>, vector<16x256xf32> -> vector<16x256xf32>
    %56 = vector.broadcast %52 : vector<16x1xf32> to vector<16x256xf32>
    %57 = arith.addf %55, %56 : vector<16x256xf32>
    %c0_8 = arith.constant 0 : index
    %c0_9 = arith.constant 0 : index
    %c0_10 = arith.constant 0 : index
    %58 = vector.load %arg5[%c0_8, %c0_9, %c0_10] : memref<3x16x256xf32, #tpu.memory_space<vmem>>, vector<1x16x256xf32>
    %59 = vector.shape_cast %58 : vector<1x16x256xf32> to vector<16x256xf32>
    %60 = vector.shape_cast %57 : vector<16x256xf32> to vector<1x16x256xf32>
    tpu.vector_store %arg5[%c0_8, %c0_9, %c0_10], %60 {strides = array<i32>} : memref<3x16x256xf32, #tpu.memory_space<vmem>>, vector<1x16x256xf32>,
    %61 = vector.extract_strided_slice %50 {offsets = [1, 0, 0], sizes = [1, 36, 256], strides = [1, 1, 1]} : vector<3x36x256xf32> to vector<1x36x256xf32>
    %62 = vector.shape_cast %61 : vector<1x36x256xf32> to vector<36x256xf32>
    %cst_11 = arith.constant dense<0.000000e+00> : vector<16x256xf32>
    %63 = tpu.matmul %51, %62, %cst_11 {dimension_numbers = #tpu.dot_dimension_numbers<[1], [0], [0], [1], [0, 0, 1, 1], [], []>} : vector<16x36xf32>, vector<36x256xf32>, vector<16x256xf32> -> vector<16x256xf32>
    %64 = vector.broadcast %52 : vector<16x1xf32> to vector<16x256xf32>
    %65 = arith.addf %63, %64 : vector<16x256xf32>
    %c1 = arith.constant 1 : index
    %c0_12 = arith.constant 0 : index
    %c0_13 = arith.constant 0 : index
    %66 = vector.load %arg5[%c1, %c0_12, %c0_13] : memref<3x16x256xf32, #tpu.memory_space<vmem>>, vector<1x16x256xf32>
    %67 = vector.shape_cast %66 : vector<1x16x256xf32> to vector<16x256xf32>
    %68 = vector.shape_cast %65 : vector<16x256xf32> to vector<1x16x256xf32>
    tpu.vector_store %arg5[%c1, %c0_12, %c0_13], %68 {strides = array<i32>} : memref<3x16x256xf32, #tpu.memory_space<vmem>>, vector<1x16x256xf32>,
    %69 = vector.extract_strided_slice %50 {offsets = [2, 0, 0], sizes = [1, 36, 256], strides = [1, 1, 1]} : vector<3x36x256xf32> to vector<1x36x256xf32>
    %70 = vector.shape_cast %69 : vector<1x36x256xf32> to vector<36x256xf32>
    %cst_14 = arith.constant dense<0.000000e+00> : vector<16x256xf32>
    %71 = tpu.matmul %51, %70, %cst_14 {dimension_numbers = #tpu.dot_dimension_numbers<[1], [0], [0], [1], [0, 0, 1, 1], [], []>} : vector<16x36xf32>, vector<36x256xf32>, vector<16x256xf32> -> vector<16x256xf32>
    %72 = vector.broadcast %52 : vector<16x1xf32> to vector<16x256xf32>
    %73 = arith.addf %71, %72 : vector<16x256xf32>
    %c2 = arith.constant 2 : index
    %c0_15 = arith.constant 0 : index
    %c0_16 = arith.constant 0 : index
    %74 = vector.load %arg5[%c2, %c0_15, %c0_16] : memref<3x16x256xf32, #tpu.memory_space<vmem>>, vector<1x16x256xf32>
    %75 = vector.shape_cast %74 : vector<1x16x256xf32> to vector<16x256xf32>
    %76 = vector.shape_cast %73 : vector<16x256xf32> to vector<1x16x256xf32>
    tpu.vector_store %arg5[%c2, %c0_15, %c0_16], %76 {strides = array<i32>} : memref<3x16x256xf32, #tpu.memory_space<vmem>>, vector<1x16x256xf32>,
    return
  }
  func.func @transform_0(%arg0: i32) -> (i32, i32) {
    %c0_i32 = arith.constant 0 : i32
    %c0_i32_0 = arith.constant 0 : i32
    %c0_i32_1 = arith.constant 0 : i32
    return %c0_i32, %c0_i32_0 : i32, i32
  }
  func.func @transform_1(%arg0: i32) -> (i32, i32, i32) {
    %c0_i32 = arith.constant 0 : i32
    %c0_i32_0 = arith.constant 0 : i32
    %c0_i32_1 = arith.constant 0 : i32
    return %arg0, %c0_i32, %c0_i32_0 : i32, i32, i32
  }
  func.func @transform_2(%arg0: i32) -> (i32, i32) {
    %c0_i32 = arith.constant 0 : i32
    %c0_i32_0 = arith.constant 0 : i32
    %c0_i32_1 = arith.constant 0 : i32
    return %c0_i32, %c0_i32_0 : i32, i32
  }
  func.func @transform_3(%arg0: i32) -> (i32, i32) {
    %c0_i32 = arith.constant 0 : i32
    %c0_i32_0 = arith.constant 0 : i32
    %c0_i32_1 = arith.constant 0 : i32
    return %c0_i32, %c0_i32_0 : i32, i32
  }
  func.func @transform_4(%arg0: i32) -> (i32, i32, i32) {
    %c0_i32 = arith.constant 0 : i32
    %c0_i32_0 = arith.constant 0 : i32
    %c0_i32_1 = arith.constant 0 : i32
    return %arg0, %c0_i32, %c0_i32_0 : i32, i32, i32
  }
}

module attributes {stable_mosaic.version = 11 : i64} {
  func.func @kernel(%arg0: i32, %arg1: memref<3x4x256xf32, #tpu.memory_space<vmem>>, %arg2: memref<4x1xf32, #tpu.memory_space<vmem>>, %arg3: memref<4x1xf32, #tpu.memory_space<vmem>>, %arg4: memref<3x4x256xf32, #tpu.memory_space<vmem>>, %arg5: memref<3x4x256xf32, #tpu.memory_space<vmem>>) attributes {dimension_semantics = [#tpu.dimension_semantics<parallel>], iteration_bounds = array<i64: 1>, scalar_prefetch = 0 : i64, scratch_operands = 0 : i64, tpu.core_type = #tpu.core_type<tc>, window_params = [{transform_indices = @transform_0, window_bounds = array<i64: 3, 4, 256>}, {pipeline_mode = #tpu.pipeline_mode<synchronous>, transform_indices = @transform_1, window_bounds = array<i64: 4, 1>}, {pipeline_mode = #tpu.pipeline_mode<synchronous>, transform_indices = @transform_2, window_bounds = array<i64: 4, 1>}, {transform_indices = @transform_3, window_bounds = array<i64: 3, 4, 256>}, {transform_indices = @transform_4, window_bounds = array<i64: 3, 4, 256>}]} {
    %c0 = arith.constant 0 : index
    %c0_0 = arith.constant 0 : index
    %c0_1 = arith.constant 0 : index
    %0 = vector.load %arg1[%c0, %c0_0, %c0_1] : memref<3x4x256xf32, #tpu.memory_space<vmem>>, vector<3x4x256xf32>
    %c0_2 = arith.constant 0 : index
    %c0_3 = arith.constant 0 : index
    %1 = vector.load %arg2[%c0_2, %c0_3] : memref<4x1xf32, #tpu.memory_space<vmem>>, vector<4x1xf32>
    %2 = vector.shape_cast %1 : vector<4x1xf32> to vector<1x4x1xf32>
    %3 = vector.broadcast %2 : vector<1x4x1xf32> to vector<3x4x256xf32>
    %4 = arith.mulf %0, %3 : vector<3x4x256xf32>
    %c0_4 = arith.constant 0 : index
    %c0_5 = arith.constant 0 : index
    %5 = vector.load %arg3[%c0_4, %c0_5] : memref<4x1xf32, #tpu.memory_space<vmem>>, vector<4x1xf32>
    %6 = vector.shape_cast %5 : vector<4x1xf32> to vector<1x4x1xf32>
    %7 = vector.broadcast %6 : vector<1x4x1xf32> to vector<3x4x256xf32>
    %8 = arith.addf %4, %7 : vector<3x4x256xf32>
    %c0_6 = arith.constant 0 : index
    %c0_7 = arith.constant 0 : index
    %c0_8 = arith.constant 0 : index
    %9 = vector.load %arg4[%c0_6, %c0_7, %c0_8] : memref<3x4x256xf32, #tpu.memory_space<vmem>>, vector<3x4x256xf32>
    %10 = arith.addf %8, %9 : vector<3x4x256xf32>
    %cst = arith.constant 0.000000e+00 : f32
    %11 = vector.broadcast %cst : f32 to vector<3x4x256xf32>
    %12 = arith.cmpf oge, %10, %11 : vector<3x4x256xf32>
    %cst_9 = arith.constant 2.000000e-01 : f32
    %13 = vector.broadcast %cst_9 : f32 to vector<3x4x256xf32>
    %14 = arith.mulf %13, %10 : vector<3x4x256xf32>
    %15 = arith.select %12, %10, %14 : vector<3x4x256xi1>, vector<3x4x256xf32>
    %c0_10 = arith.constant 0 : index
    %c0_11 = arith.constant 0 : index
    %c0_12 = arith.constant 0 : index
    %16 = vector.load %arg5[%c0_10, %c0_11, %c0_12] : memref<3x4x256xf32, #tpu.memory_space<vmem>>, vector<3x4x256xf32>
    tpu.vector_store %arg5[%c0_10, %c0_11, %c0_12], %15 {strides = array<i32>} : memref<3x4x256xf32, #tpu.memory_space<vmem>>, vector<3x4x256xf32>,
    return
  }
  func.func @transform_0(%arg0: i32) -> (i32, i32, i32) {
    %c0_i32 = arith.constant 0 : i32
    %c0_i32_0 = arith.constant 0 : i32
    %c0_i32_1 = arith.constant 0 : i32
    return %arg0, %c0_i32, %c0_i32_0 : i32, i32, i32
  }
  func.func @transform_1(%arg0: i32) -> (i32, i32) {
    %c0_i32 = arith.constant 0 : i32
    %c0_i32_0 = arith.constant 0 : i32
    %c0_i32_1 = arith.constant 0 : i32
    return %c0_i32, %c0_i32_0 : i32, i32
  }
  func.func @transform_2(%arg0: i32) -> (i32, i32) {
    %c0_i32 = arith.constant 0 : i32
    %c0_i32_0 = arith.constant 0 : i32
    %c0_i32_1 = arith.constant 0 : i32
    return %c0_i32, %c0_i32_0 : i32, i32
  }
  func.func @transform_3(%arg0: i32) -> (i32, i32, i32) {
    %c0_i32 = arith.constant 0 : i32
    %c0_i32_0 = arith.constant 0 : i32
    %c0_i32_1 = arith.constant 0 : i32
    return %arg0, %c0_i32, %c0_i32_0 : i32, i32, i32
  }
  func.func @transform_4(%arg0: i32) -> (i32, i32, i32) {
    %c0_i32 = arith.constant 0 : i32
    %c0_i32_0 = arith.constant 0 : i32
    %c0_i32_1 = arith.constant 0 : i32
    return %arg0, %c0_i32, %c0_i32_0 : i32, i32, i32
  }
}

module attributes {stable_mosaic.version = 11 : i64} {
  func.func @kernel(%arg0: i32, %arg1: i32, %arg2: memref<9x256xf32, #tpu.memory_space<vmem>>, %arg3: memref<1x1x1x16x256xf32, #tpu.memory_space<vmem>>, %arg4: memref<1x16x36xf32, #tpu.memory_space<vmem>>, %arg5: memref<1x1x1x4x256xf32, #tpu.memory_space<vmem>>, %arg6: memref<1x1x4x256xf32, #tpu.memory_space<vmem>>, %arg7: memref<1x4x256xf32, #tpu.memory_space<vmem>>, %arg8: memref<1x4x256xf32, #tpu.memory_space<vmem>>) attributes {dimension_semantics = [#tpu.dimension_semantics<parallel>, #tpu.dimension_semantics<arbitrary>], iteration_bounds = array<i64: 2, 3>, scalar_prefetch = 0 : i64, scratch_operands = 2 : i64, tpu.core_type = #tpu.core_type<tc>, window_params = [{pipeline_mode = #tpu.pipeline_mode<synchronous>, transform_indices = @transform_0, window_bounds = array<i64: 9, 256>}, {transform_indices = @transform_1, window_bounds = array<i64: 1, 1, 1, 16, 256>}, {transform_indices = @transform_2, window_bounds = array<i64: 1, 16, 36>}, {transform_indices = @transform_3, window_bounds = array<i64: 1, 1, 1, 4, 256>}, {transform_indices = @transform_4, window_bounds = array<i64: 1, 1, 4, 256>}]} {
    %c0_i32 = arith.constant 0 : i32
    %0 = arith.cmpi eq, %arg1, %c0_i32 : i32
    %1 = arith.extui %0 : i1 to i32
    %c0_i32_0 = arith.constant 0 : i32
    %2 = arith.cmpi ne, %1, %c0_i32_0 : i32
    scf.if %2 {
      %cst_34 = arith.constant 0.000000e+00 : f32
      %101 = vector.broadcast %cst_34 : f32 to vector<1x4x256xf32>
      %c0_35 = arith.constant 0 : index
      %c0_36 = arith.constant 0 : index
      %c0_37 = arith.constant 0 : index
      %102 = vector.load %arg7[%c0_35, %c0_36, %c0_37] : memref<1x4x256xf32, #tpu.memory_space<vmem>>, vector<1x4x256xf32>
      tpu.vector_store %arg7[%c0_35, %c0_36, %c0_37], %101 {strides = array<i32>} : memref<1x4x256xf32, #tpu.memory_space<vmem>>, vector<1x4x256xf32>,
      %cst_38 = arith.constant 0.000000e+00 : f32
      %103 = vector.broadcast %cst_38 : f32 to vector<1x4x256xf32>
      %c0_39 = arith.constant 0 : index
      %c0_40 = arith.constant 0 : index
      %c0_41 = arith.constant 0 : index
      %104 = vector.load %arg8[%c0_39, %c0_40, %c0_41] : memref<1x4x256xf32, #tpu.memory_space<vmem>>, vector<1x4x256xf32>
      tpu.vector_store %arg8[%c0_39, %c0_40, %c0_41], %103 {strides = array<i32>} : memref<1x4x256xf32, #tpu.memory_space<vmem>>, vector<1x4x256xf32>,
    } else {
    }
    %c0 = arith.constant 0 : index
    %c0_1 = arith.constant 0 : index
    %3 = vector.load %arg2[%c0, %c0_1] : memref<9x256xf32, #tpu.memory_space<vmem>>, vector<9x256xf32>
    %c0_2 = arith.constant 0 : index
    %c0_3 = arith.constant 0 : index
    %c0_4 = arith.constant 0 : index
    %4 = vector.load %arg4[%c0_2, %c0_3, %c0_4] : memref<1x16x36xf32, #tpu.memory_space<vmem>>, vector<1x16x36xf32>
    %5 = vector.shape_cast %4 : vector<1x16x36xf32> to vector<16x36xf32>
    %c0_5 = arith.constant 0 : index
    %c0_6 = arith.constant 0 : index
    %c0_7 = arith.constant 0 : index
    %6 = vector.load %arg7[%c0_5, %c0_6, %c0_7] : memref<1x4x256xf32, #tpu.memory_space<vmem>>, vector<1x4x256xf32>
    %c17_i32 = arith.constant 17 : i32
    %7 = tpu.dynamic_rotate %6 by %c17_i32 dim 2 : vector<1x4x256xf32>, i32 -> vector<1x4x256xf32>
    %8 = vector.extract_strided_slice %3 {offsets = [0, 0], sizes = [1, 256], strides = [1, 1]} : vector<9x256xf32> to vector<1x256xf32>
    %9 = vector.shape_cast %8 : vector<1x256xf32> to vector<256xf32>
    %10 = vector.shape_cast %9 : vector<256xf32> to vector<1x1x256xf32>
    %11 = vector.broadcast %10 : vector<1x1x256xf32> to vector<1x4x256xf32>
    %12 = arith.mulf %7, %11 : vector<1x4x256xf32>
    %c16_i32 = arith.constant 16 : i32
    %13 = tpu.dynamic_rotate %6 by %c16_i32 dim 2 : vector<1x4x256xf32>, i32 -> vector<1x4x256xf32>
    %14 = vector.extract_strided_slice %3 {offsets = [1, 0], sizes = [1, 256], strides = [1, 1]} : vector<9x256xf32> to vector<1x256xf32>
    %15 = vector.shape_cast %14 : vector<1x256xf32> to vector<256xf32>
    %16 = vector.shape_cast %15 : vector<256xf32> to vector<1x1x256xf32>
    %17 = vector.broadcast %16 : vector<1x1x256xf32> to vector<1x4x256xf32>
    %18 = arith.mulf %13, %17 : vector<1x4x256xf32>
    %c15_i32 = arith.constant 15 : i32
    %19 = tpu.dynamic_rotate %6 by %c15_i32 dim 2 : vector<1x4x256xf32>, i32 -> vector<1x4x256xf32>
    %20 = vector.extract_strided_slice %3 {offsets = [2, 0], sizes = [1, 256], strides = [1, 1]} : vector<9x256xf32> to vector<1x256xf32>
    %21 = vector.shape_cast %20 : vector<1x256xf32> to vector<256xf32>
    %22 = vector.shape_cast %21 : vector<256xf32> to vector<1x1x256xf32>
    %23 = vector.broadcast %22 : vector<1x1x256xf32> to vector<1x4x256xf32>
    %24 = arith.mulf %19, %23 : vector<1x4x256xf32>
    %c1_i32 = arith.constant 1 : i32
    %25 = tpu.dynamic_rotate %6 by %c1_i32 dim 2 : vector<1x4x256xf32>, i32 -> vector<1x4x256xf32>
    %26 = vector.extract_strided_slice %3 {offsets = [3, 0], sizes = [1, 256], strides = [1, 1]} : vector<9x256xf32> to vector<1x256xf32>
    %27 = vector.shape_cast %26 : vector<1x256xf32> to vector<256xf32>
    %28 = vector.shape_cast %27 : vector<256xf32> to vector<1x1x256xf32>
    %29 = vector.broadcast %28 : vector<1x1x256xf32> to vector<1x4x256xf32>
    %30 = arith.mulf %25, %29 : vector<1x4x256xf32>
    %c255_i32 = arith.constant 255 : i32
    %31 = tpu.dynamic_rotate %6 by %c255_i32 dim 2 : vector<1x4x256xf32>, i32 -> vector<1x4x256xf32>
    %32 = vector.extract_strided_slice %3 {offsets = [5, 0], sizes = [1, 256], strides = [1, 1]} : vector<9x256xf32> to vector<1x256xf32>
    %33 = vector.shape_cast %32 : vector<1x256xf32> to vector<256xf32>
    %34 = vector.shape_cast %33 : vector<256xf32> to vector<1x1x256xf32>
    %35 = vector.broadcast %34 : vector<1x1x256xf32> to vector<1x4x256xf32>
    %36 = arith.mulf %31, %35 : vector<1x4x256xf32>
    %c241_i32 = arith.constant 241 : i32
    %37 = tpu.dynamic_rotate %6 by %c241_i32 dim 2 : vector<1x4x256xf32>, i32 -> vector<1x4x256xf32>
    %38 = vector.extract_strided_slice %3 {offsets = [6, 0], sizes = [1, 256], strides = [1, 1]} : vector<9x256xf32> to vector<1x256xf32>
    %39 = vector.shape_cast %38 : vector<1x256xf32> to vector<256xf32>
    %40 = vector.shape_cast %39 : vector<256xf32> to vector<1x1x256xf32>
    %41 = vector.broadcast %40 : vector<1x1x256xf32> to vector<1x4x256xf32>
    %42 = arith.mulf %37, %41 : vector<1x4x256xf32>
    %c240_i32 = arith.constant 240 : i32
    %43 = tpu.dynamic_rotate %6 by %c240_i32 dim 2 : vector<1x4x256xf32>, i32 -> vector<1x4x256xf32>
    %44 = vector.extract_strided_slice %3 {offsets = [7, 0], sizes = [1, 256], strides = [1, 1]} : vector<9x256xf32> to vector<1x256xf32>
    %45 = vector.shape_cast %44 : vector<1x256xf32> to vector<256xf32>
    %46 = vector.shape_cast %45 : vector<256xf32> to vector<1x1x256xf32>
    %47 = vector.broadcast %46 : vector<1x1x256xf32> to vector<1x4x256xf32>
    %48 = arith.mulf %43, %47 : vector<1x4x256xf32>
    %c239_i32 = arith.constant 239 : i32
    %49 = tpu.dynamic_rotate %6 by %c239_i32 dim 2 : vector<1x4x256xf32>, i32 -> vector<1x4x256xf32>
    %50 = vector.extract_strided_slice %3 {offsets = [8, 0], sizes = [1, 256], strides = [1, 1]} : vector<9x256xf32> to vector<1x256xf32>
    %51 = vector.shape_cast %50 : vector<1x256xf32> to vector<256xf32>
    %52 = vector.shape_cast %51 : vector<256xf32> to vector<1x1x256xf32>
    %53 = vector.broadcast %52 : vector<1x1x256xf32> to vector<1x4x256xf32>
    %54 = arith.mulf %49, %53 : vector<1x4x256xf32>
    %55 = tpu.concatenate %12, %18, %24, %30, %6, %36, %42, %48, %54 in 1 : vector<1x4x256xf32>, vector<1x4x256xf32>, vector<1x4x256xf32>, vector<1x4x256xf32>, vector<1x4x256xf32>, vector<1x4x256xf32>, vector<1x4x256xf32>, vector<1x4x256xf32>, vector<1x4x256xf32> -> vector<1x36x256xf32>
    %c0_8 = arith.constant 0 : index
    %c0_9 = arith.constant 0 : index
    %c0_10 = arith.constant 0 : index
    %c0_11 = arith.constant 0 : index
    %c0_12 = arith.constant 0 : index
    %56 = vector.load %arg3[%c0_8, %c0_9, %c0_10, %c0_11, %c0_12] : memref<1x1x1x16x256xf32, #tpu.memory_space<vmem>>, vector<1x1x1x16x256xf32>
    %57 = vector.shape_cast %56 : vector<1x1x1x16x256xf32> to vector<1x16x256xf32>
    %58 = vector.shape_cast %57 : vector<1x16x256xf32> to vector<16x256xf32>
    %59 = vector.shape_cast %55 : vector<1x36x256xf32> to vector<36x256xf32>
    %cst = arith.constant dense<0.000000e+00> : vector<16x256xf32>
    %60 = tpu.matmul %5, %59, %cst {dimension_numbers = #tpu.dot_dimension_numbers<[1], [0], [0], [1], [0, 0, 1, 1], [], []>} : vector<16x36xf32>, vector<36x256xf32>, vector<16x256xf32> -> vector<16x256xf32>
    %61 = arith.addf %58, %60 : vector<16x256xf32>
    %62 = vector.extract_strided_slice %61 {offsets = [0, 0], sizes = [4, 256], strides = [1, 1]} : vector<16x256xf32> to vector<4x256xf32>
    %63 = arith.negf %62 : vector<4x256xf32>
    %64 = math.exp %63 : vector<4x256xf32>
    %cst_13 = arith.constant 1.000000e+00 : f32
    %65 = vector.broadcast %cst_13 : f32 to vector<4x256xf32>
    %66 = arith.addf %65, %64 : vector<4x256xf32>
    %67 = arith.divf %65, %66 : vector<4x256xf32>
    %68 = vector.extract_strided_slice %61 {offsets = [4, 0], sizes = [4, 256], strides = [1, 1]} : vector<16x256xf32> to vector<4x256xf32>
    %69 = arith.negf %68 : vector<4x256xf32>
    %70 = math.exp %69 : vector<4x256xf32>
    %cst_14 = arith.constant 1.000000e+00 : f32
    %71 = vector.broadcast %cst_14 : f32 to vector<4x256xf32>
    %72 = arith.addf %71, %70 : vector<4x256xf32>
    %73 = arith.divf %71, %72 : vector<4x256xf32>
    %74 = vector.extract_strided_slice %61 {offsets = [8, 0], sizes = [4, 256], strides = [1, 1]} : vector<16x256xf32> to vector<4x256xf32>
    %75 = math.tanh %74 : vector<4x256xf32>
    %76 = vector.extract_strided_slice %61 {offsets = [12, 0], sizes = [4, 256], strides = [1, 1]} : vector<16x256xf32> to vector<4x256xf32>
    %77 = arith.negf %76 : vector<4x256xf32>
    %78 = math.exp %77 : vector<4x256xf32>
    %cst_15 = arith.constant 1.000000e+00 : f32
    %79 = vector.broadcast %cst_15 : f32 to vector<4x256xf32>
    %80 = arith.addf %79, %78 : vector<4x256xf32>
    %81 = arith.divf %79, %80 : vector<4x256xf32>
    %c0_16 = arith.constant 0 : index
    %c0_17 = arith.constant 0 : index
    %c0_18 = arith.constant 0 : index
    %82 = vector.load %arg8[%c0_16, %c0_17, %c0_18] : memref<1x4x256xf32, #tpu.memory_space<vmem>>, vector<1x4x256xf32>
    %83 = vector.shape_cast %82 : vector<1x4x256xf32> to vector<4x256xf32>
    %84 = arith.mulf %73, %83 : vector<4x256xf32>
    %85 = arith.mulf %67, %75 : vector<4x256xf32>
    %86 = arith.addf %84, %85 : vector<4x256xf32>
    %87 = math.tanh %86 : vector<4x256xf32>
    %88 = arith.mulf %81, %87 : vector<4x256xf32>
    %c0_19 = arith.constant 0 : index
    %c0_20 = arith.constant 0 : index
    %c0_21 = arith.constant 0 : index
    %89 = vector.load %arg8[%c0_19, %c0_20, %c0_21] : memref<1x4x256xf32, #tpu.memory_space<vmem>>, vector<1x4x256xf32>
    %90 = vector.shape_cast %89 : vector<1x4x256xf32> to vector<4x256xf32>
    %91 = vector.shape_cast %86 : vector<4x256xf32> to vector<1x4x256xf32>
    tpu.vector_store %arg8[%c0_19, %c0_20, %c0_21], %91 {strides = array<i32>} : memref<1x4x256xf32, #tpu.memory_space<vmem>>, vector<1x4x256xf32>,
    %c0_22 = arith.constant 0 : index
    %c0_23 = arith.constant 0 : index
    %c0_24 = arith.constant 0 : index
    %92 = vector.load %arg7[%c0_22, %c0_23, %c0_24] : memref<1x4x256xf32, #tpu.memory_space<vmem>>, vector<1x4x256xf32>
    %93 = vector.shape_cast %92 : vector<1x4x256xf32> to vector<4x256xf32>
    %94 = vector.shape_cast %88 : vector<4x256xf32> to vector<1x4x256xf32>
    tpu.vector_store %arg7[%c0_22, %c0_23, %c0_24], %94 {strides = array<i32>} : memref<1x4x256xf32, #tpu.memory_space<vmem>>, vector<1x4x256xf32>,
    %c0_25 = arith.constant 0 : index
    %c0_26 = arith.constant 0 : index
    %c0_27 = arith.constant 0 : index
    %c0_28 = arith.constant 0 : index
    %c0_29 = arith.constant 0 : index
    %95 = vector.load %arg5[%c0_25, %c0_26, %c0_27, %c0_28, %c0_29] : memref<1x1x1x4x256xf32, #tpu.memory_space<vmem>>, vector<1x1x1x4x256xf32>
    %96 = vector.shape_cast %95 : vector<1x1x1x4x256xf32> to vector<4x256xf32>
    %97 = vector.shape_cast %88 : vector<4x256xf32> to vector<1x1x1x4x256xf32>
    tpu.vector_store %arg5[%c0_25, %c0_26, %c0_27, %c0_28, %c0_29], %97 {strides = array<i32>} : memref<1x1x1x4x256xf32, #tpu.memory_space<vmem>>, vector<1x1x1x4x256xf32>,
    %c0_30 = arith.constant 0 : index
    %c0_31 = arith.constant 0 : index
    %c0_32 = arith.constant 0 : index
    %c0_33 = arith.constant 0 : index
    %98 = vector.load %arg6[%c0_30, %c0_31, %c0_32, %c0_33] : memref<1x1x4x256xf32, #tpu.memory_space<vmem>>, vector<1x1x4x256xf32>
    %99 = vector.shape_cast %98 : vector<1x1x4x256xf32> to vector<4x256xf32>
    %100 = vector.shape_cast %86 : vector<4x256xf32> to vector<1x1x4x256xf32>
    tpu.vector_store %arg6[%c0_30, %c0_31, %c0_32, %c0_33], %100 {strides = array<i32>} : memref<1x1x4x256xf32, #tpu.memory_space<vmem>>, vector<1x1x4x256xf32>,
    return
  }
  func.func @transform_0(%arg0: i32, %arg1: i32) -> (i32, i32) {
    %c0_i32 = arith.constant 0 : i32
    %c0_i32_0 = arith.constant 0 : i32
    %c0_i32_1 = arith.constant 0 : i32
    return %c0_i32, %c0_i32_0 : i32, i32
  }
  func.func @transform_1(%arg0: i32, %arg1: i32) -> (i32, i32, i32, i32, i32) {
    %c2_i32 = arith.constant 2 : i32
    %0 = arith.subi %c2_i32, %arg1 : i32
    %1 = arith.muli %arg0, %0 : i32
    %c1_i32 = arith.constant 1 : i32
    %2 = arith.subi %c1_i32, %arg0 : i32
    %3 = arith.muli %2, %arg1 : i32
    %4 = arith.addi %1, %3 : i32
    %c0_i32 = arith.constant 0 : i32
    %c0_i32_0 = arith.constant 0 : i32
    %c0_i32_1 = arith.constant 0 : i32
    %c0_i32_2 = arith.constant 0 : i32
    return %arg0, %4, %c0_i32, %c0_i32_0, %c0_i32_1 : i32, i32, i32, i32, i32
  }
  func.func @transform_2(%arg0: i32, %arg1: i32) -> (i32, i32, i32) {
    %c0_i32 = arith.constant 0 : i32
    %c0_i32_0 = arith.constant 0 : i32
    %c0_i32_1 = arith.constant 0 : i32
    return %arg0, %c0_i32, %c0_i32_0 : i32, i32, i32
  }
  func.func @transform_3(%arg0: i32, %arg1: i32) -> (i32, i32, i32, i32, i32) {
    %c2_i32 = arith.constant 2 : i32
    %0 = arith.subi %c2_i32, %arg1 : i32
    %1 = arith.muli %arg0, %0 : i32
    %c1_i32 = arith.constant 1 : i32
    %2 = arith.subi %c1_i32, %arg0 : i32
    %3 = arith.muli %2, %arg1 : i32
    %4 = arith.addi %1, %3 : i32
    %c0_i32 = arith.constant 0 : i32
    %c0_i32_0 = arith.constant 0 : i32
    %c0_i32_1 = arith.constant 0 : i32
    %c0_i32_2 = arith.constant 0 : i32
    return %arg0, %4, %c0_i32, %c0_i32_0, %c0_i32_1 : i32, i32, i32, i32, i32
  }
  func.func @transform_4(%arg0: i32, %arg1: i32) -> (i32, i32, i32, i32) {
    %c0_i32 = arith.constant 0 : i32
    %c0_i32_0 = arith.constant 0 : i32
    %c0_i32_1 = arith.constant 0 : i32
    %c0_i32_2 = arith.constant 0 : i32
    return %arg0, %c0_i32, %c0_i32_0, %c0_i32_1 : i32, i32, i32, i32
  }
}

module attributes {stable_mosaic.version = 11 : i64} {
  func.func @kernel(%arg0: i32, %arg1: memref<9x256xf32, #tpu.memory_space<vmem>>, %arg2: memref<3x8x256xf32, #tpu.memory_space<vmem>>, %arg3: memref<4x72xf32, #tpu.memory_space<vmem>>, %arg4: memref<4x1xf32, #tpu.memory_space<vmem>>, %arg5: memref<3x4x256xf32, #tpu.memory_space<vmem>>) attributes {dimension_semantics = [#tpu.dimension_semantics<parallel>], iteration_bounds = array<i64: 1>, scalar_prefetch = 0 : i64, scratch_operands = 0 : i64, tpu.core_type = #tpu.core_type<tc>, window_params = [{pipeline_mode = #tpu.pipeline_mode<synchronous>, transform_indices = @transform_0, window_bounds = array<i64: 9, 256>}, {transform_indices = @transform_1, window_bounds = array<i64: 3, 8, 256>}, {pipeline_mode = #tpu.pipeline_mode<synchronous>, transform_indices = @transform_2, window_bounds = array<i64: 4, 72>}, {pipeline_mode = #tpu.pipeline_mode<synchronous>, transform_indices = @transform_3, window_bounds = array<i64: 4, 1>}, {transform_indices = @transform_4, window_bounds = array<i64: 3, 4, 256>}]} {
    %c0 = arith.constant 0 : index
    %c0_0 = arith.constant 0 : index
    %c0_1 = arith.constant 0 : index
    %0 = vector.load %arg2[%c0, %c0_0, %c0_1] : memref<3x8x256xf32, #tpu.memory_space<vmem>>, vector<3x8x256xf32>
    %c0_2 = arith.constant 0 : index
    %c0_3 = arith.constant 0 : index
    %1 = vector.load %arg1[%c0_2, %c0_3] : memref<9x256xf32, #tpu.memory_space<vmem>>, vector<9x256xf32>
    %c17_i32 = arith.constant 17 : i32
    %2 = tpu.dynamic_rotate %0 by %c17_i32 dim 2 : vector<3x8x256xf32>, i32 -> vector<3x8x256xf32>
    %3 = vector.extract_strided_slice %1 {offsets = [0, 0], sizes = [1, 256], strides = [1, 1]} : vector<9x256xf32> to vector<1x256xf32>
    %4 = vector.shape_cast %3 : vector<1x256xf32> to vector<256xf32>
    %5 = vector.shape_cast %4 : vector<256xf32> to vector<1x1x256xf32>
    %6 = vector.broadcast %5 : vector<1x1x256xf32> to vector<3x8x256xf32>
    %7 = arith.mulf %2, %6 : vector<3x8x256xf32>
    %c16_i32 = arith.constant 16 : i32
    %8 = tpu.dynamic_rotate %0 by %c16_i32 dim 2 : vector<3x8x256xf32>, i32 -> vector<3x8x256xf32>
    %9 = vector.extract_strided_slice %1 {offsets = [1, 0], sizes = [1, 256], strides = [1, 1]} : vector<9x256xf32> to vector<1x256xf32>
    %10 = vector.shape_cast %9 : vector<1x256xf32> to vector<256xf32>
    %11 = vector.shape_cast %10 : vector<256xf32> to vector<1x1x256xf32>
    %12 = vector.broadcast %11 : vector<1x1x256xf32> to vector<3x8x256xf32>
    %13 = arith.mulf %8, %12 : vector<3x8x256xf32>
    %c15_i32 = arith.constant 15 : i32
    %14 = tpu.dynamic_rotate %0 by %c15_i32 dim 2 : vector<3x8x256xf32>, i32 -> vector<3x8x256xf32>
    %15 = vector.extract_strided_slice %1 {offsets = [2, 0], sizes = [1, 256], strides = [1, 1]} : vector<9x256xf32> to vector<1x256xf32>
    %16 = vector.shape_cast %15 : vector<1x256xf32> to vector<256xf32>
    %17 = vector.shape_cast %16 : vector<256xf32> to vector<1x1x256xf32>
    %18 = vector.broadcast %17 : vector<1x1x256xf32> to vector<3x8x256xf32>
    %19 = arith.mulf %14, %18 : vector<3x8x256xf32>
    %c1_i32 = arith.constant 1 : i32
    %20 = tpu.dynamic_rotate %0 by %c1_i32 dim 2 : vector<3x8x256xf32>, i32 -> vector<3x8x256xf32>
    %21 = vector.extract_strided_slice %1 {offsets = [3, 0], sizes = [1, 256], strides = [1, 1]} : vector<9x256xf32> to vector<1x256xf32>
    %22 = vector.shape_cast %21 : vector<1x256xf32> to vector<256xf32>
    %23 = vector.shape_cast %22 : vector<256xf32> to vector<1x1x256xf32>
    %24 = vector.broadcast %23 : vector<1x1x256xf32> to vector<3x8x256xf32>
    %25 = arith.mulf %20, %24 : vector<3x8x256xf32>
    %c255_i32 = arith.constant 255 : i32
    %26 = tpu.dynamic_rotate %0 by %c255_i32 dim 2 : vector<3x8x256xf32>, i32 -> vector<3x8x256xf32>
    %27 = vector.extract_strided_slice %1 {offsets = [5, 0], sizes = [1, 256], strides = [1, 1]} : vector<9x256xf32> to vector<1x256xf32>
    %28 = vector.shape_cast %27 : vector<1x256xf32> to vector<256xf32>
    %29 = vector.shape_cast %28 : vector<256xf32> to vector<1x1x256xf32>
    %30 = vector.broadcast %29 : vector<1x1x256xf32> to vector<3x8x256xf32>
    %31 = arith.mulf %26, %30 : vector<3x8x256xf32>
    %c241_i32 = arith.constant 241 : i32
    %32 = tpu.dynamic_rotate %0 by %c241_i32 dim 2 : vector<3x8x256xf32>, i32 -> vector<3x8x256xf32>
    %33 = vector.extract_strided_slice %1 {offsets = [6, 0], sizes = [1, 256], strides = [1, 1]} : vector<9x256xf32> to vector<1x256xf32>
    %34 = vector.shape_cast %33 : vector<1x256xf32> to vector<256xf32>
    %35 = vector.shape_cast %34 : vector<256xf32> to vector<1x1x256xf32>
    %36 = vector.broadcast %35 : vector<1x1x256xf32> to vector<3x8x256xf32>
    %37 = arith.mulf %32, %36 : vector<3x8x256xf32>
    %c240_i32 = arith.constant 240 : i32
    %38 = tpu.dynamic_rotate %0 by %c240_i32 dim 2 : vector<3x8x256xf32>, i32 -> vector<3x8x256xf32>
    %39 = vector.extract_strided_slice %1 {offsets = [7, 0], sizes = [1, 256], strides = [1, 1]} : vector<9x256xf32> to vector<1x256xf32>
    %40 = vector.shape_cast %39 : vector<1x256xf32> to vector<256xf32>
    %41 = vector.shape_cast %40 : vector<256xf32> to vector<1x1x256xf32>
    %42 = vector.broadcast %41 : vector<1x1x256xf32> to vector<3x8x256xf32>
    %43 = arith.mulf %38, %42 : vector<3x8x256xf32>
    %c239_i32 = arith.constant 239 : i32
    %44 = tpu.dynamic_rotate %0 by %c239_i32 dim 2 : vector<3x8x256xf32>, i32 -> vector<3x8x256xf32>
    %45 = vector.extract_strided_slice %1 {offsets = [8, 0], sizes = [1, 256], strides = [1, 1]} : vector<9x256xf32> to vector<1x256xf32>
    %46 = vector.shape_cast %45 : vector<1x256xf32> to vector<256xf32>
    %47 = vector.shape_cast %46 : vector<256xf32> to vector<1x1x256xf32>
    %48 = vector.broadcast %47 : vector<1x1x256xf32> to vector<3x8x256xf32>
    %49 = arith.mulf %44, %48 : vector<3x8x256xf32>
    %50 = tpu.concatenate %7, %13, %19, %25, %0, %31, %37, %43, %49 in 1 : vector<3x8x256xf32>, vector<3x8x256xf32>, vector<3x8x256xf32>, vector<3x8x256xf32>, vector<3x8x256xf32>, vector<3x8x256xf32>, vector<3x8x256xf32>, vector<3x8x256xf32>, vector<3x8x256xf32> -> vector<3x72x256xf32>
    %c0_4 = arith.constant 0 : index
    %c0_5 = arith.constant 0 : index
    %51 = vector.load %arg3[%c0_4, %c0_5] : memref<4x72xf32, #tpu.memory_space<vmem>>, vector<4x72xf32>
    %c0_6 = arith.constant 0 : index
    %c0_7 = arith.constant 0 : index
    %52 = vector.load %arg4[%c0_6, %c0_7] : memref<4x1xf32, #tpu.memory_space<vmem>>, vector<4x1xf32>
    %53 = vector.extract_strided_slice %50 {offsets = [0, 0, 0], sizes = [1, 72, 256], strides = [1, 1, 1]} : vector<3x72x256xf32> to vector<1x72x256xf32>
    %54 = vector.shape_cast %53 : vector<1x72x256xf32> to vector<72x256xf32>
    %cst = arith.constant dense<0.000000e+00> : vector<4x256xf32>
    %55 = tpu.matmul %51, %54, %cst {dimension_numbers = #tpu.dot_dimension_numbers<[1], [0], [0], [1], [0, 0, 1, 1], [], []>} : vector<4x72xf32>, vector<72x256xf32>, vector<4x256xf32> -> vector<4x256xf32>
    %56 = vector.broadcast %52 : vector<4x1xf32> to vector<4x256xf32>
    %57 = arith.addf %55, %56 : vector<4x256xf32>
    %c0_8 = arith.constant 0 : index
    %c0_9 = arith.constant 0 : index
    %c0_10 = arith.constant 0 : index
    %58 = vector.load %arg5[%c0_8, %c0_9, %c0_10] : memref<3x4x256xf32, #tpu.memory_space<vmem>>, vector<1x4x256xf32>
    %59 = vector.shape_cast %58 : vector<1x4x256xf32> to vector<4x256xf32>
    %60 = vector.shape_cast %57 : vector<4x256xf32> to vector<1x4x256xf32>
    tpu.vector_store %arg5[%c0_8, %c0_9, %c0_10], %60 {strides = array<i32>} : memref<3x4x256xf32, #tpu.memory_space<vmem>>, vector<1x4x256xf32>,
    %61 = vector.extract_strided_slice %50 {offsets = [1, 0, 0], sizes = [1, 72, 256], strides = [1, 1, 1]} : vector<3x72x256xf32> to vector<1x72x256xf32>
    %62 = vector.shape_cast %61 : vector<1x72x256xf32> to vector<72x256xf32>
    %cst_11 = arith.constant dense<0.000000e+00> : vector<4x256xf32>
    %63 = tpu.matmul %51, %62, %cst_11 {dimension_numbers = #tpu.dot_dimension_numbers<[1], [0], [0], [1], [0, 0, 1, 1], [], []>} : vector<4x72xf32>, vector<72x256xf32>, vector<4x256xf32> -> vector<4x256xf32>
    %64 = vector.broadcast %52 : vector<4x1xf32> to vector<4x256xf32>
    %65 = arith.addf %63, %64 : vector<4x256xf32>
    %c1 = arith.constant 1 : index
    %c0_12 = arith.constant 0 : index
    %c0_13 = arith.constant 0 : index
    %66 = vector.load %arg5[%c1, %c0_12, %c0_13] : memref<3x4x256xf32, #tpu.memory_space<vmem>>, vector<1x4x256xf32>
    %67 = vector.shape_cast %66 : vector<1x4x256xf32> to vector<4x256xf32>
    %68 = vector.shape_cast %65 : vector<4x256xf32> to vector<1x4x256xf32>
    tpu.vector_store %arg5[%c1, %c0_12, %c0_13], %68 {strides = array<i32>} : memref<3x4x256xf32, #tpu.memory_space<vmem>>, vector<1x4x256xf32>,
    %69 = vector.extract_strided_slice %50 {offsets = [2, 0, 0], sizes = [1, 72, 256], strides = [1, 1, 1]} : vector<3x72x256xf32> to vector<1x72x256xf32>
    %70 = vector.shape_cast %69 : vector<1x72x256xf32> to vector<72x256xf32>
    %cst_14 = arith.constant dense<0.000000e+00> : vector<4x256xf32>
    %71 = tpu.matmul %51, %70, %cst_14 {dimension_numbers = #tpu.dot_dimension_numbers<[1], [0], [0], [1], [0, 0, 1, 1], [], []>} : vector<4x72xf32>, vector<72x256xf32>, vector<4x256xf32> -> vector<4x256xf32>
    %72 = vector.broadcast %52 : vector<4x1xf32> to vector<4x256xf32>
    %73 = arith.addf %71, %72 : vector<4x256xf32>
    %c2 = arith.constant 2 : index
    %c0_15 = arith.constant 0 : index
    %c0_16 = arith.constant 0 : index
    %74 = vector.load %arg5[%c2, %c0_15, %c0_16] : memref<3x4x256xf32, #tpu.memory_space<vmem>>, vector<1x4x256xf32>
    %75 = vector.shape_cast %74 : vector<1x4x256xf32> to vector<4x256xf32>
    %76 = vector.shape_cast %73 : vector<4x256xf32> to vector<1x4x256xf32>
    tpu.vector_store %arg5[%c2, %c0_15, %c0_16], %76 {strides = array<i32>} : memref<3x4x256xf32, #tpu.memory_space<vmem>>, vector<1x4x256xf32>,
    return
  }
  func.func @transform_0(%arg0: i32) -> (i32, i32) {
    %c0_i32 = arith.constant 0 : i32
    %c0_i32_0 = arith.constant 0 : i32
    %c0_i32_1 = arith.constant 0 : i32
    return %c0_i32, %c0_i32_0 : i32, i32
  }
  func.func @transform_1(%arg0: i32) -> (i32, i32, i32) {
    %c0_i32 = arith.constant 0 : i32
    %c0_i32_0 = arith.constant 0 : i32
    %c0_i32_1 = arith.constant 0 : i32
    return %arg0, %c0_i32, %c0_i32_0 : i32, i32, i32
  }
  func.func @transform_2(%arg0: i32) -> (i32, i32) {
    %c0_i32 = arith.constant 0 : i32
    %c0_i32_0 = arith.constant 0 : i32
    %c0_i32_1 = arith.constant 0 : i32
    return %c0_i32, %c0_i32_0 : i32, i32
  }
  func.func @transform_3(%arg0: i32) -> (i32, i32) {
    %c0_i32 = arith.constant 0 : i32
    %c0_i32_0 = arith.constant 0 : i32
    %c0_i32_1 = arith.constant 0 : i32
    return %c0_i32, %c0_i32_0 : i32, i32
  }
  func.func @transform_4(%arg0: i32) -> (i32, i32, i32) {
    %c0_i32 = arith.constant 0 : i32
    %c0_i32_0 = arith.constant 0 : i32
    %c0_i32_1 = arith.constant 0 : i32
    return %arg0, %c0_i32, %c0_i32_0 : i32, i32, i32
  }
}

module attributes {stable_mosaic.version = 11 : i64} {
  func.func @kernel(%arg0: i32, %arg1: memref<9x256xf32, #tpu.memory_space<vmem>>, %arg2: memref<3x4x256xf32, #tpu.memory_space<vmem>>, %arg3: memref<4x36xf32, #tpu.memory_space<vmem>>, %arg4: memref<4x1xf32, #tpu.memory_space<vmem>>, %arg5: memref<3x4x256xf32, #tpu.memory_space<vmem>>) attributes {dimension_semantics = [#tpu.dimension_semantics<parallel>], iteration_bounds = array<i64: 1>, scalar_prefetch = 0 : i64, scratch_operands = 0 : i64, tpu.core_type = #tpu.core_type<tc>, window_params = [{pipeline_mode = #tpu.pipeline_mode<synchronous>, transform_indices = @transform_0, window_bounds = array<i64: 9, 256>}, {transform_indices = @transform_1, window_bounds = array<i64: 3, 4, 256>}, {pipeline_mode = #tpu.pipeline_mode<synchronous>, transform_indices = @transform_2, window_bounds = array<i64: 4, 36>}, {pipeline_mode = #tpu.pipeline_mode<synchronous>, transform_indices = @transform_3, window_bounds = array<i64: 4, 1>}, {transform_indices = @transform_4, window_bounds = array<i64: 3, 4, 256>}]} {
    %c0 = arith.constant 0 : index
    %c0_0 = arith.constant 0 : index
    %c0_1 = arith.constant 0 : index
    %0 = vector.load %arg2[%c0, %c0_0, %c0_1] : memref<3x4x256xf32, #tpu.memory_space<vmem>>, vector<3x4x256xf32>
    %c0_2 = arith.constant 0 : index
    %c0_3 = arith.constant 0 : index
    %1 = vector.load %arg1[%c0_2, %c0_3] : memref<9x256xf32, #tpu.memory_space<vmem>>, vector<9x256xf32>
    %c17_i32 = arith.constant 17 : i32
    %2 = tpu.dynamic_rotate %0 by %c17_i32 dim 2 : vector<3x4x256xf32>, i32 -> vector<3x4x256xf32>
    %3 = vector.extract_strided_slice %1 {offsets = [0, 0], sizes = [1, 256], strides = [1, 1]} : vector<9x256xf32> to vector<1x256xf32>
    %4 = vector.shape_cast %3 : vector<1x256xf32> to vector<256xf32>
    %5 = vector.shape_cast %4 : vector<256xf32> to vector<1x1x256xf32>
    %6 = vector.broadcast %5 : vector<1x1x256xf32> to vector<3x4x256xf32>
    %7 = arith.mulf %2, %6 : vector<3x4x256xf32>
    %c16_i32 = arith.constant 16 : i32
    %8 = tpu.dynamic_rotate %0 by %c16_i32 dim 2 : vector<3x4x256xf32>, i32 -> vector<3x4x256xf32>
    %9 = vector.extract_strided_slice %1 {offsets = [1, 0], sizes = [1, 256], strides = [1, 1]} : vector<9x256xf32> to vector<1x256xf32>
    %10 = vector.shape_cast %9 : vector<1x256xf32> to vector<256xf32>
    %11 = vector.shape_cast %10 : vector<256xf32> to vector<1x1x256xf32>
    %12 = vector.broadcast %11 : vector<1x1x256xf32> to vector<3x4x256xf32>
    %13 = arith.mulf %8, %12 : vector<3x4x256xf32>
    %c15_i32 = arith.constant 15 : i32
    %14 = tpu.dynamic_rotate %0 by %c15_i32 dim 2 : vector<3x4x256xf32>, i32 -> vector<3x4x256xf32>
    %15 = vector.extract_strided_slice %1 {offsets = [2, 0], sizes = [1, 256], strides = [1, 1]} : vector<9x256xf32> to vector<1x256xf32>
    %16 = vector.shape_cast %15 : vector<1x256xf32> to vector<256xf32>
    %17 = vector.shape_cast %16 : vector<256xf32> to vector<1x1x256xf32>
    %18 = vector.broadcast %17 : vector<1x1x256xf32> to vector<3x4x256xf32>
    %19 = arith.mulf %14, %18 : vector<3x4x256xf32>
    %c1_i32 = arith.constant 1 : i32
    %20 = tpu.dynamic_rotate %0 by %c1_i32 dim 2 : vector<3x4x256xf32>, i32 -> vector<3x4x256xf32>
    %21 = vector.extract_strided_slice %1 {offsets = [3, 0], sizes = [1, 256], strides = [1, 1]} : vector<9x256xf32> to vector<1x256xf32>
    %22 = vector.shape_cast %21 : vector<1x256xf32> to vector<256xf32>
    %23 = vector.shape_cast %22 : vector<256xf32> to vector<1x1x256xf32>
    %24 = vector.broadcast %23 : vector<1x1x256xf32> to vector<3x4x256xf32>
    %25 = arith.mulf %20, %24 : vector<3x4x256xf32>
    %c255_i32 = arith.constant 255 : i32
    %26 = tpu.dynamic_rotate %0 by %c255_i32 dim 2 : vector<3x4x256xf32>, i32 -> vector<3x4x256xf32>
    %27 = vector.extract_strided_slice %1 {offsets = [5, 0], sizes = [1, 256], strides = [1, 1]} : vector<9x256xf32> to vector<1x256xf32>
    %28 = vector.shape_cast %27 : vector<1x256xf32> to vector<256xf32>
    %29 = vector.shape_cast %28 : vector<256xf32> to vector<1x1x256xf32>
    %30 = vector.broadcast %29 : vector<1x1x256xf32> to vector<3x4x256xf32>
    %31 = arith.mulf %26, %30 : vector<3x4x256xf32>
    %c241_i32 = arith.constant 241 : i32
    %32 = tpu.dynamic_rotate %0 by %c241_i32 dim 2 : vector<3x4x256xf32>, i32 -> vector<3x4x256xf32>
    %33 = vector.extract_strided_slice %1 {offsets = [6, 0], sizes = [1, 256], strides = [1, 1]} : vector<9x256xf32> to vector<1x256xf32>
    %34 = vector.shape_cast %33 : vector<1x256xf32> to vector<256xf32>
    %35 = vector.shape_cast %34 : vector<256xf32> to vector<1x1x256xf32>
    %36 = vector.broadcast %35 : vector<1x1x256xf32> to vector<3x4x256xf32>
    %37 = arith.mulf %32, %36 : vector<3x4x256xf32>
    %c240_i32 = arith.constant 240 : i32
    %38 = tpu.dynamic_rotate %0 by %c240_i32 dim 2 : vector<3x4x256xf32>, i32 -> vector<3x4x256xf32>
    %39 = vector.extract_strided_slice %1 {offsets = [7, 0], sizes = [1, 256], strides = [1, 1]} : vector<9x256xf32> to vector<1x256xf32>
    %40 = vector.shape_cast %39 : vector<1x256xf32> to vector<256xf32>
    %41 = vector.shape_cast %40 : vector<256xf32> to vector<1x1x256xf32>
    %42 = vector.broadcast %41 : vector<1x1x256xf32> to vector<3x4x256xf32>
    %43 = arith.mulf %38, %42 : vector<3x4x256xf32>
    %c239_i32 = arith.constant 239 : i32
    %44 = tpu.dynamic_rotate %0 by %c239_i32 dim 2 : vector<3x4x256xf32>, i32 -> vector<3x4x256xf32>
    %45 = vector.extract_strided_slice %1 {offsets = [8, 0], sizes = [1, 256], strides = [1, 1]} : vector<9x256xf32> to vector<1x256xf32>
    %46 = vector.shape_cast %45 : vector<1x256xf32> to vector<256xf32>
    %47 = vector.shape_cast %46 : vector<256xf32> to vector<1x1x256xf32>
    %48 = vector.broadcast %47 : vector<1x1x256xf32> to vector<3x4x256xf32>
    %49 = arith.mulf %44, %48 : vector<3x4x256xf32>
    %50 = tpu.concatenate %7, %13, %19, %25, %0, %31, %37, %43, %49 in 1 : vector<3x4x256xf32>, vector<3x4x256xf32>, vector<3x4x256xf32>, vector<3x4x256xf32>, vector<3x4x256xf32>, vector<3x4x256xf32>, vector<3x4x256xf32>, vector<3x4x256xf32>, vector<3x4x256xf32> -> vector<3x36x256xf32>
    %c0_4 = arith.constant 0 : index
    %c0_5 = arith.constant 0 : index
    %51 = vector.load %arg3[%c0_4, %c0_5] : memref<4x36xf32, #tpu.memory_space<vmem>>, vector<4x36xf32>
    %c0_6 = arith.constant 0 : index
    %c0_7 = arith.constant 0 : index
    %52 = vector.load %arg4[%c0_6, %c0_7] : memref<4x1xf32, #tpu.memory_space<vmem>>, vector<4x1xf32>
    %53 = vector.extract_strided_slice %50 {offsets = [0, 0, 0], sizes = [1, 36, 256], strides = [1, 1, 1]} : vector<3x36x256xf32> to vector<1x36x256xf32>
    %54 = vector.shape_cast %53 : vector<1x36x256xf32> to vector<36x256xf32>
    %cst = arith.constant dense<0.000000e+00> : vector<4x256xf32>
    %55 = tpu.matmul %51, %54, %cst {dimension_numbers = #tpu.dot_dimension_numbers<[1], [0], [0], [1], [0, 0, 1, 1], [], []>} : vector<4x36xf32>, vector<36x256xf32>, vector<4x256xf32> -> vector<4x256xf32>
    %56 = vector.broadcast %52 : vector<4x1xf32> to vector<4x256xf32>
    %57 = arith.addf %55, %56 : vector<4x256xf32>
    %c0_8 = arith.constant 0 : index
    %c0_9 = arith.constant 0 : index
    %c0_10 = arith.constant 0 : index
    %58 = vector.load %arg5[%c0_8, %c0_9, %c0_10] : memref<3x4x256xf32, #tpu.memory_space<vmem>>, vector<1x4x256xf32>
    %59 = vector.shape_cast %58 : vector<1x4x256xf32> to vector<4x256xf32>
    %60 = vector.shape_cast %57 : vector<4x256xf32> to vector<1x4x256xf32>
    tpu.vector_store %arg5[%c0_8, %c0_9, %c0_10], %60 {strides = array<i32>} : memref<3x4x256xf32, #tpu.memory_space<vmem>>, vector<1x4x256xf32>,
    %61 = vector.extract_strided_slice %50 {offsets = [1, 0, 0], sizes = [1, 36, 256], strides = [1, 1, 1]} : vector<3x36x256xf32> to vector<1x36x256xf32>
    %62 = vector.shape_cast %61 : vector<1x36x256xf32> to vector<36x256xf32>
    %cst_11 = arith.constant dense<0.000000e+00> : vector<4x256xf32>
    %63 = tpu.matmul %51, %62, %cst_11 {dimension_numbers = #tpu.dot_dimension_numbers<[1], [0], [0], [1], [0, 0, 1, 1], [], []>} : vector<4x36xf32>, vector<36x256xf32>, vector<4x256xf32> -> vector<4x256xf32>
    %64 = vector.broadcast %52 : vector<4x1xf32> to vector<4x256xf32>
    %65 = arith.addf %63, %64 : vector<4x256xf32>
    %c1 = arith.constant 1 : index
    %c0_12 = arith.constant 0 : index
    %c0_13 = arith.constant 0 : index
    %66 = vector.load %arg5[%c1, %c0_12, %c0_13] : memref<3x4x256xf32, #tpu.memory_space<vmem>>, vector<1x4x256xf32>
    %67 = vector.shape_cast %66 : vector<1x4x256xf32> to vector<4x256xf32>
    %68 = vector.shape_cast %65 : vector<4x256xf32> to vector<1x4x256xf32>
    tpu.vector_store %arg5[%c1, %c0_12, %c0_13], %68 {strides = array<i32>} : memref<3x4x256xf32, #tpu.memory_space<vmem>>, vector<1x4x256xf32>,
    %69 = vector.extract_strided_slice %50 {offsets = [2, 0, 0], sizes = [1, 36, 256], strides = [1, 1, 1]} : vector<3x36x256xf32> to vector<1x36x256xf32>
    %70 = vector.shape_cast %69 : vector<1x36x256xf32> to vector<36x256xf32>
    %cst_14 = arith.constant dense<0.000000e+00> : vector<4x256xf32>
    %71 = tpu.matmul %51, %70, %cst_14 {dimension_numbers = #tpu.dot_dimension_numbers<[1], [0], [0], [1], [0, 0, 1, 1], [], []>} : vector<4x36xf32>, vector<36x256xf32>, vector<4x256xf32> -> vector<4x256xf32>
    %72 = vector.broadcast %52 : vector<4x1xf32> to vector<4x256xf32>
    %73 = arith.addf %71, %72 : vector<4x256xf32>
    %c2 = arith.constant 2 : index
    %c0_15 = arith.constant 0 : index
    %c0_16 = arith.constant 0 : index
    %74 = vector.load %arg5[%c2, %c0_15, %c0_16] : memref<3x4x256xf32, #tpu.memory_space<vmem>>, vector<1x4x256xf32>
    %75 = vector.shape_cast %74 : vector<1x4x256xf32> to vector<4x256xf32>
    %76 = vector.shape_cast %73 : vector<4x256xf32> to vector<1x4x256xf32>
    tpu.vector_store %arg5[%c2, %c0_15, %c0_16], %76 {strides = array<i32>} : memref<3x4x256xf32, #tpu.memory_space<vmem>>, vector<1x4x256xf32>,
    return
  }
  func.func @transform_0(%arg0: i32) -> (i32, i32) {
    %c0_i32 = arith.constant 0 : i32
    %c0_i32_0 = arith.constant 0 : i32
    %c0_i32_1 = arith.constant 0 : i32
    return %c0_i32, %c0_i32_0 : i32, i32
  }
  func.func @transform_1(%arg0: i32) -> (i32, i32, i32) {
    %c0_i32 = arith.constant 0 : i32
    %c0_i32_0 = arith.constant 0 : i32
    %c0_i32_1 = arith.constant 0 : i32
    return %arg0, %c0_i32, %c0_i32_0 : i32, i32, i32
  }
  func.func @transform_2(%arg0: i32) -> (i32, i32) {
    %c0_i32 = arith.constant 0 : i32
    %c0_i32_0 = arith.constant 0 : i32
    %c0_i32_1 = arith.constant 0 : i32
    return %c0_i32, %c0_i32_0 : i32, i32
  }
  func.func @transform_3(%arg0: i32) -> (i32, i32) {
    %c0_i32 = arith.constant 0 : i32
    %c0_i32_0 = arith.constant 0 : i32
    %c0_i32_1 = arith.constant 0 : i32
    return %c0_i32, %c0_i32_0 : i32, i32
  }
  func.func @transform_4(%arg0: i32) -> (i32, i32, i32) {
    %c0_i32 = arith.constant 0 : i32
    %c0_i32_0 = arith.constant 0 : i32
    %c0_i32_1 = arith.constant 0 : i32
    return %arg0, %c0_i32, %c0_i32_0 : i32, i32, i32
  }
}

module attributes {stable_mosaic.version = 11 : i64} {
  func.func @kernel(%arg0: i32, %arg1: i32, %arg2: memref<9x256xf32, #tpu.memory_space<vmem>>, %arg3: memref<1x1x1x16x256xf32, #tpu.memory_space<vmem>>, %arg4: memref<1x16x36xf32, #tpu.memory_space<vmem>>, %arg5: memref<1x1x1x4x256xf32, #tpu.memory_space<vmem>>, %arg6: memref<1x1x4x256xf32, #tpu.memory_space<vmem>>, %arg7: memref<1x4x256xf32, #tpu.memory_space<vmem>>, %arg8: memref<1x4x256xf32, #tpu.memory_space<vmem>>) attributes {dimension_semantics = [#tpu.dimension_semantics<parallel>, #tpu.dimension_semantics<arbitrary>], iteration_bounds = array<i64: 2, 3>, scalar_prefetch = 0 : i64, scratch_operands = 2 : i64, tpu.core_type = #tpu.core_type<tc>, window_params = [{pipeline_mode = #tpu.pipeline_mode<synchronous>, transform_indices = @transform_0, window_bounds = array<i64: 9, 256>}, {transform_indices = @transform_1, window_bounds = array<i64: 1, 1, 1, 16, 256>}, {transform_indices = @transform_2, window_bounds = array<i64: 1, 16, 36>}, {transform_indices = @transform_3, window_bounds = array<i64: 1, 1, 1, 4, 256>}, {transform_indices = @transform_4, window_bounds = array<i64: 1, 1, 4, 256>}]} {
    %c0_i32 = arith.constant 0 : i32
    %0 = arith.cmpi eq, %arg1, %c0_i32 : i32
    %1 = arith.extui %0 : i1 to i32
    %c0_i32_0 = arith.constant 0 : i32
    %2 = arith.cmpi ne, %1, %c0_i32_0 : i32
    scf.if %2 {
      %cst_34 = arith.constant 0.000000e+00 : f32
      %101 = vector.broadcast %cst_34 : f32 to vector<1x4x256xf32>
      %c0_35 = arith.constant 0 : index
      %c0_36 = arith.constant 0 : index
      %c0_37 = arith.constant 0 : index
      %102 = vector.load %arg7[%c0_35, %c0_36, %c0_37] : memref<1x4x256xf32, #tpu.memory_space<vmem>>, vector<1x4x256xf32>
      tpu.vector_store %arg7[%c0_35, %c0_36, %c0_37], %101 {strides = array<i32>} : memref<1x4x256xf32, #tpu.memory_space<vmem>>, vector<1x4x256xf32>,
      %cst_38 = arith.constant 0.000000e+00 : f32
      %103 = vector.broadcast %cst_38 : f32 to vector<1x4x256xf32>
      %c0_39 = arith.constant 0 : index
      %c0_40 = arith.constant 0 : index
      %c0_41 = arith.constant 0 : index
      %104 = vector.load %arg8[%c0_39, %c0_40, %c0_41] : memref<1x4x256xf32, #tpu.memory_space<vmem>>, vector<1x4x256xf32>
      tpu.vector_store %arg8[%c0_39, %c0_40, %c0_41], %103 {strides = array<i32>} : memref<1x4x256xf32, #tpu.memory_space<vmem>>, vector<1x4x256xf32>,
    } else {
    }
    %c0 = arith.constant 0 : index
    %c0_1 = arith.constant 0 : index
    %3 = vector.load %arg2[%c0, %c0_1] : memref<9x256xf32, #tpu.memory_space<vmem>>, vector<9x256xf32>
    %c0_2 = arith.constant 0 : index
    %c0_3 = arith.constant 0 : index
    %c0_4 = arith.constant 0 : index
    %4 = vector.load %arg4[%c0_2, %c0_3, %c0_4] : memref<1x16x36xf32, #tpu.memory_space<vmem>>, vector<1x16x36xf32>
    %5 = vector.shape_cast %4 : vector<1x16x36xf32> to vector<16x36xf32>
    %c0_5 = arith.constant 0 : index
    %c0_6 = arith.constant 0 : index
    %c0_7 = arith.constant 0 : index
    %6 = vector.load %arg7[%c0_5, %c0_6, %c0_7] : memref<1x4x256xf32, #tpu.memory_space<vmem>>, vector<1x4x256xf32>
    %c17_i32 = arith.constant 17 : i32
    %7 = tpu.dynamic_rotate %6 by %c17_i32 dim 2 : vector<1x4x256xf32>, i32 -> vector<1x4x256xf32>
    %8 = vector.extract_strided_slice %3 {offsets = [0, 0], sizes = [1, 256], strides = [1, 1]} : vector<9x256xf32> to vector<1x256xf32>
    %9 = vector.shape_cast %8 : vector<1x256xf32> to vector<256xf32>
    %10 = vector.shape_cast %9 : vector<256xf32> to vector<1x1x256xf32>
    %11 = vector.broadcast %10 : vector<1x1x256xf32> to vector<1x4x256xf32>
    %12 = arith.mulf %7, %11 : vector<1x4x256xf32>
    %c16_i32 = arith.constant 16 : i32
    %13 = tpu.dynamic_rotate %6 by %c16_i32 dim 2 : vector<1x4x256xf32>, i32 -> vector<1x4x256xf32>
    %14 = vector.extract_strided_slice %3 {offsets = [1, 0], sizes = [1, 256], strides = [1, 1]} : vector<9x256xf32> to vector<1x256xf32>
    %15 = vector.shape_cast %14 : vector<1x256xf32> to vector<256xf32>
    %16 = vector.shape_cast %15 : vector<256xf32> to vector<1x1x256xf32>
    %17 = vector.broadcast %16 : vector<1x1x256xf32> to vector<1x4x256xf32>
    %18 = arith.mulf %13, %17 : vector<1x4x256xf32>
    %c15_i32 = arith.constant 15 : i32
    %19 = tpu.dynamic_rotate %6 by %c15_i32 dim 2 : vector<1x4x256xf32>, i32 -> vector<1x4x256xf32>
    %20 = vector.extract_strided_slice %3 {offsets = [2, 0], sizes = [1, 256], strides = [1, 1]} : vector<9x256xf32> to vector<1x256xf32>
    %21 = vector.shape_cast %20 : vector<1x256xf32> to vector<256xf32>
    %22 = vector.shape_cast %21 : vector<256xf32> to vector<1x1x256xf32>
    %23 = vector.broadcast %22 : vector<1x1x256xf32> to vector<1x4x256xf32>
    %24 = arith.mulf %19, %23 : vector<1x4x256xf32>
    %c1_i32 = arith.constant 1 : i32
    %25 = tpu.dynamic_rotate %6 by %c1_i32 dim 2 : vector<1x4x256xf32>, i32 -> vector<1x4x256xf32>
    %26 = vector.extract_strided_slice %3 {offsets = [3, 0], sizes = [1, 256], strides = [1, 1]} : vector<9x256xf32> to vector<1x256xf32>
    %27 = vector.shape_cast %26 : vector<1x256xf32> to vector<256xf32>
    %28 = vector.shape_cast %27 : vector<256xf32> to vector<1x1x256xf32>
    %29 = vector.broadcast %28 : vector<1x1x256xf32> to vector<1x4x256xf32>
    %30 = arith.mulf %25, %29 : vector<1x4x256xf32>
    %c255_i32 = arith.constant 255 : i32
    %31 = tpu.dynamic_rotate %6 by %c255_i32 dim 2 : vector<1x4x256xf32>, i32 -> vector<1x4x256xf32>
    %32 = vector.extract_strided_slice %3 {offsets = [5, 0], sizes = [1, 256], strides = [1, 1]} : vector<9x256xf32> to vector<1x256xf32>
    %33 = vector.shape_cast %32 : vector<1x256xf32> to vector<256xf32>
    %34 = vector.shape_cast %33 : vector<256xf32> to vector<1x1x256xf32>
    %35 = vector.broadcast %34 : vector<1x1x256xf32> to vector<1x4x256xf32>
    %36 = arith.mulf %31, %35 : vector<1x4x256xf32>
    %c241_i32 = arith.constant 241 : i32
    %37 = tpu.dynamic_rotate %6 by %c241_i32 dim 2 : vector<1x4x256xf32>, i32 -> vector<1x4x256xf32>
    %38 = vector.extract_strided_slice %3 {offsets = [6, 0], sizes = [1, 256], strides = [1, 1]} : vector<9x256xf32> to vector<1x256xf32>
    %39 = vector.shape_cast %38 : vector<1x256xf32> to vector<256xf32>
    %40 = vector.shape_cast %39 : vector<256xf32> to vector<1x1x256xf32>
    %41 = vector.broadcast %40 : vector<1x1x256xf32> to vector<1x4x256xf32>
    %42 = arith.mulf %37, %41 : vector<1x4x256xf32>
    %c240_i32 = arith.constant 240 : i32
    %43 = tpu.dynamic_rotate %6 by %c240_i32 dim 2 : vector<1x4x256xf32>, i32 -> vector<1x4x256xf32>
    %44 = vector.extract_strided_slice %3 {offsets = [7, 0], sizes = [1, 256], strides = [1, 1]} : vector<9x256xf32> to vector<1x256xf32>
    %45 = vector.shape_cast %44 : vector<1x256xf32> to vector<256xf32>
    %46 = vector.shape_cast %45 : vector<256xf32> to vector<1x1x256xf32>
    %47 = vector.broadcast %46 : vector<1x1x256xf32> to vector<1x4x256xf32>
    %48 = arith.mulf %43, %47 : vector<1x4x256xf32>
    %c239_i32 = arith.constant 239 : i32
    %49 = tpu.dynamic_rotate %6 by %c239_i32 dim 2 : vector<1x4x256xf32>, i32 -> vector<1x4x256xf32>
    %50 = vector.extract_strided_slice %3 {offsets = [8, 0], sizes = [1, 256], strides = [1, 1]} : vector<9x256xf32> to vector<1x256xf32>
    %51 = vector.shape_cast %50 : vector<1x256xf32> to vector<256xf32>
    %52 = vector.shape_cast %51 : vector<256xf32> to vector<1x1x256xf32>
    %53 = vector.broadcast %52 : vector<1x1x256xf32> to vector<1x4x256xf32>
    %54 = arith.mulf %49, %53 : vector<1x4x256xf32>
    %55 = tpu.concatenate %12, %18, %24, %30, %6, %36, %42, %48, %54 in 1 : vector<1x4x256xf32>, vector<1x4x256xf32>, vector<1x4x256xf32>, vector<1x4x256xf32>, vector<1x4x256xf32>, vector<1x4x256xf32>, vector<1x4x256xf32>, vector<1x4x256xf32>, vector<1x4x256xf32> -> vector<1x36x256xf32>
    %c0_8 = arith.constant 0 : index
    %c0_9 = arith.constant 0 : index
    %c0_10 = arith.constant 0 : index
    %c0_11 = arith.constant 0 : index
    %c0_12 = arith.constant 0 : index
    %56 = vector.load %arg3[%c0_8, %c0_9, %c0_10, %c0_11, %c0_12] : memref<1x1x1x16x256xf32, #tpu.memory_space<vmem>>, vector<1x1x1x16x256xf32>
    %57 = vector.shape_cast %56 : vector<1x1x1x16x256xf32> to vector<1x16x256xf32>
    %58 = vector.shape_cast %57 : vector<1x16x256xf32> to vector<16x256xf32>
    %59 = vector.shape_cast %55 : vector<1x36x256xf32> to vector<36x256xf32>
    %cst = arith.constant dense<0.000000e+00> : vector<16x256xf32>
    %60 = tpu.matmul %5, %59, %cst {dimension_numbers = #tpu.dot_dimension_numbers<[1], [0], [0], [1], [0, 0, 1, 1], [], []>} : vector<16x36xf32>, vector<36x256xf32>, vector<16x256xf32> -> vector<16x256xf32>
    %61 = arith.addf %58, %60 : vector<16x256xf32>
    %62 = vector.extract_strided_slice %61 {offsets = [0, 0], sizes = [4, 256], strides = [1, 1]} : vector<16x256xf32> to vector<4x256xf32>
    %63 = arith.negf %62 : vector<4x256xf32>
    %64 = math.exp %63 : vector<4x256xf32>
    %cst_13 = arith.constant 1.000000e+00 : f32
    %65 = vector.broadcast %cst_13 : f32 to vector<4x256xf32>
    %66 = arith.addf %65, %64 : vector<4x256xf32>
    %67 = arith.divf %65, %66 : vector<4x256xf32>
    %68 = vector.extract_strided_slice %61 {offsets = [4, 0], sizes = [4, 256], strides = [1, 1]} : vector<16x256xf32> to vector<4x256xf32>
    %69 = arith.negf %68 : vector<4x256xf32>
    %70 = math.exp %69 : vector<4x256xf32>
    %cst_14 = arith.constant 1.000000e+00 : f32
    %71 = vector.broadcast %cst_14 : f32 to vector<4x256xf32>
    %72 = arith.addf %71, %70 : vector<4x256xf32>
    %73 = arith.divf %71, %72 : vector<4x256xf32>
    %74 = vector.extract_strided_slice %61 {offsets = [8, 0], sizes = [4, 256], strides = [1, 1]} : vector<16x256xf32> to vector<4x256xf32>
    %75 = math.tanh %74 : vector<4x256xf32>
    %76 = vector.extract_strided_slice %61 {offsets = [12, 0], sizes = [4, 256], strides = [1, 1]} : vector<16x256xf32> to vector<4x256xf32>
    %77 = arith.negf %76 : vector<4x256xf32>
    %78 = math.exp %77 : vector<4x256xf32>
    %cst_15 = arith.constant 1.000000e+00 : f32
    %79 = vector.broadcast %cst_15 : f32 to vector<4x256xf32>
    %80 = arith.addf %79, %78 : vector<4x256xf32>
    %81 = arith.divf %79, %80 : vector<4x256xf32>
    %c0_16 = arith.constant 0 : index
    %c0_17 = arith.constant 0 : index
    %c0_18 = arith.constant 0 : index
    %82 = vector.load %arg8[%c0_16, %c0_17, %c0_18] : memref<1x4x256xf32, #tpu.memory_space<vmem>>, vector<1x4x256xf32>
    %83 = vector.shape_cast %82 : vector<1x4x256xf32> to vector<4x256xf32>
    %84 = arith.mulf %73, %83 : vector<4x256xf32>
    %85 = arith.mulf %67, %75 : vector<4x256xf32>
    %86 = arith.addf %84, %85 : vector<4x256xf32>
    %87 = math.tanh %86 : vector<4x256xf32>
    %88 = arith.mulf %81, %87 : vector<4x256xf32>
    %c0_19 = arith.constant 0 : index
    %c0_20 = arith.constant 0 : index
    %c0_21 = arith.constant 0 : index
    %89 = vector.load %arg8[%c0_19, %c0_20, %c0_21] : memref<1x4x256xf32, #tpu.memory_space<vmem>>, vector<1x4x256xf32>
    %90 = vector.shape_cast %89 : vector<1x4x256xf32> to vector<4x256xf32>
    %91 = vector.shape_cast %86 : vector<4x256xf32> to vector<1x4x256xf32>
    tpu.vector_store %arg8[%c0_19, %c0_20, %c0_21], %91 {strides = array<i32>} : memref<1x4x256xf32, #tpu.memory_space<vmem>>, vector<1x4x256xf32>,
    %c0_22 = arith.constant 0 : index
    %c0_23 = arith.constant 0 : index
    %c0_24 = arith.constant 0 : index
    %92 = vector.load %arg7[%c0_22, %c0_23, %c0_24] : memref<1x4x256xf32, #tpu.memory_space<vmem>>, vector<1x4x256xf32>
    %93 = vector.shape_cast %92 : vector<1x4x256xf32> to vector<4x256xf32>
    %94 = vector.shape_cast %88 : vector<4x256xf32> to vector<1x4x256xf32>
    tpu.vector_store %arg7[%c0_22, %c0_23, %c0_24], %94 {strides = array<i32>} : memref<1x4x256xf32, #tpu.memory_space<vmem>>, vector<1x4x256xf32>,
    %c0_25 = arith.constant 0 : index
    %c0_26 = arith.constant 0 : index
    %c0_27 = arith.constant 0 : index
    %c0_28 = arith.constant 0 : index
    %c0_29 = arith.constant 0 : index
    %95 = vector.load %arg5[%c0_25, %c0_26, %c0_27, %c0_28, %c0_29] : memref<1x1x1x4x256xf32, #tpu.memory_space<vmem>>, vector<1x1x1x4x256xf32>
    %96 = vector.shape_cast %95 : vector<1x1x1x4x256xf32> to vector<4x256xf32>
    %97 = vector.shape_cast %88 : vector<4x256xf32> to vector<1x1x1x4x256xf32>
    tpu.vector_store %arg5[%c0_25, %c0_26, %c0_27, %c0_28, %c0_29], %97 {strides = array<i32>} : memref<1x1x1x4x256xf32, #tpu.memory_space<vmem>>, vector<1x1x1x4x256xf32>,
    %c0_30 = arith.constant 0 : index
    %c0_31 = arith.constant 0 : index
    %c0_32 = arith.constant 0 : index
    %c0_33 = arith.constant 0 : index
    %98 = vector.load %arg6[%c0_30, %c0_31, %c0_32, %c0_33] : memref<1x1x4x256xf32, #tpu.memory_space<vmem>>, vector<1x1x4x256xf32>
    %99 = vector.shape_cast %98 : vector<1x1x4x256xf32> to vector<4x256xf32>
    %100 = vector.shape_cast %86 : vector<4x256xf32> to vector<1x1x4x256xf32>
    tpu.vector_store %arg6[%c0_30, %c0_31, %c0_32, %c0_33], %100 {strides = array<i32>} : memref<1x1x4x256xf32, #tpu.memory_space<vmem>>, vector<1x1x4x256xf32>,
    return
  }
  func.func @transform_0(%arg0: i32, %arg1: i32) -> (i32, i32) {
    %c0_i32 = arith.constant 0 : i32
    %c0_i32_0 = arith.constant 0 : i32
    %c0_i32_1 = arith.constant 0 : i32
    return %c0_i32, %c0_i32_0 : i32, i32
  }
  func.func @transform_1(%arg0: i32, %arg1: i32) -> (i32, i32, i32, i32, i32) {
    %c2_i32 = arith.constant 2 : i32
    %0 = arith.subi %c2_i32, %arg1 : i32
    %1 = arith.muli %arg0, %0 : i32
    %c1_i32 = arith.constant 1 : i32
    %2 = arith.subi %c1_i32, %arg0 : i32
    %3 = arith.muli %2, %arg1 : i32
    %4 = arith.addi %1, %3 : i32
    %c0_i32 = arith.constant 0 : i32
    %c0_i32_0 = arith.constant 0 : i32
    %c0_i32_1 = arith.constant 0 : i32
    %c0_i32_2 = arith.constant 0 : i32
    return %arg0, %4, %c0_i32, %c0_i32_0, %c0_i32_1 : i32, i32, i32, i32, i32
  }
  func.func @transform_2(%arg0: i32, %arg1: i32) -> (i32, i32, i32) {
    %c0_i32 = arith.constant 0 : i32
    %c0_i32_0 = arith.constant 0 : i32
    %c0_i32_1 = arith.constant 0 : i32
    return %arg0, %c0_i32, %c0_i32_0 : i32, i32, i32
  }
  func.func @transform_3(%arg0: i32, %arg1: i32) -> (i32, i32, i32, i32, i32) {
    %c2_i32 = arith.constant 2 : i32
    %0 = arith.subi %c2_i32, %arg1 : i32
    %1 = arith.muli %arg0, %0 : i32
    %c1_i32 = arith.constant 1 : i32
    %2 = arith.subi %c1_i32, %arg0 : i32
    %3 = arith.muli %2, %arg1 : i32
    %4 = arith.addi %1, %3 : i32
    %c0_i32 = arith.constant 0 : i32
    %c0_i32_0 = arith.constant 0 : i32
    %c0_i32_1 = arith.constant 0 : i32
    %c0_i32_2 = arith.constant 0 : i32
    return %arg0, %4, %c0_i32, %c0_i32_0, %c0_i32_1 : i32, i32, i32, i32, i32
  }
  func.func @transform_4(%arg0: i32, %arg1: i32) -> (i32, i32, i32, i32) {
    %c0_i32 = arith.constant 0 : i32
    %c0_i32_0 = arith.constant 0 : i32
    %c0_i32_1 = arith.constant 0 : i32
    %c0_i32_2 = arith.constant 0 : i32
    return %arg0, %c0_i32, %c0_i32_0, %c0_i32_1 : i32, i32, i32, i32
  }
}

module attributes {stable_mosaic.version = 11 : i64} {
  func.func @kernel(%arg0: i32, %arg1: memref<9x256xf32, #tpu.memory_space<vmem>>, %arg2: memref<2x8x256xf32, #tpu.memory_space<vmem>>, %arg3: memref<1x72xf32, #tpu.memory_space<vmem>>, %arg4: memref<1x1xf32, #tpu.memory_space<vmem>>, %arg5: memref<2x1x256xf32, #tpu.memory_space<vmem>>) attributes {dimension_semantics = [#tpu.dimension_semantics<parallel>], iteration_bounds = array<i64: 1>, scalar_prefetch = 0 : i64, scratch_operands = 0 : i64, tpu.core_type = #tpu.core_type<tc>, window_params = [{pipeline_mode = #tpu.pipeline_mode<synchronous>, transform_indices = @transform_0, window_bounds = array<i64: 9, 256>}, {transform_indices = @transform_1, window_bounds = array<i64: 2, 8, 256>}, {pipeline_mode = #tpu.pipeline_mode<synchronous>, transform_indices = @transform_2, window_bounds = array<i64: 1, 72>}, {pipeline_mode = #tpu.pipeline_mode<synchronous>, transform_indices = @transform_3, window_bounds = array<i64: 1, 1>}, {transform_indices = @transform_4, window_bounds = array<i64: 2, 1, 256>}]} {
    %c0 = arith.constant 0 : index
    %c0_0 = arith.constant 0 : index
    %c0_1 = arith.constant 0 : index
    %0 = vector.load %arg2[%c0, %c0_0, %c0_1] : memref<2x8x256xf32, #tpu.memory_space<vmem>>, vector<2x8x256xf32>
    %c0_2 = arith.constant 0 : index
    %c0_3 = arith.constant 0 : index
    %1 = vector.load %arg1[%c0_2, %c0_3] : memref<9x256xf32, #tpu.memory_space<vmem>>, vector<9x256xf32>
    %c17_i32 = arith.constant 17 : i32
    %2 = tpu.dynamic_rotate %0 by %c17_i32 dim 2 : vector<2x8x256xf32>, i32 -> vector<2x8x256xf32>
    %3 = vector.extract_strided_slice %1 {offsets = [0, 0], sizes = [1, 256], strides = [1, 1]} : vector<9x256xf32> to vector<1x256xf32>
    %4 = vector.shape_cast %3 : vector<1x256xf32> to vector<256xf32>
    %5 = vector.shape_cast %4 : vector<256xf32> to vector<1x1x256xf32>
    %6 = vector.broadcast %5 : vector<1x1x256xf32> to vector<2x8x256xf32>
    %7 = arith.mulf %2, %6 : vector<2x8x256xf32>
    %c16_i32 = arith.constant 16 : i32
    %8 = tpu.dynamic_rotate %0 by %c16_i32 dim 2 : vector<2x8x256xf32>, i32 -> vector<2x8x256xf32>
    %9 = vector.extract_strided_slice %1 {offsets = [1, 0], sizes = [1, 256], strides = [1, 1]} : vector<9x256xf32> to vector<1x256xf32>
    %10 = vector.shape_cast %9 : vector<1x256xf32> to vector<256xf32>
    %11 = vector.shape_cast %10 : vector<256xf32> to vector<1x1x256xf32>
    %12 = vector.broadcast %11 : vector<1x1x256xf32> to vector<2x8x256xf32>
    %13 = arith.mulf %8, %12 : vector<2x8x256xf32>
    %c15_i32 = arith.constant 15 : i32
    %14 = tpu.dynamic_rotate %0 by %c15_i32 dim 2 : vector<2x8x256xf32>, i32 -> vector<2x8x256xf32>
    %15 = vector.extract_strided_slice %1 {offsets = [2, 0], sizes = [1, 256], strides = [1, 1]} : vector<9x256xf32> to vector<1x256xf32>
    %16 = vector.shape_cast %15 : vector<1x256xf32> to vector<256xf32>
    %17 = vector.shape_cast %16 : vector<256xf32> to vector<1x1x256xf32>
    %18 = vector.broadcast %17 : vector<1x1x256xf32> to vector<2x8x256xf32>
    %19 = arith.mulf %14, %18 : vector<2x8x256xf32>
    %c1_i32 = arith.constant 1 : i32
    %20 = tpu.dynamic_rotate %0 by %c1_i32 dim 2 : vector<2x8x256xf32>, i32 -> vector<2x8x256xf32>
    %21 = vector.extract_strided_slice %1 {offsets = [3, 0], sizes = [1, 256], strides = [1, 1]} : vector<9x256xf32> to vector<1x256xf32>
    %22 = vector.shape_cast %21 : vector<1x256xf32> to vector<256xf32>
    %23 = vector.shape_cast %22 : vector<256xf32> to vector<1x1x256xf32>
    %24 = vector.broadcast %23 : vector<1x1x256xf32> to vector<2x8x256xf32>
    %25 = arith.mulf %20, %24 : vector<2x8x256xf32>
    %c255_i32 = arith.constant 255 : i32
    %26 = tpu.dynamic_rotate %0 by %c255_i32 dim 2 : vector<2x8x256xf32>, i32 -> vector<2x8x256xf32>
    %27 = vector.extract_strided_slice %1 {offsets = [5, 0], sizes = [1, 256], strides = [1, 1]} : vector<9x256xf32> to vector<1x256xf32>
    %28 = vector.shape_cast %27 : vector<1x256xf32> to vector<256xf32>
    %29 = vector.shape_cast %28 : vector<256xf32> to vector<1x1x256xf32>
    %30 = vector.broadcast %29 : vector<1x1x256xf32> to vector<2x8x256xf32>
    %31 = arith.mulf %26, %30 : vector<2x8x256xf32>
    %c241_i32 = arith.constant 241 : i32
    %32 = tpu.dynamic_rotate %0 by %c241_i32 dim 2 : vector<2x8x256xf32>, i32 -> vector<2x8x256xf32>
    %33 = vector.extract_strided_slice %1 {offsets = [6, 0], sizes = [1, 256], strides = [1, 1]} : vector<9x256xf32> to vector<1x256xf32>
    %34 = vector.shape_cast %33 : vector<1x256xf32> to vector<256xf32>
    %35 = vector.shape_cast %34 : vector<256xf32> to vector<1x1x256xf32>
    %36 = vector.broadcast %35 : vector<1x1x256xf32> to vector<2x8x256xf32>
    %37 = arith.mulf %32, %36 : vector<2x8x256xf32>
    %c240_i32 = arith.constant 240 : i32
    %38 = tpu.dynamic_rotate %0 by %c240_i32 dim 2 : vector<2x8x256xf32>, i32 -> vector<2x8x256xf32>
    %39 = vector.extract_strided_slice %1 {offsets = [7, 0], sizes = [1, 256], strides = [1, 1]} : vector<9x256xf32> to vector<1x256xf32>
    %40 = vector.shape_cast %39 : vector<1x256xf32> to vector<256xf32>
    %41 = vector.shape_cast %40 : vector<256xf32> to vector<1x1x256xf32>
    %42 = vector.broadcast %41 : vector<1x1x256xf32> to vector<2x8x256xf32>
    %43 = arith.mulf %38, %42 : vector<2x8x256xf32>
    %c239_i32 = arith.constant 239 : i32
    %44 = tpu.dynamic_rotate %0 by %c239_i32 dim 2 : vector<2x8x256xf32>, i32 -> vector<2x8x256xf32>
    %45 = vector.extract_strided_slice %1 {offsets = [8, 0], sizes = [1, 256], strides = [1, 1]} : vector<9x256xf32> to vector<1x256xf32>
    %46 = vector.shape_cast %45 : vector<1x256xf32> to vector<256xf32>
    %47 = vector.shape_cast %46 : vector<256xf32> to vector<1x1x256xf32>
    %48 = vector.broadcast %47 : vector<1x1x256xf32> to vector<2x8x256xf32>
    %49 = arith.mulf %44, %48 : vector<2x8x256xf32>
    %50 = tpu.concatenate %7, %13, %19, %25, %0, %31, %37, %43, %49 in 1 : vector<2x8x256xf32>, vector<2x8x256xf32>, vector<2x8x256xf32>, vector<2x8x256xf32>, vector<2x8x256xf32>, vector<2x8x256xf32>, vector<2x8x256xf32>, vector<2x8x256xf32>, vector<2x8x256xf32> -> vector<2x72x256xf32>
    %c0_4 = arith.constant 0 : index
    %c0_5 = arith.constant 0 : index
    %51 = vector.load %arg3[%c0_4, %c0_5] : memref<1x72xf32, #tpu.memory_space<vmem>>, vector<1x72xf32>
    %c0_6 = arith.constant 0 : index
    %c0_7 = arith.constant 0 : index
    %52 = vector.load %arg4[%c0_6, %c0_7] : memref<1x1xf32, #tpu.memory_space<vmem>>, vector<1x1xf32>
    %53 = vector.extract_strided_slice %50 {offsets = [0, 0, 0], sizes = [1, 72, 256], strides = [1, 1, 1]} : vector<2x72x256xf32> to vector<1x72x256xf32>
    %54 = vector.shape_cast %53 : vector<1x72x256xf32> to vector<72x256xf32>
    %cst = arith.constant dense<0.000000e+00> : vector<1x256xf32>
    %55 = tpu.matmul %51, %54, %cst {dimension_numbers = #tpu.dot_dimension_numbers<[1], [0], [0], [1], [0, 0, 1, 1], [], []>} : vector<1x72xf32>, vector<72x256xf32>, vector<1x256xf32> -> vector<1x256xf32>
    %56 = vector.broadcast %52 : vector<1x1xf32> to vector<1x256xf32>
    %57 = arith.addf %55, %56 : vector<1x256xf32>
    %c0_8 = arith.constant 0 : index
    %c0_9 = arith.constant 0 : index
    %c0_10 = arith.constant 0 : index
    %58 = vector.load %arg5[%c0_8, %c0_9, %c0_10] : memref<2x1x256xf32, #tpu.memory_space<vmem>>, vector<1x1x256xf32>
    %59 = vector.shape_cast %58 : vector<1x1x256xf32> to vector<1x256xf32>
    %60 = vector.shape_cast %57 : vector<1x256xf32> to vector<1x1x256xf32>
    tpu.vector_store %arg5[%c0_8, %c0_9, %c0_10], %60 {strides = array<i32>} : memref<2x1x256xf32, #tpu.memory_space<vmem>>, vector<1x1x256xf32>,
    %61 = vector.extract_strided_slice %50 {offsets = [1, 0, 0], sizes = [1, 72, 256], strides = [1, 1, 1]} : vector<2x72x256xf32> to vector<1x72x256xf32>
    %62 = vector.shape_cast %61 : vector<1x72x256xf32> to vector<72x256xf32>
    %cst_11 = arith.constant dense<0.000000e+00> : vector<1x256xf32>
    %63 = tpu.matmul %51, %62, %cst_11 {dimension_numbers = #tpu.dot_dimension_numbers<[1], [0], [0], [1], [0, 0, 1, 1], [], []>} : vector<1x72xf32>, vector<72x256xf32>, vector<1x256xf32> -> vector<1x256xf32>
    %64 = vector.broadcast %52 : vector<1x1xf32> to vector<1x256xf32>
    %65 = arith.addf %63, %64 : vector<1x256xf32>
    %c1 = arith.constant 1 : index
    %c0_12 = arith.constant 0 : index
    %c0_13 = arith.constant 0 : index
    %66 = vector.load %arg5[%c1, %c0_12, %c0_13] : memref<2x1x256xf32, #tpu.memory_space<vmem>>, vector<1x1x256xf32>
    %67 = vector.shape_cast %66 : vector<1x1x256xf32> to vector<1x256xf32>
    %68 = vector.shape_cast %65 : vector<1x256xf32> to vector<1x1x256xf32>
    tpu.vector_store %arg5[%c1, %c0_12, %c0_13], %68 {strides = array<i32>} : memref<2x1x256xf32, #tpu.memory_space<vmem>>, vector<1x1x256xf32>,
    return
  }
  func.func @transform_0(%arg0: i32) -> (i32, i32) {
    %c0_i32 = arith.constant 0 : i32
    %c0_i32_0 = arith.constant 0 : i32
    %c0_i32_1 = arith.constant 0 : i32
    return %c0_i32, %c0_i32_0 : i32, i32
  }
  func.func @transform_1(%arg0: i32) -> (i32, i32, i32) {
    %c0_i32 = arith.constant 0 : i32
    %c0_i32_0 = arith.constant 0 : i32
    %c0_i32_1 = arith.constant 0 : i32
    return %arg0, %c0_i32, %c0_i32_0 : i32, i32, i32
  }
  func.func @transform_2(%arg0: i32) -> (i32, i32) {
    %c0_i32 = arith.constant 0 : i32
    %c0_i32_0 = arith.constant 0 : i32
    %c0_i32_1 = arith.constant 0 : i32
    return %c0_i32, %c0_i32_0 : i32, i32
  }
  func.func @transform_3(%arg0: i32) -> (i32, i32) {
    %c0_i32 = arith.constant 0 : i32
    %c0_i32_0 = arith.constant 0 : i32
    %c0_i32_1 = arith.constant 0 : i32
    return %c0_i32, %c0_i32_0 : i32, i32
  }
  func.func @transform_4(%arg0: i32) -> (i32, i32, i32) {
    %c0_i32 = arith.constant 0 : i32
    %c0_i32_0 = arith.constant 0 : i32
    %c0_i32_1 = arith.constant 0 : i32
    return %arg0, %c0_i32, %c0_i32_0 : i32, i32, i32
  }
}

</mosaic_0001>

<bundles_post_ra>
// kernel: multi_block_lstm_forward.14
= control target key start
LH: loop header
LB: loop body
LE: loop exit
PB: predicated region body
PF: predicated region fallthrough
CT: control target
= control target key end

     0   :  { %v217_v1 = vmov 0   ;;  %vm35_vm0 = vcmask 1041408   ;;  %vm31_vm1 = vcmask 15360   ;;  %vm83_vm2 = vcmask 1043456   ;;  %s282_s1 = inlined_call_operand.vmem [shape: f32[3,2,256], index: 1, kind: input, shape index: {}]   ;;  %s283_s0 = inlined_call_operand.vmem [shape: f32[1,256], index: 0, kind: input, shape index: {}]   ;;  %s284_s3 = inlined_call_operand.vmem [shape: f32[4,1], index: 3, kind: input, shape index: {}]   ;;  %s285_s2 = inlined_call_operand.vmem [shape: f32[4,2], index: 2, kind: input, shape index: {}]   ;;  %s286_s4 = inlined_call_operand.vmem [shape: f32[3,4,256], index: 4, kind: output, shape index: {}]  }
   0x1   :  { %v17_v0 = vld [vmem:[%s282_s1] sm:$0xf]  ;;  %216 = vset.pattern.permute.xlu0 %v217_v1  ;;  %v18_v3 = vld [vmem:[%s282_s1 + $0x4] sm:$0xf]  ;;  %v19_v7 = vld [vmem:[%s282_s1 + $0x8] sm:$0xf] }
   0x2   :  { %28 = vst [vmem:[#allocation1] ss:$4 sm:$0xff] %v17_v0  ;;  %v21_v2 = vld [vmem:[%s284_s3] sm:$0xf] }
   0x3   :  { %24 = vperm.xlu0 %216, %v21_v2   ;;  %v20_v4 = vld [vmem:[%s285_s2] sm:$0xf] }
   0x9   :  { %v30_v5 = vld.sshfl [vmem:[#allocation1 + $0x8] sm:$0xff pattern:$0x73625140]  ;;  %v29_v6 = vld.sshfl [vmem:[#allocation1] sm:$0xff pattern:$0x73625140] }
   0xa   :  { %203 = vmatpush.msk.msra.mxu1 %vm35_vm0, %v30_v5  ;;  %201 = vmatpush.msk.msra.mxu0 %vm35_vm0, %v29_v6  ;;  %88 = vst [vmem:[#allocation1] ss:$4 sm:$0xff] %v18_v3 }
   0xb   :  { %204 = vmatmul.msk.f32.vlgmr.msra.gmra.mxu1 %vm31_vm1, %v20_v4  ;;  %202 = vmatmul.msk.f32.vlgmr.msra.gmra.mxu0 %vm31_vm1, %v20_v4 }
  0x11   :  { %v89_v8 = vld.sshfl [vmem:[#allocation1] sm:$0xff pattern:$0x73625140]  ;;  %v90_v9 = vld.sshfl [vmem:[#allocation1 + $0x8] sm:$0xff pattern:$0x73625140] }
  0x12   :  { %207 = vmatpush.msk.msra.mxu3 %vm35_vm0, %v90_v9  ;;  %143 = vst [vmem:[#allocation1] ss:$4 sm:$0xff] %v19_v7  ;;  %205 = vmatpush.msk.msra.mxu2 %vm35_vm0, %v89_v8 }
  0x13   :  { %208 = vmatmul.msk.f32.vlgmr.msra.gmra.mxu3 %vm31_vm1, %v20_v4  ;;  %206 = vmatmul.msk.f32.vlgmr.msra.gmra.mxu2 %vm31_vm1, %v20_v4 }
  0x19   :  { %v145_v10 = vld.sshfl [vmem:[#allocation1 + $0x8] sm:$0xff pattern:$0x73625140]  ;;  %v144_v11 = vld.sshfl [vmem:[#allocation1] sm:$0xff pattern:$0x73625140] }
  0x1a   :  { %212 = vmatpush.msk.msrb.mxu1 %vm35_vm0, %v145_v10  ;;  %210 = vmatpush.msk.msrb.mxu0 %vm35_vm0, %v144_v11 }
  0x1b   :  { %213 = vmatmul.msk.f32.vlgmr.msrb.gmra.mxu1 %vm31_vm1, %v20_v4  ;;  %211 = vmatmul.msk.f32.vlgmr.msrb.gmra.mxu0 %vm31_vm1, %v20_v4 }
  0x75   :  { %v25_v12 = vpop.permute.xlu0 %24 }
  0x88   :  { %v77_v13 = vpop.f32.mrf.mxu1  ;;  %v57_v14 = vpop.f32.mrf.mxu0 }
  0x89   :  { %v78_v15 = vadd.f32 %v77_v13, %v25_v12  ;;  %v58_v16 = vadd.f32 %v57_v14, %v25_v12 }
  0x8b   :  { %v82_v17 = vrot.slane %v78_v15, 4 }
  0x8d   :  { %v84_v18 = vsel %vm83_vm2, %v58_v16, %v82_v17 }
  0x8e   :  { %86 = vst [vmem:[%s286_s4] sm:$0xff] %v84_v18 }
  0x96   :  { %v132_v19 = vpop.f32.mrf.mxu3  ;;  %v112_v20 = vpop.f32.mrf.mxu2 }
  0x97   :  { %v133_v21 = vadd.f32 %v132_v19, %v25_v12  ;;  %v113_v22 = vadd.f32 %v112_v20, %v25_v12 }
  0x98   :  { %v187_v23 = vpop.f32.mrf.mxu1  ;;  %v167_v24 = vpop.f32.mrf.mxu0 }
  0x99   :  { %v137_v25 = vrot.slane %v133_v21, 4  ;;  %v188_v26 = vadd.f32 %v187_v23, %v25_v12  ;;  %v168_v29 = vadd.f32 %v167_v24, %v25_v12 }
  0x9b   :  { %v192_v27 = vrot.slane %v188_v26, 4  ;;  %v138_v28 = vsel %vm83_vm2, %v113_v22, %v137_v25 }
  0x9c   :  { %209 = vst [vmem:[%s286_s4 + $0x8] sm:$0xff] %v138_v28 }
  0x9d   :  { %v193_v30 = vsel %vm83_vm2, %v168_v29, %v192_v27 }
  0x9e   :  { %214 = vst [vmem:[%s286_s4 + $0x10] sm:$0xff] %v193_v30 }

// kernel: multi_block_lstm_forward.13
= control target key start
LH: loop header
LB: loop body
LE: loop exit
PB: predicated region body
PF: predicated region fallthrough
CT: control target
= control target key end

     0   :  { %s735_s21 = smov 17   ;;  %s736_s22 = smov 16   ;;  %v55_v48 = vlaneseq  ;;  %vm497_vm2 = vcmask 1041408   ;;  %vm504_vm4 = vcmask 1043456   ;;  %vm511_vm6 = vcmask 1045504   ;;  %s1212_s1 = inlined_call_operand.vmem [shape: f32[3,2,256], index: 1, kind: input, shape index: {}]   ;;  %s1213_s0 = inlined_call_operand.vmem [shape: f32[9,256], index: 0, kind: input, shape index: {}]   ;;  %s1214_s2 = inlined_call_operand.vmem [shape: f32[4,18], index: 2, kind: input, shape index: {}]   ;;  %s1215_s3 = inlined_call_operand.vmem [shape: f32[4,1], index: 3, kind: input, shape index: {}]   ;;  %s1216_s4 = inlined_call_operand.vmem [shape: f32[3,4,256], index: 4, kind: output, shape index: {}]  }
   0x1   :  { %v772_v0 = vld [vmem:[%s1212_s1] sm:$0xf]  ;;  %v777_v1 = vld [vmem:[%s1212_s1 + $0x4] sm:$0xf]  ;;  %v784_v2 = vld [vmem:[%s1212_s1 + $0x8] sm:$0xf] }
   0x2   :  { %27 = vst [vmem:[#allocation1] ss:$4 sm:$0xff] %v772_v0  ;;  %s737_s1 = smov 15   ;;  %s738_s23 = smov 127   ;;  %v861_v50 = vand.u32 127, %v55_v48  ;;  %v866_v51 = vld [vmem:[%s1213_s0] sm:$0xff] }
   0x3   :  { %31 = vst [vmem:[#allocation1 + $0x20] ss:$4 sm:$0xff] %v777_v1  ;;  %s739_s24 = smov 113   ;;  %s740_s25 = smov 1   ;;  %v872_v52 = vld [vmem:[%s1213_s0 + $0x8] sm:$0xff]  ;;  %v877_v53 = vperm.slane %v866_v51, 0 }
   0x4   :  { %s741_s26 = smov 112   ;;  %s742_s27 = smov 111   ;;  %vm57_vm0 = vcmp.lt.s32.totalorder %v861_v50, 17  ;;  %v880_v54 = vperm.slane %v872_v52, 0  ;;  %v883_v55 = vperm.slane %v866_v51, 1  ;;  %vm100_vm1 = vcmp.lt.s32.totalorder %v861_v50, 16 }
   0x5   :  { %v893_v61 = vperm.slane %v872_v52, 1  ;;  %vm143_vm3 = vcmp.lt.s32.totalorder %v861_v50, 15  ;;  %vm186_vm5 = vcmp.lt.s32.totalorder %v861_v50, 1  ;;  %vm229_vm7 = vcmp.lt.s32.totalorder %v861_v50, 127 }
   0x6   :  { %vm272_vm8 = vcmp.lt.s32.totalorder %v861_v50, 113  ;;  %vm315_vm9 = vcmp.lt.s32.totalorder %v861_v50, 112  ;;  %vm358_vm10 = vcmp.lt.s32.totalorder %v861_v50, 111  ;;  %vm543_vm11 = vcmask 146432  }
   0x9   :  { %v28_v3 = vld.sshfl [vmem:[#allocation1] sm:$0xff pattern:$0x73625140]  ;;  %v29_v4 = vld.sshfl [vmem:[#allocation1 + $0x8] sm:$0xff pattern:$0x73625140] }
   0xa   :  { %43 = vrot.lane.b32.xlu1 %v28_v3, %s735_s21  ;;  %v787_v5 = vld.sshfl [vmem:[#allocation1 + $0x20] sm:$0xff pattern:$0x73625140]  ;;  %v789_v6 = vld.sshfl [vmem:[#allocation1 + $0x28] sm:$0xff pattern:$0x73625140]  ;;  %49 = vrot.lane.b32.xlu2 %v29_v4, %s735_s21 }
   0xb   :  { %76 = vst [vmem:[#allocation1 + $0x20] ss:$4 sm:$0xff] %v777_v1 }
   0xc   :  { %34 = vst [vmem:[#allocation1] ss:$4 sm:$0xff] %v784_v2 }
  0x12   :  { %v77_v7 = vld.sshfl [vmem:[#allocation1 + $0x20] sm:$0xff pattern:$0x73625140]  ;;  %v78_v8 = vld.sshfl [vmem:[#allocation1 + $0x28] sm:$0xff pattern:$0x73625140] }
  0x13   :  { %90 = vrot.lane.b32.xlu0 %v77_v7, %s736_s22  ;;  %119 = vst [vmem:[#allocation1 + $0x20] ss:$4 sm:$0xff] %v777_v1  ;;  %96 = vrot.lane.b32.xlu1 %v78_v8, %s736_s22  ;;  %v797_v9 = vld.sshfl [vmem:[#allocation1] sm:$0xff pattern:$0x73625140] }
  0x14   :  { %v799_v10 = vld.sshfl [vmem:[#allocation1 + $0x8] sm:$0xff pattern:$0x73625140] }
  0x15   :  { %72 = vst [vmem:[#allocation1] ss:$4 sm:$0xff] %v772_v0 }
  0x1a   :  { %v120_v11 = vld.sshfl [vmem:[#allocation1 + $0x20] sm:$0xff pattern:$0x73625140]  ;;  %v121_v12 = vld.sshfl [vmem:[#allocation1 + $0x28] sm:$0xff pattern:$0x73625140] }
  0x1b   :  { %133 = vrot.lane.b32.xlu0 %v120_v11, %s737_s1  ;;  %162 = vst [vmem:[#allocation1 + $0x20] ss:$4 sm:$0xff] %v777_v1  ;;  %139 = vrot.lane.b32.xlu1 %v121_v12, %s737_s1 }
  0x1c   :  { %v73_v13 = vld.sshfl [vmem:[#allocation1] sm:$0xff pattern:$0x73625140]  ;;  %v74_v14 = vld.sshfl [vmem:[#allocation1 + $0x8] sm:$0xff pattern:$0x73625140] }
  0x1d   :  { %88 = vrot.lane.b32.xlu2 %v73_v13, %s736_s22  ;;  %79 = vst [vmem:[#allocation1] ss:$4 sm:$0xff] %v784_v2 }
  0x22   :  { %v163_v15 = vld.sshfl [vmem:[#allocation1 + $0x20] sm:$0xff pattern:$0x73625140]  ;;  %v164_v16 = vld.sshfl [vmem:[#allocation1 + $0x28] sm:$0xff pattern:$0x73625140] }
  0x23   :  { %205 = vst [vmem:[#allocation1 + $0x20] ss:$4 sm:$0xff] %v777_v1 }
  0x24   :  { %v80_v17 = vld.sshfl [vmem:[#allocation1] sm:$0xff pattern:$0x73625140]  ;;  %v81_v18 = vld.sshfl [vmem:[#allocation1 + $0x8] sm:$0xff pattern:$0x73625140] }
  0x25   :  { %94 = vrot.lane.b32.xlu2 %v74_v14, %s736_s22  ;;  %115 = vst [vmem:[#allocation1] ss:$4 sm:$0xff] %v772_v0 }
  0x2a   :  { %v206_v19 = vld.sshfl [vmem:[#allocation1 + $0x20] sm:$0xff pattern:$0x73625140]  ;;  %v207_v20 = vld.sshfl [vmem:[#allocation1 + $0x28] sm:$0xff pattern:$0x73625140] }
  0x2b   :  { %219 = vrot.lane.b32.xlu0 %v206_v19, %s738_s23  ;;  %225 = vrot.lane.b32.xlu1 %v207_v20, %s738_s23  ;;  %248 = vst [vmem:[#allocation1 + $0x20] ss:$4 sm:$0xff] %v777_v1 }
  0x2c   :  { %v116_v21 = vld.sshfl [vmem:[#allocation1] sm:$0xff pattern:$0x73625140]  ;;  %v117_v22 = vld.sshfl [vmem:[#allocation1 + $0x8] sm:$0xff pattern:$0x73625140] }
  0x2d   :  { %122 = vst [vmem:[#allocation1] ss:$4 sm:$0xff] %v784_v2  ;;  %137 = vrot.lane.b32.xlu2 %v117_v22, %s737_s1 }
  0x32   :  { %v249_v23 = vld.sshfl [vmem:[#allocation1 + $0x20] sm:$0xff pattern:$0x73625140]  ;;  %v250_v24 = vld.sshfl [vmem:[#allocation1 + $0x28] sm:$0xff pattern:$0x73625140] }
  0x33   :  { %262 = vrot.lane.b32.xlu0 %v249_v23, %s739_s24  ;;  %131 = vrot.lane.b32.xlu1 %v116_v21, %s737_s1  ;;  %291 = vst [vmem:[#allocation1 + $0x20] ss:$4 sm:$0xff] %v777_v1  ;;  %v923_v23 = vperm.slane %v866_v51, 2 }
  0x34   :  { %v818_v25 = vld.sshfl [vmem:[#allocation1] sm:$0xff pattern:$0x73625140]  ;;  %v124_v26 = vld.sshfl [vmem:[#allocation1 + $0x8] sm:$0xff pattern:$0x73625140] }
  0x35   :  { %158 = vst [vmem:[#allocation1] ss:$4 sm:$0xff] %v772_v0 }
  0x3a   :  { %v292_v27 = vld.sshfl [vmem:[#allocation1 + $0x20] sm:$0xff pattern:$0x73625140]  ;;  %v293_v28 = vld.sshfl [vmem:[#allocation1 + $0x28] sm:$0xff pattern:$0x73625140] }
  0x3b   :  { %268 = vrot.lane.b32.xlu1 %v250_v24, %s739_s24  ;;  %334 = vst [vmem:[#allocation1 + $0x20] ss:$4 sm:$0xff] %v777_v1 }
  0x3c   :  { %v160_v29 = vld.sshfl [vmem:[#allocation1 + $0x8] sm:$0xff pattern:$0x73625140]  ;;  %v159_v30 = vld.sshfl [vmem:[#allocation1] sm:$0xff pattern:$0x73625140] }
  0x3d   :  { %180 = vrot.lane.b32.xlu0 %v160_v29, %s740_s25  ;;  %174 = vrot.lane.b32.xlu2 %v159_v30, %s740_s25  ;;  %165 = vst [vmem:[#allocation1] ss:$4 sm:$0xff] %v784_v2 }
  0x42   :  { %v336_v31 = vld.sshfl [vmem:[#allocation1 + $0x28] sm:$0xff pattern:$0x73625140]  ;;  %v335_v34 = vld.sshfl [vmem:[#allocation1 + $0x20] sm:$0xff pattern:$0x73625140] }
  0x43   :  { %305 = vrot.lane.b32.xlu1 %v292_v27, %s741_s26  ;;  %431 = vst [vmem:[#allocation1 + $0x20] ss:$4 sm:$0xff] %v777_v1 }
  0x44   :  { %v827_v32 = vld.sshfl [vmem:[#allocation1] sm:$0xff pattern:$0x73625140]  ;;  %v829_v33 = vld.sshfl [vmem:[#allocation1 + $0x8] sm:$0xff pattern:$0x73625140] }
  0x45   :  { %176 = vrot.lane.b32.xlu0 %v163_v15, %s740_s25  ;;  %201 = vst [vmem:[#allocation1] ss:$4 sm:$0xff] %v772_v0  ;;  %51 = vrot.lane.b32.xlu2 %v789_v6, %s735_s21 }
  0x4b   :  { %45 = vrot.lane.b32.xlu1 %v787_v5, %s735_s21 }
  0x4c   :  { %v202_v35 = vld.sshfl [vmem:[#allocation1] sm:$0xff pattern:$0x73625140]  ;;  %v203_v36 = vld.sshfl [vmem:[#allocation1 + $0x8] sm:$0xff pattern:$0x73625140] }
  0x4d   :  { %92 = vrot.lane.b32.xlu0 %v80_v17, %s736_s22  ;;  %311 = vrot.lane.b32.xlu2 %v293_v28, %s741_s26  ;;  %208 = vst [vmem:[#allocation1] ss:$4 sm:$0xff] %v784_v2 }
  0x53   :  { %182 = vrot.lane.b32.xlu1 %v164_v16, %s740_s25 }
  0x54   :  { %v209_v37 = vld.sshfl [vmem:[#allocation1] sm:$0xff pattern:$0x73625140]  ;;  %v210_v38 = vld.sshfl [vmem:[#allocation1 + $0x8] sm:$0xff pattern:$0x73625140] }
  0x55   :  { %354 = vrot.lane.b32.xlu0 %v336_v31, %s742_s27  ;;  %244 = vst [vmem:[#allocation1] ss:$4 sm:$0xff] %v772_v0  ;;  %348 = vrot.lane.b32.xlu2 %v335_v34, %s742_s27 }
  0x5b   :  { %98 = vrot.lane.b32.xlu1 %v81_v18, %s736_s22 }
  0x5c   :  { %v245_v39 = vld.sshfl [vmem:[#allocation1] sm:$0xff pattern:$0x73625140]  ;;  %v246_v40 = vld.sshfl [vmem:[#allocation1 + $0x8] sm:$0xff pattern:$0x73625140] }
  0x5d   :  { %217 = vrot.lane.b32.xlu0 %v202_v35, %s738_s23  ;;  %251 = vst [vmem:[#allocation1] ss:$4 sm:$0xff] %v784_v2  ;;  %221 = vrot.lane.b32.xlu2 %v209_v37, %s738_s23  ;;  %v938_v35 = vperm.slane %v866_v51, 3 }
  0x63   :  { %260 = vrot.lane.b32.xlu1 %v245_v39, %s739_s24 }
  0x64   :  { %v252_v41 = vld.sshfl [vmem:[#allocation1] sm:$0xff pattern:$0x73625140]  ;;  %v253_v42 = vld.sshfl [vmem:[#allocation1 + $0x8] sm:$0xff pattern:$0x73625140]  ;;  %v50_v45 = vpop.permute.xlu2 %49 }
  0x65   :  { %223 = vrot.lane.b32.xlu0 %v203_v36, %s738_s23  ;;  %287 = vst [vmem:[#allocation1] ss:$4 sm:$0xff] %v772_v0  ;;  %141 = vrot.lane.b32.xlu2 %v124_v26, %s737_s1  ;;  %v941_v36 = vperm.slane %v872_v52, 3 }
  0x6b   :  { %266 = vrot.lane.b32.xlu1 %v246_v40, %s739_s24 }
  0x6c   :  { %v289_v43 = vld.sshfl [vmem:[#allocation1 + $0x8] sm:$0xff pattern:$0x73625140]  ;;  %v288_v44 = vld.sshfl [vmem:[#allocation1] sm:$0xff pattern:$0x73625140] }
  0x6d   :  { %227 = vrot.lane.b32.xlu0 %v210_v38, %s738_s23  ;;  %294 = vst [vmem:[#allocation1] ss:$4 sm:$0xff] %v784_v2  ;;  %270 = vrot.lane.b32.xlu2 %v253_v42, %s739_s24 }
  0x73   :  { %264 = vrot.lane.b32.xlu1 %v252_v41, %s739_s24 }
  0x74   :  { %v296_v46 = vld.sshfl [vmem:[#allocation1 + $0x8] sm:$0xff pattern:$0x73625140]  ;;  %v295_v47 = vld.sshfl [vmem:[#allocation1] sm:$0xff pattern:$0x73625140] }
  0x75   :  { %309 = vrot.lane.b32.xlu0 %v289_v43, %s741_s26  ;;  %330 = vst [vmem:[#allocation1] ss:$4 sm:$0xff] %v772_v0  ;;  %303 = vrot.lane.b32.xlu2 %v288_v44, %s741_s26 }
  0x77   :  { %v89_v49 = vpop.permute.xlu2 %88 }
  0x7b   :  { %135 = vrot.lane.b32.xlu1 %v818_v25, %s737_s1 }
  0x7c   :  { %v332_v56 = vld.sshfl [vmem:[#allocation1 + $0x8] sm:$0xff pattern:$0x73625140]  ;;  %v331_v57 = vld.sshfl [vmem:[#allocation1] sm:$0xff pattern:$0x73625140]  ;;  %v44_v58 = vpop.permute.xlu1 %43 }
  0x7d   :  { %313 = vrot.lane.b32.xlu0 %v296_v46, %s741_s26  ;;  %337 = vst [vmem:[#allocation1] ss:$4 sm:$0xff] %v784_v2  ;;  %v58_v59 = vsel %vm57_vm0, %v44_v58, %v50_v45  ;;  %v61_v60 = vsel %vm57_vm0, %v50_v45, %v44_v58  ;;  %307 = vrot.lane.b32.xlu2 %v295_v47, %s741_s26 }
  0x7e   :  { %v66_v3 = vmul.f32 %v877_v53, %v61_v60  ;;  %v67_v4 = vmul.f32 %v880_v54, %v58_v59  ;;  %v970_v60 = vperm.slane %v872_v52, 5 }
  0x7f   :  { %v95_v62 = vpop.permute.xlu2 %94 }
  0x80   :  { %v101_v63 = vsel %vm100_vm1, %v89_v49, %v95_v62  ;;  %v104_v1 = vsel %vm100_vm1, %v95_v62, %v89_v49 }
  0x81   :  { %v109_v5 = vmul.f32 %v883_v55, %v104_v1  ;;  %v110_v6 = vmul.f32 %v893_v61, %v101_v63 }
  0x83   :  { %v379_v7 = vrot.slane %v109_v5, 6  ;;  %v380_v8 = vrot.slane %v110_v6, 6 }
  0x84   :  { %v339_v11 = vld.sshfl [vmem:[#allocation1 + $0x8] sm:$0xff pattern:$0x73625140]  ;;  %v338_v12 = vld.sshfl [vmem:[#allocation1] sm:$0xff pattern:$0x73625140] }
  0x85   :  { %352 = vrot.lane.b32.xlu0 %v332_v56, %s742_s27  ;;  %356 = vrot.lane.b32.xlu1 %v339_v11, %s742_s27  ;;  %427 = vst [vmem:[#allocation1] ss:$4 sm:$0xff] %v772_v0  ;;  %v498_v13 = vsel %vm497_vm2, %v66_v3, %v379_v7  ;;  %v499_v14 = vsel %vm497_vm2, %v67_v4, %v380_v8  ;;  %v91_v15 = vpop.permute.xlu0 %90  ;;  %v97_v16 = vpop.permute.xlu1 %96  ;;  %v989_v11 = vperm.slane %v866_v51, 6 }
  0x86   :  { %346 = vrot.lane.b32.xlu2 %v331_v57, %s742_s27  ;;  %v105_v56 = vsel %vm100_vm1, %v97_v16, %v91_v15  ;;  %v963_v57 = vperm.slane %v866_v51, 5  ;;  %v102_v59 = vsel %vm100_vm1, %v91_v15, %v97_v16  ;;  %v999_v15 = vperm.slane %v866_v51, 7 }
  0x87   :  { %v138_v17 = vpop.permute.xlu2 %137  ;;  %v111_v62 = vmul.f32 %v883_v55, %v105_v56  ;;  %v112_v7 = vmul.f32 %v893_v61, %v102_v59 }
  0x8c   :  { %v974_v63 = vld.sshfl [vmem:[#allocation1] sm:$0xff pattern:$0x73625140]  ;;  %v976_v1 = vld.sshfl [vmem:[#allocation1 + $0x8] sm:$0xff pattern:$0x73625140] }
  0x8d   :  { %350 = vrot.lane.b32.xlu0 %v338_v12, %s742_s27  ;;  %178 = vrot.lane.b32.xlu1 %v827_v32, %s740_s25  ;;  %v134_v18 = vpop.permute.xlu0 %133  ;;  %v140_v19 = vpop.permute.xlu1 %139  ;;  %434 = vst [vmem:[#allocation1] ss:$4 sm:$0xff] %v784_v2  ;;  %v992_v12 = vperm.slane %v872_v52, 6  ;;  %v1002_v2 = vperm.slane %v872_v52, 7 }
  0x8e   :  { %47 = vrot.lane.b32.xlu2 %v797_v9, %s735_s21  ;;  %v926_v9 = vperm.slane %v872_v52, 2  ;;  %v145_v3 = vsel %vm143_vm3, %v134_v18, %v140_v19  ;;  %v148_v4 = vsel %vm143_vm3, %v140_v19, %v134_v18 }
  0x90   :  { %v155_v18 = vmul.f32 %v926_v9, %v145_v3 }
  0x95   :  { %53 = vrot.lane.b32.xlu0 %v799_v10, %s735_s21 }
  0x96   :  { %184 = vrot.lane.b32.xlu2 %v829_v33, %s740_s25 }
  0x97   :  { %v175_v0 = vpop.permute.xlu2 %174 }
  0x9d   :  { %v220_v20 = vpop.permute.xlu0 %219  ;;  %v226_v21 = vpop.permute.xlu1 %225 }
  0x9e   :  { %v231_v58 = vsel %vm229_vm7, %v220_v20, %v226_v21  ;;  %v234_v8 = vsel %vm229_vm7, %v226_v21, %v220_v20 }
  0x9f   :  { %v919_v22 = vpop.permute.xlu2 %51  ;;  %v240_v5 = vmul.f32 %v963_v57, %v231_v58  ;;  %v241_v20 = vmul.f32 %v970_v60, %v234_v8 }
  0xa1   :  { %v451_v21 = vrot.slane %v240_v5, 6 }
  0xa5   :  { %v263_v24 = vpop.permute.xlu0 %262  ;;  %v132_v25 = vpop.permute.xlu1 %131 }
  0xa6   :  { %v144_v10 = vsel %vm143_vm3, %v132_v25, %v138_v17  ;;  %v147_v26 = vsel %vm143_vm3, %v138_v17, %v132_v25  ;;  %v154_v17 = vmul.f32 %v923_v23, %v148_v4  ;;  %v433_v4 = vld.sshfl [vmem:[#allocation1 + $0x28] sm:$0xff pattern:$0x73625140] }
  0xa7   :  { %v152_v27 = vmul.f32 %v923_v23, %v147_v26  ;;  %v153_v28 = vmul.f32 %v926_v9, %v144_v10  ;;  %v312_v29 = vpop.permute.xlu2 %311  ;;  %v432_v10 = vld.sshfl [vmem:[#allocation1 + $0x20] sm:$0xff pattern:$0x73625140] }
  0xa9   :  { %v397_v30 = vrot.slane %v152_v27, 4  ;;  %v398_v31 = vrot.slane %v153_v28, 4  ;;  %v381_v27 = vrot.slane %v111_v62, 6  ;;  %v382_v28 = vrot.slane %v112_v7, 6 }
  0xab   :  { %v505_v32 = vsel %vm504_vm4, %v498_v13, %v397_v30  ;;  %v506_v33 = vsel %vm504_vm4, %v499_v14, %v398_v31  ;;  %v399_v31 = vrot.slane %v154_v17, 4 }
  0xad   :  { %v269_v34 = vpop.permute.xlu1 %268 }
  0xae   :  { %v274_v13 = vsel %vm272_vm8, %v263_v24, %v269_v34  ;;  %v277_v14 = vsel %vm272_vm8, %v269_v34, %v263_v24 }
  0xaf   :  { %v181_v37 = vpop.permute.xlu0 %180  ;;  %v943_v38 = vpop.permute.xlu2 %348  ;;  %v283_v24 = vmul.f32 %v989_v11, %v274_v13  ;;  %v284_v25 = vmul.f32 %v992_v12, %v277_v14 }
  0xb0   :  { %v187_v39 = vsel %vm186_vm5, %v175_v0, %v181_v37  ;;  %v190_v40 = vsel %vm186_vm5, %v181_v37, %v175_v0 }
  0xb1   :  { %v195_v41 = vmul.f32 %v938_v35, %v190_v40  ;;  %v196_v42 = vmul.f32 %v941_v36, %v187_v39  ;;  %v1029_v39 = vld [vmem:[%s1213_s0 + $0x10] ss:$0 sm:$0xff]  ;;  %v1034_v40 = vld [vmem:[%s1213_s0 + $0x18] ss:$0 sm:$0xff] }
  0xb3   :  { %v415_v43 = vrot.slane %v195_v41, 2  ;;  %v416_v44 = vrot.slane %v196_v42, 2  ;;  %v520_v41 = vsel %vm497_vm2, %v432_v10, %v451_v21  ;;  %v469_v42 = vrot.slane %v283_v24, 4 }
  0xb5   :  { %v306_v45 = vpop.permute.xlu1 %305  ;;  %v952_v46 = vsel %vm511_vm6, %v505_v32, %v415_v43  ;;  %v955_v47 = vsel %vm511_vm6, %v506_v33, %v416_v44  ;;  %v400_v32 = vrot.slane %v155_v18, 4  ;;  %v470_v43 = vrot.slane %v284_v25, 4 }
  0xb6   :  { %v317_v19 = vsel %vm315_vm9, %v306_v45, %v312_v29  ;;  %v320_v0 = vsel %vm315_vm9, %v312_v29, %v306_v45  ;;  %v526_v18 = vsel %vm504_vm4, %v520_v41, %v469_v42 }
  0xb7   :  { %v177_v48 = vpop.permute.xlu0 %176  ;;  %v958_v49 = vpop.permute.xlu2 %221  ;;  %v326_v29 = vmul.f32 %v999_v15, %v317_v19  ;;  %v327_v30 = vmul.f32 %v1002_v2, %v320_v0 }
  0xb9   :  { %v487_v56 = vrot.slane %v326_v29, 2  ;;  %v488_v58 = vrot.slane %v327_v30, 2 }
  0xbb   :  { %v532_v21 = vsel %vm511_vm6, %v526_v18, %v487_v56 }
  0xbd   :  { %v46_v6 = vpop.permute.xlu1 %45 }
  0xbe   :  { %v59_v51 = vsel %vm57_vm0, %v46_v6, %v919_v22  ;;  %v62_v52 = vsel %vm57_vm0, %v919_v22, %v46_v6  ;;  %v452_v22 = vrot.slane %v241_v20, 6 }
  0xbf   :  { %v93_v16 = vpop.permute.xlu0 %92  ;;  %v1019_v26 = vpop.permute.xlu2 %141  ;;  %v68_v33 = vmul.f32 %v877_v53, %v62_v52  ;;  %v69_v34 = vmul.f32 %v880_v54, %v59_v51 }
  0xc0   :  { %v521_v19 = vsel %vm497_vm2, %v433_v4, %v452_v22 }
  0xc1   :  { %v500_v7 = vsel %vm497_vm2, %v68_v33, %v381_v27 }
  0xc2   :  { %v507_v0 = vsel %vm504_vm4, %v500_v7, %v399_v31 }
  0xc5   :  { %v183_v37 = vpop.permute.xlu1 %182 }
  0xc6   :  { %v188_v44 = vsel %vm186_vm5, %v177_v48, %v183_v37  ;;  %v191_v45 = vsel %vm186_vm5, %v183_v37, %v177_v48  ;;  %v501_v48 = vsel %vm497_vm2, %v69_v34, %v382_v28 }
  0xc7   :  { %v197_v59 = vmul.f32 %v938_v35, %v191_v45  ;;  %v198_v62 = vmul.f32 %v941_v36, %v188_v44  ;;  %v355_v3 = vpop.permute.xlu0 %354  ;;  %v508_v20 = vsel %vm504_vm4, %v501_v48, %v400_v32  ;;  %v271_v25 = vpop.permute.xlu2 %270 }
  0xc8   :  { %v360_v5 = vsel %vm358_vm10, %v943_v38, %v355_v3  ;;  %v363_v6 = vsel %vm358_vm10, %v355_v3, %v943_v38  ;;  %v527_v38 = vsel %vm504_vm4, %v521_v19, %v470_v43  ;;  %v743_v3 = vmov 0  }
  0xc9   :  { %v417_v8 = vrot.slane %v197_v59, 2  ;;  %v418_v13 = vrot.slane %v198_v62, 2  ;;  %v369_v14 = vmul.f32 %v1029_v39, %v360_v5  ;;  %v370_v17 = vmul.f32 %v1034_v40, %v363_v6  ;;  %732 = vset.pattern.permute.xlu0 %v743_v3 }
  0xca   :  { %v533_v51 = vsel %vm511_vm6, %v527_v38, %v488_v58  ;;  %v537_v58 = vld [vmem:[%s1215_s3] sm:$0xf] }
  0xcb   :  { %713 = vmatpush.msk.msra.mxu2 %vm497_vm2, %v369_v14  ;;  %715 = vmatpush.msk.msra.mxu3 %vm497_vm2, %v370_v17  ;;  %v514_v52 = vsel %vm511_vm6, %v507_v0, %v417_v8  ;;  %v515_v24 = vsel %vm511_vm6, %v508_v20, %v418_v13 }
  0xcc   :  { %540 = vperm.xlu0 %732, %v537_v58   ;;  %v435_v58 = vld.sshfl [vmem:[#allocation1] sm:$0xff pattern:$0x73625140] }
  0xcd   :  { %619 = vmatpush.msra.mxu2 %v532_v21  ;;  %639 = vmatpush.msra.mxu3 %v533_v51  ;;  %v99_v10 = vpop.permute.xlu1 %98 }
  0xce   :  { %v103_v27 = vsel %vm100_vm1, %v93_v16, %v99_v10  ;;  %v106_v28 = vsel %vm100_vm1, %v99_v10, %v93_v16  ;;  %v1077_v16 = vld [vmem:[%s1214_s2] sm:$0xf] }
  0xcf   :  { %v1069_v29 = vmul.f32 %v883_v55, %v106_v28  ;;  %v1072_v30 = vmul.f32 %v893_v61, %v103_v27  ;;  %v218_v31 = vpop.permute.xlu0 %217  ;;  %620 = vmatpush.msra.mxu2 %v514_v52  ;;  %640 = vmatpush.msra.mxu3 %v515_v24  ;;  %v304_v33 = vpop.permute.xlu2 %303 }
  0xd0   :  { %716 = vmatmul.msk.f32.vlgmr.msra.gmra.mxu3 %vm543_vm11, %v1077_v16  ;;  %714 = vmatmul.msk.f32.vlgmr.msra.gmra.mxu2 %vm543_vm11, %v1077_v16 }
  0xd5   :  { %v261_v32 = vpop.permute.xlu1 %260 }
  0xd7   :  { %v224_v34 = vpop.permute.xlu0 %223  ;;  %v308_v41 = vpop.permute.xlu2 %307 }
  0xd8   :  { %v230_v43 = vsel %vm229_vm7, %v218_v31, %v224_v34  ;;  %v233_v44 = vsel %vm229_vm7, %v224_v34, %v218_v31 }
  0xd9   :  { %v238_v6 = vmul.f32 %v963_v57, %v230_v43  ;;  %v239_v7 = vmul.f32 %v970_v60, %v233_v44 }
  0xdb   :  { %v449_v19 = vrot.slane %v238_v6, 6  ;;  %v450_v38 = vrot.slane %v239_v7, 6 }
  0xdd   :  { %v267_v22 = vpop.permute.xlu1 %266 }
  0xde   :  { %v273_v59 = vsel %vm272_vm8, %v261_v32, %v267_v22  ;;  %v276_v62 = vsel %vm272_vm8, %v267_v22, %v261_v32 }
  0xdf   :  { %v228_v37 = vpop.permute.xlu0 %227  ;;  %v281_v8 = vmul.f32 %v989_v11, %v273_v59  ;;  %v282_v13 = vmul.f32 %v992_v12, %v276_v62 }
  0xe0   :  { %v347_v61 = vpop.permute.xlu2 %346  ;;  %v232_v48 = vsel %vm229_vm7, %v958_v49, %v228_v37  ;;  %v235_v0 = vsel %vm229_vm7, %v228_v37, %v958_v49 }
  0xe1   :  { %v242_v20 = vmul.f32 %v963_v57, %v232_v48  ;;  %v467_v21 = vrot.slane %v281_v8, 4  ;;  %v468_v51 = vrot.slane %v282_v13, 4  ;;  %v243_v22 = vmul.f32 %v970_v60, %v235_v0 }
  0xe5   :  { %v265_v42 = vpop.permute.xlu1 %264 }
  0xe6   :  { %v275_v52 = vsel %vm272_vm8, %v265_v42, %v271_v25  ;;  %v278_v24 = vsel %vm272_vm8, %v271_v25, %v265_v42  ;;  %v518_v42 = vsel %vm497_vm2, %v974_v63, %v449_v19 }
  0xe7   :  { %v310_v55 = vpop.permute.xlu0 %309  ;;  %v285_v37 = vmul.f32 %v989_v11, %v275_v52  ;;  %v383_v52 = vrot.slane %v1069_v29, 6 }
  0xe8   :  { %v316_v4 = vsel %vm315_vm9, %v304_v33, %v310_v55  ;;  %v319_v5 = vsel %vm315_vm9, %v310_v55, %v304_v33  ;;  %v1109_v18 = vpop.permute.xlu2 %47  ;;  %v519_v55 = vsel %vm497_vm2, %v976_v1, %v450_v38  ;;  %v454_v1 = vrot.slane %v243_v22, 6 }
  0xe9   :  { %v324_v14 = vmul.f32 %v999_v15, %v316_v4  ;;  %v325_v17 = vmul.f32 %v1002_v2, %v319_v5  ;;  %v525_v43 = vsel %vm504_vm4, %v519_v55, %v468_v51 }
  0xeb   :  { %v485_v28 = vrot.slane %v324_v14, 2  ;;  %v486_v31 = vrot.slane %v325_v17, 2 }
  0xed   :  { %v1087_v45 = vpop.permute.xlu1 %135  ;;  %v531_v63 = vsel %vm511_vm6, %v525_v43, %v486_v31 }
  0xef   :  { %v314_v56 = vpop.permute.xlu0 %313 }
  0xf0   :  { %v318_v57 = vsel %vm315_vm9, %v308_v41, %v314_v56  ;;  %v321_v33 = vsel %vm315_vm9, %v314_v56, %v308_v41  ;;  %v524_v41 = vsel %vm504_vm4, %v518_v42, %v467_v21  ;;  %v453_v56 = vrot.slane %v242_v20, 6  ;;  %v185_v59 = vpop.permute.xlu2 %184 }
  0xf1   :  { %v328_v60 = vmul.f32 %v999_v15, %v318_v57  ;;  %v329_v11 = vmul.f32 %v1002_v2, %v321_v33  ;;  %v530_v44 = vsel %vm511_vm6, %v524_v41, %v485_v28  ;;  %v436_v15 = vld.sshfl [vmem:[#allocation1 + $0x8] sm:$0xff pattern:$0x73625140] }
  0xf2   :  { %v523_v13 = vsel %vm497_vm2, %v436_v15, %v454_v1 }
  0xf3   :  { %v489_v2 = vrot.slane %v328_v60, 2  ;;  %v490_v5 = vrot.slane %v329_v11, 2 }
  0xf7   :  { %v353_v10 = vpop.permute.xlu0 %352  ;;  %v357_v27 = vpop.permute.xlu1 %356 }
  0xf8   :  { %v359_v32 = vsel %vm358_vm10, %v347_v61, %v353_v10  ;;  %v362_v49 = vsel %vm358_vm10, %v353_v10, %v347_v61  ;;  %v286_v61 = vmul.f32 %v992_v12, %v278_v24  ;;  %v471_v12 = vrot.slane %v285_v37, 4 }
  0xf9   :  { %v367_v34 = vmul.f32 %v1029_v39, %v359_v32  ;;  %v368_v25 = vmul.f32 %v1034_v40, %v362_v49  ;;  %v384_v24 = vrot.slane %v1072_v30, 6 }
  0xfa   :  { %v472_v62 = vrot.slane %v286_v61, 4 }
  0xfb   :  { %709 = vmatpush.msk.msra.mxu0 %vm497_vm2, %v367_v34  ;;  %711 = vmatpush.msk.msra.mxu1 %vm497_vm2, %v368_v25 }
  0xfc   :  { %v529_v19 = vsel %vm504_vm4, %v523_v13, %v472_v62 }
  0xfd   :  { %567 = vmatpush.msra.mxu0 %v530_v44  ;;  %587 = vmatpush.msra.mxu1 %v531_v63  ;;  %v535_v0 = vsel %vm511_vm6, %v529_v19, %v490_v5 }
  0xff   :  { %v351_v3 = vpop.permute.xlu0 %350  ;;  %568 = vmatpush.msra.mxu0 %v952_v46  ;;  %588 = vmatpush.msra.mxu1 %v955_v47  ;;  %v179_v4 = vpop.permute.xlu1 %178  ;;  %v522_v46 = vsel %vm497_vm2, %v435_v58, %v453_v56 }
 0x100   :  { %v361_v6 = vsel %vm358_vm10, %v351_v3, %v357_v27  ;;  %v364_v7 = vsel %vm358_vm10, %v357_v27, %v351_v3  ;;  %712 = vmatmul.msk.f32.vlgmr.msra.gmra.mxu1 %vm543_vm11, %v1077_v16  ;;  %710 = vmatmul.msk.f32.vlgmr.msra.gmra.mxu0 %vm543_vm11, %v1077_v16  ;;  %v528_v47 = vsel %vm504_vm4, %v522_v46, %v471_v12 }
 0x101   :  { %v371_v48 = vmul.f32 %v1029_v39, %v361_v6  ;;  %v372_v8 = vmul.f32 %v1034_v40, %v364_v7  ;;  %v189_v14 = vsel %vm186_vm5, %v179_v4, %v185_v59  ;;  %v192_v17 = vsel %vm186_vm5, %v185_v59, %v179_v4 }
 0x102   :  { %v146_v39 = vsel %vm143_vm3, %v1087_v45, %v1019_v26  ;;  %v149_v40 = vsel %vm143_vm3, %v1019_v26, %v1087_v45  ;;  %v534_v38 = vsel %vm511_vm6, %v528_v47, %v489_v2  ;;  %v199_v20 = vmul.f32 %v938_v35, %v192_v17 }
 0x103   :  { %718 = vmatpush.msk.msrb.mxu0 %vm497_vm2, %v371_v48  ;;  %720 = vmatpush.msk.msrb.mxu1 %vm497_vm2, %v372_v8  ;;  %v200_v21 = vmul.f32 %v941_v36, %v189_v14  ;;  %v156_v51 = vmul.f32 %v923_v23, %v149_v40  ;;  %v157_v26 = vmul.f32 %v926_v9, %v146_v39 }
 0x104   :  { %v419_v35 = vrot.slane %v199_v20, 2 }
 0x105   :  { %672 = vmatpush.msrb.mxu0 %v534_v38  ;;  %692 = vmatpush.msrb.mxu1 %v535_v0  ;;  %v420_v28 = vrot.slane %v200_v21, 2  ;;  %v401_v9 = vrot.slane %v156_v51, 4  ;;  %v402_v31 = vrot.slane %v157_v26, 4 }
 0x107   :  { %v54_v45 = vpop.permute.xlu0 %53 }
 0x108   :  { %v60_v10 = vsel %vm57_vm0, %v1109_v18, %v54_v45  ;;  %v63_v27 = vsel %vm57_vm0, %v54_v45, %v1109_v18 }
 0x109   :  { %v70_v36 = vmul.f32 %v877_v53, %v63_v27  ;;  %v71_v23 = vmul.f32 %v880_v54, %v60_v10 }
 0x10b   :  { %v502_v29 = vsel %vm497_vm2, %v70_v36, %v383_v52  ;;  %v503_v30 = vsel %vm497_vm2, %v71_v23, %v384_v24 }
 0x10c   :  { %v509_v32 = vsel %vm504_vm4, %v502_v29, %v401_v9  ;;  %v510_v49 = vsel %vm504_vm4, %v503_v30, %v402_v31 }
 0x10d   :  { %v516_v57 = vsel %vm511_vm6, %v509_v32, %v419_v35  ;;  %v517_v50 = vsel %vm511_vm6, %v510_v49, %v420_v28 }
 0x10e   :  { %673 = vmatpush.msrb.mxu0 %v516_v57  ;;  %693 = vmatpush.msrb.mxu1 %v517_v50 }
 0x10f   :  { %721 = vmatmul.msk.f32.vlgmr.msrb.gmra.mxu1 %vm543_vm11, %v1077_v16  ;;  %719 = vmatmul.msk.f32.vlgmr.msrb.gmra.mxu0 %vm543_vm11, %v1077_v16 }
 0x13e   :  { %v541_v53 = vpop.permute.xlu0 %540 }
 0x153   :  { %v642_v54 = vpop.f32.mrf.mxu3  ;;  %v622_v33 = vpop.f32.mrf.mxu2 }
 0x154   :  { %v643_v18 = vadd.f32 %v642_v54, %v541_v53  ;;  %v623_v25 = vadd.f32 %v622_v33, %v541_v53 }
 0x156   :  { %v647_v34 = vrot.slane %v643_v18, 4 }
 0x158   :  { %v648_v22 = vsel %vm504_vm4, %v623_v25, %v647_v34 }
 0x159   :  { %717 = vst [vmem:[%s1216_s4 + $0x8] sm:$0xff] %v648_v22 }
 0x17d   :  { %v590_v37 = vpop.f32.mrf.mxu1  ;;  %v570_v55 = vpop.f32.mrf.mxu0 }
 0x17e   :  { %v591_v42 = vadd.f32 %v590_v37, %v541_v53  ;;  %v571_v61 = vadd.f32 %v570_v55, %v541_v53 }
 0x180   :  { %v595_v41 = vrot.slane %v591_v42, 4 }
 0x182   :  { %v596_v43 = vsel %vm504_vm4, %v571_v61, %v595_v41 }
 0x183   :  { %598 = vst [vmem:[%s1216_s4] sm:$0xff] %v596_v43 }
 0x18c   :  { %v695_v16 = vpop.f32.mrf.mxu1  ;;  %v675_v60 = vpop.f32.mrf.mxu0 }
 0x18d   :  { %v696_v11 = vadd.f32 %v695_v16, %v541_v53  ;;  %v676_v63 = vadd.f32 %v675_v60, %v541_v53 }
 0x18f   :  { %v700_v44 = vrot.slane %v696_v11, 4 }
 0x191   :  { %v701_v56 = vsel %vm504_vm4, %v676_v63, %v700_v44 }
 0x192   :  { %722 = vst [vmem:[%s1216_s4 + $0x10] sm:$0xff] %v701_v56 }

// kernel: multi_block_lstm_forward.15
= control target key start
LH: loop header
LB: loop body
LE: loop exit
PB: predicated region body
PF: predicated region fallthrough
CT: control target
= control target key end

     0   :  { %v71_v0 = vmov 0   ;;  %v72_v3 = vmov 839922192   ;;  %s131_s1 = inlined_call_operand.vmem [shape: f32[4,1], index: 1, kind: input, shape index: {}]   ;;  %s132_s2 = inlined_call_operand.vmem [shape: f32[4,1], index: 2, kind: input, shape index: {}]   ;;  %s133_s0 = inlined_call_operand.vmem [shape: f32[3,4,256], index: 0, kind: input, shape index: {}]   ;;  %s134_s3 = inlined_call_operand.vmem [shape: f32[3,4,256], index: 3, kind: input, shape index: {}]   ;;  %s135_s4 = inlined_call_operand.vmem [shape: f32[3,4,256], index: 4, kind: output, shape index: {}]  }
   0x1   :  { %70 = vset.pattern.permute.xlu0 %v71_v0  ;;  %v20_v1 = vld [vmem:[%s131_s1] sm:$0xf]  ;;  %v26_v4 = vunpack.c.l.s4 %v72_v3  ;;  %v18_v9 = vld [vmem:[%s133_s0 + $0x8] sm:$0xff]  ;;  %v19_v10 = vld [vmem:[%s133_s0 + $0x10] sm:$0xff] }
   0x2   :  { %23 = vperm.xlu0 %70, %v20_v1   ;;  %v33_v2 = vld [vmem:[%s132_s2] sm:$0xf]  ;;  %v47_v17 = vld [vmem:[%s134_s3 + $0x8] sm:$0xff]  ;;  %v48_v18 = vld [vmem:[%s134_s3 + $0x10] sm:$0xff] }
   0x3   :  { %v27_v6 = vunpack.c.0.s8 %v26_v4  ;;  %v17_v8 = vld [vmem:[%s133_s0] sm:$0xff] }
   0x4   :  { %v46_v16 = vld [vmem:[%s134_s3] sm:$0xff] }
   0xa   :  { %36 = vperm.xlu0 %70, %v33_v2  }
  0x74   :  { %v24_v5 = vpop.permute.xlu0 %23 }
  0x75   :  { %v28_v7 = vperm.slane %v24_v5, %v27_v6 }
  0x77   :  { %v30_v12 = vmul.f32 %v28_v7, %v17_v8  ;;  %v31_v13 = vmul.f32 %v28_v7, %v18_v9  ;;  %v32_v14 = vmul.f32 %v28_v7, %v19_v10 }
  0x7c   :  { %v37_v11 = vpop.permute.xlu0 %36 }
  0x7d   :  { %v41_v15 = vperm.slane %v37_v11, %v27_v6 }
  0x7f   :  { %v43_v19 = vadd.f32 %v41_v15, %v30_v12  ;;  %v44_v20 = vadd.f32 %v41_v15, %v31_v13  ;;  %v45_v21 = vadd.f32 %v41_v15, %v32_v14 }
  0x81   :  { %v49_v22 = vadd.f32 %v46_v16, %v43_v19  ;;  %v50_v23 = vadd.f32 %v47_v17, %v44_v20  ;;  %v51_v24 = vadd.f32 %v48_v18, %v45_v21 }
  0x83   :  { %vm52_vm0 = vcmp.ge.f32.partialorder %v49_v22, 0.0  ;;  %vm53_vm1 = vcmp.ge.f32.partialorder %v50_v23, 0.0  ;;  %vm54_vm2 = vcmp.ge.f32.partialorder %v51_v24, 0.0  ;;  %v55_v25 = vmul.f32 0.2, %v49_v22 }
  0x84   :  { %v56_v26 = vmul.f32 0.2, %v50_v23  ;;  %v57_v27 = vmul.f32 0.2, %v51_v24 }
  0x85   :  { %v58_v28 = vsel %vm52_vm0, %v49_v22, %v55_v25 }
  0x86   :  { %v59_v29 = vsel %vm53_vm1, %v50_v23, %v56_v26  ;;  %v60_v30 = vsel %vm54_vm2, %v51_v24, %v57_v27  ;;  %61 = vst [vmem:[%s135_s4] sm:$0xff] %v58_v28 }
  0x87   :  { %62 = vst [vmem:[%s135_s4 + $0x8] sm:$0xff] %v59_v29 }
  0x88   :  { %63 = vst [vmem:[%s135_s4 + $0x10] sm:$0xff] %v60_v30 }

// kernel: multi_block_lstm_forward.17
= control target key start
LH: loop header
LB: loop body
LE: loop exit
PB: predicated region body
PF: predicated region fallthrough
CT: control target
= control target key end

     0   :  { %s739_s21 = smov 17   ;;  %s741_s22 = smov 15   ;;  %v56_v52 = vlaneseq  ;;  %vm470_vm6 = vcmask 1043456   ;;  %vm509_vm9 = vcmask 293888   ;;  %s1261_s1 = inlined_call_operand.vmem [shape: f32[3,4,256], index: 1, kind: input, shape index: {}]   ;;  %s1262_s0 = inlined_call_operand.vmem [shape: f32[9,256], index: 0, kind: input, shape index: {}]   ;;  %s1263_s2 = inlined_call_operand.vmem [shape: f32[16,36], index: 2, kind: input, shape index: {}]   ;;  %s1264_s3 = inlined_call_operand.vmem [shape: f32[16,1], index: 3, kind: input, shape index: {}]   ;;  %s1265_s4 = inlined_call_operand.vmem [shape: f32[3,16,256], index: 4, kind: output, shape index: {}]  }
   0x1   :  { %v776_v0 = vld [vmem:[%s1261_s1 + $0x8] sm:$0xff]  ;;  %v781_v1 = vld [vmem:[%s1261_s1 + $0x10] sm:$0xff]  ;;  %v786_v2 = vld [vmem:[%s1261_s1] sm:$0xff]  ;;  %s740_s1 = smov 16   ;;  %s742_s23 = smov 1  }
   0x2   :  { %31 = vst [vmem:[#allocation1 + $0x10] ss:$2 sm:$0xff] %v776_v0  ;;  %s743_s24 = smov 127   ;;  %s744_s25 = smov 113   ;;  %v885_v53 = vand.u32 127, %v56_v52 }
   0x3   :  { %35 = vst [vmem:[#allocation1 + $0x20] ss:$2 sm:$0xff] %v781_v1  ;;  %s745_s26 = smov 112   ;;  %s746_s27 = smov 111  }
   0x4   :  { %27 = vst [vmem:[#allocation1] ss:$2 sm:$0xff] %v786_v2  ;;  %vm58_vm0 = vcmp.lt.s32.totalorder %v885_v53, 17  ;;  %vm234_vm1 = vcmp.lt.s32.totalorder %v885_v53, 127  ;;  %vm190_vm2 = vcmp.lt.s32.totalorder %v885_v53, 1  ;;  %vm322_vm3 = vcmp.lt.s32.totalorder %v885_v53, 112 }
   0x5   :  { %vm102_vm4 = vcmp.lt.s32.totalorder %v885_v53, 16  ;;  %vm146_vm5 = vcmp.lt.s32.totalorder %v885_v53, 15  ;;  %vm278_vm7 = vcmp.lt.s32.totalorder %v885_v53, 113  ;;  %vm366_vm8 = vcmp.lt.s32.totalorder %v885_v53, 111 }
   0x9   :  { %v33_v3 = vld.sshfl [vmem:[#allocation1 + $0x18] sm:$0xff pattern:$0x75316420]  ;;  %v32_v4 = vld.sshfl [vmem:[#allocation1 + $0x10] sm:$0xff pattern:$0x75316420] }
   0xa   :  { %52 = vrot.lane.b32.xlu1 %v33_v3, %s739_s21  ;;  %46 = vrot.lane.b32.xlu0 %v32_v4, %s739_s21  ;;  %77 = vst [vmem:[#allocation1 + $0x10] ss:$2 sm:$0xff] %v776_v0  ;;  %v815_v15 = vld.sshfl [vmem:[#allocation1 + $0x20] sm:$0xff pattern:$0x75316420] }
   0xb   :  { %v794_v5 = vld.sshfl [vmem:[#allocation1] sm:$0xff pattern:$0x75316420]  ;;  %v796_v6 = vld.sshfl [vmem:[#allocation1 + $0x8] sm:$0xff pattern:$0x75316420] }
   0xc   :  { %73 = vst [vmem:[#allocation1] ss:$2 sm:$0xff] %v786_v2  ;;  %v817_v16 = vld.sshfl [vmem:[#allocation1 + $0x28] sm:$0xff pattern:$0x75316420] }
   0xd   :  { %81 = vst [vmem:[#allocation1 + $0x20] ss:$2 sm:$0xff] %v781_v1 }
  0x11   :  { %v78_v7 = vld.sshfl [vmem:[#allocation1 + $0x10] sm:$0xff pattern:$0x75316420]  ;;  %v79_v8 = vld.sshfl [vmem:[#allocation1 + $0x18] sm:$0xff pattern:$0x75316420] }
  0x12   :  { %92 = vrot.lane.b32.xlu1 %v78_v7, %s740_s1  ;;  %121 = vst [vmem:[#allocation1 + $0x10] ss:$2 sm:$0xff] %v776_v0  ;;  %98 = vrot.lane.b32.xlu2 %v79_v8, %s740_s1 }
  0x13   :  { %v802_v9 = vld.sshfl [vmem:[#allocation1] sm:$0xff pattern:$0x75316420]  ;;  %v804_v10 = vld.sshfl [vmem:[#allocation1 + $0x8] sm:$0xff pattern:$0x75316420] }
  0x14   :  { %117 = vst [vmem:[#allocation1] ss:$2 sm:$0xff] %v786_v2  ;;  %v826_v21 = vld.sshfl [vmem:[#allocation1 + $0x20] sm:$0xff pattern:$0x75316420] }
  0x15   :  { %v828_v22 = vld.sshfl [vmem:[#allocation1 + $0x28] sm:$0xff pattern:$0x75316420] }
  0x16   :  { %125 = vst [vmem:[#allocation1 + $0x20] ss:$2 sm:$0xff] %v781_v1 }
  0x19   :  { %v122_v11 = vld.sshfl [vmem:[#allocation1 + $0x10] sm:$0xff pattern:$0x75316420]  ;;  %v123_v12 = vld.sshfl [vmem:[#allocation1 + $0x18] sm:$0xff pattern:$0x75316420] }
  0x1a   :  { %136 = vrot.lane.b32.xlu0 %v122_v11, %s741_s22  ;;  %142 = vrot.lane.b32.xlu1 %v123_v12, %s741_s22  ;;  %165 = vst [vmem:[#allocation1 + $0x10] ss:$2 sm:$0xff] %v776_v0  ;;  %v20_v12 = vld [vmem:[%s1262_s0] sm:$0xff] }
  0x1b   :  { %v810_v13 = vld.sshfl [vmem:[#allocation1] sm:$0xff pattern:$0x75316420]  ;;  %v812_v14 = vld.sshfl [vmem:[#allocation1 + $0x8] sm:$0xff pattern:$0x75316420] }
  0x1c   :  { %161 = vst [vmem:[#allocation1] ss:$2 sm:$0xff] %v786_v2 }
  0x1d   :  { %v835_v27 = vld.sshfl [vmem:[#allocation1 + $0x20] sm:$0xff pattern:$0x75316420]  ;;  %v837_v28 = vld.sshfl [vmem:[#allocation1 + $0x28] sm:$0xff pattern:$0x75316420] }
  0x1e   :  { %169 = vst [vmem:[#allocation1 + $0x20] ss:$2 sm:$0xff] %v781_v1 }
  0x21   :  { %v167_v17 = vld.sshfl [vmem:[#allocation1 + $0x18] sm:$0xff pattern:$0x75316420]  ;;  %v166_v18 = vld.sshfl [vmem:[#allocation1 + $0x10] sm:$0xff pattern:$0x75316420] }
  0x22   :  { %186 = vrot.lane.b32.xlu0 %v167_v17, %s742_s23  ;;  %180 = vrot.lane.b32.xlu2 %v166_v18, %s742_s23  ;;  %209 = vst [vmem:[#allocation1 + $0x10] ss:$2 sm:$0xff] %v776_v0  ;;  %v945_v18 = vperm.slane %v20_v12, 5 }
  0x23   :  { %v823_v19 = vld.sshfl [vmem:[#allocation1] sm:$0xff pattern:$0x75316420]  ;;  %v163_v20 = vld.sshfl [vmem:[#allocation1 + $0x8] sm:$0xff pattern:$0x75316420] }
  0x24   :  { %205 = vst [vmem:[#allocation1] ss:$2 sm:$0xff] %v786_v2 }
  0x25   :  { %v845_v33 = vld.sshfl [vmem:[#allocation1 + $0x20] sm:$0xff pattern:$0x75316420]  ;;  %v847_v34 = vld.sshfl [vmem:[#allocation1 + $0x28] sm:$0xff pattern:$0x75316420] }
  0x26   :  { %213 = vst [vmem:[#allocation1 + $0x20] ss:$2 sm:$0xff] %v781_v1 }
  0x29   :  { %v210_v23 = vld.sshfl [vmem:[#allocation1 + $0x10] sm:$0xff pattern:$0x75316420]  ;;  %v211_v24 = vld.sshfl [vmem:[#allocation1 + $0x18] sm:$0xff pattern:$0x75316420] }
  0x2a   :  { %253 = vst [vmem:[#allocation1 + $0x10] ss:$2 sm:$0xff] %v776_v0  ;;  %224 = vrot.lane.b32.xlu2 %v210_v23, %s743_s24 }
  0x2b   :  { %v207_v25 = vld.sshfl [vmem:[#allocation1 + $0x8] sm:$0xff pattern:$0x75316420]  ;;  %v206_v26 = vld.sshfl [vmem:[#allocation1] sm:$0xff pattern:$0x75316420] }
  0x2c   :  { %228 = vrot.lane.b32.xlu0 %v207_v25, %s743_s24  ;;  %249 = vst [vmem:[#allocation1] ss:$2 sm:$0xff] %v786_v2 }
  0x2d   :  { %v214_v39 = vld.sshfl [vmem:[#allocation1 + $0x20] sm:$0xff pattern:$0x75316420]  ;;  %v215_v40 = vld.sshfl [vmem:[#allocation1 + $0x28] sm:$0xff pattern:$0x75316420] }
  0x2e   :  { %257 = vst [vmem:[#allocation1 + $0x20] ss:$2 sm:$0xff] %v781_v1 }
  0x31   :  { %v255_v29 = vld.sshfl [vmem:[#allocation1 + $0x18] sm:$0xff pattern:$0x75316420]  ;;  %v254_v30 = vld.sshfl [vmem:[#allocation1 + $0x10] sm:$0xff pattern:$0x75316420] }
  0x32   :  { %274 = vrot.lane.b32.xlu1 %v255_v29, %s744_s25  ;;  %297 = vst [vmem:[#allocation1 + $0x10] ss:$2 sm:$0xff] %v776_v0  ;;  %230 = vrot.lane.b32.xlu2 %v211_v24, %s743_s24 }
  0x33   :  { %v250_v31 = vld.sshfl [vmem:[#allocation1] sm:$0xff pattern:$0x75316420]  ;;  %v251_v32 = vld.sshfl [vmem:[#allocation1 + $0x8] sm:$0xff pattern:$0x75316420] }
  0x34   :  { %268 = vrot.lane.b32.xlu0 %v254_v30, %s744_s25  ;;  %293 = vst [vmem:[#allocation1] ss:$2 sm:$0xff] %v786_v2 }
  0x35   :  { %v258_v43 = vld.sshfl [vmem:[#allocation1 + $0x20] sm:$0xff pattern:$0x75316420]  ;;  %v259_v44 = vld.sshfl [vmem:[#allocation1 + $0x28] sm:$0xff pattern:$0x75316420] }
  0x36   :  { %301 = vst [vmem:[#allocation1 + $0x20] ss:$2 sm:$0xff] %v781_v1 }
  0x39   :  { %v298_v35 = vld.sshfl [vmem:[#allocation1 + $0x10] sm:$0xff pattern:$0x75316420]  ;;  %v299_v36 = vld.sshfl [vmem:[#allocation1 + $0x18] sm:$0xff pattern:$0x75316420] }
  0x3a   :  { %266 = vrot.lane.b32.xlu1 %v250_v31, %s744_s25  ;;  %341 = vst [vmem:[#allocation1 + $0x10] ss:$2 sm:$0xff] %v776_v0  ;;  %222 = vrot.lane.b32.xlu2 %v206_v26, %s743_s24  ;;  %v962_v26 = vperm.slane %v20_v12, 7 }
  0x3b   :  { %v295_v37 = vld.sshfl [vmem:[#allocation1 + $0x8] sm:$0xff pattern:$0x75316420]  ;;  %v294_v38 = vld.sshfl [vmem:[#allocation1] sm:$0xff pattern:$0x75316420] }
  0x3c   :  { %312 = vrot.lane.b32.xlu0 %v298_v35, %s745_s26  ;;  %337 = vst [vmem:[#allocation1] ss:$2 sm:$0xff] %v786_v2 }
  0x3d   :  { %v302_v45 = vld.sshfl [vmem:[#allocation1 + $0x20] sm:$0xff pattern:$0x75316420]  ;;  %v303_v46 = vld.sshfl [vmem:[#allocation1 + $0x28] sm:$0xff pattern:$0x75316420] }
  0x3e   :  { %345 = vst [vmem:[#allocation1 + $0x20] ss:$2 sm:$0xff] %v781_v1 }
  0x41   :  { %v342_v41 = vld.sshfl [vmem:[#allocation1 + $0x10] sm:$0xff pattern:$0x75316420]  ;;  %v343_v42 = vld.sshfl [vmem:[#allocation1 + $0x18] sm:$0xff pattern:$0x75316420] }
  0x42   :  { %184 = vrot.lane.b32.xlu1 %v163_v20, %s742_s23  ;;  %272 = vrot.lane.b32.xlu2 %v251_v32, %s744_s25  ;;  %421 = vst [vmem:[#allocation1 + $0x10] ss:$2 sm:$0xff] %v776_v0  ;;  %v951_v20 = vperm.slane %v20_v12, 3 }
  0x43   :  { %v338_v47 = vld.sshfl [vmem:[#allocation1] sm:$0xff pattern:$0x75316420]  ;;  %v339_v48 = vld.sshfl [vmem:[#allocation1 + $0x8] sm:$0xff pattern:$0x75316420] }
  0x44   :  { %318 = vrot.lane.b32.xlu0 %v299_v36, %s745_s26  ;;  %417 = vst [vmem:[#allocation1] ss:$2 sm:$0xff] %v786_v2 }
  0x45   :  { %v346_v49 = vld.sshfl [vmem:[#allocation1 + $0x20] sm:$0xff pattern:$0x75316420]  ;;  %v347_v50 = vld.sshfl [vmem:[#allocation1 + $0x28] sm:$0xff pattern:$0x75316420] }
  0x46   :  { %425 = vst [vmem:[#allocation1 + $0x20] ss:$2 sm:$0xff] %v781_v1 }
  0x4a   :  { %356 = vrot.lane.b32.xlu1 %v342_v41, %s746_s27  ;;  %310 = vrot.lane.b32.xlu2 %v294_v38, %s745_s26 }
  0x4c   :  { %316 = vrot.lane.b32.xlu0 %v295_v37, %s745_s26 }
  0x52   :  { %362 = vrot.lane.b32.xlu1 %v343_v42, %s746_s27  ;;  %90 = vrot.lane.b32.xlu2 %v802_v9, %s740_s1 }
  0x54   :  { %178 = vrot.lane.b32.xlu0 %v823_v19, %s742_s23 }
  0x5a   :  { %354 = vrot.lane.b32.xlu1 %v338_v47, %s746_s27  ;;  %360 = vrot.lane.b32.xlu2 %v339_v48, %s746_s27  ;;  %v1009_v47 = vld [vmem:[%s1262_s0 + $0x18] ss:$0 sm:$0xff] }
  0x5c   :  { %96 = vrot.lane.b32.xlu0 %v804_v10, %s740_s1 }
  0x62   :  { %134 = vrot.lane.b32.xlu1 %v810_v13, %s741_s22  ;;  %140 = vrot.lane.b32.xlu2 %v812_v14, %s741_s22  ;;  %v21_v13 = vld [vmem:[%s1262_s0 + $0x8] sm:$0xff]  ;;  %v936_v14 = vperm.slane %v20_v12, 0 }
  0x63   :  { %v943_v17 = vperm.slane %v21_v13, 1  ;;  %v947_v19 = vperm.slane %v21_v13, 5  ;;  %v968_v29 = vperm.slane %v21_v13, 2  ;;  %v982_v37 = vperm.slane %v21_v13, 3 }
  0x64   :  { %44 = vrot.lane.b32.xlu0 %v794_v5, %s739_s21 }
  0x6a   :  { %50 = vrot.lane.b32.xlu1 %v796_v6, %s739_s21  ;;  %314 = vrot.lane.b32.xlu2 %v302_v45, %s745_s26  ;;  %v998_v45 = vperm.slane %v21_v13, 6 }
  0x6c   :  { %320 = vrot.lane.b32.xlu0 %v303_v46, %s745_s26  ;;  %v882_v51 = vpop.permute.xlu2 %98  ;;  %v1004_v46 = vld [vmem:[%s1262_s0 + $0x10] ss:$0 sm:$0xff] }
  0x72   :  { %358 = vrot.lane.b32.xlu1 %v346_v49, %s746_s27  ;;  %364 = vrot.lane.b32.xlu2 %v347_v50, %s746_s27 }
  0x74   :  { %226 = vrot.lane.b32.xlu0 %v214_v39, %s743_s24 }
  0x7a   :  { %232 = vrot.lane.b32.xlu1 %v215_v40, %s743_s24  ;;  %270 = vrot.lane.b32.xlu2 %v258_v43, %s744_s25  ;;  %v988_v40 = vperm.slane %v20_v12, 6 }
  0x7c   :  { %276 = vrot.lane.b32.xlu0 %v259_v44, %s744_s25  ;;  %v53_v54 = vpop.permute.xlu1 %52  ;;  %v47_v55 = vpop.permute.xlu0 %46 }
  0x7d   :  { %v893_v56 = vsel %vm58_vm0, %v47_v55, %v53_v54  ;;  %v63_v57 = vsel %vm58_vm0, %v53_v54, %v47_v55  ;;  %v181_v58 = vpop.permute.xlu2 %180 }
  0x7e   :  { %v980_v36 = vmul.f32 %v936_v14, %v63_v57 }
  0x82   :  { %182 = vrot.lane.b32.xlu1 %v845_v33, %s742_s23  ;;  %188 = vrot.lane.b32.xlu2 %v847_v34, %s742_s23 }
  0x84   :  { %94 = vrot.lane.b32.xlu0 %v826_v21, %s740_s1  ;;  %v93_v62 = vpop.permute.xlu1 %92 }
  0x85   :  { %v225_v59 = vpop.permute.xlu2 %224  ;;  %v107_v33 = vsel %vm102_vm4, %v882_v51, %v93_v62  ;;  %v104_v43 = vsel %vm102_vm4, %v93_v62, %v882_v51 }
  0x8a   :  { %100 = vrot.lane.b32.xlu1 %v828_v22, %s740_s1  ;;  %138 = vrot.lane.b32.xlu2 %v835_v27, %s741_s22  ;;  %v964_v27 = vperm.slane %v21_v13, 7 }
  0x8c   :  { %144 = vrot.lane.b32.xlu0 %v837_v28, %s741_s22  ;;  %v909_v60 = vpop.permute.xlu0 %136  ;;  %v143_v1 = vpop.permute.xlu1 %142  ;;  %v966_v28 = vperm.slane %v20_v12, 2 }
  0x8d   :  { %v231_v61 = vpop.permute.xlu2 %230  ;;  %v148_v48 = vsel %vm146_vm5, %v909_v60, %v143_v1  ;;  %v151_v49 = vsel %vm146_vm5, %v143_v1, %v909_v60 }
  0x8e   :  { %v236_v21 = vsel %vm234_vm1, %v225_v59, %v231_v61  ;;  %v239_v22 = vsel %vm234_vm1, %v231_v61, %v225_v59 }
  0x8f   :  { %v245_v34 = vmul.f32 %v945_v18, %v236_v21  ;;  %v246_v35 = vmul.f32 %v947_v19, %v239_v22  ;;  %v422_v22 = vld.sshfl [vmem:[#allocation1 + $0x10] sm:$0xff pattern:$0x75316420] }
  0x91   :  { %v442_v50 = vrot.slane %v245_v34, 4  ;;  %v443_v51 = vrot.slane %v246_v35, 4 }
  0x92   :  { %48 = vrot.lane.b32.xlu1 %v815_v15, %s739_s21  ;;  %54 = vrot.lane.b32.xlu2 %v817_v16, %s739_s21  ;;  %v938_v15 = vperm.slane %v21_v13, 0  ;;  %v940_v16 = vperm.slane %v20_v12, 1 }
  0x94   :  { %v187_v63 = vpop.permute.xlu0 %186  ;;  %v996_v44 = vmul.f32 %v940_v16, %v107_v33 }
  0x95   :  { %v915_v0 = vpop.permute.xlu2 %222  ;;  %v195_v25 = vsel %vm190_vm2, %v187_v63, %v181_v58  ;;  %v192_v39 = vsel %vm190_vm2, %v181_v58, %v187_v63 }
  0x96   :  { %v201_v38 = vmul.f32 %v951_v20, %v195_v25  ;;  %v202_v52 = vmul.f32 %v982_v37, %v192_v39  ;;  %v114_v25 = vmul.f32 %v943_v17, %v104_v43  ;;  %v389_v39 = vrot.slane %v996_v44, 4 }
  0x98   :  { %v407_v54 = vrot.slane %v201_v38, 4 }
  0x9d   :  { %v919_v3 = vpop.permute.xlu2 %272 }
  0x9e   :  { %v917_v2 = vpop.permute.xlu0 %228 }
  0x9f   :  { %v235_v12 = vsel %vm234_vm1, %v915_v0, %v917_v2  ;;  %v238_v13 = vsel %vm234_vm1, %v917_v2, %v915_v0 }
  0xa0   :  { %v243_v35 = vmul.f32 %v945_v18, %v235_v12  ;;  %v244_v38 = vmul.f32 %v947_v19, %v238_v13  ;;  %v419_v12 = vld.sshfl [vmem:[#allocation1 + $0x8] sm:$0xff pattern:$0x75316420] }
  0xa4   :  { %v275_v4 = vpop.permute.xlu1 %274 }
  0xa5   :  { %v921_v6 = vpop.permute.xlu2 %310 }
  0xa6   :  { %v269_v5 = vpop.permute.xlu0 %268 }
  0xa7   :  { %v280_v55 = vsel %vm278_vm7, %v269_v5, %v275_v4  ;;  %v283_v57 = vsel %vm278_vm7, %v275_v4, %v269_v5 }
  0xa8   :  { %v289_v21 = vmul.f32 %v988_v40, %v280_v55 }
  0xac   :  { %v923_v7 = vpop.permute.xlu1 %266 }
  0xad   :  { %v925_v9 = vpop.permute.xlu2 %90 }
  0xae   :  { %v313_v8 = vpop.permute.xlu0 %312 }
  0xb4   :  { %v927_v10 = vpop.permute.xlu1 %184 }
  0xb5   :  { %v957_v24 = vpop.permute.xlu2 %360 }
  0xb6   :  { %v319_v11 = vpop.permute.xlu0 %318 }
  0xb7   :  { %v324_v30 = vsel %vm322_vm3, %v313_v8, %v319_v11  ;;  %v327_v31 = vsel %vm322_vm3, %v319_v11, %v313_v8 }
  0xb8   :  { %v333_v41 = vmul.f32 %v962_v26, %v324_v30  ;;  %v334_v42 = vmul.f32 %v964_v27, %v327_v31  ;;  %v157_v30 = vmul.f32 %v966_v28, %v151_v49  ;;  %v408_v31 = vrot.slane %v202_v52, 4 }
  0xb9   :  { %v390_v49 = vrot.slane %v114_v25, 4  ;;  %v282_v52 = vsel %vm278_vm7, %v919_v3, %v923_v7 }
  0xba   :  { %v460_v59 = vrot.slane %v333_v41, 4  ;;  %v461_v61 = vrot.slane %v334_v42, 4  ;;  %v485_v41 = vsel %vm470_vm6, %v422_v22, %v442_v50  ;;  %v479_v43 = vsel %vm470_vm6, %v157_v30, %v407_v54 }
  0xbc   :  { %v357_v23 = vpop.permute.xlu1 %356  ;;  %v491_v33 = vsel %vm470_vm6, %v289_v21, %v460_v59  ;;  %v441_v59 = vrot.slane %v244_v38, 4 }
  0xbd   :  { %v1034_v11 = vpop.permute.xlu2 %140 }
  0xbe   :  { %v317_v32 = vpop.permute.xlu0 %316 }
  0xbf   :  { %v323_v63 = vsel %vm322_vm3, %v921_v6, %v317_v32  ;;  %v326_v1 = vsel %vm322_vm3, %v317_v32, %v921_v6  ;;  %v290_v6 = vmul.f32 %v998_v45, %v283_v57  ;;  %v423_v32 = vld.sshfl [vmem:[#allocation1 + $0x18] sm:$0xff pattern:$0x75316420] }
  0xc0   :  { %v331_v0 = vmul.f32 %v962_v26, %v323_v63  ;;  %v332_v2 = vmul.f32 %v964_v27, %v326_v1  ;;  %v486_v42 = vsel %vm470_vm6, %v423_v32, %v443_v51  ;;  %v473_v1 = vsel %vm470_vm6, %v980_v36, %v389_v39 }
  0xc1   :  { %v492_v34 = vsel %vm470_vm6, %v290_v6, %v461_v61  ;;  %v484_v36 = vsel %vm470_vm6, %v419_v12, %v441_v59  ;;  %v1141_v59 = vld [vmem:[%s1263_s2 + $0x8] sm:$0xff] }
  0xc2   :  { %v458_v50 = vrot.slane %v331_v0, 4  ;;  %v459_v51 = vrot.slane %v332_v2, 4  ;;  %v498_v12 = vld [vmem:[%s1264_s3 + $0x8] sm:$0xff] }
  0xc4   :  { %v363_v58 = vpop.permute.xlu1 %362 }
  0xc5   :  { %v368_v62 = vsel %vm366_vm8, %v357_v23, %v363_v58  ;;  %v371_v60 = vsel %vm366_vm8, %v363_v58, %v357_v23  ;;  %v70_v23 = vmul.f32 %v938_v15, %v893_v56  ;;  %v158_v56 = vmul.f32 %v968_v29, %v148_v48  ;;  %v315_v13 = vpop.permute.xlu2 %314 }
  0xc6   :  { %v179_v8 = vpop.permute.xlu0 %178  ;;  %v377_v4 = vmul.f32 %v1004_v46, %v368_v62  ;;  %v378_v5 = vmul.f32 %v1009_v47, %v371_v60  ;;  %v279_v48 = vsel %vm278_vm7, %v923_v7, %v919_v3  ;;  %v440_v58 = vrot.slane %v243_v35, 4 }
  0xc7   :  { %v480_v44 = vsel %vm470_vm6, %v158_v56, %v408_v31  ;;  %v287_v62 = vmul.f32 %v988_v40, %v279_v48  ;;  %v288_v60 = vmul.f32 %v998_v45, %v282_v52  ;;  %v191_v63 = vsel %vm190_vm2, %v179_v8, %v927_v10 }
  0xc8   :  { %696 = vmatpush.msk.msra.mxu2 %vm470_vm6, %v377_v4  ;;  %699 = vmatpush.msk.msra.mxu3 %vm470_vm6, %v378_v5  ;;  %v474_v4 = vsel %vm470_vm6, %v70_v23, %v390_v49  ;;  %v418_v5 = vld.sshfl [vmem:[#allocation1] sm:$0xff pattern:$0x75316420] }
  0xc9   :  { %v489_v21 = vsel %vm470_vm6, %v287_v62, %v458_v50  ;;  %v490_v6 = vsel %vm470_vm6, %v288_v60, %v459_v51  ;;  %v483_v22 = vsel %vm470_vm6, %v418_v5, %v440_v58 }
  0xca   :  { %590 = vmatpush.msra.mxu2 %v491_v33  ;;  %613 = vmatpush.msra.mxu3 %v492_v34 }
  0xcc   :  { %v355_v55 = vpop.permute.xlu1 %354  ;;  %591 = vmatpush.msra.mxu2 %v485_v41  ;;  %614 = vmatpush.msra.mxu3 %v486_v42 }
  0xcd   :  { %v367_v54 = vsel %vm366_vm8, %v355_v55, %v957_v24  ;;  %v370_v57 = vsel %vm366_vm8, %v957_v24, %v355_v55  ;;  %v194_v24 = vsel %vm190_vm2, %v927_v10, %v179_v8  ;;  %v200_v8 = vmul.f32 %v982_v37, %v191_v63  ;;  %v365_v41 = vpop.permute.xlu2 %364 }
  0xce   :  { %v97_v61 = vpop.permute.xlu0 %96  ;;  %592 = vmatpush.msra.mxu2 %v479_v43  ;;  %615 = vmatpush.msra.mxu3 %v480_v44  ;;  %v375_v3 = vmul.f32 %v1004_v46, %v367_v54  ;;  %v376_v7 = vmul.f32 %v1009_v47, %v370_v57  ;;  %v199_v10 = vmul.f32 %v951_v20, %v194_v24  ;;  %v1120_v43 = vld [vmem:[%s1263_s2] sm:$0xff] }
  0xcf   :  { %v406_v32 = vrot.slane %v200_v8, 4  ;;  %v103_v34 = vsel %vm102_vm4, %v925_v9, %v97_v61  ;;  %v106_v56 = vsel %vm102_vm4, %v97_v61, %v925_v9 }
  0xd0   :  { %690 = vmatpush.msk.msra.mxu0 %vm470_vm6, %v375_v3  ;;  %693 = vmatpush.msk.msra.mxu1 %vm470_vm6, %v376_v7  ;;  %v405_v31 = vrot.slane %v199_v10, 4  ;;  %v112_v39 = vmul.f32 %v943_v17, %v103_v34 }
  0xd1   :  { %593 = vmatpush.msra.mxu2 %v473_v1  ;;  %616 = vmatpush.msra.mxu3 %v474_v4  ;;  %v747_v1 = vmov 0   ;;  %v497_v4 = vld [vmem:[%s1264_s3] sm:$0xff] }
  0xd2   :  { %534 = vmatpush.msra.mxu0 %v489_v21  ;;  %557 = vmatpush.msra.mxu1 %v490_v6  ;;  %v388_v52 = vrot.slane %v112_v39, 4 }
  0xd3   :  { %697 = vmatmul.msk.f32.vlgmr.msra.gmra.mxu2 %vm509_vm9, %v1120_v43  ;;  %700 = vmatmul.msk.f32.vlgmr.msra.gmra.mxu3 %vm509_vm9, %v1120_v43 }
  0xd4   :  { %v135_v23 = vpop.permute.xlu1 %134  ;;  %535 = vmatpush.msra.mxu0 %v483_v22  ;;  %558 = vmatpush.msra.mxu1 %v484_v36 }
  0xd5   :  { %v147_v25 = vsel %vm146_vm5, %v135_v23, %v1034_v11  ;;  %v150_v30 = vsel %vm146_vm5, %v1034_v11, %v135_v23  ;;  %v111_v11 = vmul.f32 %v940_v16, %v106_v56  ;;  %v271_v58 = vpop.permute.xlu2 %270  ;;  %735 = vset.pattern.permute.xlu0 %v747_v1  ;;  %736 = vset.pattern.permute.xlu1 %v747_v1 }
  0xd6   :  { %v45_v0 = vpop.permute.xlu0 %44  ;;  %v155_v2 = vmul.f32 %v966_v28, %v150_v30  ;;  %v156_v33 = vmul.f32 %v968_v29, %v147_v25  ;;  %501 = vperm.xlu0 %735, %v497_v4   ;;  %506 = vperm.xlu1 %736, %v498_v12   ;;  %v426_v25 = vld.sshfl [vmem:[#allocation1 + $0x20] sm:$0xff pattern:$0x75316420] }
  0xd7   :  { %v387_v48 = vrot.slane %v111_v11, 4 }
  0xd8   :  { %v477_v35 = vsel %vm470_vm6, %v155_v2, %v405_v31  ;;  %v478_v38 = vsel %vm470_vm6, %v156_v33, %v406_v32  ;;  %v427_v2 = vld.sshfl [vmem:[#allocation1 + $0x28] sm:$0xff pattern:$0x75316420] }
  0xd9   :  { %536 = vmatpush.msra.mxu0 %v477_v35  ;;  %559 = vmatpush.msra.mxu1 %v478_v38 }
  0xdb   :  { %698 = vmatmul.msk.f32.gmra.mxu2 %vm509_vm9, %v1141_v59  ;;  %701 = vmatmul.msk.f32.gmra.mxu3 %vm509_vm9, %v1141_v59 }
  0xdc   :  { %v51_v42 = vpop.permute.xlu1 %50 }
  0xdd   :  { %v59_v9 = vsel %vm58_vm0, %v45_v0, %v51_v42  ;;  %v62_v49 = vsel %vm58_vm0, %v51_v42, %v45_v0  ;;  %v189_v10 = vpop.permute.xlu2 %188 }
  0xde   :  { %v321_v55 = vpop.permute.xlu0 %320  ;;  %v67_v44 = vmul.f32 %v936_v14, %v62_v49  ;;  %v68_v50 = vmul.f32 %v938_v15, %v59_v9 }
  0xdf   :  { %v325_v63 = vsel %vm322_vm3, %v315_v13, %v321_v55  ;;  %v328_v24 = vsel %vm322_vm3, %v321_v55, %v315_v13 }
  0xe0   :  { %v471_v51 = vsel %vm470_vm6, %v67_v44, %v387_v48  ;;  %v472_v54 = vsel %vm470_vm6, %v68_v50, %v388_v52 }
  0xe1   :  { %537 = vmatpush.msra.mxu0 %v471_v51  ;;  %560 = vmatpush.msra.mxu1 %v472_v54 }
  0xe2   :  { %691 = vmatmul.msk.f32.vlgmr.msra.gmra.mxu0 %vm509_vm9, %v1120_v43  ;;  %694 = vmatmul.msk.f32.vlgmr.msra.gmra.mxu1 %vm509_vm9, %v1120_v43 }
  0xe4   :  { %v359_v57 = vpop.permute.xlu1 %358 }
  0xe5   :  { %v369_v61 = vsel %vm366_vm8, %v359_v57, %v365_v41  ;;  %v372_v3 = vsel %vm366_vm8, %v365_v41, %v359_v57 }
  0xe6   :  { %v227_v7 = vpop.permute.xlu0 %226  ;;  %v379_v62 = vmul.f32 %v1004_v46, %v369_v61  ;;  %v380_v60 = vmul.f32 %v1009_v47, %v372_v3  ;;  %v335_v46 = vmul.f32 %v962_v26, %v325_v63  ;;  %v336_v47 = vmul.f32 %v964_v27, %v328_v24 }
  0xe8   :  { %706 = vmatpush.msk.msrb.mxu0 %vm470_vm6, %v379_v62  ;;  %716 = vmatpush.msk.msrb.mxu2 %vm470_vm6, %v379_v62  ;;  %v462_v8 = vrot.slane %v335_v46, 4  ;;  %v463_v22 = vrot.slane %v336_v47, 4 }
  0xe9   :  { %709 = vmatpush.msk.msrb.mxu1 %vm470_vm6, %v380_v60  ;;  %721 = vmatpush.msk.msrb.mxu3 %vm470_vm6, %v380_v60 }
  0xea   :  { %692 = vmatmul.msk.f32.gmra.mxu0 %vm509_vm9, %v1141_v59  ;;  %695 = vmatmul.msk.f32.gmra.mxu1 %vm509_vm9, %v1141_v59 }
  0xec   :  { %v233_v5 = vpop.permute.xlu1 %232 }
  0xed   :  { %v237_v13 = vsel %vm234_vm1, %v227_v7, %v233_v5  ;;  %v240_v26 = vsel %vm234_vm1, %v233_v5, %v227_v7 }
  0xee   :  { %v277_v27 = vpop.permute.xlu0 %276  ;;  %v247_v21 = vmul.f32 %v945_v18, %v237_v13  ;;  %v248_v6 = vmul.f32 %v947_v19, %v240_v26 }
  0xef   :  { %v281_v36 = vsel %vm278_vm7, %v271_v58, %v277_v27  ;;  %v284_v23 = vsel %vm278_vm7, %v277_v27, %v271_v58 }
  0xf0   :  { %v291_v30 = vmul.f32 %v988_v40, %v281_v36  ;;  %v292_v31 = vmul.f32 %v998_v45, %v284_v23  ;;  %v444_v32 = vrot.slane %v247_v21, 4  ;;  %v445_v0 = vrot.slane %v248_v6, 4  ;;  %v139_v45 = vpop.permute.xlu2 %138 }
  0xf2   :  { %v493_v18 = vsel %vm470_vm6, %v291_v30, %v462_v8  ;;  %v494_v19 = vsel %vm470_vm6, %v292_v31, %v463_v22  ;;  %v487_v33 = vsel %vm470_vm6, %v426_v25, %v444_v32  ;;  %v488_v34 = vsel %vm470_vm6, %v427_v2, %v445_v0 }
  0xf3   :  { %647 = vmatpush.msrb.mxu0 %v493_v18  ;;  %717 = vmatpush.msrb.mxu2 %v493_v18 }
  0xf4   :  { %670 = vmatpush.msrb.mxu1 %v494_v19  ;;  %722 = vmatpush.msrb.mxu3 %v494_v19  ;;  %v183_v56 = vpop.permute.xlu1 %182 }
  0xf5   :  { %648 = vmatpush.msrb.mxu0 %v487_v33  ;;  %718 = vmatpush.msrb.mxu2 %v487_v33  ;;  %v193_v35 = vsel %vm190_vm2, %v183_v56, %v189_v10  ;;  %v196_v38 = vsel %vm190_vm2, %v189_v10, %v183_v56 }
  0xf6   :  { %671 = vmatpush.msrb.mxu1 %v488_v34  ;;  %723 = vmatpush.msrb.mxu3 %v488_v34  ;;  %v95_v40 = vpop.permute.xlu0 %94  ;;  %v203_v11 = vmul.f32 %v951_v20, %v196_v38  ;;  %v204_v39 = vmul.f32 %v982_v37, %v193_v35 }
  0xf8   :  { %v409_v55 = vrot.slane %v203_v11, 4  ;;  %v410_v44 = vrot.slane %v204_v39, 4  ;;  %v55_v58 = vpop.permute.xlu2 %54 }
  0xfc   :  { %v101_v41 = vpop.permute.xlu1 %100 }
  0xfd   :  { %v105_v48 = vsel %vm102_vm4, %v95_v40, %v101_v41  ;;  %v108_v52 = vsel %vm102_vm4, %v101_v41, %v95_v40 }
  0xfe   :  { %v145_v42 = vpop.permute.xlu0 %144  ;;  %v115_v50 = vmul.f32 %v940_v16, %v108_v52  ;;  %v116_v51 = vmul.f32 %v943_v17, %v105_v48 }
  0xff   :  { %v149_v9 = vsel %vm146_vm5, %v139_v45, %v145_v42  ;;  %v152_v49 = vsel %vm146_vm5, %v145_v42, %v139_v45 }
 0x100   :  { %v159_v20 = vmul.f32 %v966_v28, %v152_v49  ;;  %v160_v37 = vmul.f32 %v968_v29, %v149_v9  ;;  %v391_v29 = vrot.slane %v115_v50, 4  ;;  %v392_v16 = vrot.slane %v116_v51, 4 }
 0x102   :  { %v481_v54 = vsel %vm470_vm6, %v159_v20, %v409_v55  ;;  %v482_v57 = vsel %vm470_vm6, %v160_v37, %v410_v44 }
 0x103   :  { %649 = vmatpush.msrb.mxu0 %v481_v54  ;;  %719 = vmatpush.msrb.mxu2 %v481_v54 }
 0x104   :  { %672 = vmatpush.msrb.mxu1 %v482_v57  ;;  %724 = vmatpush.msrb.mxu3 %v482_v57  ;;  %v49_v61 = vpop.permute.xlu1 %48 }
 0x105   :  { %v61_v3 = vsel %vm58_vm0, %v49_v61, %v55_v58  ;;  %v64_v28 = vsel %vm58_vm0, %v55_v58, %v49_v61 }
 0x106   :  { %v71_v17 = vmul.f32 %v936_v14, %v64_v28  ;;  %v72_v7 = vmul.f32 %v938_v15, %v61_v3 }
 0x108   :  { %v475_v62 = vsel %vm470_vm6, %v71_v17, %v391_v29  ;;  %v476_v60 = vsel %vm470_vm6, %v72_v7, %v392_v16 }
 0x109   :  { %650 = vmatpush.msrb.mxu0 %v475_v62  ;;  %720 = vmatpush.msrb.mxu2 %v475_v62 }
 0x10a   :  { %673 = vmatpush.msrb.mxu1 %v476_v60  ;;  %725 = vmatpush.msrb.mxu3 %v476_v60 }
 0x10b   :  { %708 = vmatmul.msk.f32.vlgmr.msrb.gmra.mxu2 %vm509_vm9, %v1141_v59  ;;  %711 = vmatmul.msk.f32.vlgmr.msrb.gmra.mxu3 %vm509_vm9, %v1141_v59 }
 0x10c   :  { %707 = vmatmul.msk.f32.vlgmr.msrb.gmra.mxu0 %vm509_vm9, %v1120_v43  ;;  %710 = vmatmul.msk.f32.vlgmr.msrb.gmra.mxu1 %vm509_vm9, %v1120_v43 }
 0x148   :  { %v502_v53 = vpop.permute.xlu0 %501  ;;  %v507_v43 = vpop.permute.xlu1 %506 }
 0x156   :  { %v595_v46 = vpop.f32.mrf.mxu2  ;;  %v618_v47 = vpop.f32.mrf.mxu3 }
 0x157   :  { %v596_v1 = vadd.f32 %v595_v46, %v502_v53  ;;  %v619_v4 = vadd.f32 %v618_v47, %v502_v53 }
 0x159   :  { %702 = vst [vmem:[%s1265_s4 + $0x20] sm:$0xff] %v596_v1 }
 0x15a   :  { %703 = vst [vmem:[%s1265_s4 + $0x28] sm:$0xff] %v619_v4 }
 0x15e   :  { %v598_v26 = vpop.f32.mrf.mxu2  ;;  %v621_v27 = vpop.f32.mrf.mxu3 }
 0x15f   :  { %v539_v14 = vpop.f32.mrf.mxu0  ;;  %v562_v15 = vpop.f32.mrf.mxu1  ;;  %v599_v21 = vadd.f32 %v598_v26, %v507_v43  ;;  %v622_v6 = vadd.f32 %v621_v27, %v507_v43 }
 0x160   :  { %v540_v63 = vadd.f32 %v539_v14, %v502_v53  ;;  %v563_v24 = vadd.f32 %v562_v15, %v502_v53 }
 0x161   :  { %704 = vst [vmem:[%s1265_s4 + $0x30] sm:$0xff] %v599_v21 }
 0x162   :  { %568 = vst [vmem:[%s1265_s4] sm:$0xff] %v540_v63 }
 0x163   :  { %569 = vst [vmem:[%s1265_s4 + $0x8] sm:$0xff] %v563_v24 }
 0x164   :  { %705 = vst [vmem:[%s1265_s4 + $0x38] sm:$0xff] %v622_v6 }
 0x167   :  { %v542_v59 = vpop.f32.mrf.mxu0  ;;  %v565_v5 = vpop.f32.mrf.mxu1 }
 0x168   :  { %v543_v12 = vadd.f32 %v542_v59, %v507_v43  ;;  %v566_v13 = vadd.f32 %v565_v5, %v507_v43 }
 0x16a   :  { %570 = vst [vmem:[%s1265_s4 + $0x10] sm:$0xff] %v543_v12 }
 0x16b   :  { %571 = vst [vmem:[%s1265_s4 + $0x18] sm:$0xff] %v566_v13 }
 0x189   :  { %v652_v10 = vpop.f32.mrf.mxu0  ;;  %v675_v8 = vpop.f32.mrf.mxu1 }
 0x18a   :  { %v653_v22 = vadd.f32 %v652_v10, %v502_v53  ;;  %v676_v36 = vadd.f32 %v675_v8, %v502_v53 }
 0x18c   :  { %712 = vst [vmem:[%s1265_s4 + $0x40] sm:$0xff] %v653_v22 }
 0x18d   :  { %713 = vst [vmem:[%s1265_s4 + $0x48] sm:$0xff] %v676_v36 }
 0x18e   :  { %v655_v23 = vpop.f32.mrf.mxu2  ;;  %v678_v25 = vpop.f32.mrf.mxu3 }
 0x18f   :  { %v656_v30 = vadd.f32 %v655_v23, %v507_v43  ;;  %v679_v31 = vadd.f32 %v678_v25, %v507_v43 }
 0x191   :  { %714 = vst [vmem:[%s1265_s4 + $0x50] sm:$0xff] %v656_v30 }
 0x192   :  { %715 = vst [vmem:[%s1265_s4 + $0x58] sm:$0xff] %v679_v31 }

// kernel: multi_block_lstm_forward.18
= control target key start
LH: loop header
LB: loop body
LE: loop exit
PB: predicated region body
PF: predicated region fallthrough
CT: control target
= control target key end

     0   :  { %10 = vsyncpa [#allocation5], 0  ;;  %s1401_s0 = inlined_call_operand.vmem [shape: f32[9,256], index: 0, kind: input, shape index: {}]   ;;  %s1402_s1 = inlined_call_operand.vmem [shape: f32[2,3,1,16,256], index: 1, kind: input, shape index: {}]   ;;  %s1403_s2 = inlined_call_operand.vmem [shape: f32[2,16,36], index: 2, kind: input, shape index: {}]   ;;  %s1404_s3 = inlined_call_operand.vmem [shape: f32[2,3,1,4,256], index: 3, kind: output, shape index: {0}]   ;;  %s1405_s4 = inlined_call_operand.hbm [shape: f32[2,1,4,256], index: 4, kind: output, shape index: {1}]  }
   0x1   :  { %12 = vsyncpa [#allocation5 + $0x1], 0  ;;  %s1158_s15 = smov 0   ;;  %s1160_s16 = smov 0  }
   0x2   :  { %s1162_s17 = smov 0   ;;  %s1164_s18 = smov 0  }
   0x3   :  { %s1166_s19 = smov 0   ;;  %s1168_s20 = smov 0  }
   0x4   :  { %s1170_s21 = smov 0   ;;  %s1172_s22 = smov 0  }
   0x5 LB: > { %1413 = sst [smem:[#allocation7_spill]] %s1094_s15  ;;  %s880_s23 = sadd.s32 4294967295, %s1122_s22   ;;  %s1122_s22 = sphi %s1172_s22, %s18_s22   ;;  %s1118_s21 = sphi %s1170_s21, %s1431_s21   ;;  %s1114_s20 = sphi %s1168_s20, %s1430_s20   ;;  %s1110_s19 = sphi %s1166_s19, %s1429_s19   ;;  %s1106_s18 = sphi %s1164_s18, %s1428_s18   ;;  %s1102_s17 = sphi %s1162_s17, %s1427_s17   ;;  %s1098_s16 = sphi %s1160_s16, %s1433_s16   ;;  %s1094_s15 = sphi %s1158_s15, %s1432_s15  }
   0x6   : > { %1414 = sst [smem:[#allocation8_spill]] %s1102_s17  ;;  %s881_s24 = sadd.s32 4294967294, %s1122_s22  }
   0x7   : > { %1415 = sst [smem:[#allocation9_spill]] %s1114_s20  ;;  %s27_s25 = sadd.s32 1, %s1114_s20 }
   0x8   : > { %1416 = sst [smem:[#allocation10_spill]] %s1118_s21  ;;  %p28_p0 = scmp.ge.s32.totalorder %s27_s25, 3 }
   0x9   : > { %s30_s26 = sadd.s32 1, %s1118_s21  ;;  %p170_p1 = scmp.ne.s32.totalorder %s1102_s17, %s1098_s16 }
   0xa   : > { %p171_p2 = scmp.eq.s32.totalorder %s880_s23, 5  ;;  %s1435_s25 = smov (%p28_p0, %s27_s25), 0 }
   0xb   : > { %1417 = sst [smem:[#allocation11_spill]] %s1435_s25  ;;  %s1437_s26 = smov (!%p28_p0, %s30_s26), %s1118_s21 }
   0xc   : > { %p1207_p3 = por %p171_p2, %p170_p1  ;;  %p176_p4 = scmp.ne.s32.totalorder %s1098_s16, %s1094_s15 }
   0xd   : > { %p32_p5 = scmp.ge.s32.totalorder %s1437_s26, 2  ;;  %p177_p6 = scmp.eq.s32.totalorder %s881_s24, 5 }
   0xe   : > { %p884_p7 = scmp.ge.s32.totalorder %s1122_s22, 1  ;;  %p228_p8 = scmp.lt.s32.totalorder %s1122_s22, 7 }
   0xf   : > { %s1439_s26 = smov (%p32_p5, %s1437_s26), 0  ;;  %p1217_p9 = por %p177_p6, %p176_p4 }
  0x10   : > { %1419 = sst [smem:[#allocation12_spill]] %s1439_s26  ;;  %p229_p10 = pnand %p884_p7, %p228_p8 }
  0x11   : > { %s1420_s28 = scalar_select %p1217_p9, 1, 0 }
  0x12   : > { %s157_s29 = ssub.s32 %s1118_s21, %s1439_s26  ;;  %s160_s30 = sadd.s32 1, %s1102_s17 }
  0x13   : > { %1421 = sst [smem:[#allocation13_spill]] %s1420_s28  ;;  %p158_p11 = scmp.eq.s32.totalorder %s157_s29, 0 }
  0x14   : > { %232 = sbr.rel (%p229_p10) target bundleno = 456 (0x1c8), region = 32  ;;  %s1407_s6 = sand.u32 (!%p229_p10), 1, %s1098_s16  }
  0x15   : > { %s1225_s5 = scalar_select %p158_p11, %s1102_s17, %s160_s30  }
  0x16   : > { %s282_s7 = ssub.s32 (!%p229_p10), 2, %s1106_s18  ;;  %s1231_s8 = sshll.u32 (!%p229_p10), %s1407_s6, 3 }
  0x17   : > { %1422 = sst [smem:[#allocation14_spill]] %s1225_s5  ;;  %s283_s9 = smul.u32 (!%p229_p10), %s1110_s19, %s282_s7 }
  0x18   : > { %s284_s10 = ssub.s32 (!%p229_p10), 1, %s1110_s19  ;;  %p287_p12 = scmp.lt.s32.totalorder (!%p229_p10), %s1110_s19, 1 }
  0x19   : > { %s285_s11 = smul.u32 %s1106_s18, %s284_s10  ;;  %s281_s24 = scalar_lea.vmem [#allocation4], %s1231_s8 }
  0x1a   : > { %s288_s13 = scalar_select %p287_p12, %s1110_s19, 1 }
  0x1b   : > { %s286_s12 = sadd.s32 %s285_s11, %s283_s9  ;;  %p892_p0 = scmp.ne.s32.totalorder %s1106_s18, 0 }
  0x1c   : > { %p289_p13 = scmp.lt.s32.totalorder %s286_s12, 2  ;;  %s920_s14 = smul.u32 12, %s288_s13 }
  0x1d   : > { %s908_s23 = sshll.u32 %s288_s13, 4  ;;  %s921_s26 = smul.u32 6, %s288_s13 }
  0x1e   : > { %s1441_s12 = smov (!%p289_p13, %s286_s12), 2  ;;  %s1241_s30 = scalar_lea.vmem %s1403_s2, %s908_s23 }
  0x1f   : > { %s886_s25 = sshll.u32 %s1441_s12, 2  ;;  %s890_s6 = sshll.u32 %s1441_s12, 1 }
  0x20   : > { %s293_s21 = sadd.s32 %s920_s14, %s886_s25  ;;  %s317_s7 = sadd.s32 %s921_s26, %s890_s6 }
  0x21   : > { %s887_s20 = sshll.u32 %s293_s21, 3  ;;  %s891_s10 = sshll.u32 %s317_s7, 2 }
  0x22   : > { %s1246_s11 = scalar_lea.vmem %s1402_s1, %s887_s20  ;;  %s1251_s15 = scalar_lea.vmem %s1404_s3, %s891_s10 }
  0x23   : > { %328 = sbr.rel (%p892_p0) target bundleno = 43 (0x2b), region = 36 }
  0x28   : > { %v1124_v0 = vmov 0.0  }
  0x29   : > { %329 = vst [vmem:[#allocation2] sm:$0xff] %v1124_v0 }
  0x2a   : > { %330 = vst [vmem:[#allocation3] sm:$0xff] %v1124_v0 }
  0x2b PF: > { %s1125_s20 = smov 16   ;;  %s1126_s17 = smov 15   ;;  %v348_v27 = vlaneseq  ;;  %v1265_v29 = vld [vmem:[%s1401_s0] sm:$0xff]  ;;  %v1270_v32 = vld [vmem:[%s1401_s0 + $0x8] sm:$0xff]  ;;  %v1002_v47 = vld [vmem:[%s1401_s0 + $0x10] ss:$0 sm:$0xff] }
  0x2c   : > { %s1127_s18 = smov 1   ;;  %s1128_s21 = smov 127   ;;  %v449_v33 = vperm.slane %v1265_v29, 7  ;;  %v450_v36 = vperm.slane %v1270_v32, 7  ;;  %v417_v37 = vperm.slane %v1265_v29, 5  ;;  %v369_v39 = vperm.slane %v1265_v29, 1 }
  0x2d   : > { %s1129_s25 = smov 113   ;;  %s1130_s26 = smov 112   ;;  %v1259_v28 = vand.u32 127, %v348_v27  ;;  %v401_v40 = vperm.slane %v1265_v29, 3  ;;  %v418_v42 = vperm.slane %v1270_v32, 5  ;;  %v402_v45 = vperm.slane %v1270_v32, 3 }
  0x2e   : > { %s1131_s28 = smov 17   ;;  %s1132_s5 = smov 111   ;;  %v1003_v48 = vld [vmem:[%s1401_s0 + $0x18] ss:$0 sm:$0xff]  ;;  %v433_v49 = vperm.slane %v1265_v29, 6  ;;  %v434_v50 = vperm.slane %v1270_v32, 6 }
  0x2f   : > { %vm446_vm0 = vcmp.lt.s32.totalorder %v1259_v28, 112  ;;  %vm414_vm1 = vcmp.lt.s32.totalorder %v1259_v28, 127  ;;  %vm398_vm2 = vcmp.lt.s32.totalorder %v1259_v28, 1  ;;  %vm430_vm3 = vcmp.lt.s32.totalorder %v1259_v28, 113 }
  0x30   : > { %v337_v1 = vld [vmem:[#allocation2] sm:$0xff]  ;;  %vm462_vm4 = vcmp.lt.s32.totalorder %v1259_v28, 111  ;;  %vm366_vm5 = vcmp.lt.s32.totalorder %v1259_v28, 16  ;;  %vm498_vm6 = vcmask 1043456   ;;  %vm350_vm7 = vcmp.lt.s32.totalorder %v1259_v28, 17 }
  0x31   : > { %339 = vst [vmem:[#allocation1] ss:$2 sm:$0xff] %v337_v1  ;;  %vm382_vm8 = vcmp.lt.s32.totalorder %v1259_v28, 15  ;;  %v335_v28 = vld [vmem:[%s1241_s30] sm:$0xff]  ;;  %vm511_vm9 = vcmask 293888  }
  0x38   : > { %v340_v2 = vld.sshfl [vmem:[#allocation1] sm:$0xff pattern:$0x75316420]  ;;  %v341_v3 = vld.sshfl [vmem:[#allocation1 + $0x8] sm:$0xff pattern:$0x75316420] }
  0x39   : > { %357 = vst [vmem:[#allocation1] ss:$2 sm:$0xff] %v337_v1 }
  0x40   : > { %v358_v4 = vld.sshfl [vmem:[#allocation1] sm:$0xff pattern:$0x75316420]  ;;  %v359_v5 = vld.sshfl [vmem:[#allocation1 + $0x8] sm:$0xff pattern:$0x75316420] }
  0x41   : > { %373 = vst [vmem:[#allocation1] ss:$2 sm:$0xff] %v337_v1  ;;  %362 = vrot.lane.b32.xlu1 %v358_v4, %s1125_s20  ;;  %364 = vrot.lane.b32.xlu2 %v359_v5, %s1125_s20 }
  0x48   : > { %v374_v6 = vld.sshfl [vmem:[#allocation1] sm:$0xff pattern:$0x75316420]  ;;  %v375_v7 = vld.sshfl [vmem:[#allocation1 + $0x8] sm:$0xff pattern:$0x75316420] }
  0x49   : > { %378 = vrot.lane.b32.xlu0 %v374_v6, %s1126_s17  ;;  %389 = vst [vmem:[#allocation1] ss:$2 sm:$0xff] %v337_v1 }
  0x50   : > { %v391_v8 = vld.sshfl [vmem:[#allocation1 + $0x8] sm:$0xff pattern:$0x75316420]  ;;  %v390_v9 = vld.sshfl [vmem:[#allocation1] sm:$0xff pattern:$0x75316420] }
  0x51   : > { %396 = vrot.lane.b32.xlu0 %v391_v8, %s1127_s18  ;;  %405 = vst [vmem:[#allocation1] ss:$2 sm:$0xff] %v337_v1  ;;  %394 = vrot.lane.b32.xlu2 %v390_v9, %s1127_s18 }
  0x58   : > { %v406_v10 = vld.sshfl [vmem:[#allocation1] sm:$0xff pattern:$0x75316420]  ;;  %v407_v11 = vld.sshfl [vmem:[#allocation1 + $0x8] sm:$0xff pattern:$0x75316420] }
  0x59   : > { %421 = vst [vmem:[#allocation1] ss:$2 sm:$0xff] %v337_v1  ;;  %410 = vrot.lane.b32.xlu2 %v406_v10, %s1128_s21 }
  0x60   : > { %v422_v12 = vld.sshfl [vmem:[#allocation1] sm:$0xff pattern:$0x75316420]  ;;  %v423_v13 = vld.sshfl [vmem:[#allocation1 + $0x8] sm:$0xff pattern:$0x75316420] }
  0x61   : > { %426 = vrot.lane.b32.xlu0 %v422_v12, %s1129_s25  ;;  %428 = vrot.lane.b32.xlu1 %v423_v13, %s1129_s25  ;;  %437 = vst [vmem:[#allocation1] ss:$2 sm:$0xff] %v337_v1  ;;  %v353_v12 = vperm.slane %v1265_v29, 0 }
  0x62   : > { %412 = vrot.lane.b32.xlu2 %v407_v11, %s1128_s21  ;;  %s1423_s21 = sand.u32 1, %s1098_s16  }
  0x63   : > { %s719_s25 = scalar_lea.sflag [#allocation5], %s1423_s21 }
  0x68   : > { %v438_v14 = vld.sshfl [vmem:[#allocation1] sm:$0xff pattern:$0x75316420]  ;;  %v439_v15 = vld.sshfl [vmem:[#allocation1 + $0x8] sm:$0xff pattern:$0x75316420] }
  0x69   : > { %442 = vrot.lane.b32.xlu0 %v438_v14, %s1130_s26  ;;  %453 = vst [vmem:[#allocation1] ss:$2 sm:$0xff] %v337_v1 }
  0x6a   : > { %344 = vrot.lane.b32.xlu2 %v340_v2, %s1131_s28 }
  0x70   : > { %v454_v16 = vld.sshfl [vmem:[#allocation1] sm:$0xff pattern:$0x75316420]  ;;  %v455_v17 = vld.sshfl [vmem:[#allocation1 + $0x8] sm:$0xff pattern:$0x75316420] }
  0x71   : > { %444 = vrot.lane.b32.xlu0 %v439_v15, %s1130_s26  ;;  %458 = vrot.lane.b32.xlu1 %v454_v16, %s1132_s5  ;;  %481 = vst [vmem:[#allocation1] ss:$2 sm:$0xff] %v337_v1  ;;  %v370_v1 = vperm.slane %v1270_v32, 1  ;;  %v385_v16 = vperm.slane %v1265_v29, 2 }
  0x78   : > { %v482_v9 = vld.sshfl [vmem:[#allocation1] sm:$0xff pattern:$0x75316420]  ;;  %v483_v14 = vld.sshfl [vmem:[#allocation1 + $0x8] sm:$0xff pattern:$0x75316420] }
  0x79   : > { %346 = vrot.lane.b32.xlu0 %v341_v3, %s1131_s28  ;;  %460 = vrot.lane.b32.xlu1 %v455_v17, %s1132_s5  ;;  %v386_v17 = vperm.slane %v1270_v32, 2  ;;  %s1048_s5 = scalar_lea.hbm %s1405_s4, 16 }
  0x81   : > { %380 = vrot.lane.b32.xlu1 %v375_v7, %s1126_s17  ;;  %s740_s17 = sshll.u32 %s281_s24, 4  ;;  %s741_s17 = int_to_ptr.vmem [resolvable:$true] %s740_s17 }
  0x9b   : > { %v365_v19 = vpop.permute.xlu2 %364 }
  0xab   : > { %v395_v22 = vpop.permute.xlu2 %394 }
  0xb3   : > { %v363_v21 = vpop.permute.xlu1 %362  ;;  %v411_v25 = vpop.permute.xlu2 %410 }
  0xb4   : > { %v367_v0 = vsel %vm366_vm5, %v363_v21, %v365_v19  ;;  %v368_v4 = vsel %vm366_vm5, %v365_v19, %v363_v21 }
  0xbb   : > { %v1257_v18 = vpop.permute.xlu0 %378 }
  0xbc   : > { %v413_v34 = vpop.permute.xlu2 %412 }
  0xbd   : > { %v415_v41 = vsel %vm414_vm1, %v411_v25, %v413_v34  ;;  %v416_v43 = vsel %vm414_vm1, %v413_v34, %v411_v25 }
  0xbe   : > { %v419_v51 = vmul.f32 %v417_v37, %v415_v41  ;;  %v420_v55 = vmul.f32 %v418_v42, %v416_v43  ;;  %v652_v42 = vld [vmem:[#allocation3] sm:$0xff]  ;;  %v507_v43 = vld [vmem:[%s1246_s11] sm:$0xff] }
  0xbf   : > { %655 = vst [vmem:[#allocation1 + $0x1] ss:$2 sm:$0xff] %v652_v42 }
  0xc0   : > { %v488_v3 = vrot.slane %v419_v51, 4  ;;  %v489_v6 = vrot.slane %v420_v55, 4  ;;  %v509_v51 = vld [vmem:[%s1246_s11 + $0x10] sm:$0xff] }
  0xc2   : > { %v503_v21 = vsel %vm498_vm6, %v482_v9, %v488_v3  ;;  %v504_v25 = vsel %vm498_vm6, %v483_v14, %v489_v6 }
  0xc3   : > { %v397_v20 = vpop.permute.xlu0 %396 }
  0xc4   : > { %v399_v52 = vsel %vm398_vm2, %v395_v22, %v397_v20  ;;  %v400_v53 = vsel %vm398_vm2, %v397_v20, %v395_v22  ;;  %v345_v7 = vpop.permute.xlu2 %344  ;;  %v354_v20 = vperm.slane %v1270_v32, 0  ;;  %v371_v22 = vmul.f32 %v369_v39, %v368_v4 }
  0xc5   : > { %v403_v10 = vmul.f32 %v401_v40, %v400_v53  ;;  %v404_v11 = vmul.f32 %v402_v45, %v399_v52  ;;  %v336_v40 = vld [vmem:[%s1241_s30 + $0x8] sm:$0xff]  ;;  %v510_v52 = vld [vmem:[%s1246_s11 + $0x18] sm:$0xff]  ;;  %s909_s30 = sshll.u32 %s1110_s19, 3 }
  0xc6   : > { %s738_s20 = scalar_lea.hbm %s1405_s4, %s909_s30 }
  0xc7   : > { %v477_v27 = vrot.slane %v403_v10, 4  ;;  %s742_s18 = sshll.u32 %s738_s20, 4  ;;  %s743_s18 = int_to_ptr.hbm [resolvable:$true] %s742_s18 }
  0xc8   : > { %s1042_s26 = sshra.s32 %s743_s18, 4  ;;  %s1043_s26 = int_to_ptr.hbm [resolvable:$true] %s1042_s26 }
  0xc9   : > { %s1044_s19 = scalar_lea.hbm %s1043_s26, 8  ;;  %p1049_p5 = scmp.lt.s32.totalorder %s1043_s26, %s1405_s4 }
  0xca   : > { %p1045_p1 = scmp.ne.s32.totalorder %s1043_s26, %s1044_s19  ;;  %p1050_p6 = scmp.lt.s32.totalorder %s1048_s5, %s1044_s19 }
  0xcc   : > { %p1046_p2 = pnand %p1045_p1, %p1207_p3  ;;  %p1051_p7 = por %p1050_p6, %p1049_p5 }
  0xce   : > { %p1047_p4 = pneg %p1046_p2 }
  0xd0   : > { %p1052_p8 = pnand %p1051_p7, %p1047_p4 }
  0xd3   : > { %v427_v23 = vpop.permute.xlu0 %426  ;;  %v429_v24 = vpop.permute.xlu1 %428 }
  0xd4   : > { %v431_v54 = vsel %vm430_vm3, %v427_v23, %v429_v24  ;;  %v432_v57 = vsel %vm430_vm3, %v429_v24, %v427_v23 }
  0xd5   : > { %v435_v2 = vmul.f32 %v433_v49, %v431_v54  ;;  %v436_v5 = vmul.f32 %v434_v50, %v432_v57 }
  0xdb   : > { %v443_v26 = vpop.permute.xlu0 %442 }
  0xe3   : > { %v445_v30 = vpop.permute.xlu0 %444  ;;  %v459_v31 = vpop.permute.xlu1 %458 }
  0xe4   : > { %v447_v35 = vsel %vm446_vm0, %v443_v26, %v445_v30  ;;  %v448_v38 = vsel %vm446_vm0, %v445_v30, %v443_v26  ;;  %v372_v26 = vmul.f32 %v370_v1, %v367_v0 }
  0xe5   : > { %v451_v44 = vmul.f32 %v449_v33, %v447_v35  ;;  %v452_v46 = vmul.f32 %v450_v36, %v448_v38  ;;  %v471_v36 = vrot.slane %v371_v22, 4 }
  0xe6   : > { %v472_v39 = vrot.slane %v372_v26, 4 }
  0xe7   : > { %v494_v58 = vrot.slane %v451_v44, 4  ;;  %v495_v61 = vrot.slane %v452_v46, 4  ;;  %v508_v44 = vld [vmem:[%s1246_s11 + $0x8] sm:$0xff] }
  0xe9   : > { %v505_v13 = vsel %vm498_vm6, %v435_v2, %v494_v58  ;;  %v506_v15 = vsel %vm498_vm6, %v436_v5, %v495_v61 }
  0xeb   : > { %v461_v56 = vpop.permute.xlu1 %460  ;;  %v347_v8 = vpop.permute.xlu0 %346 }
  0xec   : > { %v463_v59 = vsel %vm462_vm4, %v459_v31, %v461_v56  ;;  %v464_v60 = vsel %vm462_vm4, %v461_v56, %v459_v31  ;;  %v352_v19 = vsel %vm350_vm7, %v347_v8, %v345_v7  ;;  %v351_v23 = vsel %vm350_vm7, %v345_v7, %v347_v8 }
  0xed   : > { %v467_v62 = vmul.f32 %v1002_v47, %v463_v59  ;;  %v468_v63 = vmul.f32 %v1003_v48, %v464_v60  ;;  %v478_v31 = vrot.slane %v404_v11, 4  ;;  %v355_v32 = vmul.f32 %v353_v12, %v352_v19 }
  0xee   : > { %v356_v35 = vmul.f32 %v354_v20, %v351_v23 }
  0xef   : > { %893 = vmatpush.msk.msra.mxu0 %vm498_vm6, %v467_v62  ;;  %910 = vmatpush.msk.msra.mxu2 %vm498_vm6, %v467_v62 }
  0xf0   : > { %896 = vmatpush.msk.msra.mxu1 %vm498_vm6, %v468_v63  ;;  %915 = vmatpush.msk.msra.mxu3 %vm498_vm6, %v468_v63  ;;  %v500_v41 = vsel %vm498_vm6, %v356_v35, %v472_v39  ;;  %v657_v35 = vld.sshfl [vmem:[#allocation1 + $0x8] sm:$0xff pattern:$0x75316420] }
  0xf1   : > { %536 = vmatpush.msra.mxu0 %v505_v13  ;;  %911 = vmatpush.msra.mxu2 %v505_v13 }
  0xf2   : > { %559 = vmatpush.msra.mxu1 %v506_v15  ;;  %916 = vmatpush.msra.mxu3 %v506_v15 }
  0xf3   : > { %v381_v24 = vpop.permute.xlu1 %380  ;;  %537 = vmatpush.msra.mxu0 %v503_v21  ;;  %912 = vmatpush.msra.mxu2 %v503_v21 }
  0xf4   : > { %v383_v29 = vsel %vm382_vm8, %v1257_v18, %v381_v24  ;;  %v384_v30 = vsel %vm382_vm8, %v381_v24, %v1257_v18  ;;  %560 = vmatpush.msra.mxu1 %v504_v25  ;;  %917 = vmatpush.msra.mxu3 %v504_v25  ;;  %v499_v18 = vsel %vm498_vm6, %v355_v32, %v471_v36 }
  0xf5   : > { %v387_v33 = vmul.f32 %v385_v16, %v384_v30  ;;  %v388_v34 = vmul.f32 %v386_v17, %v383_v29  ;;  %v656_v30 = vld.sshfl [vmem:[#allocation1] sm:$0xff pattern:$0x75316420] }
  0xf7   : > { %v501_v37 = vsel %vm498_vm6, %v387_v33, %v477_v27  ;;  %v502_v38 = vsel %vm498_vm6, %v388_v34, %v478_v31 }
  0xf8   : > { %538 = vmatpush.msra.mxu0 %v501_v37  ;;  %913 = vmatpush.msra.mxu2 %v501_v37 }
  0xf9   : > { %561 = vmatpush.msra.mxu1 %v502_v38  ;;  %918 = vmatpush.msra.mxu3 %v502_v38 }
  0xfa   : > { %539 = vmatpush.msra.mxu0 %v499_v18  ;;  %914 = vmatpush.msra.mxu2 %v499_v18 }
  0xfb   : > { %562 = vmatpush.msra.mxu1 %v500_v41  ;;  %919 = vmatpush.msra.mxu3 %v500_v41 }
  0xfc   : > { %894 = vmatmul.msk.f32.vlgmr.msra.gmra.mxu0 %vm511_vm9, %v335_v28  ;;  %895 = vmatmul.msk.f32.vlgmr.msra.gmra.mxu2 %vm511_vm9, %v336_v40 }
  0xfd   : > { %897 = vmatmul.msk.f32.vlgmr.msra.gmra.mxu1 %vm511_vm9, %v335_v28  ;;  %898 = vmatmul.msk.f32.vlgmr.msra.gmra.mxu3 %vm511_vm9, %v336_v40 }
 0x179   : > { %v541_v45 = vpop.f32.mrf.mxu0 }
 0x17a   : > { %v570_v46 = vadd.f32 %v541_v45, %v507_v43  ;;  %v564_v47 = vpop.f32.mrf.mxu1 }
 0x17b   : > { %v571_v48 = vadd.f32 %v564_v47, %v508_v44 }
 0x17c   : > { %v899_v49 = vmul.f32 -1.442695, %v570_v46 }
 0x17d   : > { %v900_v50 = vmul.f32 -1.442695, %v571_v48 }
 0x17e   : > { %1004 = vpow2.f32 %v899_v49 }
 0x17f   : > { %1006 = vpow2.f32 %v900_v50  ;;  %v544_v53 = vpop.f32.mrf.mxu2 }
 0x180   : > { %v572_v54 = vadd.f32 %v544_v53, %v509_v51  ;;  %v567_v55 = vpop.f32.mrf.mxu3 }
 0x181   : > { %v573_v56 = vadd.f32 %v567_v55, %v510_v52 }
 0x182   : > { %v901_v57 = vmul.f32 -1.442695, %v572_v54 }
 0x183   : > { %v902_v58 = vmul.f32 -1.442695, %v573_v56 }
 0x184   : > { %v1005_v59 = vpop.eup %1004  ;;  %1008 = vpow2.f32 %v901_v57 }
 0x185   : > { %v1007_v60 = vpop.eup %1006  ;;  %v580_v61 = vadd.f32 1.0, %v1005_v59  ;;  %1010 = vpow2.f32 %v902_v58 }
 0x186   : > { %v581_v62 = vadd.f32 1.0, %v1007_v60 }
 0x187   : > { %1012 = vrcp.f32 %v580_v61  ;;  %v593_v9 = vand.u32 2147483648, %v580_v61  ;;  %v591_v11 = vand.u32 2147483647, %v580_v61  ;;  %vm587_vm12 = vweird.f32 %v580_v61 }
 0x188   : > { %1014 = vrcp.f32 %v581_v62  ;;  %v608_v12 = vand.u32 2147483648, %v581_v62  ;;  %v606_v15 = vand.u32 2147483647, %v581_v62  ;;  %vm602_vm13 = vweird.f32 %v581_v62 }
 0x189   : > { %v594_v20 = vor.u32 1.1754944e-38, %v593_v9  ;;  %vm592_vm15 = vcmp.eq.f32.partialorder %v591_v11, 8.507059e+37 }
 0x18a   : > { %v1009_v63 = vpop.eup %1008  ;;  %v609_v26 = vor.u32 1.1754944e-38, %v608_v12  ;;  %vm607_vm1 = vcmp.eq.f32.partialorder %v606_v15, 8.507059e+37 }
 0x18b   : > { %v1011_v0 = vpop.eup %1010  ;;  %v1335_v1 = vadd.f32 1.0, %v1009_v63 }
 0x18c   : > { %v1337_v2 = vadd.f32 1.0, %v1011_v0 }
 0x18d   : > { %v1013_v3 = vpop.eup %1012  ;;  %1016 = vrcp.f32 %v1335_v1  ;;  %vm627_vm2 = vweird.f32 %v1335_v1  ;;  %v633_v43 = vand.u32 2147483648, %v1335_v1  ;;  %v631_v46 = vand.u32 2147483647, %v1335_v1 }
 0x18e   : > { %v1015_v4 = vpop.eup %1014  ;;  %v583_v5 = vmul.f32 %v1013_v3, %v580_v61  ;;  %1018 = vrcp.f32 %v1337_v2  ;;  %vm588_vm10 = vweird.f32 %v1013_v3  ;;  %vm642_vm4 = vweird.f32 %v1337_v2 }
 0x18f   : > { %v598_v6 = vmul.f32 %v1015_v4, %v581_v62  ;;  %1020 = vtanh.f32 %v572_v54  ;;  %vm603_vm11 = vweird.f32 %v1015_v4  ;;  %vm589_vm14 = vmor %vm587_vm12, %vm588_vm10  ;;  %v648_v47 = vand.u32 2147483648, %v1337_v2 }
 0x190   : > { %v584_v7 = vsub.f32 1.0, %v583_v5  ;;  %1022 = vtanh.f32 %v573_v56  ;;  %vm604_vm0 = vmor %vm602_vm13, %vm603_vm11  ;;  %v646_v48 = vand.u32 2147483647, %v1337_v2  ;;  %v634_v50 = vor.u32 1.1754944e-38, %v633_v43 }
 0x191   : > { %v599_v8 = vsub.f32 1.0, %v598_v6  ;;  %vm632_vm8 = vcmp.eq.f32.partialorder %v631_v46, 8.507059e+37  ;;  %v649_v52 = vor.u32 1.1754944e-38, %v648_v47 }
 0x192   : > { %v585_v10 = vmul.f32 %v1013_v3, %v584_v7  ;;  %vm647_vm9 = vcmp.eq.f32.partialorder %v646_v48, 8.507059e+37 }
 0x193   : > { %v1017_v13 = vpop.eup %1016  ;;  %v600_v14 = vmul.f32 %v1015_v4, %v599_v8 }
 0x194   : > { %v1019_v16 = vpop.eup %1018  ;;  %v586_v17 = vadd.f32 %v1013_v3, %v585_v10  ;;  %v623_v19 = vmul.f32 %v1017_v13, %v1335_v1  ;;  %vm628_vm3 = vweird.f32 %v1017_v13 }
 0x195   : > { %v601_v21 = vadd.f32 %v1015_v4, %v600_v14  ;;  %v638_v22 = vmul.f32 %v1019_v16, %v1337_v2  ;;  %v1021_v23 = vpop.eup %1020  ;;  %vm643_vm5 = vweird.f32 %v1019_v16  ;;  %vm629_vm6 = vmor %vm627_vm2, %vm628_vm3 }
 0x196   : > { %v590_v24 = vsel %vm589_vm14, %v1013_v3, %v586_v17  ;;  %v624_v25 = vsub.f32 1.0, %v623_v19  ;;  %v1023_v27 = vpop.eup %1022  ;;  %vm644_vm7 = vmor %vm642_vm4, %vm643_vm5 }
 0x197   : > { %v595_v29 = vsel %vm592_vm15, %v594_v20, %v590_v24  ;;  %v605_v31 = vsel %vm604_vm0, %v1015_v4, %v601_v21  ;;  %v639_v32 = vsub.f32 1.0, %v638_v22 }
 0x198   : > { %v662_v33 = vmul.f32 %v1021_v23, %v595_v29  ;;  %v610_v34 = vsel %vm607_vm1, %v609_v26, %v605_v31  ;;  %v625_v36 = vmul.f32 %v1017_v13, %v624_v25  ;;  %v660_v38 = vmul.f32 %v656_v30, %v595_v29 }
 0x199   : > { %v663_v37 = vmul.f32 %v1023_v27, %v610_v34  ;;  %v640_v18 = vmul.f32 %v1019_v16, %v639_v32  ;;  %v661_v28 = vmul.f32 %v657_v35, %v610_v34 }
 0x19a   : > { %v666_v39 = vrot.slane %v662_v33, 4  ;;  %v626_v42 = vadd.f32 %v1017_v13, %v625_v36 }
 0x19b   : > { %v667_v40 = vrot.slane %v663_v37, 4  ;;  %v641_v45 = vadd.f32 %v1019_v16, %v640_v18 }
 0x19c   : > { %v670_v41 = vadd.f32 %v666_v39, %v660_v38  ;;  %v630_v49 = vsel %vm629_vm6, %v1017_v13, %v626_v42 }
 0x19d   : > { %v671_v44 = vadd.f32 %v667_v40, %v661_v28  ;;  %v645_v51 = vsel %vm644_vm7, %v1019_v16, %v641_v45  ;;  %v635_v54 = vsel %vm632_vm8, %v634_v50, %v630_v49 }
 0x19e   : > { %1024 = vtanh.f32 %v670_v41  ;;  %678 = vst.sshfl [vmem:[#allocation1] sm:$0xff pattern:$0x75316420] %v670_v41  ;;  %v650_v57 = vsel %vm647_vm9, %v649_v52, %v645_v51 }
 0x19f   : > { %1026 = vtanh.f32 %v671_v44  ;;  %679 = vst.sshfl [vmem:[#allocation1 + $0x8] sm:$0xff pattern:$0x75316420] %v671_v44 }
 0x1a4   : > { %v1025_v53 = vpop.eup %1024 }
 0x1a5   : > { %v1027_v55 = vpop.eup %1026  ;;  %v674_v56 = vmul.f32 %v1025_v53, %v635_v54 }
 0x1a6   : > { %v675_v58 = vmul.f32 %v1027_v55, %v650_v57  ;;  %v681_v59 = vld [vmem:[#allocation1 + $0x1] ss:$2 sm:$0xff] }
 0x1a7   : > { %683 = vst [vmem:[#allocation3] sm:$0xff] %v681_v59 }
 0x1a8   : > { %686 = vst.sshfl [vmem:[#allocation1] sm:$0xff pattern:$0x75316420] %v674_v56 }
 0x1a9   : > { %687 = vst.sshfl [vmem:[#allocation1 + $0x8] sm:$0xff pattern:$0x75316420] %v675_v58 }
 0x1b0   : > { %v689_v60 = vld [vmem:[#allocation1 + $0x1] ss:$2 sm:$0xff] }
 0x1b1   : > { %691 = vst [vmem:[#allocation2] sm:$0xff] %v689_v60 }
 0x1b2   : > { %692 = vst.sshfl [vmem:[#allocation1] sm:$0xff pattern:$0x75316420] %v674_v56 }
 0x1b3   : > { %693 = vst.sshfl [vmem:[#allocation1 + $0x8] sm:$0xff pattern:$0x75316420] %v675_v58 }
 0x1ba   : > { %v695_v61 = vld [vmem:[#allocation1 + $0x1] ss:$2 sm:$0xff] }
 0x1bb   : > { %697 = vst [vmem:[%s1251_s15] sm:$0xff] %v695_v61 }
 0x1bc   : > { %699 = vst.sshfl [vmem:[#allocation1 + $0x8] sm:$0xff pattern:$0x75316420] %v671_v44 }
 0x1bd   : > { %698 = vst.sshfl [vmem:[#allocation1] sm:$0xff pattern:$0x75316420] %v670_v41 }
 0x1c4   : > { %v701_v62 = vld [vmem:[#allocation1 + $0x1] ss:$2 sm:$0xff] }
 0x1c5   : > { %703 = vst [vmem:[%s281_s24] sm:$0xff] %v701_v62 }
 0x1c6   : > { %1055 = shalt.err (!%p1052_p8)
}
 0x1c7   : > { %922 = dma.vmem_to_hbm [thread:$0]  (%p1207_p3), %s741_s17, 128, %s743_s18, %s719_s25  }
 0x1c8 PF: > { %s1424_s8 = sld [smem:[#allocation7_spill]]  ;;  %p928_p10 = scmp.ge.s32.totalorder %s1122_s22, 2 }
 0x1ca   : > { %p925_p11 = pnand %p928_p10, %p1217_p9 }
 0x1cc   : > { %p926_p12 = pneg %p925_p11 }
 0x1ce   : > { %s771_s13 = sand.u32 1, %s1424_s8  }
 0x1cf   : > { %s772_s14 = scalar_lea.sflag [#allocation5], %s771_s13 }
 0x1d0   : > { %1089 = dma.done.wait (%p926_p12), %s772_s14, 128  }
 0x1d1   : > { %1091 = vsyncadd (%p926_p12), %s772_s14, 4294967168  ;;  %s18_s22 = sadd.s32 1, %s1122_s22   ;;  %s1426_s23 = sld [smem:[#allocation8_spill]] }
 0x1d2   : > { %p15_p13 = scmp.ge.s32.totalorder %s18_s22, 8   ;;  %s1427_s17 = sld [smem:[#allocation14_spill]] }
 0x1d3   : > { %s1428_s18 = sld [smem:[#allocation9_spill]]  ;;  %s1432_s15 = smov %s1098_s16 }
 0x1d4   : > { %s1429_s19 = sld [smem:[#allocation10_spill]]  ;;  %17 = sbr.rel (!%p15_p13) target bundleno = 5 (0x5), region = 91 }
 0x1d5   : > { %s1430_s20 = sld [smem:[#allocation11_spill]] }
 0x1d6   : > { %s1431_s21 = sld [smem:[#allocation12_spill]] }
 0x1d7   : > { %s1433_s16 = smov %s1426_s23 }
 0x1d9   :  { %778 = vsyncpa [#allocation5], 1 }
 0x1da   :  { %780 = vsyncpa [#allocation5 + $0x1], 1 }

// kernel: multi_block_lstm_forward.19
= control target key start
LH: loop header
LB: loop body
LE: loop exit
PB: predicated region body
PF: predicated region fallthrough
CT: control target
= control target key end

     0   :  { %s421_s19 = smov 112   ;;  %s422_s20 = smov 111   ;;  %v39_v6 = vlaneseq  ;;  %vm252_vm8 = vcmask 588800   ;;  %vm299_vm9 = vcmask 1043456   ;;  %s829_s1 = inlined_call_operand.vmem [shape: f32[3,8,256], index: 1, kind: input, shape index: {}]   ;;  %s830_s0 = inlined_call_operand.vmem [shape: f32[9,256], index: 0, kind: input, shape index: {}]   ;;  %s831_s2 = inlined_call_operand.vmem [shape: f32[4,72], index: 2, kind: input, shape index: {}]   ;;  %s832_s3 = inlined_call_operand.vmem [shape: f32[4,1], index: 3, kind: input, shape index: {}]   ;;  %s833_s4 = inlined_call_operand.vmem [shape: f32[3,4,256], index: 4, kind: output, shape index: {}]  }
   0x1   :  { %v458_v0 = vld [vmem:[%s829_s1] sm:$0xff]  ;;  %v463_v1 = vld [vmem:[%s829_s1 + $0x10] sm:$0xff]  ;;  %v472_v2 = vld [vmem:[%s829_s1 + $0x8] sm:$0xff]  ;;  %s423_s25 = smov 113   ;;  %s424_s26 = smov 127  }
   0x2   :  { %191 = vrot.lane.b32.xlu1 %v458_v0, %s421_s19  ;;  %218 = vrot.lane.b32.xlu0 %v458_v0, %s422_s20  ;;  %v480_v3 = vld [vmem:[%s829_s1 + $0x18] sm:$0xff]  ;;  %v500_v4 = vld [vmem:[%s829_s1 + $0x20] sm:$0xff]  ;;  %s425_s5 = smov 1   ;;  %s426_s6 = smov 15   ;;  %v545_v8 = vand.u32 127, %v39_v6 }
   0x3   :  { %220 = vrot.lane.b32.xlu2 %v463_v1, %s422_s20  ;;  %v508_v5 = vld [vmem:[%s829_s1 + $0x28] sm:$0xff]  ;;  %s427_s1 = smov 16   ;;  %s428_s7 = smov 17   ;;  %v555_v9 = vld [vmem:[%s830_s0 + $0x10] ss:$0 sm:$0xff]  ;;  %v585_v20 = vld [vmem:[%s830_s0] sm:$0xff] }
   0x4   :  { %vm230_vm0 = vcmp.lt.s32.totalorder %v545_v8, 111  ;;  %v560_v10 = vld [vmem:[%s830_s0 + $0x18] ss:$0 sm:$0xff]  ;;  %v590_v21 = vld [vmem:[%s830_s0 + $0x8] sm:$0xff]  ;;  %vm203_vm1 = vcmp.lt.s32.totalorder %v545_v8, 112  ;;  %v600_v24 = vperm.slane %v585_v20, 7 }
   0x5   :  { %v603_v25 = vperm.slane %v590_v21, 7  ;;  %vm176_vm2 = vcmp.lt.s32.totalorder %v545_v8, 113  ;;  %v619_v35 = vperm.slane %v585_v20, 6  ;;  %v622_v36 = vperm.slane %v590_v21, 6 }
   0x6   :  { %vm149_vm3 = vcmp.lt.s32.totalorder %v545_v8, 127  ;;  %v632_v44 = vperm.slane %v585_v20, 5  ;;  %v635_v45 = vperm.slane %v590_v21, 5  ;;  %vm122_vm4 = vcmp.lt.s32.totalorder %v545_v8, 1 }
   0x7   :  { %vm95_vm5 = vcmp.lt.s32.totalorder %v545_v8, 15  ;;  %vm68_vm6 = vcmp.lt.s32.totalorder %v545_v8, 16  ;;  %vm41_vm7 = vcmp.lt.s32.totalorder %v545_v8, 17 }
   0xa   :  { %197 = vrot.lane.b32.xlu1 %v472_v2, %s421_s19  ;;  %224 = vrot.lane.b32.xlu0 %v472_v2, %s422_s20 }
   0xb   :  { %226 = vrot.lane.b32.xlu2 %v480_v3, %s422_s20 }
  0x12   :  { %170 = vrot.lane.b32.xlu1 %v472_v2, %s423_s25  ;;  %164 = vrot.lane.b32.xlu0 %v458_v0, %s423_s25 }
  0x13   :  { %193 = vrot.lane.b32.xlu2 %v463_v1, %s421_s19 }
  0x1a   :  { %137 = vrot.lane.b32.xlu1 %v458_v0, %s424_s26  ;;  %199 = vrot.lane.b32.xlu0 %v480_v3, %s421_s19 }
  0x1b   :  { %143 = vrot.lane.b32.xlu2 %v472_v2, %s424_s26 }
  0x22   :  { %172 = vrot.lane.b32.xlu1 %v480_v3, %s423_s25  ;;  %166 = vrot.lane.b32.xlu0 %v463_v1, %s423_s25 }
  0x23   :  { %139 = vrot.lane.b32.xlu2 %v463_v1, %s424_s26 }
  0x2a   :  { %222 = vrot.lane.b32.xlu1 %v500_v4, %s422_s20  ;;  %145 = vrot.lane.b32.xlu0 %v480_v3, %s424_s26 }
  0x2b   :  { %228 = vrot.lane.b32.xlu2 %v508_v5, %s422_s20 }
  0x32   :  { %116 = vrot.lane.b32.xlu1 %v472_v2, %s425_s5  ;;  %110 = vrot.lane.b32.xlu0 %v458_v0, %s425_s5 }
  0x33   :  { %195 = vrot.lane.b32.xlu2 %v500_v4, %s421_s19 }
  0x3a   :  { %83 = vrot.lane.b32.xlu1 %v458_v0, %s426_s6  ;;  %201 = vrot.lane.b32.xlu0 %v508_v5, %s421_s19 }
  0x3b   :  { %89 = vrot.lane.b32.xlu2 %v472_v2, %s426_s6 }
  0x42   :  { %118 = vrot.lane.b32.xlu1 %v480_v3, %s425_s5  ;;  %112 = vrot.lane.b32.xlu0 %v463_v1, %s425_s5 }
  0x43   :  { %168 = vrot.lane.b32.xlu2 %v500_v4, %s423_s25 }
  0x4a   :  { %56 = vrot.lane.b32.xlu1 %v458_v0, %s427_s1  ;;  %174 = vrot.lane.b32.xlu0 %v508_v5, %s423_s25 }
  0x4b   :  { %62 = vrot.lane.b32.xlu2 %v472_v2, %s427_s1 }
  0x52   :  { %91 = vrot.lane.b32.xlu1 %v480_v3, %s426_s6  ;;  %85 = vrot.lane.b32.xlu0 %v463_v1, %s426_s6 }
  0x53   :  { %141 = vrot.lane.b32.xlu2 %v500_v4, %s424_s26 }
  0x5a   :  { %27 = vrot.lane.b32.xlu1 %v458_v0, %s428_s7  ;;  %147 = vrot.lane.b32.xlu0 %v508_v5, %s424_s26 }
  0x5b   :  { %33 = vrot.lane.b32.xlu2 %v472_v2, %s428_s7 }
  0x5d   :  { %v221_v7 = vpop.permute.xlu2 %220 }
  0x62   :  { %64 = vrot.lane.b32.xlu1 %v480_v3, %s427_s1  ;;  %58 = vrot.lane.b32.xlu0 %v463_v1, %s427_s1 }
  0x63   :  { %29 = vrot.lane.b32.xlu2 %v463_v1, %s428_s7 }
  0x65   :  { %v227_v11 = vpop.permute.xlu2 %226 }
  0x66   :  { %v232_v12 = vsel %vm230_vm0, %v221_v7, %v227_v11  ;;  %v235_v13 = vsel %vm230_vm0, %v227_v11, %v221_v7 }
  0x67   :  { %v241_v14 = vmul.f32 %v555_v9, %v232_v12  ;;  %v242_v15 = vmul.f32 %v560_v10, %v235_v13 }
  0x69   :  { %310 = vmatpush.msra.mxu2 %v241_v14  ;;  %330 = vmatpush.msra.mxu3 %v242_v15 }
  0x6a   :  { %114 = vrot.lane.b32.xlu1 %v500_v4, %s425_s5  ;;  %35 = vrot.lane.b32.xlu0 %v480_v3, %s428_s7 }
  0x6b   :  { %120 = vrot.lane.b32.xlu2 %v508_v5, %s425_s5 }
  0x6d   :  { %v194_v16 = vpop.permute.xlu2 %193 }
  0x72   :  { %93 = vrot.lane.b32.xlu1 %v508_v5, %s426_s6  ;;  %87 = vrot.lane.b32.xlu0 %v500_v4, %s426_s6 }
  0x73   :  { %60 = vrot.lane.b32.xlu2 %v500_v4, %s427_s1 }
  0x74   :  { %v192_v17 = vpop.permute.xlu1 %191  ;;  %v219_v18 = vpop.permute.xlu0 %218 }
  0x75   :  { %v144_v19 = vpop.permute.xlu2 %143 }
  0x7a   :  { %66 = vrot.lane.b32.xlu0 %v508_v5, %s427_s1  ;;  %31 = vrot.lane.b32.xlu1 %v500_v4, %s428_s7 }
  0x7b   :  { %37 = vrot.lane.b32.xlu2 %v508_v5, %s428_s7 }
  0x7c   :  { %v198_v22 = vpop.permute.xlu1 %197  ;;  %v225_v23 = vpop.permute.xlu0 %224 }
  0x7d   :  { %v204_v26 = vsel %vm203_vm1, %v192_v17, %v198_v22  ;;  %v207_v27 = vsel %vm203_vm1, %v198_v22, %v192_v17  ;;  %v231_v28 = vsel %vm230_vm0, %v219_v18, %v225_v23  ;;  %v234_v29 = vsel %vm230_vm0, %v225_v23, %v219_v18  ;;  %v140_v30 = vpop.permute.xlu2 %139 }
  0x7e   :  { %v239_v31 = vmul.f32 %v555_v9, %v231_v28  ;;  %v240_v32 = vmul.f32 %v560_v10, %v234_v29  ;;  %v212_v33 = vmul.f32 %v600_v24, %v204_v26  ;;  %v213_v34 = vmul.f32 %v603_v25, %v207_v27 }
  0x7f   :  { %v675_v17 = vperm.slane %v585_v20, 3  ;;  %v678_v18 = vperm.slane %v590_v21, 3 }
  0x80   :  { %263 = vmatpush.msra.mxu0 %v239_v31  ;;  %283 = vmatpush.msra.mxu1 %v240_v32 }
  0x82   :  { %264 = vmatpush.msra.mxu0 %v212_v33  ;;  %284 = vmatpush.msra.mxu1 %v213_v34 }
  0x84   :  { %v171_v37 = vpop.permute.xlu1 %170  ;;  %v165_v38 = vpop.permute.xlu0 %164 }
  0x85   :  { %v177_v39 = vsel %vm176_vm2, %v165_v38, %v171_v37  ;;  %v180_v40 = vsel %vm176_vm2, %v171_v37, %v165_v38  ;;  %v229_v43 = vpop.permute.xlu2 %228 }
  0x86   :  { %v185_v41 = vmul.f32 %v619_v35, %v177_v39  ;;  %v186_v42 = vmul.f32 %v622_v36, %v180_v40 }
  0x88   :  { %265 = vmatpush.msra.mxu0 %v185_v41  ;;  %285 = vmatpush.msra.mxu1 %v186_v42 }
  0x8c   :  { %v138_v46 = vpop.permute.xlu1 %137  ;;  %v200_v47 = vpop.permute.xlu0 %199 }
  0x8d   :  { %v150_v48 = vsel %vm149_vm3, %v138_v46, %v144_v19  ;;  %v153_v49 = vsel %vm149_vm3, %v144_v19, %v138_v46  ;;  %v205_v50 = vsel %vm203_vm1, %v194_v16, %v200_v47  ;;  %v208_v51 = vsel %vm203_vm1, %v200_v47, %v194_v16  ;;  %v196_v56 = vpop.permute.xlu2 %195 }
  0x8e   :  { %v214_v52 = vmul.f32 %v600_v24, %v205_v50  ;;  %v215_v53 = vmul.f32 %v603_v25, %v208_v51  ;;  %v158_v54 = vmul.f32 %v632_v44, %v150_v48  ;;  %v159_v55 = vmul.f32 %v635_v45, %v153_v49 }
  0x8f   :  { %v718_v49 = vperm.slane %v590_v21, 1 }
  0x90   :  { %311 = vmatpush.msra.mxu2 %v214_v52  ;;  %331 = vmatpush.msra.mxu3 %v215_v53 }
  0x91   :  { %266 = vmatpush.msra.mxu0 %v158_v54  ;;  %286 = vmatpush.msra.mxu1 %v159_v55 }
  0x93   :  { %267 = vmatpush.msra.mxu0 %v458_v0  ;;  %287 = vmatpush.msra.mxu1 %v472_v2 }
  0x94   :  { %v173_v57 = vpop.permute.xlu1 %172  ;;  %v167_v58 = vpop.permute.xlu0 %166 }
  0x95   :  { %v178_v59 = vsel %vm176_vm2, %v167_v58, %v173_v57  ;;  %v181_v60 = vsel %vm176_vm2, %v173_v57, %v167_v58  ;;  %v90_v63 = vpop.permute.xlu2 %89 }
  0x96   :  { %v187_v61 = vmul.f32 %v619_v35, %v178_v59  ;;  %v188_v62 = vmul.f32 %v622_v36, %v181_v60 }
  0x98   :  { %312 = vmatpush.msra.mxu2 %v187_v61  ;;  %332 = vmatpush.msra.mxu3 %v188_v62 }
  0x9c   :  { %v223_v6 = vpop.permute.xlu1 %222  ;;  %v146_v7 = vpop.permute.xlu0 %145 }
  0x9d   :  { %v233_v0 = vsel %vm230_vm0, %v223_v6, %v229_v43  ;;  %v236_v2 = vsel %vm230_vm0, %v229_v43, %v223_v6  ;;  %v151_v11 = vsel %vm149_vm3, %v140_v30, %v146_v7  ;;  %v154_v12 = vsel %vm149_vm3, %v146_v7, %v140_v30  ;;  %v169_v23 = vpop.permute.xlu2 %168 }
  0x9e   :  { %v160_v13 = vmul.f32 %v632_v44, %v151_v11  ;;  %v161_v14 = vmul.f32 %v635_v45, %v154_v12  ;;  %v668_v15 = vmul.f32 %v555_v9, %v233_v0  ;;  %v671_v16 = vmul.f32 %v560_v10, %v236_v2 }
  0xa0   :  { %313 = vmatpush.msra.mxu2 %v160_v13  ;;  %333 = vmatpush.msra.mxu3 %v161_v14 }
  0xa2   :  { %314 = vmatpush.msra.mxu2 %v463_v1  ;;  %334 = vmatpush.msra.mxu3 %v480_v3  ;;  %v690_v1 = vperm.slane %v585_v20, 2  ;;  %v693_v3 = vperm.slane %v590_v21, 2 }
  0xa4   :  { %v117_v19 = vpop.permute.xlu1 %116  ;;  %v111_v9 = vpop.permute.xlu0 %110 }
  0xa5   :  { %v123_v10 = vsel %vm122_vm4, %v111_v9, %v117_v19  ;;  %v126_v22 = vsel %vm122_vm4, %v117_v19, %v111_v9  ;;  %v63_v40 = vpop.permute.xlu2 %62 }
  0xa6   :  { %v131_v26 = vmul.f32 %v675_v17, %v126_v22  ;;  %v132_v27 = vmul.f32 %v678_v18, %v123_v10 }
  0xa8   :  { %268 = vmatpush.msra.mxu0 %v131_v26  ;;  %288 = vmatpush.msra.mxu1 %v132_v27  ;;  %v429_v27 = vmov 0  }
  0xa9   :  { %418 = vset.pattern.permute.xlu0 %v429_v27 }
  0xac   :  { %v84_v28 = vpop.permute.xlu1 %83  ;;  %v202_v29 = vpop.permute.xlu0 %201 }
  0xad   :  { %v96_v30 = vsel %vm95_vm5, %v84_v28, %v90_v63  ;;  %v99_v31 = vsel %vm95_vm5, %v90_v63, %v84_v28  ;;  %v206_v32 = vsel %vm203_vm1, %v196_v56, %v202_v29  ;;  %v209_v33 = vsel %vm203_vm1, %v202_v29, %v196_v56 }
  0xae   :  { %v104_v34 = vmul.f32 %v690_v1, %v99_v31  ;;  %v105_v37 = vmul.f32 %v693_v3, %v96_v30  ;;  %v216_v38 = vmul.f32 %v600_v24, %v206_v32  ;;  %v217_v39 = vmul.f32 %v603_v25, %v209_v33  ;;  %v142_v24 = vpop.permute.xlu2 %141 }
  0xaf   :  { %v715_v25 = vperm.slane %v585_v20, 1 }
  0xb0   :  { %269 = vmatpush.msra.mxu0 %v104_v34  ;;  %289 = vmatpush.msra.mxu1 %v105_v37 }
  0xb4   :  { %v119_v41 = vpop.permute.xlu1 %118  ;;  %v113_v42 = vpop.permute.xlu0 %112 }
  0xb5   :  { %v124_v43 = vsel %vm122_vm4, %v113_v42, %v119_v41  ;;  %v127_v46 = vsel %vm122_vm4, %v119_v41, %v113_v42 }
  0xb6   :  { %v133_v47 = vmul.f32 %v675_v17, %v127_v46  ;;  %v134_v48 = vmul.f32 %v678_v18, %v124_v43  ;;  %v34_v60 = vpop.permute.xlu2 %33 }
  0xb8   :  { %315 = vmatpush.msra.mxu2 %v133_v47  ;;  %335 = vmatpush.msra.mxu3 %v134_v48 }
  0xbc   :  { %v57_v50 = vpop.permute.xlu1 %56  ;;  %v175_v51 = vpop.permute.xlu0 %174 }
  0xbd   :  { %v69_v52 = vsel %vm68_vm6, %v57_v50, %v63_v40  ;;  %v72_v53 = vsel %vm68_vm6, %v63_v40, %v57_v50  ;;  %v179_v54 = vsel %vm176_vm2, %v169_v23, %v175_v51  ;;  %v182_v55 = vsel %vm176_vm2, %v175_v51, %v169_v23  ;;  %v760_v23 = vld [vmem:[%s831_s2] sm:$0xf] }
  0xbe   :  { %v77_v56 = vmul.f32 %v715_v25, %v72_v53  ;;  %v78_v57 = vmul.f32 %v718_v49, %v69_v52  ;;  %v189_v58 = vmul.f32 %v619_v35, %v179_v54  ;;  %v190_v59 = vmul.f32 %v622_v36, %v182_v55  ;;  %v30_v2 = vpop.permute.xlu2 %29 }
  0xbf   :  { %v740_v35 = vperm.slane %v585_v20, 0  ;;  %v743_v36 = vperm.slane %v590_v21, 0 }
  0xc0   :  { %270 = vmatpush.msra.mxu0 %v77_v56  ;;  %290 = vmatpush.msra.mxu1 %v78_v57 }
  0xc4   :  { %v92_v61 = vpop.permute.xlu1 %91  ;;  %v86_v62 = vpop.permute.xlu0 %85 }
  0xc5   :  { %v97_v63 = vsel %vm95_vm5, %v86_v62, %v92_v61  ;;  %v100_v6 = vsel %vm95_vm5, %v92_v61, %v86_v62 }
  0xc6   :  { %v106_v7 = vmul.f32 %v690_v1, %v100_v6  ;;  %v107_v0 = vmul.f32 %v693_v3, %v97_v63  ;;  %v121_v30 = vpop.permute.xlu2 %120 }
  0xc8   :  { %316 = vmatpush.msra.mxu2 %v106_v7  ;;  %336 = vmatpush.msra.mxu3 %v107_v0 }
  0xcc   :  { %v28_v11 = vpop.permute.xlu1 %27  ;;  %v148_v12 = vpop.permute.xlu0 %147 }
  0xcd   :  { %v42_v13 = vsel %vm41_vm7, %v28_v11, %v34_v60  ;;  %v45_v14 = vsel %vm41_vm7, %v34_v60, %v28_v11  ;;  %v152_v19 = vsel %vm149_vm3, %v142_v24, %v148_v12  ;;  %v155_v9 = vsel %vm149_vm3, %v148_v12, %v142_v24 }
  0xce   :  { %v50_v20 = vmul.f32 %v740_v35, %v45_v14  ;;  %v51_v21 = vmul.f32 %v743_v36, %v42_v13  ;;  %v162_v10 = vmul.f32 %v632_v44, %v152_v19  ;;  %v163_v22 = vmul.f32 %v635_v45, %v155_v9  ;;  %v246_v44 = vld [vmem:[%s832_s3] sm:$0xf]  ;;  %v61_v41 = vpop.permute.xlu2 %60 }
  0xcf   :  { %249 = vperm.xlu0 %418, %v246_v44  }
  0xd0   :  { %271 = vmatpush.msra.mxu0 %v50_v20  ;;  %291 = vmatpush.msra.mxu1 %v51_v21 }
  0xd1   :  { %401 = vmatmul.msk.f32.vlgmr.msra.gmra.mxu0 %vm252_vm8, %v760_v23  ;;  %402 = vmatmul.msk.f32.vlgmr.msra.gmra.mxu1 %vm252_vm8, %v760_v23 }
  0xd2   :  { %357 = vmatpush.msrb.mxu0 %v668_v15  ;;  %377 = vmatpush.msrb.mxu1 %v671_v16 }
  0xd4   :  { %358 = vmatpush.msrb.mxu0 %v216_v38  ;;  %378 = vmatpush.msrb.mxu1 %v217_v39  ;;  %v65_v45 = vpop.permute.xlu1 %64  ;;  %v59_v26 = vpop.permute.xlu0 %58 }
  0xd5   :  { %v70_v15 = vsel %vm68_vm6, %v59_v26, %v65_v45  ;;  %v73_v16 = vsel %vm68_vm6, %v65_v45, %v59_v26 }
  0xd6   :  { %359 = vmatpush.msrb.mxu0 %v189_v58  ;;  %379 = vmatpush.msrb.mxu1 %v190_v59  ;;  %v79_v28 = vmul.f32 %v715_v25, %v73_v16  ;;  %v80_v29 = vmul.f32 %v718_v49, %v70_v15  ;;  %v38_v48 = vpop.permute.xlu2 %37 }
  0xd8   :  { %360 = vmatpush.msrb.mxu0 %v162_v10  ;;  %380 = vmatpush.msrb.mxu1 %v163_v22 }
  0xd9   :  { %317 = vmatpush.msra.mxu2 %v79_v28  ;;  %337 = vmatpush.msra.mxu3 %v80_v29 }
  0xda   :  { %361 = vmatpush.msrb.mxu0 %v500_v4  ;;  %381 = vmatpush.msrb.mxu1 %v508_v5 }
  0xdc   :  { %v115_v31 = vpop.permute.xlu1 %114  ;;  %v36_v32 = vpop.permute.xlu0 %35 }
  0xdd   :  { %v43_v33 = vsel %vm41_vm7, %v30_v2, %v36_v32  ;;  %v46_v34 = vsel %vm41_vm7, %v36_v32, %v30_v2  ;;  %v125_v37 = vsel %vm122_vm4, %v115_v31, %v121_v30  ;;  %v128_v38 = vsel %vm122_vm4, %v121_v30, %v115_v31 }
  0xde   :  { %v52_v39 = vmul.f32 %v740_v35, %v46_v34  ;;  %v53_v4 = vmul.f32 %v743_v36, %v43_v33  ;;  %v135_v5 = vmul.f32 %v675_v17, %v128_v38  ;;  %v136_v40 = vmul.f32 %v678_v18, %v125_v37 }
  0xe0   :  { %318 = vmatpush.msra.mxu2 %v52_v39  ;;  %338 = vmatpush.msra.mxu3 %v53_v4 }
  0xe1   :  { %362 = vmatpush.msrb.mxu0 %v135_v5  ;;  %382 = vmatpush.msrb.mxu1 %v136_v40 }
  0xe2   :  { %404 = vmatmul.msk.f32.vlgmr.msra.gmra.mxu3 %vm252_vm8, %v760_v23  ;;  %403 = vmatmul.msk.f32.vlgmr.msra.gmra.mxu2 %vm252_vm8, %v760_v23 }
  0xe4   :  { %v94_v42 = vpop.permute.xlu1 %93  ;;  %v88_v43 = vpop.permute.xlu0 %87 }
  0xe5   :  { %v98_v46 = vsel %vm95_vm5, %v88_v43, %v94_v42  ;;  %v101_v17 = vsel %vm95_vm5, %v94_v42, %v88_v43 }
  0xe6   :  { %v108_v18 = vmul.f32 %v690_v1, %v101_v17  ;;  %v109_v47 = vmul.f32 %v693_v3, %v98_v46 }
  0xe8   :  { %363 = vmatpush.msrb.mxu0 %v108_v18  ;;  %383 = vmatpush.msrb.mxu1 %v109_v47 }
  0xec   :  { %v67_v24 = vpop.permute.xlu0 %66  ;;  %v32_v50 = vpop.permute.xlu1 %31 }
  0xed   :  { %v71_v51 = vsel %vm68_vm6, %v61_v41, %v67_v24  ;;  %v74_v52 = vsel %vm68_vm6, %v67_v24, %v61_v41  ;;  %v44_v53 = vsel %vm41_vm7, %v32_v50, %v38_v48  ;;  %v47_v54 = vsel %vm41_vm7, %v38_v48, %v32_v50 }
  0xee   :  { %v81_v1 = vmul.f32 %v715_v25, %v74_v52  ;;  %v82_v3 = vmul.f32 %v718_v49, %v71_v51  ;;  %v54_v55 = vmul.f32 %v740_v35, %v47_v54  ;;  %v55_v56 = vmul.f32 %v743_v36, %v44_v53 }
  0xf0   :  { %364 = vmatpush.msrb.mxu0 %v81_v1  ;;  %384 = vmatpush.msrb.mxu1 %v82_v3 }
  0xf2   :  { %365 = vmatpush.msrb.mxu0 %v54_v55  ;;  %385 = vmatpush.msrb.mxu1 %v55_v56 }
  0xf3   :  { %406 = vmatmul.msk.f32.vlgmr.msrb.gmra.mxu0 %vm252_vm8, %v760_v23  ;;  %407 = vmatmul.msk.f32.vlgmr.msrb.gmra.mxu1 %vm252_vm8, %v760_v23 }
 0x141   :  { %v250_v8 = vpop.permute.xlu0 %249 }
 0x14e   :  { %v273_v57 = vpop.f32.mrf.mxu0  ;;  %v293_v58 = vpop.f32.mrf.mxu1 }
 0x14f   :  { %v274_v25 = vadd.f32 %v273_v57, %v250_v8  ;;  %v294_v59 = vadd.f32 %v293_v58, %v250_v8 }
 0x151   :  { %v298_v49 = vrot.slane %v294_v59, 4 }
 0x153   :  { %v300_v60 = vsel %vm299_vm9, %v274_v25, %v298_v49 }
 0x154   :  { %302 = vst [vmem:[%s833_s4] sm:$0xff] %v300_v60 }
 0x165   :  { %v340_v61 = vpop.f32.mrf.mxu3  ;;  %v320_v62 = vpop.f32.mrf.mxu2 }
 0x166   :  { %v341_v63 = vadd.f32 %v340_v61, %v250_v8  ;;  %v321_v6 = vadd.f32 %v320_v62, %v250_v8 }
 0x168   :  { %v345_v7 = vrot.slane %v341_v63, 4 }
 0x16a   :  { %v346_v0 = vsel %vm299_vm9, %v321_v6, %v345_v7 }
 0x16b   :  { %405 = vst [vmem:[%s833_s4 + $0x8] sm:$0xff] %v346_v0 }
 0x170   :  { %v367_v35 = vpop.f32.mrf.mxu0  ;;  %v387_v36 = vpop.f32.mrf.mxu1 }
 0x171   :  { %v388_v2 = vadd.f32 %v387_v36, %v250_v8  ;;  %v368_v11 = vadd.f32 %v367_v35, %v250_v8 }
 0x173   :  { %v392_v12 = vrot.slane %v388_v2, 4 }
 0x175   :  { %v393_v13 = vsel %vm299_vm9, %v368_v11, %v392_v12 }
 0x176   :  { %408 = vst [vmem:[%s833_s4 + $0x10] sm:$0xff] %v393_v13 }

// kernel: squeeze.15
= control target key start
LH: loop header
LB: loop body
LE: loop exit
PB: predicated region body
PF: predicated region fallthrough
CT: control target
= control target key end

     0   :  { %s170_s0 = inlined_call_operand.vmem [shape: f32[1,1,4,256], index: 0, kind: input, shape index: {}]   ;;  %s171_s1 = inlined_call_operand.hbm [shape: f32[1,4,16,16], index: 1, kind: output, shape index: {}]  }
   0x1   :  { %v90_v0 = vld [vmem:[%s170_s0 + $0x4] sm:$0xf]  ;;  %v9_v1 = vld [vmem:[%s170_s0] sm:$0xf] }
   0x2   :  { %8 = vst [vmem:[#allocation2 + $0x8] sm:$0xf] %v90_v0 }
   0x3   :  { %10 = vst [vmem:[#allocation2] sm:$0xf] %v9_v1 }
   0x4   :  { %2 = vsyncpa [#allocation1], 0  ;;  %s125_s0 = smov 112   ;;  %s126_s10 = smov 80   ;;  %vm12_vm0 = vcmask 130048  }
   0x5   :  { %s127_s11 = smov 48   ;;  %s128_s12 = smov 96  }
   0x6   :  { %s129_s13 = smov 64   ;;  %s130_s14 = smov 32  }
   0x7   :  { %s131_s15 = smov 16   ;;  %s132_s16 = smov [#allocation0]  }
   0x8   :  { %s81_s17 = sshll.u32 %s132_s16, 4  ;;  %s83_s1 = sshll.u32 %s171_s1, 4  ;;  %s82_s17 = int_to_ptr.vmem [resolvable:$true] %s81_s17  ;;  %s84_s1 = int_to_ptr.hbm [resolvable:$true] %s83_s1 }
   0x9   :  { %v16_v6 = vld [vmem:[#allocation2 + $0x8] sm:$0xf]  }
   0xa   :  { %v22_v2 = vld.sshfl [vmem:[#allocation2] sm:$0xff pattern:$0xb3a29180]   ;;  %19 = vst.msk [vmem:[#allocation0 + $0x8] ss:$16 sm:$0x3] %vm12_vm0, %v16_v6  }
   0xb   :  { %23 = vrot.lane.b32.xlu0 %v22_v2, %s125_s0  ;;  %39 = vrot.lane.b32.xlu1 %v22_v2, %s126_s10  ;;  %v11_v5 = vld [vmem:[#allocation2] sm:$0xf]   ;;  %21 = vst.msk [vmem:[#allocation0 + $0x8] ss:$16 sm:$0xc] %vm12_vm0, %v16_v6  }
   0xc   :  { %55 = vrot.lane.b32.xlu2 %v22_v2, %s127_s11  ;;  %13 = vst.msk [vmem:[#allocation0] ss:$16 sm:$0x3] %vm12_vm0, %v11_v5  }
   0xd   :  { %14 = vst.msk [vmem:[#allocation0] ss:$16 sm:$0xc] %vm12_vm0, %v11_v5  }
  0x13   :  { %31 = vrot.lane.b32.xlu0 %v22_v2, %s128_s12  ;;  %47 = vrot.lane.b32.xlu1 %v22_v2, %s129_s13 }
  0x14   :  { %63 = vrot.lane.b32.xlu2 %v22_v2, %s130_s14 }
  0x1b   :  { %71 = vrot.lane.b32.xlu0 %v22_v2, %s131_s15 }
  0x66   :  { %v56_v3 = vpop.permute.xlu2 %55  }
  0x67   :  { %59 = vst.msk [vmem:[#allocation0 + $0x5] ss:$8 sm:$0xf] %vm12_vm0, %v56_v3  }
  0x68   :  { %61 = vst.msk [vmem:[#allocation0 + $0x5] ss:$8 sm:$0xf0] %vm12_vm0, %v56_v3  }
  0x6e   :  { %v64_v4 = vpop.permute.xlu2 %63  }
  0x6f   :  { %67 = vst.msk [vmem:[#allocation0 + $0x6] ss:$8 sm:$0xf] %vm12_vm0, %v64_v4  }
  0x70   :  { %69 = vst.msk [vmem:[#allocation0 + $0x6] ss:$8 sm:$0xf0] %vm12_vm0, %v64_v4  }
  0x7d   :  { %v24_v7 = vpop.permute.xlu0 %23   ;;  %v40_v8 = vpop.permute.xlu1 %39  }
  0x7e   :  { %27 = vst.msk [vmem:[#allocation0 + $0x1] ss:$8 sm:$0xf] %vm12_vm0, %v24_v7  }
  0x7f   :  { %29 = vst.msk [vmem:[#allocation0 + $0x1] ss:$8 sm:$0xf0] %vm12_vm0, %v24_v7  }
  0x80   :  { %43 = vst.msk [vmem:[#allocation0 + $0x3] ss:$8 sm:$0xf] %vm12_vm0, %v40_v8  }
  0x81   :  { %45 = vst.msk [vmem:[#allocation0 + $0x3] ss:$8 sm:$0xf0] %vm12_vm0, %v40_v8  }
  0x85   :  { %v32_v9 = vpop.permute.xlu0 %31   ;;  %v48_v10 = vpop.permute.xlu1 %47  }
  0x86   :  { %35 = vst.msk [vmem:[#allocation0 + $0x2] ss:$8 sm:$0xf] %vm12_vm0, %v32_v9  }
  0x87   :  { %37 = vst.msk [vmem:[#allocation0 + $0x2] ss:$8 sm:$0xf0] %vm12_vm0, %v32_v9  }
  0x88   :  { %51 = vst.msk [vmem:[#allocation0 + $0x4] ss:$8 sm:$0xf] %vm12_vm0, %v48_v10  }
  0x89   :  { %53 = vst.msk [vmem:[#allocation0 + $0x4] ss:$8 sm:$0xf0] %vm12_vm0, %v48_v10  }
  0x8d   :  { %v72_v11 = vpop.permute.xlu0 %71  }
  0x8e   :  { %75 = vst.msk [vmem:[#allocation0 + $0x7] ss:$8 sm:$0xf] %vm12_vm0, %v72_v11  }
  0x8f   :  { %77 = vst.msk [vmem:[#allocation0 + $0x7] ss:$8 sm:$0xf0] %vm12_vm0, %v72_v11  }
  0x90   :  { %86 = dma.vmem_to_hbm [thread:$0]  %s82_s17, 1024, %s84_s1, [#allocation1]  }
  0x91   :  { %123 = dma.done.wait [#allocation1], 1024  }
  0x92   :  { %124 = vsyncadd [#allocation1], 4294966272 }
  0x93   :  { %89 = vsyncpa [#allocation1], 1 }

// kernel: squeeze.10
= control target key start
LH: loop header
LB: loop body
LE: loop exit
PB: predicated region body
PF: predicated region fallthrough
CT: control target
= control target key end

     0   :  { %vm27_vm0 = vcmask 130048   ;;  %s311_s19 = smov 112   ;;  %s312_s28 = smov 96   ;;  %s562_s0 = inlined_call_operand.vmem [shape: f32[1,3,1,4,256], index: 0, kind: input, shape index: {}]   ;;  %s563_s1 = inlined_call_operand.vmem [shape: f32[3,1,4,16,16], index: 1, kind: output, shape index: {}]  }
   0x1   :  { %v251_v0 = vld [vmem:[%s562_s0 + $0x4] sm:$0xf]  ;;  %v24_v1 = vld [vmem:[%s562_s0] sm:$0xf]  ;;  %v247_v2 = vld [vmem:[%s562_s0 + $0x14] sm:$0xf] }
   0x2   :  { %23 = vst [vmem:[#allocation0 + $0x8] sm:$0xf] %v251_v0  ;;  %v248_v3 = vld [vmem:[%s562_s0 + $0x10] sm:$0xf]  ;;  %v249_v4 = vld [vmem:[%s562_s0 + $0xc] sm:$0xf] }
   0x3   :  { %25 = vst [vmem:[#allocation0] sm:$0xf] %v24_v1  ;;  %v250_v5 = vld [vmem:[%s562_s0 + $0x8] sm:$0xf]  ;;  %s313_s14 = smov 80   ;;  %s314_s15 = smov 64  }
   0x4   :  { %7 = vst [vmem:[#allocation0 + $0x28] sm:$0xf] %v247_v2  ;;  %s315_s16 = smov 48   ;;  %s316_s17 = smov 32  }
   0x5   :  { %11 = vst [vmem:[#allocation0 + $0x20] sm:$0xf] %v248_v3  ;;  %s317_s0 = smov 16  }
   0x6   :  { %15 = vst [vmem:[#allocation0 + $0x18] sm:$0xf] %v249_v4 }
   0x7   :  { %19 = vst [vmem:[#allocation0 + $0x10] sm:$0xf] %v250_v5 }
   0x9   :  { %v31_v6 = vld [vmem:[#allocation0 + $0x8] sm:$0xf]  }
   0xa   :  { %v26_v7 = vld [vmem:[#allocation0] sm:$0xf]   ;;  %252 = vst.msk [vmem:[%s563_s1 + $0x8] ss:$16 sm:$0x3] %vm27_vm0, %v31_v6  }
   0xb   :  { %v65_v8 = vld.sshfl [vmem:[#allocation0] sm:$0xff pattern:$0xb3a29180]   ;;  %28 = vst.msk [vmem:[%s563_s1] ss:$16 sm:$0x3] %vm27_vm0, %v26_v7  }
   0xc   :  { %66 = vrot.lane.b32.xlu0 %v65_v8, %s311_s19  ;;  %29 = vst.msk [vmem:[%s563_s1] ss:$16 sm:$0xc] %vm27_vm0, %v26_v7   ;;  %v52_v9 = vld [vmem:[#allocation0 + $0x20] sm:$0xf]  }
   0xd   :  { %v59_v10 = vld [vmem:[#allocation0 + $0x28] sm:$0xf]   ;;  %253 = vst.msk [vmem:[%s563_s1 + $0x8] ss:$16 sm:$0xc] %vm27_vm0, %v31_v6  }
   0xe   :  { %v83_v11 = vld.sshfl [vmem:[#allocation0 + $0x20] sm:$0xff pattern:$0xb3a29180]   ;;  %v74_v12 = vld.sshfl [vmem:[#allocation0 + $0x10] sm:$0xff pattern:$0xb3a29180]  }
   0xf   :  { %84 = vrot.lane.b32.xlu1 %v83_v11, %s311_s19  ;;  %258 = vst.msk [vmem:[%s563_s1 + $0x80] ss:$16 sm:$0x3] %vm27_vm0, %v52_v9   ;;  %101 = vrot.lane.b32.xlu2 %v74_v12, %s312_s28  ;;  %v38_v13 = vld [vmem:[#allocation0 + $0x10] sm:$0xf]  }
  0x10   :  { %259 = vst.msk [vmem:[%s563_s1 + $0x80] ss:$16 sm:$0xc] %vm27_vm0, %v52_v9   ;;  %v45_v14 = vld [vmem:[#allocation0 + $0x18] sm:$0xf]  }
  0x11   :  { %260 = vst.msk [vmem:[%s563_s1 + $0x88] ss:$16 sm:$0x3] %vm27_vm0, %v59_v10  }
  0x12   :  { %261 = vst.msk [vmem:[%s563_s1 + $0x88] ss:$16 sm:$0xc] %vm27_vm0, %v59_v10  }
  0x13   :  { %254 = vst.msk [vmem:[%s563_s1 + $0x40] ss:$16 sm:$0x3] %vm27_vm0, %v38_v13  }
  0x14   :  { %75 = vrot.lane.b32.xlu0 %v74_v12, %s311_s19  ;;  %255 = vst.msk [vmem:[%s563_s1 + $0x40] ss:$16 sm:$0xc] %vm27_vm0, %v38_v13  }
  0x15   :  { %256 = vst.msk [vmem:[%s563_s1 + $0x48] ss:$16 sm:$0x3] %vm27_vm0, %v45_v14  }
  0x16   :  { %257 = vst.msk [vmem:[%s563_s1 + $0x48] ss:$16 sm:$0xc] %vm27_vm0, %v45_v14  }
  0x17   :  { %92 = vrot.lane.b32.xlu1 %v65_v8, %s312_s28  ;;  %110 = vrot.lane.b32.xlu2 %v83_v11, %s312_s28 }
  0x1c   :  { %118 = vrot.lane.b32.xlu0 %v65_v8, %s313_s14 }
  0x1f   :  { %127 = vrot.lane.b32.xlu1 %v74_v12, %s313_s14  ;;  %136 = vrot.lane.b32.xlu2 %v83_v11, %s313_s14 }
  0x24   :  { %144 = vrot.lane.b32.xlu0 %v65_v8, %s314_s15 }
  0x27   :  { %153 = vrot.lane.b32.xlu1 %v74_v12, %s314_s15  ;;  %162 = vrot.lane.b32.xlu2 %v83_v11, %s314_s15 }
  0x2c   :  { %170 = vrot.lane.b32.xlu0 %v65_v8, %s315_s16 }
  0x2f   :  { %179 = vrot.lane.b32.xlu1 %v74_v12, %s315_s16  ;;  %188 = vrot.lane.b32.xlu2 %v83_v11, %s315_s16 }
  0x34   :  { %196 = vrot.lane.b32.xlu0 %v65_v8, %s316_s17 }
  0x37   :  { %205 = vrot.lane.b32.xlu1 %v74_v12, %s316_s17  ;;  %214 = vrot.lane.b32.xlu2 %v83_v11, %s316_s17 }
  0x3c   :  { %222 = vrot.lane.b32.xlu0 %v65_v8, %s317_s0 }
  0x3f   :  { %231 = vrot.lane.b32.xlu1 %v74_v12, %s317_s0  ;;  %240 = vrot.lane.b32.xlu2 %v83_v11, %s317_s0 }
  0x69   :  { %v102_v15 = vpop.permute.xlu2 %101  }
  0x6a   :  { %270 = vst.msk [vmem:[%s563_s1 + $0x42] ss:$8 sm:$0xf] %vm27_vm0, %v102_v15  }
  0x6b   :  { %271 = vst.msk [vmem:[%s563_s1 + $0x42] ss:$8 sm:$0xf0] %vm27_vm0, %v102_v15  }
  0x71   :  { %v111_v16 = vpop.permute.xlu2 %110  }
  0x72   :  { %272 = vst.msk [vmem:[%s563_s1 + $0x82] ss:$8 sm:$0xf] %vm27_vm0, %v111_v16  }
  0x73   :  { %273 = vst.msk [vmem:[%s563_s1 + $0x82] ss:$8 sm:$0xf0] %vm27_vm0, %v111_v16  }
  0x79   :  { %v137_v17 = vpop.permute.xlu2 %136  }
  0x7a   :  { %278 = vst.msk [vmem:[%s563_s1 + $0x83] ss:$8 sm:$0xf] %vm27_vm0, %v137_v17  }
  0x7b   :  { %279 = vst.msk [vmem:[%s563_s1 + $0x83] ss:$8 sm:$0xf0] %vm27_vm0, %v137_v17  }
  0x7e   :  { %v67_v18 = vpop.permute.xlu0 %66  }
  0x7f   :  { %262 = vst.msk [vmem:[%s563_s1 + $0x1] ss:$8 sm:$0xf] %vm27_vm0, %v67_v18  }
  0x80   :  { %263 = vst.msk [vmem:[%s563_s1 + $0x1] ss:$8 sm:$0xf0] %vm27_vm0, %v67_v18  }
  0x81   :  { %v85_v19 = vpop.permute.xlu1 %84   ;;  %v163_v20 = vpop.permute.xlu2 %162  }
  0x82   :  { %266 = vst.msk [vmem:[%s563_s1 + $0x81] ss:$8 sm:$0xf] %vm27_vm0, %v85_v19  }
  0x83   :  { %267 = vst.msk [vmem:[%s563_s1 + $0x81] ss:$8 sm:$0xf0] %vm27_vm0, %v85_v19  }
  0x84   :  { %284 = vst.msk [vmem:[%s563_s1 + $0x84] ss:$8 sm:$0xf] %vm27_vm0, %v163_v20  }
  0x85   :  { %285 = vst.msk [vmem:[%s563_s1 + $0x84] ss:$8 sm:$0xf0] %vm27_vm0, %v163_v20  }
  0x86   :  { %v76_v21 = vpop.permute.xlu0 %75  }
  0x87   :  { %264 = vst.msk [vmem:[%s563_s1 + $0x41] ss:$8 sm:$0xf] %vm27_vm0, %v76_v21  }
  0x88   :  { %265 = vst.msk [vmem:[%s563_s1 + $0x41] ss:$8 sm:$0xf0] %vm27_vm0, %v76_v21  }
  0x89   :  { %v93_v22 = vpop.permute.xlu1 %92   ;;  %v189_v23 = vpop.permute.xlu2 %188  }
  0x8a   :  { %268 = vst.msk [vmem:[%s563_s1 + $0x2] ss:$8 sm:$0xf] %vm27_vm0, %v93_v22  }
  0x8b   :  { %269 = vst.msk [vmem:[%s563_s1 + $0x2] ss:$8 sm:$0xf0] %vm27_vm0, %v93_v22  }
  0x8c   :  { %290 = vst.msk [vmem:[%s563_s1 + $0x85] ss:$8 sm:$0xf] %vm27_vm0, %v189_v23  }
  0x8d   :  { %291 = vst.msk [vmem:[%s563_s1 + $0x85] ss:$8 sm:$0xf0] %vm27_vm0, %v189_v23  }
  0x8e   :  { %v119_v24 = vpop.permute.xlu0 %118  }
  0x8f   :  { %274 = vst.msk [vmem:[%s563_s1 + $0x3] ss:$8 sm:$0xf] %vm27_vm0, %v119_v24  }
  0x90   :  { %275 = vst.msk [vmem:[%s563_s1 + $0x3] ss:$8 sm:$0xf0] %vm27_vm0, %v119_v24  }
  0x91   :  { %v128_v25 = vpop.permute.xlu1 %127   ;;  %v215_v26 = vpop.permute.xlu2 %214  }
  0x92   :  { %276 = vst.msk [vmem:[%s563_s1 + $0x43] ss:$8 sm:$0xf] %vm27_vm0, %v128_v25  }
  0x93   :  { %277 = vst.msk [vmem:[%s563_s1 + $0x43] ss:$8 sm:$0xf0] %vm27_vm0, %v128_v25  }
  0x94   :  { %296 = vst.msk [vmem:[%s563_s1 + $0x86] ss:$8 sm:$0xf] %vm27_vm0, %v215_v26  }
  0x95   :  { %297 = vst.msk [vmem:[%s563_s1 + $0x86] ss:$8 sm:$0xf0] %vm27_vm0, %v215_v26  }
  0x96   :  { %v145_v27 = vpop.permute.xlu0 %144  }
  0x97   :  { %280 = vst.msk [vmem:[%s563_s1 + $0x4] ss:$8 sm:$0xf] %vm27_vm0, %v145_v27  }
  0x98   :  { %281 = vst.msk [vmem:[%s563_s1 + $0x4] ss:$8 sm:$0xf0] %vm27_vm0, %v145_v27  }
  0x99   :  { %v154_v28 = vpop.permute.xlu1 %153   ;;  %v241_v29 = vpop.permute.xlu2 %240  }
  0x9a   :  { %282 = vst.msk [vmem:[%s563_s1 + $0x44] ss:$8 sm:$0xf] %vm27_vm0, %v154_v28  }
  0x9b   :  { %283 = vst.msk [vmem:[%s563_s1 + $0x44] ss:$8 sm:$0xf0] %vm27_vm0, %v154_v28  }
  0x9c   :  { %302 = vst.msk [vmem:[%s563_s1 + $0x87] ss:$8 sm:$0xf] %vm27_vm0, %v241_v29  }
  0x9d   :  { %303 = vst.msk [vmem:[%s563_s1 + $0x87] ss:$8 sm:$0xf0] %vm27_vm0, %v241_v29  }
  0x9e   :  { %v171_v30 = vpop.permute.xlu0 %170  }
  0x9f   :  { %286 = vst.msk [vmem:[%s563_s1 + $0x5] ss:$8 sm:$0xf] %vm27_vm0, %v171_v30  }
  0xa0   :  { %287 = vst.msk [vmem:[%s563_s1 + $0x5] ss:$8 sm:$0xf0] %vm27_vm0, %v171_v30  }
  0xa1   :  { %v180_v31 = vpop.permute.xlu1 %179  }
  0xa2   :  { %288 = vst.msk [vmem:[%s563_s1 + $0x45] ss:$8 sm:$0xf] %vm27_vm0, %v180_v31  }
  0xa3   :  { %289 = vst.msk [vmem:[%s563_s1 + $0x45] ss:$8 sm:$0xf0] %vm27_vm0, %v180_v31  }
  0xa6   :  { %v197_v32 = vpop.permute.xlu0 %196  }
  0xa7   :  { %292 = vst.msk [vmem:[%s563_s1 + $0x6] ss:$8 sm:$0xf] %vm27_vm0, %v197_v32  }
  0xa8   :  { %293 = vst.msk [vmem:[%s563_s1 + $0x6] ss:$8 sm:$0xf0] %vm27_vm0, %v197_v32  }
  0xa9   :  { %v206_v33 = vpop.permute.xlu1 %205  }
  0xaa   :  { %294 = vst.msk [vmem:[%s563_s1 + $0x46] ss:$8 sm:$0xf] %vm27_vm0, %v206_v33  }
  0xab   :  { %295 = vst.msk [vmem:[%s563_s1 + $0x46] ss:$8 sm:$0xf0] %vm27_vm0, %v206_v33  }
  0xae   :  { %v223_v34 = vpop.permute.xlu0 %222  }
  0xaf   :  { %298 = vst.msk [vmem:[%s563_s1 + $0x7] ss:$8 sm:$0xf] %vm27_vm0, %v223_v34  }
  0xb0   :  { %299 = vst.msk [vmem:[%s563_s1 + $0x7] ss:$8 sm:$0xf0] %vm27_vm0, %v223_v34  }
  0xb1   :  { %v232_v35 = vpop.permute.xlu1 %231  }
  0xb2   :  { %300 = vst.msk [vmem:[%s563_s1 + $0x47] ss:$8 sm:$0xf] %vm27_vm0, %v232_v35  }
  0xb3   :  { %301 = vst.msk [vmem:[%s563_s1 + $0x47] ss:$8 sm:$0xf0] %vm27_vm0, %v232_v35  }

// kernel: multi_block_lstm_forward.24
= control target key start
LH: loop header
LB: loop body
LE: loop exit
PB: predicated region body
PF: predicated region fallthrough
CT: control target
= control target key end

     0   :  { %s1051_s15 = smov 0   ;;  %s1053_s16 = smov 0   ;;  %s1220_s0 = inlined_call_operand.vmem [shape: f32[9,256], index: 0, kind: input, shape index: {}]   ;;  %s1221_s1 = inlined_call_operand.vmem [shape: f32[2,3,1,16,256], index: 1, kind: input, shape index: {}]   ;;  %s1222_s2 = inlined_call_operand.vmem [shape: f32[2,16,36], index: 2, kind: input, shape index: {}]   ;;  %s1223_s3 = inlined_call_operand.vmem [shape: f32[2,3,1,4,256], index: 3, kind: output, shape index: {0}]   ;;  %s1224_s4 = inlined_call_operand.vmem [shape: f32[2,1,4,256], index: 4, kind: output, shape index: {1}]  }
   0x1   :  { %s1055_s17 = smov 0   ;;  %s1057_s18 = smov 0  }
   0x2   :  { %s1059_s19 = smov 0  }
   0x3 LB: > { %s24_s20 = sadd.s32 1, %s1007_s17  ;;  %s27_s21 = sadd.s32 1, %s1011_s18  ;;  %s1015_s19 = sphi %s1059_s19, %s15_s19   ;;  %s1011_s18 = sphi %s1057_s18, %s1230_s18   ;;  %s1007_s17 = sphi %s1055_s17, %s1229_s17   ;;  %s1003_s16 = sphi %s1053_s16, %s1228_s16   ;;  %s999_s15 = sphi %s1051_s15, %s1227_s15  }
   0x4   : > { %p25_p0 = scmp.ge.s32.totalorder %s24_s20, 3  ;;  %p866_p1 = scmp.ge.s32.totalorder %s1015_s19, 1 }
   0x5   : > { %p225_p2 = scmp.lt.s32.totalorder %s1015_s19, 7 }
   0x6   : > { %s1232_s20 = smov (%p25_p0, %s24_s20), 0  ;;  %s1234_s21 = smov (!%p25_p0, %s27_s21), %s1011_s18 }
   0x7   : > { %p226_p3 = pnand %p866_p1, %p225_p2  ;;  %p29_p4 = scmp.ge.s32.totalorder %s1234_s21, 2 }
   0x8   : > { %s279_s22 = ssub.s32 (!%p226_p3), 2, %s999_s15  ;;  %s281_s23 = ssub.s32 (!%p226_p3), 1, %s1003_s16 }
   0x9   : > { %s1236_s21 = smov (%p29_p4, %s1234_s21), 0  ;;  %229 = sbr.rel (%p226_p3) target bundleno = 441 (0x1b9), region = 32 }
   0xa   : > { %1225 = sst [smem:[#allocation4_spill]] %s1236_s21  ;;  %s280_s24 = smul.u32 (!%p226_p3), %s1003_s16, %s279_s22 }
   0xb   : > { %p284_p5 = scmp.lt.s32.totalorder (!%p226_p3), %s1003_s16, 1  ;;  %s282_s25 = smul.u32 (!%p226_p3), %s999_s15, %s281_s23 }
   0xc   : > { %p875_p7 = scmp.ne.s32.totalorder (!%p226_p3), %s999_s15, 0 }
   0xd   : > { %s283_s26 = sadd.s32 (!%p226_p3), %s282_s25, %s280_s24 }
   0xe   : > { %s1238_s16 = smov (!%p284_p5, %s1003_s16), 1  ;;  %p286_p6 = scmp.lt.s32.totalorder %s283_s26, 2 }
   0xf   : > { %s900_s27 = smul.u32 12, %s1238_s16  ;;  %s888_s28 = sshll.u32 %s1238_s16, 4 }
  0x10   : > { %s901_s29 = smul.u32 6, %s1238_s16  ;;  %s1240_s26 = smov (!%p286_p6, %s283_s26), 2 }
  0x11   : > { %s1088_s6 = scalar_lea.vmem %s1222_s2, %s888_s28  ;;  %s889_s7 = sshll.u32 %s1238_s16, 3 }
  0x12   : > { %s867_s8 = sshll.u32 %s1240_s26, 2  ;;  %s871_s9 = sshll.u32 %s1240_s26, 1 }
  0x13   : > { %s290_s10 = sadd.s32 %s900_s27, %s867_s8  ;;  %s314_s11 = sadd.s32 %s901_s29, %s871_s9 }
  0x14   : > { %s868_s12 = sshll.u32 %s290_s10, 3  ;;  %s872_s13 = sshll.u32 %s314_s11, 2 }
  0x15   : > { %s1093_s23 = scalar_lea.vmem %s1221_s1, %s868_s12  ;;  %s1098_s21 = scalar_lea.vmem %s1223_s3, %s872_s13 }
  0x16   : > { %s1103_s16 = scalar_lea.vmem %s1224_s4, %s889_s7  ;;  %330 = sbr.rel (%p875_p7) target bundleno = 30 (0x1e), region = 36 }
  0x1b   : > { %v1017_v0 = vmov 0.0  }
  0x1c   : > { %331 = vst [vmem:[#allocation2] sm:$0xff] %v1017_v0 }
  0x1d   : > { %332 = vst [vmem:[#allocation3] sm:$0xff] %v1017_v0 }
  0x1e PF: > { %s1018_s26 = smov 16   ;;  %s1019_s27 = smov 15   ;;  %v350_v27 = vlaneseq  ;;  %v1116_v29 = vld [vmem:[%s1220_s0] sm:$0xff]  ;;  %v1121_v32 = vld [vmem:[%s1220_s0 + $0x8] sm:$0xff]  ;;  %v951_v47 = vld [vmem:[%s1220_s0 + $0x10] ss:$0 sm:$0xff] }
  0x1f   : > { %s1020_s15 = smov 1   ;;  %s1021_s29 = smov 127   ;;  %v451_v33 = vperm.slane %v1116_v29, 7  ;;  %v452_v36 = vperm.slane %v1121_v32, 7  ;;  %v419_v37 = vperm.slane %v1116_v29, 5  ;;  %v371_v39 = vperm.slane %v1116_v29, 1 }
  0x20   : > { %s1022_s5 = smov 113   ;;  %s1023_s7 = smov 112   ;;  %v1110_v28 = vand.u32 127, %v350_v27  ;;  %v403_v40 = vperm.slane %v1116_v29, 3  ;;  %v420_v42 = vperm.slane %v1121_v32, 5  ;;  %v404_v45 = vperm.slane %v1121_v32, 3 }
  0x21   : > { %s1024_s8 = smov 17   ;;  %s1025_s9 = smov 111   ;;  %v952_v48 = vld [vmem:[%s1220_s0 + $0x18] ss:$0 sm:$0xff]  ;;  %v435_v49 = vperm.slane %v1116_v29, 6  ;;  %v436_v50 = vperm.slane %v1121_v32, 6 }
  0x22   : > { %vm448_vm0 = vcmp.lt.s32.totalorder %v1110_v28, 112  ;;  %vm416_vm1 = vcmp.lt.s32.totalorder %v1110_v28, 127  ;;  %vm400_vm2 = vcmp.lt.s32.totalorder %v1110_v28, 1  ;;  %vm432_vm3 = vcmp.lt.s32.totalorder %v1110_v28, 113 }
  0x23   : > { %v339_v1 = vld [vmem:[#allocation2] sm:$0xff]  ;;  %vm464_vm4 = vcmp.lt.s32.totalorder %v1110_v28, 111  ;;  %vm368_vm5 = vcmp.lt.s32.totalorder %v1110_v28, 16  ;;  %vm500_vm6 = vcmask 1043456   ;;  %vm352_vm7 = vcmp.lt.s32.totalorder %v1110_v28, 17 }
  0x24   : > { %341 = vst [vmem:[#allocation1] ss:$2 sm:$0xff] %v339_v1  ;;  %vm384_vm8 = vcmp.lt.s32.totalorder %v1110_v28, 15  ;;  %v337_v28 = vld [vmem:[%s1088_s6] sm:$0xff]  ;;  %vm513_vm9 = vcmask 293888  }
  0x2b   : > { %v342_v2 = vld.sshfl [vmem:[#allocation1] sm:$0xff pattern:$0x75316420]  ;;  %v343_v3 = vld.sshfl [vmem:[#allocation1 + $0x8] sm:$0xff pattern:$0x75316420] }
  0x2c   : > { %359 = vst [vmem:[#allocation1] ss:$2 sm:$0xff] %v339_v1 }
  0x33   : > { %v360_v4 = vld.sshfl [vmem:[#allocation1] sm:$0xff pattern:$0x75316420]  ;;  %v361_v5 = vld.sshfl [vmem:[#allocation1 + $0x8] sm:$0xff pattern:$0x75316420] }
  0x34   : > { %375 = vst [vmem:[#allocation1] ss:$2 sm:$0xff] %v339_v1  ;;  %364 = vrot.lane.b32.xlu1 %v360_v4, %s1018_s26  ;;  %366 = vrot.lane.b32.xlu2 %v361_v5, %s1018_s26 }
  0x3b   : > { %v376_v6 = vld.sshfl [vmem:[#allocation1] sm:$0xff pattern:$0x75316420]  ;;  %v377_v7 = vld.sshfl [vmem:[#allocation1 + $0x8] sm:$0xff pattern:$0x75316420] }
  0x3c   : > { %380 = vrot.lane.b32.xlu0 %v376_v6, %s1019_s27  ;;  %391 = vst [vmem:[#allocation1] ss:$2 sm:$0xff] %v339_v1 }
  0x43   : > { %v393_v8 = vld.sshfl [vmem:[#allocation1 + $0x8] sm:$0xff pattern:$0x75316420]  ;;  %v392_v9 = vld.sshfl [vmem:[#allocation1] sm:$0xff pattern:$0x75316420] }
  0x44   : > { %398 = vrot.lane.b32.xlu0 %v393_v8, %s1020_s15  ;;  %407 = vst [vmem:[#allocation1] ss:$2 sm:$0xff] %v339_v1  ;;  %396 = vrot.lane.b32.xlu2 %v392_v9, %s1020_s15 }
  0x4b   : > { %v408_v10 = vld.sshfl [vmem:[#allocation1] sm:$0xff pattern:$0x75316420]  ;;  %v409_v11 = vld.sshfl [vmem:[#allocation1 + $0x8] sm:$0xff pattern:$0x75316420] }
  0x4c   : > { %423 = vst [vmem:[#allocation1] ss:$2 sm:$0xff] %v339_v1  ;;  %412 = vrot.lane.b32.xlu2 %v408_v10, %s1021_s29 }
  0x53   : > { %v424_v12 = vld.sshfl [vmem:[#allocation1] sm:$0xff pattern:$0x75316420]  ;;  %v425_v13 = vld.sshfl [vmem:[#allocation1 + $0x8] sm:$0xff pattern:$0x75316420] }
  0x54   : > { %428 = vrot.lane.b32.xlu0 %v424_v12, %s1022_s5  ;;  %430 = vrot.lane.b32.xlu1 %v425_v13, %s1022_s5  ;;  %439 = vst [vmem:[#allocation1] ss:$2 sm:$0xff] %v339_v1  ;;  %v355_v12 = vperm.slane %v1116_v29, 0 }
  0x55   : > { %414 = vrot.lane.b32.xlu2 %v409_v11, %s1021_s29 }
  0x5b   : > { %v440_v14 = vld.sshfl [vmem:[#allocation1] sm:$0xff pattern:$0x75316420]  ;;  %v441_v15 = vld.sshfl [vmem:[#allocation1 + $0x8] sm:$0xff pattern:$0x75316420] }
  0x5c   : > { %444 = vrot.lane.b32.xlu0 %v440_v14, %s1023_s7  ;;  %455 = vst [vmem:[#allocation1] ss:$2 sm:$0xff] %v339_v1 }
  0x5d   : > { %346 = vrot.lane.b32.xlu2 %v342_v2, %s1024_s8 }
  0x63   : > { %v456_v16 = vld.sshfl [vmem:[#allocation1] sm:$0xff pattern:$0x75316420]  ;;  %v457_v17 = vld.sshfl [vmem:[#allocation1 + $0x8] sm:$0xff pattern:$0x75316420] }
  0x64   : > { %446 = vrot.lane.b32.xlu0 %v441_v15, %s1023_s7  ;;  %460 = vrot.lane.b32.xlu1 %v456_v16, %s1025_s9  ;;  %483 = vst [vmem:[#allocation1] ss:$2 sm:$0xff] %v339_v1  ;;  %v372_v1 = vperm.slane %v1121_v32, 1  ;;  %v387_v16 = vperm.slane %v1116_v29, 2 }
  0x6b   : > { %v484_v9 = vld.sshfl [vmem:[#allocation1] sm:$0xff pattern:$0x75316420]  ;;  %v485_v14 = vld.sshfl [vmem:[#allocation1 + $0x8] sm:$0xff pattern:$0x75316420] }
  0x6c   : > { %348 = vrot.lane.b32.xlu0 %v343_v3, %s1024_s8  ;;  %462 = vrot.lane.b32.xlu1 %v457_v17, %s1025_s9  ;;  %v388_v17 = vperm.slane %v1121_v32, 2 }
  0x74   : > { %382 = vrot.lane.b32.xlu1 %v377_v7, %s1019_s27 }
  0x8e   : > { %v367_v19 = vpop.permute.xlu2 %366 }
  0x9e   : > { %v397_v22 = vpop.permute.xlu2 %396 }
  0xa6   : > { %v365_v21 = vpop.permute.xlu1 %364  ;;  %v413_v25 = vpop.permute.xlu2 %412 }
  0xa7   : > { %v369_v0 = vsel %vm368_vm5, %v365_v21, %v367_v19  ;;  %v370_v4 = vsel %vm368_vm5, %v367_v19, %v365_v21 }
  0xae   : > { %v1108_v18 = vpop.permute.xlu0 %380 }
  0xaf   : > { %v415_v34 = vpop.permute.xlu2 %414 }
  0xb0   : > { %v417_v41 = vsel %vm416_vm1, %v413_v25, %v415_v34  ;;  %v418_v43 = vsel %vm416_vm1, %v415_v34, %v413_v25 }
  0xb1   : > { %v421_v51 = vmul.f32 %v419_v37, %v417_v41  ;;  %v422_v55 = vmul.f32 %v420_v42, %v418_v43  ;;  %v654_v42 = vld [vmem:[#allocation3] sm:$0xff]  ;;  %v509_v43 = vld [vmem:[%s1093_s23] sm:$0xff] }
  0xb2   : > { %657 = vst [vmem:[#allocation1 + $0x1] ss:$2 sm:$0xff] %v654_v42 }
  0xb3   : > { %v490_v3 = vrot.slane %v421_v51, 4  ;;  %v491_v6 = vrot.slane %v422_v55, 4  ;;  %v511_v51 = vld [vmem:[%s1093_s23 + $0x10] sm:$0xff] }
  0xb5   : > { %v505_v21 = vsel %vm500_vm6, %v484_v9, %v490_v3  ;;  %v506_v25 = vsel %vm500_vm6, %v485_v14, %v491_v6 }
  0xb6   : > { %v399_v20 = vpop.permute.xlu0 %398 }
  0xb7   : > { %v401_v52 = vsel %vm400_vm2, %v397_v22, %v399_v20  ;;  %v402_v53 = vsel %vm400_vm2, %v399_v20, %v397_v22  ;;  %v347_v7 = vpop.permute.xlu2 %346  ;;  %v356_v20 = vperm.slane %v1121_v32, 0  ;;  %v373_v22 = vmul.f32 %v371_v39, %v370_v4 }
  0xb8   : > { %v405_v10 = vmul.f32 %v403_v40, %v402_v53  ;;  %v406_v11 = vmul.f32 %v404_v45, %v401_v52  ;;  %v338_v40 = vld [vmem:[%s1088_s6 + $0x8] sm:$0xff]  ;;  %v512_v52 = vld [vmem:[%s1093_s23 + $0x18] sm:$0xff] }
  0xba   : > { %v479_v27 = vrot.slane %v405_v10, 4 }
  0xc6   : > { %v429_v23 = vpop.permute.xlu0 %428  ;;  %v431_v24 = vpop.permute.xlu1 %430 }
  0xc7   : > { %v433_v54 = vsel %vm432_vm3, %v429_v23, %v431_v24  ;;  %v434_v57 = vsel %vm432_vm3, %v431_v24, %v429_v23 }
  0xc8   : > { %v437_v2 = vmul.f32 %v435_v49, %v433_v54  ;;  %v438_v5 = vmul.f32 %v436_v50, %v434_v57 }
  0xce   : > { %v445_v26 = vpop.permute.xlu0 %444 }
  0xd6   : > { %v447_v30 = vpop.permute.xlu0 %446  ;;  %v461_v31 = vpop.permute.xlu1 %460 }
  0xd7   : > { %v449_v35 = vsel %vm448_vm0, %v445_v26, %v447_v30  ;;  %v450_v38 = vsel %vm448_vm0, %v447_v30, %v445_v26  ;;  %v374_v26 = vmul.f32 %v372_v1, %v369_v0 }
  0xd8   : > { %v453_v44 = vmul.f32 %v451_v33, %v449_v35  ;;  %v454_v46 = vmul.f32 %v452_v36, %v450_v38  ;;  %v473_v36 = vrot.slane %v373_v22, 4 }
  0xd9   : > { %v474_v39 = vrot.slane %v374_v26, 4 }
  0xda   : > { %v496_v58 = vrot.slane %v453_v44, 4  ;;  %v497_v61 = vrot.slane %v454_v46, 4  ;;  %v510_v44 = vld [vmem:[%s1093_s23 + $0x8] sm:$0xff] }
  0xdc   : > { %v507_v13 = vsel %vm500_vm6, %v437_v2, %v496_v58  ;;  %v508_v15 = vsel %vm500_vm6, %v438_v5, %v497_v61 }
  0xde   : > { %v463_v56 = vpop.permute.xlu1 %462  ;;  %v349_v8 = vpop.permute.xlu0 %348 }
  0xdf   : > { %v465_v59 = vsel %vm464_vm4, %v461_v31, %v463_v56  ;;  %v466_v60 = vsel %vm464_vm4, %v463_v56, %v461_v31  ;;  %v354_v19 = vsel %vm352_vm7, %v349_v8, %v347_v7  ;;  %v353_v23 = vsel %vm352_vm7, %v347_v7, %v349_v8 }
  0xe0   : > { %v469_v62 = vmul.f32 %v951_v47, %v465_v59  ;;  %v470_v63 = vmul.f32 %v952_v48, %v466_v60  ;;  %v480_v31 = vrot.slane %v406_v11, 4  ;;  %v357_v32 = vmul.f32 %v355_v12, %v354_v19 }
  0xe1   : > { %v358_v35 = vmul.f32 %v356_v20, %v353_v23 }
  0xe2   : > { %876 = vmatpush.msk.msra.mxu0 %vm500_vm6, %v469_v62  ;;  %890 = vmatpush.msk.msra.mxu2 %vm500_vm6, %v469_v62 }
  0xe3   : > { %879 = vmatpush.msk.msra.mxu1 %vm500_vm6, %v470_v63  ;;  %895 = vmatpush.msk.msra.mxu3 %vm500_vm6, %v470_v63  ;;  %v502_v41 = vsel %vm500_vm6, %v358_v35, %v474_v39  ;;  %v659_v35 = vld.sshfl [vmem:[#allocation1 + $0x8] sm:$0xff pattern:$0x75316420] }
  0xe4   : > { %538 = vmatpush.msra.mxu0 %v507_v13  ;;  %891 = vmatpush.msra.mxu2 %v507_v13 }
  0xe5   : > { %561 = vmatpush.msra.mxu1 %v508_v15  ;;  %896 = vmatpush.msra.mxu3 %v508_v15 }
  0xe6   : > { %v383_v24 = vpop.permute.xlu1 %382  ;;  %539 = vmatpush.msra.mxu0 %v505_v21  ;;  %892 = vmatpush.msra.mxu2 %v505_v21 }
  0xe7   : > { %v385_v29 = vsel %vm384_vm8, %v1108_v18, %v383_v24  ;;  %v386_v30 = vsel %vm384_vm8, %v383_v24, %v1108_v18  ;;  %562 = vmatpush.msra.mxu1 %v506_v25  ;;  %897 = vmatpush.msra.mxu3 %v506_v25  ;;  %v501_v18 = vsel %vm500_vm6, %v357_v32, %v473_v36 }
  0xe8   : > { %v389_v33 = vmul.f32 %v387_v16, %v386_v30  ;;  %v390_v34 = vmul.f32 %v388_v17, %v385_v29  ;;  %v658_v30 = vld.sshfl [vmem:[#allocation1] sm:$0xff pattern:$0x75316420] }
  0xea   : > { %v503_v37 = vsel %vm500_vm6, %v389_v33, %v479_v27  ;;  %v504_v38 = vsel %vm500_vm6, %v390_v34, %v480_v31 }
  0xeb   : > { %540 = vmatpush.msra.mxu0 %v503_v37  ;;  %893 = vmatpush.msra.mxu2 %v503_v37 }
  0xec   : > { %563 = vmatpush.msra.mxu1 %v504_v38  ;;  %898 = vmatpush.msra.mxu3 %v504_v38 }
  0xed   : > { %541 = vmatpush.msra.mxu0 %v501_v18  ;;  %894 = vmatpush.msra.mxu2 %v501_v18 }
  0xee   : > { %564 = vmatpush.msra.mxu1 %v502_v41  ;;  %899 = vmatpush.msra.mxu3 %v502_v41 }
  0xef   : > { %877 = vmatmul.msk.f32.vlgmr.msra.gmra.mxu0 %vm513_vm9, %v337_v28  ;;  %878 = vmatmul.msk.f32.vlgmr.msra.gmra.mxu2 %vm513_vm9, %v338_v40 }
  0xf0   : > { %880 = vmatmul.msk.f32.vlgmr.msra.gmra.mxu1 %vm513_vm9, %v337_v28  ;;  %881 = vmatmul.msk.f32.vlgmr.msra.gmra.mxu3 %vm513_vm9, %v338_v40 }
 0x16c   : > { %v543_v45 = vpop.f32.mrf.mxu0 }
 0x16d   : > { %v572_v46 = vadd.f32 %v543_v45, %v509_v43  ;;  %v566_v47 = vpop.f32.mrf.mxu1 }
 0x16e   : > { %v573_v48 = vadd.f32 %v566_v47, %v510_v44 }
 0x16f   : > { %v882_v49 = vmul.f32 -1.442695, %v572_v46 }
 0x170   : > { %v883_v50 = vmul.f32 -1.442695, %v573_v48 }
 0x171   : > { %953 = vpow2.f32 %v882_v49 }
 0x172   : > { %955 = vpow2.f32 %v883_v50  ;;  %v546_v53 = vpop.f32.mrf.mxu2 }
 0x173   : > { %v574_v54 = vadd.f32 %v546_v53, %v511_v51  ;;  %v569_v55 = vpop.f32.mrf.mxu3 }
 0x174   : > { %v575_v56 = vadd.f32 %v569_v55, %v512_v52 }
 0x175   : > { %v884_v57 = vmul.f32 -1.442695, %v574_v54 }
 0x176   : > { %v885_v58 = vmul.f32 -1.442695, %v575_v56 }
 0x177   : > { %v954_v59 = vpop.eup %953  ;;  %957 = vpow2.f32 %v884_v57 }
 0x178   : > { %v956_v60 = vpop.eup %955  ;;  %v582_v61 = vadd.f32 1.0, %v954_v59  ;;  %959 = vpow2.f32 %v885_v58 }
 0x179   : > { %v583_v62 = vadd.f32 1.0, %v956_v60 }
 0x17a   : > { %961 = vrcp.f32 %v582_v61  ;;  %v595_v9 = vand.u32 2147483648, %v582_v61  ;;  %v593_v11 = vand.u32 2147483647, %v582_v61  ;;  %vm589_vm12 = vweird.f32 %v582_v61 }
 0x17b   : > { %963 = vrcp.f32 %v583_v62  ;;  %v610_v12 = vand.u32 2147483648, %v583_v62  ;;  %v608_v15 = vand.u32 2147483647, %v583_v62  ;;  %vm604_vm13 = vweird.f32 %v583_v62 }
 0x17c   : > { %v596_v20 = vor.u32 1.1754944e-38, %v595_v9  ;;  %vm594_vm15 = vcmp.eq.f32.partialorder %v593_v11, 8.507059e+37 }
 0x17d   : > { %v958_v63 = vpop.eup %957  ;;  %v611_v26 = vor.u32 1.1754944e-38, %v610_v12  ;;  %vm609_vm1 = vcmp.eq.f32.partialorder %v608_v15, 8.507059e+37 }
 0x17e   : > { %v960_v0 = vpop.eup %959  ;;  %v1186_v1 = vadd.f32 1.0, %v958_v63 }
 0x17f   : > { %v1188_v2 = vadd.f32 1.0, %v960_v0 }
 0x180   : > { %v962_v3 = vpop.eup %961  ;;  %965 = vrcp.f32 %v1186_v1  ;;  %vm629_vm2 = vweird.f32 %v1186_v1  ;;  %v635_v43 = vand.u32 2147483648, %v1186_v1  ;;  %v633_v46 = vand.u32 2147483647, %v1186_v1 }
 0x181   : > { %v964_v4 = vpop.eup %963  ;;  %v585_v5 = vmul.f32 %v962_v3, %v582_v61  ;;  %967 = vrcp.f32 %v1188_v2  ;;  %vm590_vm10 = vweird.f32 %v962_v3  ;;  %vm644_vm4 = vweird.f32 %v1188_v2 }
 0x182   : > { %v600_v6 = vmul.f32 %v964_v4, %v583_v62  ;;  %969 = vtanh.f32 %v574_v54  ;;  %vm605_vm11 = vweird.f32 %v964_v4  ;;  %vm591_vm14 = vmor %vm589_vm12, %vm590_vm10  ;;  %v650_v47 = vand.u32 2147483648, %v1188_v2 }
 0x183   : > { %v586_v7 = vsub.f32 1.0, %v585_v5  ;;  %971 = vtanh.f32 %v575_v56  ;;  %vm606_vm0 = vmor %vm604_vm13, %vm605_vm11  ;;  %v648_v48 = vand.u32 2147483647, %v1188_v2  ;;  %v636_v50 = vor.u32 1.1754944e-38, %v635_v43 }
 0x184   : > { %v601_v8 = vsub.f32 1.0, %v600_v6  ;;  %vm634_vm8 = vcmp.eq.f32.partialorder %v633_v46, 8.507059e+37  ;;  %v651_v52 = vor.u32 1.1754944e-38, %v650_v47 }
 0x185   : > { %v587_v10 = vmul.f32 %v962_v3, %v586_v7  ;;  %vm649_vm9 = vcmp.eq.f32.partialorder %v648_v48, 8.507059e+37 }
 0x186   : > { %v966_v13 = vpop.eup %965  ;;  %v602_v14 = vmul.f32 %v964_v4, %v601_v8 }
 0x187   : > { %v968_v16 = vpop.eup %967  ;;  %v588_v17 = vadd.f32 %v962_v3, %v587_v10  ;;  %v625_v19 = vmul.f32 %v966_v13, %v1186_v1  ;;  %vm630_vm3 = vweird.f32 %v966_v13 }
 0x188   : > { %v603_v21 = vadd.f32 %v964_v4, %v602_v14  ;;  %v640_v22 = vmul.f32 %v968_v16, %v1188_v2  ;;  %v970_v23 = vpop.eup %969  ;;  %vm645_vm5 = vweird.f32 %v968_v16  ;;  %vm631_vm6 = vmor %vm629_vm2, %vm630_vm3 }
 0x189   : > { %v592_v24 = vsel %vm591_vm14, %v962_v3, %v588_v17  ;;  %v626_v25 = vsub.f32 1.0, %v625_v19  ;;  %v972_v27 = vpop.eup %971  ;;  %vm646_vm7 = vmor %vm644_vm4, %vm645_vm5 }
 0x18a   : > { %v597_v29 = vsel %vm594_vm15, %v596_v20, %v592_v24  ;;  %v607_v31 = vsel %vm606_vm0, %v964_v4, %v603_v21  ;;  %v641_v32 = vsub.f32 1.0, %v640_v22 }
 0x18b   : > { %v664_v33 = vmul.f32 %v970_v23, %v597_v29  ;;  %v612_v34 = vsel %vm609_vm1, %v611_v26, %v607_v31  ;;  %v627_v36 = vmul.f32 %v966_v13, %v626_v25  ;;  %v662_v38 = vmul.f32 %v658_v30, %v597_v29 }
 0x18c   : > { %v665_v37 = vmul.f32 %v972_v27, %v612_v34  ;;  %v642_v18 = vmul.f32 %v968_v16, %v641_v32  ;;  %v663_v28 = vmul.f32 %v659_v35, %v612_v34 }
 0x18d   : > { %v668_v39 = vrot.slane %v664_v33, 4  ;;  %v628_v42 = vadd.f32 %v966_v13, %v627_v36 }
 0x18e   : > { %v669_v40 = vrot.slane %v665_v37, 4  ;;  %v643_v45 = vadd.f32 %v968_v16, %v642_v18 }
 0x18f   : > { %v672_v41 = vadd.f32 %v668_v39, %v662_v38  ;;  %v632_v49 = vsel %vm631_vm6, %v966_v13, %v628_v42 }
 0x190   : > { %v673_v44 = vadd.f32 %v669_v40, %v663_v28  ;;  %v647_v51 = vsel %vm646_vm7, %v968_v16, %v643_v45  ;;  %v637_v54 = vsel %vm634_vm8, %v636_v50, %v632_v49 }
 0x191   : > { %973 = vtanh.f32 %v672_v41  ;;  %680 = vst.sshfl [vmem:[#allocation1] sm:$0xff pattern:$0x75316420] %v672_v41  ;;  %v652_v57 = vsel %vm649_vm9, %v651_v52, %v647_v51 }
 0x192   : > { %975 = vtanh.f32 %v673_v44  ;;  %681 = vst.sshfl [vmem:[#allocation1 + $0x8] sm:$0xff pattern:$0x75316420] %v673_v44 }
 0x197   : > { %v974_v53 = vpop.eup %973 }
 0x198   : > { %v976_v55 = vpop.eup %975  ;;  %v676_v56 = vmul.f32 %v974_v53, %v637_v54 }
 0x199   : > { %v677_v58 = vmul.f32 %v976_v55, %v652_v57  ;;  %v683_v59 = vld [vmem:[#allocation1 + $0x1] ss:$2 sm:$0xff] }
 0x19a   : > { %685 = vst [vmem:[#allocation3] sm:$0xff] %v683_v59 }
 0x19b   : > { %688 = vst.sshfl [vmem:[#allocation1] sm:$0xff pattern:$0x75316420] %v676_v56 }
 0x19c   : > { %689 = vst.sshfl [vmem:[#allocation1 + $0x8] sm:$0xff pattern:$0x75316420] %v677_v58 }
 0x1a3   : > { %v691_v60 = vld [vmem:[#allocation1 + $0x1] ss:$2 sm:$0xff] }
 0x1a4   : > { %693 = vst [vmem:[#allocation2] sm:$0xff] %v691_v60 }
 0x1a5   : > { %694 = vst.sshfl [vmem:[#allocation1] sm:$0xff pattern:$0x75316420] %v676_v56 }
 0x1a6   : > { %695 = vst.sshfl [vmem:[#allocation1 + $0x8] sm:$0xff pattern:$0x75316420] %v677_v58 }
 0x1ad   : > { %v697_v61 = vld [vmem:[#allocation1 + $0x1] ss:$2 sm:$0xff] }
 0x1ae   : > { %699 = vst [vmem:[%s1098_s21] sm:$0xff] %v697_v61 }
 0x1af   : > { %700 = vst.sshfl [vmem:[#allocation1] sm:$0xff pattern:$0x75316420] %v672_v41 }
 0x1b0   : > { %701 = vst.sshfl [vmem:[#allocation1 + $0x8] sm:$0xff pattern:$0x75316420] %v673_v44 }
 0x1b7   : > { %v703_v62 = vld [vmem:[#allocation1 + $0x1] ss:$2 sm:$0xff] }
 0x1b8   : > { %705 = vst [vmem:[%s1103_s16] sm:$0xff] %v703_v62 }
 0x1b9 PF: > { %s15_s19 = sadd.s32 1, %s1015_s19   ;;  %s1226_s6 = sld [smem:[#allocation4_spill]] }
 0x1ba   : > { %p12_p8 = scmp.ge.s32.totalorder %s15_s19, 8   ;;  %s1227_s15 = smov %s1007_s17 }
 0x1bb   : > { %s1228_s16 = smov %s1011_s18  ;;  %s1229_s17 = smov %s1232_s20 }
 0x1bc   :  { %14 = sbr.rel (!%p12_p8) target bundleno = 3 (0x3), region = 86 }
 0x1bf   : > { %s1230_s18 = smov %s1226_s6 }

// kernel: multi_block_lstm_forward.20
= control target key start
LH: loop header
LB: loop body
LE: loop exit
PB: predicated region body
PF: predicated region fallthrough
CT: control target
= control target key end

     0   :  { %s695_s21 = smov 15   ;;  %s696_s22 = smov 1   ;;  %vm470_vm5 = vcmask 1043456   ;;  %vm502_vm9 = vcmask 293888   ;;  %s1174_s1 = inlined_call_operand.vmem [shape: f32[3,4,256], index: 1, kind: input, shape index: {}]   ;;  %s1175_s0 = inlined_call_operand.vmem [shape: f32[9,256], index: 0, kind: input, shape index: {}]   ;;  %s1176_s2 = inlined_call_operand.vmem [shape: f32[4,36], index: 2, kind: input, shape index: {}]   ;;  %s1177_s3 = inlined_call_operand.vmem [shape: f32[4,1], index: 3, kind: input, shape index: {}]   ;;  %s1178_s4 = inlined_call_operand.vmem [shape: f32[3,4,256], index: 4, kind: output, shape index: {}]  }
   0x1   :  { %v731_v0 = vld [vmem:[%s1174_s1] sm:$0xff]  ;;  %v736_v1 = vld [vmem:[%s1174_s1 + $0x10] sm:$0xff]  ;;  %v741_v2 = vld [vmem:[%s1174_s1 + $0x8] sm:$0xff]  ;;  %s694_s1 = smov 16   ;;  %s697_s23 = smov 127  }
   0x2   :  { %27 = vst [vmem:[#allocation1] ss:$2 sm:$0xff] %v731_v0  ;;  %s698_s24 = smov 113   ;;  %s699_s25 = smov 112  }
   0x3   :  { %35 = vst [vmem:[#allocation1 + $0x20] ss:$2 sm:$0xff] %v736_v1  ;;  %s700_s26 = smov 17   ;;  %s701_s27 = smov 111  }
   0x4   :  { %31 = vst [vmem:[#allocation1 + $0x10] ss:$2 sm:$0xff] %v741_v2 }
   0x9   :  { %v746_v3 = vld.sshfl [vmem:[#allocation1] sm:$0xff pattern:$0x75316420]  ;;  %v748_v4 = vld.sshfl [vmem:[#allocation1 + $0x8] sm:$0xff pattern:$0x75316420] }
   0xa   :  { %73 = vst [vmem:[#allocation1] ss:$2 sm:$0xff] %v731_v0  ;;  %v764_v11 = vld.sshfl [vmem:[#allocation1 + $0x20] sm:$0xff pattern:$0x75316420] }
   0xb   :  { %v751_v5 = vld.sshfl [vmem:[#allocation1 + $0x10] sm:$0xff pattern:$0x75316420]  ;;  %v753_v6 = vld.sshfl [vmem:[#allocation1 + $0x18] sm:$0xff pattern:$0x75316420] }
   0xc   :  { %77 = vst [vmem:[#allocation1 + $0x10] ss:$2 sm:$0xff] %v741_v2  ;;  %v766_v12 = vld.sshfl [vmem:[#allocation1 + $0x28] sm:$0xff pattern:$0x75316420] }
   0xd   :  { %81 = vst [vmem:[#allocation1 + $0x20] ss:$2 sm:$0xff] %v736_v1 }
  0x11   :  { %v74_v7 = vld.sshfl [vmem:[#allocation1] sm:$0xff pattern:$0x75316420]  ;;  %v75_v8 = vld.sshfl [vmem:[#allocation1 + $0x8] sm:$0xff pattern:$0x75316420] }
  0x12   :  { %90 = vrot.lane.b32.xlu0 %v74_v7, %s694_s1  ;;  %96 = vrot.lane.b32.xlu1 %v75_v8, %s694_s1  ;;  %117 = vst [vmem:[#allocation1] ss:$2 sm:$0xff] %v731_v0 }
  0x13   :  { %v759_v9 = vld.sshfl [vmem:[#allocation1 + $0x10] sm:$0xff pattern:$0x75316420]  ;;  %v761_v10 = vld.sshfl [vmem:[#allocation1 + $0x18] sm:$0xff pattern:$0x75316420] }
  0x14   :  { %121 = vst [vmem:[#allocation1 + $0x10] ss:$2 sm:$0xff] %v741_v2  ;;  %v777_v17 = vld.sshfl [vmem:[#allocation1 + $0x20] sm:$0xff pattern:$0x75316420] }
  0x15   :  { %v779_v18 = vld.sshfl [vmem:[#allocation1 + $0x28] sm:$0xff pattern:$0x75316420] }
  0x16   :  { %125 = vst [vmem:[#allocation1 + $0x20] ss:$2 sm:$0xff] %v736_v1 }
  0x19   :  { %v119_v13 = vld.sshfl [vmem:[#allocation1 + $0x8] sm:$0xff pattern:$0x75316420]  ;;  %v118_v14 = vld.sshfl [vmem:[#allocation1] sm:$0xff pattern:$0x75316420] }
  0x1a   :  { %140 = vrot.lane.b32.xlu0 %v119_v13, %s695_s21  ;;  %161 = vst [vmem:[#allocation1] ss:$2 sm:$0xff] %v731_v0  ;;  %134 = vrot.lane.b32.xlu2 %v118_v14, %s695_s21 }
  0x1b   :  { %v772_v15 = vld.sshfl [vmem:[#allocation1 + $0x10] sm:$0xff pattern:$0x75316420]  ;;  %v774_v16 = vld.sshfl [vmem:[#allocation1 + $0x18] sm:$0xff pattern:$0x75316420] }
  0x1c   :  { %165 = vst [vmem:[#allocation1 + $0x10] ss:$2 sm:$0xff] %v741_v2 }
  0x1d   :  { %v787_v23 = vld.sshfl [vmem:[#allocation1 + $0x20] sm:$0xff pattern:$0x75316420]  ;;  %v789_v24 = vld.sshfl [vmem:[#allocation1 + $0x28] sm:$0xff pattern:$0x75316420] }
  0x1e   :  { %169 = vst [vmem:[#allocation1 + $0x20] ss:$2 sm:$0xff] %v736_v1 }
  0x21   :  { %v163_v19 = vld.sshfl [vmem:[#allocation1 + $0x8] sm:$0xff pattern:$0x75316420]  ;;  %v162_v20 = vld.sshfl [vmem:[#allocation1] sm:$0xff pattern:$0x75316420] }
  0x22   :  { %184 = vrot.lane.b32.xlu1 %v163_v19, %s696_s22  ;;  %178 = vrot.lane.b32.xlu0 %v162_v20, %s696_s22  ;;  %205 = vst [vmem:[#allocation1] ss:$2 sm:$0xff] %v731_v0 }
  0x23   :  { %v166_v21 = vld.sshfl [vmem:[#allocation1 + $0x10] sm:$0xff pattern:$0x75316420]  ;;  %v167_v22 = vld.sshfl [vmem:[#allocation1 + $0x18] sm:$0xff pattern:$0x75316420] }
  0x24   :  { %209 = vst [vmem:[#allocation1 + $0x10] ss:$2 sm:$0xff] %v741_v2  ;;  %186 = vrot.lane.b32.xlu2 %v167_v22, %s696_s22 }
  0x25   :  { %v797_v29 = vld.sshfl [vmem:[#allocation1 + $0x20] sm:$0xff pattern:$0x75316420]  ;;  %v799_v30 = vld.sshfl [vmem:[#allocation1 + $0x28] sm:$0xff pattern:$0x75316420] }
  0x26   :  { %213 = vst [vmem:[#allocation1 + $0x20] ss:$2 sm:$0xff] %v736_v1 }
  0x29   :  { %v206_v25 = vld.sshfl [vmem:[#allocation1] sm:$0xff pattern:$0x75316420]  ;;  %v207_v26 = vld.sshfl [vmem:[#allocation1 + $0x8] sm:$0xff pattern:$0x75316420] }
  0x2a   :  { %249 = vst [vmem:[#allocation1] ss:$2 sm:$0xff] %v731_v0  ;;  %180 = vrot.lane.b32.xlu1 %v166_v21, %s696_s22 }
  0x2b   :  { %v210_v27 = vld.sshfl [vmem:[#allocation1 + $0x10] sm:$0xff pattern:$0x75316420]  ;;  %v211_v28 = vld.sshfl [vmem:[#allocation1 + $0x18] sm:$0xff pattern:$0x75316420] }
  0x2c   :  { %230 = vrot.lane.b32.xlu0 %v211_v28, %s697_s23  ;;  %253 = vst [vmem:[#allocation1 + $0x10] ss:$2 sm:$0xff] %v741_v2  ;;  %222 = vrot.lane.b32.xlu2 %v206_v25, %s697_s23 }
  0x2d   :  { %v214_v35 = vld.sshfl [vmem:[#allocation1 + $0x20] sm:$0xff pattern:$0x75316420]  ;;  %v215_v36 = vld.sshfl [vmem:[#allocation1 + $0x28] sm:$0xff pattern:$0x75316420] }
  0x2e   :  { %257 = vst [vmem:[#allocation1 + $0x20] ss:$2 sm:$0xff] %v736_v1 }
  0x31   :  { %v251_v31 = vld.sshfl [vmem:[#allocation1 + $0x8] sm:$0xff pattern:$0x75316420]  ;;  %v250_v32 = vld.sshfl [vmem:[#allocation1] sm:$0xff pattern:$0x75316420] }
  0x32   :  { %272 = vrot.lane.b32.xlu1 %v251_v31, %s698_s24  ;;  %293 = vst [vmem:[#allocation1] ss:$2 sm:$0xff] %v731_v0 }
  0x33   :  { %v254_v33 = vld.sshfl [vmem:[#allocation1 + $0x10] sm:$0xff pattern:$0x75316420]  ;;  %v255_v34 = vld.sshfl [vmem:[#allocation1 + $0x18] sm:$0xff pattern:$0x75316420] }
  0x34   :  { %266 = vrot.lane.b32.xlu0 %v250_v32, %s698_s24  ;;  %297 = vst [vmem:[#allocation1 + $0x10] ss:$2 sm:$0xff] %v741_v2  ;;  %228 = vrot.lane.b32.xlu2 %v207_v26, %s697_s23 }
  0x35   :  { %v258_v41 = vld.sshfl [vmem:[#allocation1 + $0x20] sm:$0xff pattern:$0x75316420]  ;;  %v259_v42 = vld.sshfl [vmem:[#allocation1 + $0x28] sm:$0xff pattern:$0x75316420] }
  0x36   :  { %301 = vst [vmem:[#allocation1 + $0x20] ss:$2 sm:$0xff] %v736_v1 }
  0x39   :  { %v294_v37 = vld.sshfl [vmem:[#allocation1] sm:$0xff pattern:$0x75316420]  ;;  %v295_v38 = vld.sshfl [vmem:[#allocation1 + $0x8] sm:$0xff pattern:$0x75316420] }
  0x3a   :  { %268 = vrot.lane.b32.xlu1 %v254_v33, %s698_s24  ;;  %337 = vst [vmem:[#allocation1] ss:$2 sm:$0xff] %v731_v0 }
  0x3b   :  { %v298_v39 = vld.sshfl [vmem:[#allocation1 + $0x10] sm:$0xff pattern:$0x75316420]  ;;  %v299_v40 = vld.sshfl [vmem:[#allocation1 + $0x18] sm:$0xff pattern:$0x75316420] }
  0x3c   :  { %310 = vrot.lane.b32.xlu0 %v294_v37, %s699_s25  ;;  %224 = vrot.lane.b32.xlu2 %v210_v27, %s697_s23  ;;  %341 = vst [vmem:[#allocation1 + $0x10] ss:$2 sm:$0xff] %v741_v2 }
  0x3d   :  { %v302_v45 = vld.sshfl [vmem:[#allocation1 + $0x20] sm:$0xff pattern:$0x75316420]  ;;  %v303_v46 = vld.sshfl [vmem:[#allocation1 + $0x28] sm:$0xff pattern:$0x75316420] }
  0x3e   :  { %345 = vst [vmem:[#allocation1 + $0x20] ss:$2 sm:$0xff] %v736_v1 }
  0x41   :  { %v338_v43 = vld.sshfl [vmem:[#allocation1] sm:$0xff pattern:$0x75316420]  ;;  %v339_v44 = vld.sshfl [vmem:[#allocation1 + $0x8] sm:$0xff pattern:$0x75316420] }
  0x42   :  { %50 = vrot.lane.b32.xlu1 %v748_v4, %s700_s26  ;;  %417 = vst [vmem:[#allocation1] ss:$2 sm:$0xff] %v731_v0 }
  0x43   :  { %v342_v47 = vld.sshfl [vmem:[#allocation1 + $0x10] sm:$0xff pattern:$0x75316420]  ;;  %v343_v48 = vld.sshfl [vmem:[#allocation1 + $0x18] sm:$0xff pattern:$0x75316420] }
  0x44   :  { %316 = vrot.lane.b32.xlu0 %v295_v38, %s699_s25  ;;  %274 = vrot.lane.b32.xlu2 %v255_v34, %s698_s24  ;;  %421 = vst [vmem:[#allocation1 + $0x10] ss:$2 sm:$0xff] %v741_v2 }
  0x45   :  { %v347_v49 = vld.sshfl [vmem:[#allocation1 + $0x28] sm:$0xff pattern:$0x75316420]  ;;  %v346_v50 = vld.sshfl [vmem:[#allocation1 + $0x20] sm:$0xff pattern:$0x75316420] }
  0x46   :  { %425 = vst [vmem:[#allocation1 + $0x20] ss:$2 sm:$0xff] %v736_v1 }
  0x4a   :  { %354 = vrot.lane.b32.xlu1 %v338_v43, %s701_s27 }
  0x4c   :  { %318 = vrot.lane.b32.xlu0 %v299_v40, %s699_s25  ;;  %312 = vrot.lane.b32.xlu2 %v298_v39, %s699_s25 }
  0x52   :  { %360 = vrot.lane.b32.xlu1 %v339_v44, %s701_s27  ;;  %v957_v44 = vld [vmem:[%s1175_s0 + $0x10] ss:$0 sm:$0xff] }
  0x54   :  { %44 = vrot.lane.b32.xlu0 %v746_v3, %s700_s26  ;;  %92 = vrot.lane.b32.xlu2 %v759_v9, %s694_s1 }
  0x5a   :  { %356 = vrot.lane.b32.xlu1 %v342_v47, %s701_s27 }
  0x5c   :  { %98 = vrot.lane.b32.xlu0 %v761_v10, %s694_s1  ;;  %362 = vrot.lane.b32.xlu2 %v343_v48, %s701_s27  ;;  %v20_v10 = vld [vmem:[%s1175_s0] sm:$0xff] }
  0x5d   :  { %v896_v14 = vperm.slane %v20_v10, 5  ;;  %v941_v38 = vperm.slane %v20_v10, 6 }
  0x62   :  { %136 = vrot.lane.b32.xlu1 %v772_v15, %s695_s21 }
  0x64   :  { %314 = vrot.lane.b32.xlu0 %v302_v45, %s699_s25  ;;  %142 = vrot.lane.b32.xlu2 %v774_v16, %s695_s21  ;;  %v901_v16 = vperm.slane %v20_v10, 2  ;;  %v962_v45 = vld [vmem:[%s1175_s0 + $0x18] ss:$0 sm:$0xff] }
  0x6a   :  { %320 = vrot.lane.b32.xlu1 %v303_v46, %s699_s25 }
  0x6c   :  { %364 = vrot.lane.b32.xlu0 %v347_v49, %s701_s27  ;;  %358 = vrot.lane.b32.xlu2 %v346_v50, %s701_s27 }
  0x72   :  { %46 = vrot.lane.b32.xlu1 %v751_v5, %s700_s26  ;;  %v56_v5 = vlaneseq }
  0x74   :  { %226 = vrot.lane.b32.xlu0 %v214_v35, %s697_s23  ;;  %v839_v51 = vpop.permute.xlu2 %134  ;;  %52 = vrot.lane.b32.xlu2 %v753_v6, %s700_s26  ;;  %v880_v8 = vand.u32 127, %v56_v5 }
  0x76   :  { %vm234_vm0 = vcmp.lt.s32.totalorder %v880_v8, 127  ;;  %vm102_vm1 = vcmp.lt.s32.totalorder %v880_v8, 16  ;;  %vm190_vm2 = vcmp.lt.s32.totalorder %v880_v8, 1  ;;  %vm146_vm3 = vcmp.lt.s32.totalorder %v880_v8, 15 }
  0x77   :  { %vm322_vm4 = vcmp.lt.s32.totalorder %v880_v8, 112  ;;  %vm278_vm6 = vcmp.lt.s32.totalorder %v880_v8, 113  ;;  %vm366_vm7 = vcmp.lt.s32.totalorder %v880_v8, 111  ;;  %vm58_vm8 = vcmp.lt.s32.totalorder %v880_v8, 17 }
  0x7a   :  { %232 = vrot.lane.b32.xlu1 %v215_v36, %s697_s23 }
  0x7c   :  { %276 = vrot.lane.b32.xlu0 %v259_v42, %s698_s24  ;;  %270 = vrot.lane.b32.xlu2 %v258_v41, %s698_s24 }
  0x7e   :  { %v846_v52 = vpop.permute.xlu2 %186 }
  0x82   :  { %182 = vrot.lane.b32.xlu1 %v797_v29, %s696_s22 }
  0x84   :  { %94 = vrot.lane.b32.xlu0 %v777_v17, %s694_s1  ;;  %v91_v53 = vpop.permute.xlu0 %90  ;;  %188 = vrot.lane.b32.xlu2 %v799_v30, %s696_s22  ;;  %v97_v55 = vpop.permute.xlu1 %96  ;;  %v903_v17 = vperm.slane %v20_v10, 3 }
  0x85   :  { %v106_v26 = vsel %vm102_vm1, %v97_v55, %v91_v53  ;;  %v103_v31 = vsel %vm102_vm1, %v91_v53, %v97_v55 }
  0x86   :  { %v223_v54 = vpop.permute.xlu2 %222 }
  0x8a   :  { %100 = vrot.lane.b32.xlu1 %v779_v18, %s694_s1 }
  0x8c   :  { %144 = vrot.lane.b32.xlu0 %v789_v24, %s695_s21  ;;  %v141_v56 = vpop.permute.xlu0 %140  ;;  %138 = vrot.lane.b32.xlu2 %v787_v23, %s695_s21  ;;  %v915_v24 = vperm.slane %v20_v10, 7 }
  0x8d   :  { %v150_v34 = vsel %vm146_vm3, %v141_v56, %v839_v51  ;;  %v147_v42 = vsel %vm146_vm3, %v839_v51, %v141_v56 }
  0x8e   :  { %v229_v57 = vpop.permute.xlu2 %228  ;;  %v155_v46 = vmul.f32 %v901_v16, %v150_v34 }
  0x8f   :  { %v235_v18 = vsel %vm234_vm0, %v223_v54, %v229_v57  ;;  %v238_v19 = vsel %vm234_vm0, %v229_v57, %v223_v54 }
  0x90   :  { %v243_v32 = vmul.f32 %v896_v14, %v235_v18 }
  0x92   :  { %48 = vrot.lane.b32.xlu1 %v764_v11, %s700_s26  ;;  %v21_v11 = vld [vmem:[%s1175_s0 + $0x8] sm:$0xff]  ;;  %v440_v48 = vrot.slane %v243_v32, 4 }
  0x93   :  { %v892_v13 = vperm.slane %v21_v11, 1  ;;  %v898_v15 = vperm.slane %v21_v11, 5  ;;  %v911_v22 = vperm.slane %v21_v11, 2  ;;  %v917_v25 = vperm.slane %v21_v11, 7 }
  0x94   :  { %v185_v58 = vpop.permute.xlu1 %184  ;;  %v179_v59 = vpop.permute.xlu0 %178  ;;  %54 = vrot.lane.b32.xlu2 %v766_v12, %s700_s26  ;;  %v890_v12 = vperm.slane %v20_v10, 1  ;;  %v921_v27 = vperm.slane %v21_v11, 3  ;;  %v951_v43 = vperm.slane %v21_v11, 6  ;;  %v977_v5 = vperm.slane %v21_v11, 0 }
  0x95   :  { %v194_v23 = vsel %vm190_vm2, %v185_v58, %v179_v59  ;;  %v244_v33 = vmul.f32 %v898_v15, %v238_v19  ;;  %v191_v35 = vsel %vm190_vm2, %v179_v59, %v185_v58  ;;  %v946_v41 = vmul.f32 %v892_v13, %v103_v31  ;;  %v418_v11 = vld.sshfl [vmem:[#allocation1] sm:$0xff pattern:$0x75316420]  ;;  %v419_v31 = vld.sshfl [vmem:[#allocation1 + $0x8] sm:$0xff pattern:$0x75316420] }
  0x96   :  { %v864_v60 = vpop.permute.xlu2 %224  ;;  %v199_v36 = vmul.f32 %v903_v17, %v194_v23  ;;  %v939_v37 = vmul.f32 %v890_v12, %v106_v26  ;;  %v200_v47 = vmul.f32 %v921_v27, %v191_v35 }
  0x97   :  { %v441_v49 = vrot.slane %v244_v33, 4 }
  0x98   :  { %v405_v50 = vrot.slane %v199_v36, 4  ;;  %v406_v26 = vrot.slane %v200_v47, 4  ;;  %v483_v36 = vsel %vm470_vm5, %v418_v11, %v440_v48 }
  0x9c   :  { %v866_v61 = vpop.permute.xlu1 %180 }
  0x9e   :  { %v868_v62 = vpop.permute.xlu0 %230  ;;  %v870_v63 = vpop.permute.xlu2 %274 }
  0xa4   :  { %v273_v0 = vpop.permute.xlu1 %272 }
  0xa6   :  { %v267_v1 = vpop.permute.xlu0 %266  ;;  %v872_v2 = vpop.permute.xlu2 %312 }
  0xa7   :  { %v279_v51 = vsel %vm278_vm6, %v267_v1, %v273_v0  ;;  %v282_v53 = vsel %vm278_vm6, %v273_v0, %v267_v1 }
  0xa8   :  { %v287_v18 = vmul.f32 %v941_v38, %v279_v51  ;;  %v288_v19 = vmul.f32 %v951_v43, %v282_v53 }
  0xac   :  { %v874_v3 = vpop.permute.xlu1 %268 }
  0xad   :  { %v280_v48 = vsel %vm278_vm6, %v874_v3, %v870_v63 }
  0xae   :  { %v311_v4 = vpop.permute.xlu0 %310  ;;  %v876_v6 = vpop.permute.xlu2 %92 }
  0xb4   :  { %v878_v7 = vpop.permute.xlu1 %50 }
  0xb6   :  { %v317_v9 = vpop.permute.xlu0 %316  ;;  %v909_v21 = vpop.permute.xlu2 %362 }
  0xb7   :  { %v323_v28 = vsel %vm322_vm4, %v311_v4, %v317_v9  ;;  %v326_v29 = vsel %vm322_vm4, %v317_v9, %v311_v4  ;;  %v975_v4 = vperm.slane %v20_v10, 0 }
  0xb8   :  { %v331_v39 = vmul.f32 %v915_v24, %v323_v28  ;;  %v332_v40 = vmul.f32 %v917_v25, %v326_v29 }
  0xba   :  { %v458_v55 = vrot.slane %v331_v39, 4  ;;  %v459_v56 = vrot.slane %v332_v40, 4 }
  0xbc   :  { %v355_v20 = vpop.permute.xlu1 %354  ;;  %v489_v32 = vsel %vm470_vm5, %v287_v18, %v458_v55  ;;  %v490_v33 = vsel %vm470_vm5, %v288_v19, %v459_v56 }
  0xbe   :  { %v319_v30 = vpop.permute.xlu0 %318  ;;  %v981_v1 = vpop.permute.xlu2 %142 }
  0xbf   :  { %v324_v23 = vsel %vm322_vm4, %v872_v2, %v319_v30  ;;  %v327_v10 = vsel %vm322_vm4, %v319_v30, %v872_v2  ;;  %v236_v2 = vsel %vm234_vm0, %v864_v60, %v868_v62  ;;  %v239_v30 = vsel %vm234_vm0, %v868_v62, %v864_v60 }
  0xc0   :  { %v333_v34 = vmul.f32 %v915_v24, %v324_v23  ;;  %v334_v35 = vmul.f32 %v917_v25, %v327_v10  ;;  %v484_v60 = vsel %vm470_vm5, %v419_v31, %v441_v49  ;;  %v477_v62 = vsel %vm470_vm5, %v155_v46, %v405_v50  ;;  %v422_v23 = vld.sshfl [vmem:[#allocation1 + $0x10] sm:$0xff pattern:$0x75316420]  ;;  %v423_v10 = vld.sshfl [vmem:[#allocation1 + $0x18] sm:$0xff pattern:$0x75316420] }
  0xc1   :  { %v246_v47 = vmul.f32 %v898_v15, %v239_v30  ;;  %v283_v46 = vsel %vm278_vm6, %v870_v63, %v874_v3  ;;  %v192_v63 = vsel %vm190_vm2, %v866_v61, %v846_v52  ;;  %v195_v3 = vsel %vm190_vm2, %v846_v52, %v866_v61 }
  0xc2   :  { %v460_v50 = vrot.slane %v333_v34, 4  ;;  %v290_v18 = vmul.f32 %v951_v43, %v283_v46  ;;  %v201_v52 = vmul.f32 %v903_v17, %v195_v3  ;;  %v202_v61 = vmul.f32 %v921_v27, %v192_v63 }
  0xc4   :  { %v361_v54 = vpop.permute.xlu1 %360  ;;  %v407_v30 = vrot.slane %v201_v52, 4 }
  0xc5   :  { %v367_v57 = vsel %vm366_vm7, %v355_v20, %v361_v54  ;;  %v370_v58 = vsel %vm366_vm7, %v361_v54, %v355_v20  ;;  %v156_v20 = vmul.f32 %v911_v22, %v147_v42  ;;  %v388_v42 = vrot.slane %v946_v41, 4 }
  0xc6   :  { %v45_v59 = vpop.permute.xlu0 %44  ;;  %v375_v9 = vmul.f32 %v957_v44, %v367_v57  ;;  %v376_v0 = vmul.f32 %v962_v45, %v370_v58  ;;  %v461_v54 = vrot.slane %v334_v35, 4  ;;  %v359_v19 = vpop.permute.xlu2 %358 }
  0xc7   :  { %v59_v28 = vsel %vm58_vm8, %v45_v59, %v878_v7  ;;  %v62_v29 = vsel %vm58_vm8, %v878_v7, %v45_v59  ;;  %v387_v7 = vrot.slane %v939_v37, 4  ;;  %v245_v37 = vmul.f32 %v896_v14, %v236_v2 }
  0xc8   :  { %668 = vmatpush.msk.msra.mxu0 %vm470_vm5, %v375_v9  ;;  %670 = vmatpush.msk.msra.mxu1 %vm470_vm5, %v376_v0  ;;  %v67_v39 = vmul.f32 %v975_v4, %v62_v29  ;;  %v68_v40 = vmul.f32 %v977_v5, %v59_v28  ;;  %v478_v53 = vsel %vm470_vm5, %v156_v20, %v406_v26  ;;  %v443_v9 = vrot.slane %v246_v47, 4 }
  0xc9   :  { %v442_v59 = vrot.slane %v245_v37, 4  ;;  %v289_v0 = vmul.f32 %v941_v38, %v280_v48  ;;  %v492_v20 = vsel %vm470_vm5, %v290_v18, %v461_v54 }
  0xca   :  { %524 = vmatpush.msra.mxu0 %v489_v32  ;;  %544 = vmatpush.msra.mxu1 %v490_v33  ;;  %v472_v58 = vsel %vm470_vm5, %v68_v40, %v388_v42  ;;  %v486_v29 = vsel %vm470_vm5, %v423_v10, %v443_v9  ;;  %v408_v32 = vrot.slane %v202_v61, 4 }
  0xcb   :  { %v491_v11 = vsel %vm470_vm5, %v289_v0, %v460_v50  ;;  %v485_v28 = vsel %vm470_vm5, %v422_v23, %v442_v59  ;;  %v702_v0 = vmov 0  }
  0xcc   :  { %v357_v51 = vpop.permute.xlu1 %356  ;;  %525 = vmatpush.msra.mxu0 %v483_v36  ;;  %545 = vmatpush.msra.mxu1 %v484_v60 }
  0xcd   :  { %v368_v41 = vsel %vm366_vm7, %v357_v51, %v909_v21  ;;  %v371_v49 = vsel %vm366_vm7, %v909_v21, %v357_v51  ;;  %v471_v21 = vsel %vm470_vm5, %v67_v39, %v387_v7  ;;  %691 = vset.pattern.permute.xlu0 %v702_v0 }
  0xce   :  { %v99_v55 = vpop.permute.xlu0 %98  ;;  %526 = vmatpush.msra.mxu0 %v477_v62  ;;  %546 = vmatpush.msra.mxu1 %v478_v53  ;;  %v377_v56 = vmul.f32 %v957_v44, %v368_v41  ;;  %v378_v57 = vmul.f32 %v962_v45, %v371_v49  ;;  %v53_v39 = vpop.permute.xlu2 %52 }
  0xcf   :  { %v107_v62 = vsel %vm102_vm1, %v99_v55, %v876_v6 }
  0xd0   :  { %527 = vmatpush.msra.mxu0 %v471_v21  ;;  %547 = vmatpush.msra.mxu1 %v472_v58  ;;  %v113_v53 = vmul.f32 %v890_v12, %v107_v62  ;;  %v496_v58 = vld [vmem:[%s1177_s3] sm:$0xf] }
  0xd1   :  { %672 = vmatpush.msk.msra.mxu2 %vm470_vm5, %v377_v56  ;;  %674 = vmatpush.msk.msra.mxu3 %vm470_vm5, %v378_v57 }
  0xd2   :  { %v389_v49 = vrot.slane %v113_v53, 4  ;;  %499 = vperm.xlu0 %691, %v496_v58  }
  0xd3   :  { %576 = vmatpush.msra.mxu2 %v491_v11  ;;  %596 = vmatpush.msra.mxu3 %v492_v20  ;;  %v426_v11 = vld.sshfl [vmem:[#allocation1 + $0x20] sm:$0xff pattern:$0x75316420] }
  0xd4   :  { %v137_v26 = vpop.permute.xlu1 %136 }
  0xd5   :  { %v148_v31 = vsel %vm146_vm3, %v137_v26, %v981_v1  ;;  %v151_v2 = vsel %vm146_vm3, %v981_v1, %v137_v26  ;;  %577 = vmatpush.msra.mxu2 %v485_v28  ;;  %597 = vmatpush.msra.mxu3 %v486_v29  ;;  %v104_v1 = vsel %vm102_vm1, %v876_v6, %v99_v55  ;;  %v1087_v6 = vld [vmem:[%s1176_s2] sm:$0xf]  ;;  %v427_v29 = vld.sshfl [vmem:[#allocation1 + $0x28] sm:$0xff pattern:$0x75316420] }
  0xd6   :  { %v315_v33 = vpop.permute.xlu0 %314  ;;  %v157_v7 = vmul.f32 %v901_v16, %v151_v2  ;;  %v158_v34 = vmul.f32 %v911_v22, %v148_v31  ;;  %v114_v48 = vmul.f32 %v892_v13, %v104_v1  ;;  %v271_v41 = vpop.permute.xlu2 %270  ;;  %669 = vmatmul.msk.f32.vlgmr.msra.gmra.mxu0 %vm502_vm9, %v1087_v6  ;;  %671 = vmatmul.msk.f32.vlgmr.msra.gmra.mxu1 %vm502_vm9, %v1087_v6 }
  0xd8   :  { %v479_v35 = vsel %vm470_vm5, %v157_v7, %v407_v30  ;;  %v480_v36 = vsel %vm470_vm5, %v158_v34, %v408_v32  ;;  %v390_v50 = vrot.slane %v114_v48, 4 }
  0xd9   :  { %578 = vmatpush.msra.mxu2 %v479_v35  ;;  %598 = vmatpush.msra.mxu3 %v480_v36 }
  0xdc   :  { %v321_v40 = vpop.permute.xlu1 %320 }
  0xdd   :  { %v325_v57 = vsel %vm322_vm4, %v315_v33, %v321_v40  ;;  %v328_v63 = vsel %vm322_vm4, %v321_v40, %v315_v33 }
  0xde   :  { %v365_v60 = vpop.permute.xlu0 %364  ;;  %v335_v59 = vmul.f32 %v915_v24, %v325_v57  ;;  %v336_v9 = vmul.f32 %v917_v25, %v328_v63  ;;  %v189_v20 = vpop.permute.xlu2 %188 }
  0xdf   :  { %v369_v42 = vsel %vm366_vm7, %v359_v19, %v365_v60  ;;  %v372_v37 = vsel %vm366_vm7, %v365_v60, %v359_v19 }
  0xe0   :  { %v379_v47 = vmul.f32 %v957_v44, %v369_v42  ;;  %v380_v51 = vmul.f32 %v962_v45, %v372_v37  ;;  %v462_v24 = vrot.slane %v335_v59, 4  ;;  %v463_v26 = vrot.slane %v336_v9, 4 }
  0xe2   :  { %677 = vmatpush.msk.msrb.mxu0 %vm470_vm5, %v379_v47  ;;  %679 = vmatpush.msk.msrb.mxu1 %vm470_vm5, %v380_v51 }
  0xe4   :  { %v47_v46 = vpop.permute.xlu1 %46 }
  0xe5   :  { %v60_v44 = vsel %vm58_vm8, %v47_v46, %v53_v39  ;;  %v63_v45 = vsel %vm58_vm8, %v53_v39, %v47_v46 }
  0xe6   :  { %v227_v54 = vpop.permute.xlu0 %226  ;;  %v69_v55 = vmul.f32 %v975_v4, %v63_v45  ;;  %v70_v56 = vmul.f32 %v977_v5, %v60_v44  ;;  %v139_v36 = vpop.permute.xlu2 %138 }
  0xe8   :  { %v473_v3 = vsel %vm470_vm5, %v69_v55, %v389_v49  ;;  %v474_v21 = vsel %vm470_vm5, %v70_v56, %v390_v50 }
  0xe9   :  { %579 = vmatpush.msra.mxu2 %v473_v3  ;;  %599 = vmatpush.msra.mxu3 %v474_v21 }
  0xea   :  { %675 = vmatmul.msk.f32.vlgmr.msra.gmra.mxu3 %vm502_vm9, %v1087_v6  ;;  %673 = vmatmul.msk.f32.vlgmr.msra.gmra.mxu2 %vm502_vm9, %v1087_v6 }
  0xec   :  { %v233_v18 = vpop.permute.xlu1 %232 }
  0xed   :  { %v237_v19 = vsel %vm234_vm0, %v227_v54, %v233_v18  ;;  %v240_v23 = vsel %vm234_vm0, %v233_v18, %v227_v54 }
  0xee   :  { %v277_v10 = vpop.permute.xlu0 %276  ;;  %v247_v52 = vmul.f32 %v896_v14, %v237_v19  ;;  %v248_v61 = vmul.f32 %v898_v15, %v240_v23  ;;  %v55_v45 = vpop.permute.xlu2 %54 }
  0xef   :  { %v281_v25 = vsel %vm278_vm6, %v271_v41, %v277_v10  ;;  %v284_v28 = vsel %vm278_vm6, %v277_v10, %v271_v41 }
  0xf0   :  { %v291_v31 = vmul.f32 %v941_v38, %v281_v25  ;;  %v292_v2 = vmul.f32 %v951_v43, %v284_v28  ;;  %v444_v30 = vrot.slane %v247_v52, 4  ;;  %v445_v32 = vrot.slane %v248_v61, 4 }
  0xf2   :  { %v493_v14 = vsel %vm470_vm5, %v291_v31, %v462_v24  ;;  %v494_v15 = vsel %vm470_vm5, %v292_v2, %v463_v26  ;;  %v487_v33 = vsel %vm470_vm5, %v426_v11, %v444_v30  ;;  %v488_v7 = vsel %vm470_vm5, %v427_v29, %v445_v32 }
  0xf3   :  { %629 = vmatpush.msrb.mxu0 %v493_v14  ;;  %649 = vmatpush.msrb.mxu1 %v494_v15 }
  0xf4   :  { %v183_v34 = vpop.permute.xlu1 %182 }
  0xf5   :  { %630 = vmatpush.msrb.mxu0 %v487_v33  ;;  %650 = vmatpush.msrb.mxu1 %v488_v7  ;;  %v193_v38 = vsel %vm190_vm2, %v183_v34, %v189_v20  ;;  %v196_v43 = vsel %vm190_vm2, %v189_v20, %v183_v34 }
  0xf6   :  { %v95_v35 = vpop.permute.xlu0 %94  ;;  %v203_v39 = vmul.f32 %v903_v17, %v196_v43  ;;  %v204_v40 = vmul.f32 %v921_v27, %v193_v38 }
  0xf8   :  { %v409_v51 = vrot.slane %v203_v39, 4  ;;  %v410_v53 = vrot.slane %v204_v40, 4 }
  0xfc   :  { %v101_v60 = vpop.permute.xlu1 %100 }
  0xfd   :  { %v105_v37 = vsel %vm102_vm1, %v95_v35, %v101_v60  ;;  %v108_v47 = vsel %vm102_vm1, %v101_v60, %v95_v35 }
  0xfe   :  { %v145_v1 = vpop.permute.xlu0 %144  ;;  %v115_v48 = vmul.f32 %v890_v12, %v108_v47  ;;  %v116_v46 = vmul.f32 %v892_v13, %v105_v37 }
  0xff   :  { %v149_v62 = vsel %vm146_vm3, %v139_v36, %v145_v1  ;;  %v152_v42 = vsel %vm146_vm3, %v145_v1, %v139_v36 }
 0x100   :  { %v159_v17 = vmul.f32 %v901_v16, %v152_v42  ;;  %v160_v27 = vmul.f32 %v911_v22, %v149_v62  ;;  %v391_v54 = vrot.slane %v115_v48, 4  ;;  %v392_v22 = vrot.slane %v116_v46, 4 }
 0x102   :  { %v481_v41 = vsel %vm470_vm5, %v159_v17, %v409_v51  ;;  %v482_v44 = vsel %vm470_vm5, %v160_v27, %v410_v53 }
 0x103   :  { %631 = vmatpush.msrb.mxu0 %v481_v41  ;;  %651 = vmatpush.msrb.mxu1 %v482_v44 }
 0x104   :  { %v49_v49 = vpop.permute.xlu1 %48 }
 0x105   :  { %v61_v50 = vsel %vm58_vm8, %v49_v49, %v55_v45  ;;  %v64_v16 = vsel %vm58_vm8, %v55_v45, %v49_v49 }
 0x106   :  { %v71_v12 = vmul.f32 %v975_v4, %v64_v16  ;;  %v72_v13 = vmul.f32 %v977_v5, %v61_v50 }
 0x108   :  { %v475_v55 = vsel %vm470_vm5, %v71_v12, %v391_v54  ;;  %v476_v56 = vsel %vm470_vm5, %v72_v13, %v392_v22 }
 0x109   :  { %632 = vmatpush.msrb.mxu0 %v475_v55  ;;  %652 = vmatpush.msrb.mxu1 %v476_v56 }
 0x10a   :  { %678 = vmatmul.msk.f32.vlgmr.msrb.gmra.mxu0 %vm502_vm9, %v1087_v6  ;;  %680 = vmatmul.msk.f32.vlgmr.msrb.gmra.mxu1 %vm502_vm9, %v1087_v6 }
 0x144   :  { %v500_v8 = vpop.permute.xlu0 %499 }
 0x153   :  { %v529_v57 = vpop.f32.mrf.mxu0  ;;  %v549_v63 = vpop.f32.mrf.mxu1 }
 0x154   :  { %v530_v3 = vadd.f32 %v529_v57, %v500_v8  ;;  %v550_v21 = vadd.f32 %v549_v63, %v500_v8 }
 0x156   :  { %v554_v4 = vrot.slane %v550_v21, 4 }
 0x158   :  { %v555_v5 = vsel %vm470_vm5, %v530_v3, %v554_v4 }
 0x159   :  { %557 = vst [vmem:[%s1178_s4] sm:$0xff] %v555_v5 }
 0x16d   :  { %v601_v58 = vpop.f32.mrf.mxu3  ;;  %v581_v59 = vpop.f32.mrf.mxu2 }
 0x16e   :  { %v602_v9 = vadd.f32 %v601_v58, %v500_v8  ;;  %v582_v0 = vadd.f32 %v581_v59, %v500_v8 }
 0x170   :  { %v606_v18 = vrot.slane %v602_v9, 4 }
 0x172   :  { %v607_v19 = vsel %vm470_vm5, %v582_v0, %v606_v18 }
 0x173   :  { %676 = vst [vmem:[%s1178_s4 + $0x8] sm:$0xff] %v607_v19 }
 0x187   :  { %v634_v6 = vpop.f32.mrf.mxu0  ;;  %v654_v23 = vpop.f32.mrf.mxu1 }
 0x188   :  { %v655_v10 = vadd.f32 %v654_v23, %v500_v8  ;;  %v635_v52 = vadd.f32 %v634_v6, %v500_v8 }
 0x18a   :  { %v659_v61 = vrot.slane %v655_v10, 4 }
 0x18c   :  { %v660_v11 = vsel %vm470_vm5, %v635_v52, %v659_v61 }
 0x18d   :  { %681 = vst [vmem:[%s1178_s4 + $0x10] sm:$0xff] %v660_v11 }

// kernel: multi_block_lstm_forward.25
= control target key start
LH: loop header
LB: loop body
LE: loop exit
PB: predicated region body
PF: predicated region fallthrough
CT: control target
= control target key end

     0   :  { %s313_s17 = smov 112   ;;  %s314_s18 = smov 111   ;;  %v35_v9 = vlaneseq  ;;  %vm189_vm8 = vcmask 588800   ;;  %vm236_vm9 = vcmask 1040384   ;;  %s557_s1 = inlined_call_operand.vmem [shape: f32[2,8,256], index: 1, kind: input, shape index: {}]   ;;  %s558_s0 = inlined_call_operand.vmem [shape: f32[9,256], index: 0, kind: input, shape index: {}]   ;;  %s559_s3 = inlined_call_operand.<no memory space> [shape: f32[1,1], index: 3, kind: input, shape index: {}]   ;;  %s560_s2 = inlined_call_operand.vmem [shape: f32[1,72], index: 2, kind: input, shape index: {}]   ;;  %s561_s4 = inlined_call_operand.vmem [shape: f32[2,1,256], index: 4, kind: output, shape index: {}]  }
   0x1   :  { %v350_v0 = vld [vmem:[%s557_s1 + $0x10] sm:$0xff]  ;;  %s315_s19 = smov 113   ;;  %v358_v1 = vld [vmem:[%s557_s1 + $0x18] sm:$0xff]  ;;  %s316_s22 = smov 127   ;;  %v368_v2 = vld [vmem:[%s557_s1] sm:$0xff] }
   0x2   :  { %145 = vrot.lane.b32.xlu1 %v350_v0, %s313_s17  ;;  %164 = vrot.lane.b32.xlu0 %v350_v0, %s314_s18  ;;  %v374_v3 = vld [vmem:[%s557_s1 + $0x8] sm:$0xff]  ;;  %s317_s27 = smov 1   ;;  %s318_s28 = smov 15   ;;  %v400_v10 = vand.u32 127, %v35_v9  ;;  %v311_v11 = vld [vmem:[%s558_s0 + $0x10] ss:$0 sm:$0xff] }
   0x3   :  { %126 = vrot.lane.b32.xlu2 %v350_v0, %s315_s19  ;;  %s319_s1 = smov 16   ;;  %s320_s29 = smov 17   ;;  %v312_v12 = vld [vmem:[%s558_s0 + $0x18] ss:$0 sm:$0xff]  ;;  %v413_v13 = vld [vmem:[%s558_s0] sm:$0xff]  ;;  %v418_v14 = vld [vmem:[%s558_s0 + $0x8] sm:$0xff] }
   0x4   :  { %vm151_vm0 = vcmp.lt.s32.totalorder %v400_v10, 112  ;;  %vm170_vm1 = vcmp.lt.s32.totalorder %v400_v10, 111  ;;  %vm132_vm2 = vcmp.lt.s32.totalorder %v400_v10, 113  ;;  %v156_v17 = vperm.slane %v413_v13, 7 }
   0x5   :  { %v157_v18 = vperm.slane %v418_v14, 7  ;;  %v137_v26 = vperm.slane %v413_v13, 6  ;;  %v138_v27 = vperm.slane %v418_v14, 6  ;;  %vm113_vm3 = vcmp.lt.s32.totalorder %v400_v10, 127 }
   0x6   :  { %v118_v34 = vperm.slane %v413_v13, 5  ;;  %v119_v35 = vperm.slane %v418_v14, 5  ;;  %vm94_vm4 = vcmp.lt.s32.totalorder %v400_v10, 1  ;;  %v99_v54 = vperm.slane %v413_v13, 3 }
   0x7   :  { %v100_v55 = vperm.slane %v418_v14, 3  ;;  %vm75_vm5 = vcmp.lt.s32.totalorder %v400_v10, 15  ;;  %v80_v62 = vperm.slane %v413_v13, 2  ;;  %v81_v63 = vperm.slane %v418_v14, 2 }
   0x8   :  { %vm56_vm6 = vcmp.lt.s32.totalorder %v400_v10, 16  ;;  %vm37_vm7 = vcmp.lt.s32.totalorder %v400_v10, 17  ;;  %vm241_vm10 = vcmp.lt.s32.totalorder %v35_v9, 256 }
   0xa   :  { %149 = vrot.lane.b32.xlu1 %v358_v1, %s313_s17  ;;  %168 = vrot.lane.b32.xlu0 %v358_v1, %s314_s18 }
   0xb   :  { %130 = vrot.lane.b32.xlu2 %v358_v1, %s315_s19 }
  0x12   :  { %111 = vrot.lane.b32.xlu1 %v358_v1, %s316_s22  ;;  %107 = vrot.lane.b32.xlu0 %v350_v0, %s316_s22 }
  0x13   :  { %162 = vrot.lane.b32.xlu2 %v368_v2, %s314_s18 }
  0x1a   :  { %166 = vrot.lane.b32.xlu0 %v374_v3, %s314_s18  ;;  %143 = vrot.lane.b32.xlu1 %v368_v2, %s313_s17 }
  0x1b   :  { %147 = vrot.lane.b32.xlu2 %v374_v3, %s313_s17 }
  0x22   :  { %88 = vrot.lane.b32.xlu0 %v350_v0, %s317_s27  ;;  %92 = vrot.lane.b32.xlu1 %v358_v1, %s317_s27 }
  0x23   :  { %124 = vrot.lane.b32.xlu2 %v368_v2, %s315_s19 }
  0x2a   :  { %128 = vrot.lane.b32.xlu0 %v374_v3, %s315_s19  ;;  %69 = vrot.lane.b32.xlu1 %v350_v0, %s318_s28 }
  0x2b   :  { %73 = vrot.lane.b32.xlu2 %v358_v1, %s318_s28 }
  0x32   :  { %105 = vrot.lane.b32.xlu0 %v368_v2, %s316_s22  ;;  %109 = vrot.lane.b32.xlu1 %v374_v3, %s316_s22 }
  0x33   :  { %50 = vrot.lane.b32.xlu2 %v350_v0, %s319_s1 }
  0x3a   :  { %54 = vrot.lane.b32.xlu0 %v358_v1, %s319_s1  ;;  %29 = vrot.lane.b32.xlu1 %v350_v0, %s320_s29 }
  0x3b   :  { %33 = vrot.lane.b32.xlu2 %v358_v1, %s320_s29 }
  0x42   :  { %86 = vrot.lane.b32.xlu0 %v368_v2, %s317_s27  ;;  %90 = vrot.lane.b32.xlu1 %v374_v3, %s317_s27 }
  0x43   :  { %67 = vrot.lane.b32.xlu2 %v368_v2, %s318_s28 }
  0x4a   :  { %71 = vrot.lane.b32.xlu0 %v374_v3, %s318_s28  ;;  %48 = vrot.lane.b32.xlu1 %v368_v2, %s319_s1 }
  0x4b   :  { %52 = vrot.lane.b32.xlu2 %v374_v3, %s319_s1 }
  0x52   :  { %27 = vrot.lane.b32.xlu0 %v368_v2, %s320_s29  ;;  %31 = vrot.lane.b32.xlu1 %v374_v3, %s320_s29 }
  0x5d   :  { %v127_v4 = vpop.permute.xlu2 %126 }
  0x65   :  { %v131_v5 = vpop.permute.xlu2 %130 }
  0x66   :  { %v134_v28 = vsel %vm132_vm2, %v127_v4, %v131_v5  ;;  %v136_v29 = vsel %vm132_vm2, %v131_v5, %v127_v4 }
  0x67   :  { %v141_v32 = vmul.f32 %v137_v26, %v134_v28  ;;  %v142_v33 = vmul.f32 %v138_v27, %v136_v29 }
  0x6d   :  { %v163_v6 = vpop.permute.xlu2 %162 }
  0x74   :  { %v146_v7 = vpop.permute.xlu1 %145  ;;  %v165_v8 = vpop.permute.xlu0 %164 }
  0x75   :  { %v148_v23 = vpop.permute.xlu2 %147 }
  0x7c   :  { %v150_v15 = vpop.permute.xlu1 %149  ;;  %v169_v16 = vpop.permute.xlu0 %168 }
  0x7d   :  { %v153_v19 = vsel %vm151_vm0, %v146_v7, %v150_v15  ;;  %v155_v20 = vsel %vm151_vm0, %v150_v15, %v146_v7  ;;  %v172_v21 = vsel %vm170_vm1, %v165_v8, %v169_v16  ;;  %v174_v22 = vsel %vm170_vm1, %v169_v16, %v165_v8  ;;  %v125_v42 = vpop.permute.xlu2 %124 }
  0x7e   :  { %v179_v24 = vmul.f32 %v311_v11, %v172_v21  ;;  %v180_v25 = vmul.f32 %v312_v12, %v174_v22  ;;  %v160_v30 = vmul.f32 %v156_v17, %v153_v19  ;;  %v161_v31 = vmul.f32 %v157_v18, %v155_v20 }
  0x80   :  { %251 = vmatpush.msra.mxu2 %v179_v24  ;;  %271 = vmatpush.msra.mxu3 %v180_v25  ;;  %v9_v24 = vstv %s559_s3  ;;  %v61_v25 = vperm.slane %v413_v13, 1 }
  0x81   :  { %10 = vst [vmem:[#allocation2] sm:$0x1] %v9_v24 }
  0x82   :  { %252 = vmatpush.msra.mxu2 %v160_v30  ;;  %272 = vmatpush.msra.mxu3 %v161_v31  ;;  %v42_v30 = vperm.slane %v413_v13, 0  ;;  %v43_v31 = vperm.slane %v418_v14, 0 }
  0x84   :  { %v112_v36 = vpop.permute.xlu1 %111  ;;  %v108_v37 = vpop.permute.xlu0 %107  ;;  %253 = vmatpush.msra.mxu2 %v141_v32  ;;  %273 = vmatpush.msra.mxu3 %v142_v33 }
  0x85   :  { %v115_v38 = vsel %vm113_vm3, %v108_v37, %v112_v36  ;;  %v117_v39 = vsel %vm113_vm3, %v112_v36, %v108_v37  ;;  %v74_v53 = vpop.permute.xlu2 %73 }
  0x86   :  { %v122_v40 = vmul.f32 %v118_v34, %v115_v38  ;;  %v123_v41 = vmul.f32 %v119_v35, %v117_v39  ;;  %v181_v39 = vld [vmem:[%s560_s2] sm:$0x1] }
  0x88   :  { %254 = vmatpush.msra.mxu2 %v122_v40  ;;  %274 = vmatpush.msra.mxu3 %v123_v41  ;;  %v182_v40 = vld [vmem:[#allocation2] sm:$0x1] }
  0x8a   :  { %255 = vmatpush.msra.mxu2 %v350_v0  ;;  %275 = vmatpush.msra.mxu3 %v358_v1 }
  0x8c   :  { %v167_v43 = vpop.permute.xlu0 %166  ;;  %v144_v44 = vpop.permute.xlu1 %143 }
  0x8d   :  { %v152_v45 = vsel %vm151_vm0, %v144_v44, %v148_v23  ;;  %v154_v46 = vsel %vm151_vm0, %v148_v23, %v144_v44  ;;  %v171_v47 = vsel %vm170_vm1, %v163_v6, %v167_v43  ;;  %v173_v48 = vsel %vm170_vm1, %v167_v43, %v163_v6  ;;  %v51_v0 = vpop.permute.xlu2 %50 }
  0x8e   :  { %v177_v49 = vmul.f32 %v311_v11, %v171_v47  ;;  %v178_v50 = vmul.f32 %v312_v12, %v173_v48  ;;  %v158_v51 = vmul.f32 %v156_v17, %v152_v45  ;;  %v159_v52 = vmul.f32 %v157_v18, %v154_v46 }
  0x90   :  { %200 = vmatpush.msra.mxu0 %v177_v49  ;;  %220 = vmatpush.msra.mxu1 %v178_v50 }
  0x92   :  { %201 = vmatpush.msra.mxu0 %v158_v51  ;;  %221 = vmatpush.msra.mxu1 %v159_v52 }
  0x94   :  { %v89_v56 = vpop.permute.xlu0 %88  ;;  %v93_v57 = vpop.permute.xlu1 %92 }
  0x95   :  { %v96_v58 = vsel %vm94_vm4, %v89_v56, %v93_v57  ;;  %v98_v59 = vsel %vm94_vm4, %v93_v57, %v89_v56  ;;  %v34_v23 = vpop.permute.xlu2 %33 }
  0x96   :  { %v103_v60 = vmul.f32 %v99_v54, %v98_v59  ;;  %v104_v61 = vmul.f32 %v100_v55, %v96_v58 }
  0x98   :  { %256 = vmatpush.msra.mxu2 %v103_v60  ;;  %276 = vmatpush.msra.mxu3 %v104_v61 }
  0x9c   :  { %v129_v1 = vpop.permute.xlu0 %128  ;;  %v70_v4 = vpop.permute.xlu1 %69 }
  0x9d   :  { %v133_v5 = vsel %vm132_vm2, %v125_v42, %v129_v1  ;;  %v135_v6 = vsel %vm132_vm2, %v129_v1, %v125_v42  ;;  %v77_v7 = vsel %vm75_vm5, %v70_v4, %v74_v53  ;;  %v79_v8 = vsel %vm75_vm5, %v74_v53, %v70_v4  ;;  %v68_v38 = vpop.permute.xlu2 %67 }
  0x9e   :  { %v139_v11 = vmul.f32 %v137_v26, %v133_v5  ;;  %v140_v12 = vmul.f32 %v138_v27, %v135_v6  ;;  %v84_v15 = vmul.f32 %v80_v62, %v79_v8  ;;  %v85_v16 = vmul.f32 %v81_v63, %v77_v7 }
  0x9f   :  { %v62_v26 = vperm.slane %v418_v14, 1  ;;  %v321_v27 = vmov 0  }
  0xa0   :  { %202 = vmatpush.msra.mxu0 %v139_v11  ;;  %222 = vmatpush.msra.mxu1 %v140_v12 }
  0xa1   :  { %257 = vmatpush.msra.mxu2 %v84_v15  ;;  %277 = vmatpush.msra.mxu3 %v85_v16 }
  0xa2   :  { %309 = vset.pattern.permute.xlu2 %v321_v27  ;;  %310 = vset.pattern.permute.xlu0 %v321_v27 }
  0xa3   :  { %185 = vperm.xlu2 %309, %v182_v40  }
  0xa4   :  { %v106_v17 = vpop.permute.xlu0 %105  ;;  %v110_v18 = vpop.permute.xlu1 %109 }
  0xa5   :  { %v114_v19 = vsel %vm113_vm3, %v106_v17, %v110_v18  ;;  %v116_v20 = vsel %vm113_vm3, %v110_v18, %v106_v17  ;;  %v53_v47 = vpop.permute.xlu2 %52 }
  0xa6   :  { %v120_v21 = vmul.f32 %v118_v34, %v114_v19  ;;  %v121_v22 = vmul.f32 %v119_v35, %v116_v20 }
  0xa8   :  { %203 = vmatpush.msra.mxu0 %v120_v21  ;;  %223 = vmatpush.msra.mxu1 %v121_v22 }
  0xaa   :  { %204 = vmatpush.msra.mxu0 %v368_v2  ;;  %224 = vmatpush.msra.mxu1 %v374_v3 }
  0xac   :  { %v55_v28 = vpop.permute.xlu0 %54  ;;  %v30_v29 = vpop.permute.xlu1 %29 }
  0xad   :  { %v58_v32 = vsel %vm56_vm6, %v51_v0, %v55_v28  ;;  %v60_v33 = vsel %vm56_vm6, %v55_v28, %v51_v0  ;;  %v39_v2 = vsel %vm37_vm7, %v30_v29, %v34_v23  ;;  %v41_v3 = vsel %vm37_vm7, %v34_v23, %v30_v29 }
  0xae   :  { %v65_v34 = vmul.f32 %v61_v25, %v60_v33  ;;  %v66_v35 = vmul.f32 %v62_v26, %v58_v32  ;;  %v46_v36 = vmul.f32 %v42_v30, %v41_v3  ;;  %v47_v37 = vmul.f32 %v43_v31, %v39_v2 }
  0xb0   :  { %258 = vmatpush.msra.mxu2 %v65_v34  ;;  %278 = vmatpush.msra.mxu3 %v66_v35 }
  0xb2   :  { %259 = vmatpush.msra.mxu2 %v46_v36  ;;  %279 = vmatpush.msra.mxu3 %v47_v37 }
  0xb3   :  { %298 = vmatmul.msk.f32.vlgmr.msra.gmra.mxu3 %vm189_vm8, %v181_v39  ;;  %297 = vmatmul.msk.f32.vlgmr.msra.gmra.mxu2 %vm189_vm8, %v181_v39 }
  0xb4   :  { %v87_v41 = vpop.permute.xlu0 %86  ;;  %v91_v42 = vpop.permute.xlu1 %90 }
  0xb5   :  { %v95_v43 = vsel %vm94_vm4, %v87_v41, %v91_v42  ;;  %v97_v44 = vsel %vm94_vm4, %v91_v42, %v87_v41 }
  0xb6   :  { %v101_v45 = vmul.f32 %v99_v54, %v97_v44  ;;  %v102_v46 = vmul.f32 %v100_v55, %v95_v43 }
  0xb8   :  { %205 = vmatpush.msra.mxu0 %v101_v45  ;;  %225 = vmatpush.msra.mxu1 %v102_v46 }
  0xbc   :  { %v72_v48 = vpop.permute.xlu0 %71  ;;  %v49_v49 = vpop.permute.xlu1 %48 }
  0xbd   :  { %v76_v50 = vsel %vm75_vm5, %v68_v38, %v72_v48  ;;  %v78_v51 = vsel %vm75_vm5, %v72_v48, %v68_v38  ;;  %v57_v52 = vsel %vm56_vm6, %v49_v49, %v53_v47  ;;  %v59_v53 = vsel %vm56_vm6, %v53_v47, %v49_v49 }
  0xbe   :  { %v82_v54 = vmul.f32 %v80_v62, %v78_v51  ;;  %v83_v55 = vmul.f32 %v81_v63, %v76_v50  ;;  %v63_v56 = vmul.f32 %v61_v25, %v59_v53  ;;  %v64_v57 = vmul.f32 %v62_v26, %v57_v52 }
  0xc0   :  { %206 = vmatpush.msra.mxu0 %v82_v54  ;;  %226 = vmatpush.msra.mxu1 %v83_v55 }
  0xc2   :  { %207 = vmatpush.msra.mxu0 %v63_v56  ;;  %227 = vmatpush.msra.mxu1 %v64_v57 }
  0xc4   :  { %v28_v58 = vpop.permute.xlu0 %27  ;;  %v32_v59 = vpop.permute.xlu1 %31 }
  0xc5   :  { %v38_v60 = vsel %vm37_vm7, %v28_v58, %v32_v59  ;;  %v40_v61 = vsel %vm37_vm7, %v32_v59, %v28_v58 }
  0xc6   :  { %v44_v0 = vmul.f32 %v42_v30, %v40_v61  ;;  %v45_v13 = vmul.f32 %v43_v31, %v38_v60 }
  0xc8   :  { %208 = vmatpush.msra.mxu0 %v44_v0  ;;  %228 = vmatpush.msra.mxu1 %v45_v13 }
  0xc9   :  { %295 = vmatmul.msk.f32.vlgmr.msra.gmra.mxu0 %vm189_vm8, %v181_v39  ;;  %296 = vmatmul.msk.f32.vlgmr.msra.gmra.mxu1 %vm189_vm8, %v181_v39 }
  0xfd   :  { %v186_v14 = vpop.permute.xlu2 %185 }
  0xfe   :  { %v188_v62 = vperm.slane %v186_v14, 0 }
 0x136   :  { %v281_v63 = vpop.f32.mrf.mxu3  ;;  %v261_v1 = vpop.f32.mrf.mxu2 }
 0x137   :  { %v282_v4 = vadd.f32 %v281_v63, %v188_v62  ;;  %v262_v5 = vadd.f32 %v261_v1, %v188_v62 }
 0x139   :  { %v286_v6 = vrot.slane %v282_v4, 7 }
 0x13b   :  { %v287_v10 = vsel %vm236_vm9, %v262_v5, %v286_v6 }
 0x13c   :  { %299 = vst.msk [vmem:[%s561_s4 + $0x2] sm:$0x3] %vm241_vm10, %v287_v10 }
 0x146   :  { %v210_v7 = vpop.f32.mrf.mxu0  ;;  %v230_v8 = vpop.f32.mrf.mxu1 }
 0x147   :  { %v231_v11 = vadd.f32 %v230_v8, %v188_v62  ;;  %v211_v12 = vadd.f32 %v210_v7, %v188_v62 }
 0x149   :  { %v235_v15 = vrot.slane %v231_v11, 7 }
 0x14b   :  { %v237_v16 = vsel %vm236_vm9, %v211_v12, %v235_v15 }
 0x14c   :  { %243 = vst.msk [vmem:[%s561_s4] sm:$0x3] %vm241_vm10, %v237_v16 }

</bundles_post_ra>
